<compile_context>
chip_gen: v5e
topology: v5e:2x2
jax: 0.10.0
libtpu: 0.0.40
codegen_flags: <defaults>
</compile_context>

<pallas_src>
import jax
import jax.numpy as jnp
import numpy as np
from jax.experimental import pallas as pl
from jax.experimental.pallas import tpu as pltpu

_LANE = 128
_SUBLANE = 8
_ACC_ROWS = 256  # rows per f32 register accumulator chunk (<= 32 vregs at 128 lanes)


def _round_up(v, m):
    return (v + m - 1) // m * m


def _basic_block_v2_kernel(x_ref, w1_ref, w2_ref, s1_ref, b1_ref, s2_ref, b2_ref,
                           o_ref, pad1_ref, pad2_ref):
    # x_ref   : (1, H, W, C)     f32, one batch element, NHWC, C padded to 128*k
    # w1_ref  : (3, 3*C, P)      bf16 conv1 weight, dy x (dx-major, cin-minor) x cout
    # w2_ref  : (3, 3*P, P)      bf16 conv2 weight, same layout
    # s*/b*   : (1, C)/(1, P)    f32 folded BatchNorm scale / shift
    # o_ref   : (1, H, W, P)     f32
    # pad1_ref: (H+2, Wp, C)     bf16 scratch: zero halo + relu(bn1(x)), Wp = ceil8(W+2)
    # pad2_ref: (H+2, Wp, P)     bf16 scratch: zero halo + relu(bn2(conv1))
    _, H, W, C = x_ref.shape
    P = o_ref.shape[-1]
    Wp = pad1_ref.shape[1]
    Hc = min(H, max(1, _ACC_ROWS // W))   # rows per register-accumulator chunk

    # ---- zero the top/bottom halo rows (full-width, sublane/lane dense) ----
    # Re-done every grid step so it stays correct when the (parallel) batch
    # axis is sharded across TensorCores (per-core scratch is uninitialized).
    pad1_ref[0] = jnp.zeros((Wp, C), jnp.bfloat16)
    pad1_ref[H + 1] = jnp.zeros((Wp, C), jnp.bfloat16)
    pad2_ref[0] = jnp.zeros((Wp, P), jnp.bfloat16)
    pad2_ref[H + 1] = jnp.zeros((Wp, P), jnp.bfloat16)

    def store_padded_rows(pad_ref, h0, hc, rows_bf16):
        # One full-width, unmasked store per chunk: [0 | interior | 0 ... 0].
        # The left/right halo columns come along for free; no offset-by-1
        # masked interior store, no 1-wide edge-column writes.
        cin = pad_ref.shape[-1]
        pad_ref[1 + h0:1 + h0 + hc] = jnp.concatenate(
            [jnp.zeros((hc, 1, cin), jnp.bfloat16),
             rows_bf16,
             jnp.zeros((hc, Wp - W - 1, cin), jnp.bfloat16)], axis=1)

    # ---- pre-activation BN1 + ReLU: f32 math, cast once into bf16 scratch ----
    for h0 in range(0, H, Hc):
        hc = min(Hc, H - h0)
        xs = x_ref[0, h0:h0 + hc].reshape(hc * W, C)                      # f32
        h1 = jnp.maximum(xs * s1_ref[...] + b1_ref[...], 0.0)
        store_padded_rows(pad1_ref, h0, hc,
                          h1.astype(jnp.bfloat16).reshape(hc, W, C))

    def conv3x3(pad_ref, w_ref, consume):
        # 3x3 conv: per dy, the 3 dx taps are fused into ONE matmul with
        # K = 3*Cin (fills the 256-deep MXU on v6e/v7x).  The f32 result is
        # accumulated in registers (init = first tap) and handed to `consume`
        # once per spatial chunk -- no VMEM read-modify-write accumulation.
        cin = pad_ref.shape[-1]
        for h0 in range(0, H, Hc):
            hc = min(Hc, H - h0)
            acc = None
            for dy in range(3):
                rows = pad_ref[h0 + dy:h0 + dy + hc]                      # (hc, Wp, cin) bf16
                win = jnp.concatenate(
                    [rows[:, 0:W], rows[:, 1:W + 1], rows[:, 2:W + 2]],
                    axis=-1).reshape(hc * W, 3 * cin)                     # (hc*W, 3*cin) bf16
                part = jnp.dot(win, w_ref[dy],
                               preferred_element_type=jnp.float32)
                acc = part if acc is None else acc + part
            consume(h0, hc, acc)                                          # (hc*W, cout) f32

    # ---- conv1 -> BN2 + ReLU -> bf16 padded scratch (one store per chunk) ----
    def bn2_relu_store(h0, hc, acc):
        h2 = jnp.maximum(acc * s2_ref[...] + b2_ref[...], 0.0)
        store_padded_rows(pad2_ref, h0, hc,
                          h2.astype(jnp.bfloat16).reshape(hc, W, P))

    conv3x3(pad1_ref, w1_ref, bn2_relu_store)

    # ---- conv2 + identity residual (f32), lane-dense output stores ----
    def residual_store(h0, hc, acc):
        res = x_ref[0, h0:h0 + hc].reshape(hc * W, P)                     # f32 (C == P)
        o_ref[0, h0:h0 + hc] = (acc + res).reshape(hc, W, P).astype(o_ref.dtype)

    conv3x3(pad2_ref, w2_ref, residual_store)


def _fold_bn(gamma, beta, mean, var, eps=1e-5):
    scale = gamma / jnp.sqrt(var + eps)
    shift = beta - mean * scale
    return scale, shift


def basic_block_v2(x_nchw, params):
    """Pallas BasicBlockV2 forward. Input/output are NCHW like PyTorch."""
    s1, b1 = _fold_bn(params["bn1_gamma"], params["bn1_beta"],
                      params["bn1_mean"], params["bn1_var"])
    s2, b2 = _fold_bn(params["bn2_gamma"], params["bn2_beta"],
                      params["bn2_mean"], params["bn2_var"])

    x = jnp.transpose(x_nchw, (0, 2, 3, 1)).astype(jnp.float32)              # NCHW -> NHWC
    w1 = jnp.transpose(params["conv1_w"], (2, 3, 1, 0)).astype(jnp.float32)  # OIHW -> HWIO
    w2 = jnp.transpose(params["conv2_w"], (2, 3, 1, 0)).astype(jnp.float32)

    N, H, W, C = x.shape
    P = w1.shape[-1]
    assert C == P, "identity residual requires inplanes == planes (downsample=None)"

    # Lane-dense channel padding; padded channels stay exactly zero end-to-end
    # (zero x, zero weights, zero BN scale/shift) and are sliced off afterwards.
    Cp = _round_up(C, _LANE)
    Pp = _round_up(P, _LANE)
    Wp = _round_up(W + 2, _SUBLANE)     # sublane-aligned padded scratch width

    x_p = jnp.pad(x, ((0, 0), (0, 0), (0, 0), (0, Cp - C)))
    # HWIO -> (3, 3*Cin, Cout): K is dx-major / cin-minor, matching the
    # in-kernel concat([dx=0, dx=1, dx=2], axis=-1) window layout.
    w1_p = jnp.pad(w1, ((0, 0), (0, 0), (0, Cp - C), (0, Pp - P))) \
              .astype(jnp.bfloat16).reshape(3, 3 * Cp, Pp)
    w2_p = jnp.pad(w2, ((0, 0), (0, 0), (0, Pp - P), (0, Pp - P))) \
              .astype(jnp.bfloat16).reshape(3, 3 * Pp, Pp)
    s1_p = jnp.pad(s1.astype(jnp.float32), (0, Cp - C)).reshape(1, Cp)
    b1_p = jnp.pad(b1.astype(jnp.float32), (0, Cp - C)).reshape(1, Cp)
    s2_p = jnp.pad(s2.astype(jnp.float32), (0, Pp - P)).reshape(1, Pp)
    b2_p = jnp.pad(b2.astype(jnp.float32), (0, Pp - P)).reshape(1, Pp)

    out_nhwc = pl.pallas_call(
        _basic_block_v2_kernel,
        out_shape=jax.ShapeDtypeStruct((N, H, W, Pp), jnp.float32),
        grid=(N,),
        in_specs=[
            pl.BlockSpec((1, H, W, Cp), lambda n: (n, 0, 0, 0)),
            pl.BlockSpec((3, 3 * Cp, Pp), lambda n: (0, 0, 0)),
            pl.BlockSpec((3, 3 * Pp, Pp), lambda n: (0, 0, 0)),
            pl.BlockSpec((1, Cp), lambda n: (0, 0)),
            pl.BlockSpec((1, Cp), lambda n: (0, 0)),
            pl.BlockSpec((1, Pp), lambda n: (0, 0)),
            pl.BlockSpec((1, Pp), lambda n: (0, 0)),
        ],
        out_specs=pl.BlockSpec((1, H, W, Pp), lambda n: (n, 0, 0, 0)),
        scratch_shapes=[
            pltpu.VMEM((H + 2, Wp, Cp), jnp.bfloat16),   # relu(bn1(x)) + zero halo
            pltpu.VMEM((H + 2, Wp, Pp), jnp.bfloat16),   # relu(bn2(conv1)) + zero halo
        ],
        compiler_params=pltpu.CompilerParams(
            dimension_semantics=("parallel",)),   # megacore-shard batch on v7x
    )(x_p, w1_p, w2_p, s1_p, b1_p, s2_p, b2_p)

    return jnp.transpose(out_nhwc[..., :P], (0, 3, 1, 2))   # NHWC -> NCHW


def basic_block_v2_reference(x_nchw, params):
    """Pure-JAX reference (XLA conv) with the same bf16 matmul operands and
    f32 accumulation as the Pallas kernel, for a tight correctness check."""
    s1, b1 = _fold_bn(params["bn1_gamma"], params["bn1_beta"],
                      params["bn1_mean"], params["bn1_var"])
    s2, b2 = _fold_bn(params["bn2_gamma"], params["bn2_beta"],
                      params["bn2_mean"], params["bn2_var"])
    x = jnp.transpose(x_nchw, (0, 2, 3, 1)).astype(jnp.float32)
    w1 = jnp.transpose(params["conv1_w"], (2, 3, 1, 0)).astype(jnp.bfloat16)
    w2 = jnp.transpose(params["conv2_w"], (2, 3, 1, 0)).astype(jnp.bfloat16)
    dn = ("NHWC", "HWIO", "NHWC")

    h1 = jnp.maximum(x * s1.reshape(1, 1, 1, -1) + b1.reshape(1, 1, 1, -1), 0.0)
    c1 = jax.lax.conv_general_dilated(h1.astype(jnp.bfloat16), w1, (1, 1), "SAME",
                                      dimension_numbers=dn,
                                      preferred_element_type=jnp.float32)
    h2 = jnp.maximum(c1 * s2.reshape(1, 1, 1, -1) + b2.reshape(1, 1, 1, -1), 0.0)
    c2 = jax.lax.conv_general_dilated(h2.astype(jnp.bfloat16), w2, (1, 1), "SAME",
                                      dimension_numbers=dn,
                                      preferred_element_type=jnp.float32)
    out = c2 + x
    return jnp.transpose(out, (0, 3, 1, 2))


if __name__ == "__main__":
    key = jax.random.PRNGKey(0)
    kx, kw1, kw2, *kb = jax.random.split(key, 11)

    N, C, H, W = 2, 4, 16, 16
    planes = 4  # == inplanes -> identity residual (downsample=None, stride=1)

    x = jax.random.normal(kx, (N, C, H, W), jnp.float32)
    params = {
        "conv1_w": 0.1 * jax.random.normal(kw1, (planes, C, 3, 3), jnp.float32),
        "conv2_w": 0.1 * jax.random.normal(kw2, (planes, planes, 3, 3), jnp.float32),
        "bn1_gamma": jax.random.uniform(kb[0], (C,), jnp.float32, 0.5, 1.5),
        "bn1_beta": 0.1 * jax.random.normal(kb[1], (C,), jnp.float32),
        "bn1_mean": 0.1 * jax.random.normal(kb[2], (C,), jnp.float32),
        "bn1_var": jax.random.uniform(kb[3], (C,), jnp.float32, 0.5, 1.5),
        "bn2_gamma": jax.random.uniform(kb[4], (planes,), jnp.float32, 0.5, 1.5),
        "bn2_beta": 0.1 * jax.random.normal(kb[5], (planes,), jnp.float32),
        "bn2_mean": 0.1 * jax.random.normal(kb[6], (planes,), jnp.float32),
        "bn2_var": jax.random.uniform(kb[7], (planes,), jnp.float32, 0.5, 1.5),
    }

    out = jax.block_until_ready(basic_block_v2(x, params))
    ref = jax.block_until_ready(basic_block_v2_reference(x, params))
    np.testing.assert_allclose(np.asarray(out), np.asarray(ref), rtol=1e-3, atol=1e-3)
    print("KERNEL_OK")
</pallas_src>

<mosaic_0001>
module attributes {stable_mosaic.version = 11 : i64} {
  func.func @_basic_block_v2_kernel(%arg0: i32, %arg1: memref<1x16x16x128xf32, #tpu.memory_space<vmem>>, %arg2: memref<3x384x128xbf16, #tpu.memory_space<vmem>>, %arg3: memref<3x384x128xbf16, #tpu.memory_space<vmem>>, %arg4: memref<1x128xf32, #tpu.memory_space<vmem>>, %arg5: memref<1x128xf32, #tpu.memory_space<vmem>>, %arg6: memref<1x128xf32, #tpu.memory_space<vmem>>, %arg7: memref<1x128xf32, #tpu.memory_space<vmem>>, %arg8: memref<1x16x16x128xf32, #tpu.memory_space<vmem>>, %arg9: memref<18x24x128xbf16, #tpu.memory_space<vmem>>, %arg10: memref<18x24x128xbf16, #tpu.memory_space<vmem>>) attributes {dimension_semantics = [#tpu.dimension_semantics<parallel>], iteration_bounds = array<i64: 2>, scalar_prefetch = 0 : i64, scratch_operands = 2 : i64, tpu.core_type = #tpu.core_type<tc>, window_params = [{transform_indices = @transform_0, window_bounds = array<i64: 1, 16, 16, 128>}, {pipeline_mode = #tpu.pipeline_mode<synchronous>, transform_indices = @transform_1, window_bounds = array<i64: 3, 384, 128>}, {pipeline_mode = #tpu.pipeline_mode<synchronous>, transform_indices = @transform_2, window_bounds = array<i64: 3, 384, 128>}, {pipeline_mode = #tpu.pipeline_mode<synchronous>, transform_indices = @transform_3, window_bounds = array<i64: 1, 128>}, {pipeline_mode = #tpu.pipeline_mode<synchronous>, transform_indices = @transform_4, window_bounds = array<i64: 1, 128>}, {pipeline_mode = #tpu.pipeline_mode<synchronous>, transform_indices = @transform_5, window_bounds = array<i64: 1, 128>}, {pipeline_mode = #tpu.pipeline_mode<synchronous>, transform_indices = @transform_6, window_bounds = array<i64: 1, 128>}, {transform_indices = @transform_7, window_bounds = array<i64: 1, 16, 16, 128>}]} {
    %cst = arith.constant 0.000000e+00 : bf16
    %0 = vector.broadcast %cst : bf16 to vector<24x128xbf16>
    %c0 = arith.constant 0 : index
    %c0_0 = arith.constant 0 : index
    %c0_1 = arith.constant 0 : index
    %1 = vector.load %arg9[%c0, %c0_0, %c0_1] : memref<18x24x128xbf16, #tpu.memory_space<vmem>>, vector<1x24x128xbf16>
    %2 = vector.shape_cast %1 : vector<1x24x128xbf16> to vector<24x128xbf16>
    %3 = vector.shape_cast %0 : vector<24x128xbf16> to vector<1x24x128xbf16>
    tpu.vector_store %arg9[%c0, %c0_0, %c0_1], %3 {strides = array<i32>} : memref<18x24x128xbf16, #tpu.memory_space<vmem>>, vector<1x24x128xbf16>,
    %cst_2 = arith.constant 0.000000e+00 : bf16
    %4 = vector.broadcast %cst_2 : bf16 to vector<24x128xbf16>
    %c17 = arith.constant 17 : index
    %c0_3 = arith.constant 0 : index
    %c0_4 = arith.constant 0 : index
    %5 = vector.load %arg9[%c17, %c0_3, %c0_4] : memref<18x24x128xbf16, #tpu.memory_space<vmem>>, vector<1x24x128xbf16>
    %6 = vector.shape_cast %5 : vector<1x24x128xbf16> to vector<24x128xbf16>
    %7 = vector.shape_cast %4 : vector<24x128xbf16> to vector<1x24x128xbf16>
    tpu.vector_store %arg9[%c17, %c0_3, %c0_4], %7 {strides = array<i32>} : memref<18x24x128xbf16, #tpu.memory_space<vmem>>, vector<1x24x128xbf16>,
    %cst_5 = arith.constant 0.000000e+00 : bf16
    %8 = vector.broadcast %cst_5 : bf16 to vector<24x128xbf16>
    %c0_6 = arith.constant 0 : index
    %c0_7 = arith.constant 0 : index
    %c0_8 = arith.constant 0 : index
    %9 = vector.load %arg10[%c0_6, %c0_7, %c0_8] : memref<18x24x128xbf16, #tpu.memory_space<vmem>>, vector<1x24x128xbf16>
    %10 = vector.shape_cast %9 : vector<1x24x128xbf16> to vector<24x128xbf16>
    %11 = vector.shape_cast %8 : vector<24x128xbf16> to vector<1x24x128xbf16>
    tpu.vector_store %arg10[%c0_6, %c0_7, %c0_8], %11 {strides = array<i32>} : memref<18x24x128xbf16, #tpu.memory_space<vmem>>, vector<1x24x128xbf16>,
    %cst_9 = arith.constant 0.000000e+00 : bf16
    %12 = vector.broadcast %cst_9 : bf16 to vector<24x128xbf16>
    %c17_10 = arith.constant 17 : index
    %c0_11 = arith.constant 0 : index
    %c0_12 = arith.constant 0 : index
    %13 = vector.load %arg10[%c17_10, %c0_11, %c0_12] : memref<18x24x128xbf16, #tpu.memory_space<vmem>>, vector<1x24x128xbf16>
    %14 = vector.shape_cast %13 : vector<1x24x128xbf16> to vector<24x128xbf16>
    %15 = vector.shape_cast %12 : vector<24x128xbf16> to vector<1x24x128xbf16>
    tpu.vector_store %arg10[%c17_10, %c0_11, %c0_12], %15 {strides = array<i32>} : memref<18x24x128xbf16, #tpu.memory_space<vmem>>, vector<1x24x128xbf16>,
    %c0_13 = arith.constant 0 : index
    %c0_14 = arith.constant 0 : index
    %c0_15 = arith.constant 0 : index
    %c0_16 = arith.constant 0 : index
    %16 = vector.load %arg1[%c0_13, %c0_14, %c0_15, %c0_16] : memref<1x16x16x128xf32, #tpu.memory_space<vmem>>, vector<1x16x16x128xf32>
    %17 = vector.shape_cast %16 : vector<1x16x16x128xf32> to vector<16x16x128xf32>
    %18 = vector.shape_cast %17 : vector<16x16x128xf32> to vector<256x128xf32>
    %c0_17 = arith.constant 0 : index
    %c0_18 = arith.constant 0 : index
    %19 = vector.load %arg4[%c0_17, %c0_18] : memref<1x128xf32, #tpu.memory_space<vmem>>, vector<1x128xf32>
    %20 = vector.broadcast %19 : vector<1x128xf32> to vector<256x128xf32>
    %21 = arith.mulf %18, %20 : vector<256x128xf32>
    %c0_19 = arith.constant 0 : index
    %c0_20 = arith.constant 0 : index
    %22 = vector.load %arg5[%c0_19, %c0_20] : memref<1x128xf32, #tpu.memory_space<vmem>>, vector<1x128xf32>
    %23 = vector.broadcast %22 : vector<1x128xf32> to vector<256x128xf32>
    %24 = arith.addf %21, %23 : vector<256x128xf32>
    %cst_21 = arith.constant 0.000000e+00 : f32
    %25 = vector.broadcast %cst_21 : f32 to vector<256x128xf32>
    %26 = arith.maximumf %24, %25 : vector<256x128xf32>
    %27 = arith.truncf %26 : vector<256x128xf32> to vector<256x128xbf16>
    %28 = vector.shape_cast %27 : vector<256x128xbf16> to vector<16x16x128xbf16>
    %cst_22 = arith.constant 0.000000e+00 : bf16
    %29 = vector.broadcast %cst_22 : bf16 to vector<16x1x128xbf16>
    %cst_23 = arith.constant 0.000000e+00 : bf16
    %30 = vector.broadcast %cst_23 : bf16 to vector<16x7x128xbf16>
    %31 = tpu.concatenate %29, %28, %30 in 1 : vector<16x1x128xbf16>, vector<16x16x128xbf16>, vector<16x7x128xbf16> -> vector<16x24x128xbf16>
    %c1 = arith.constant 1 : index
    %c0_24 = arith.constant 0 : index
    %c0_25 = arith.constant 0 : index
    %32 = vector.load %arg9[%c1, %c0_24, %c0_25] : memref<18x24x128xbf16, #tpu.memory_space<vmem>>, vector<16x24x128xbf16>
    tpu.vector_store %arg9[%c1, %c0_24, %c0_25], %31 {strides = array<i32>} : memref<18x24x128xbf16, #tpu.memory_space<vmem>>, vector<16x24x128xbf16>,
    %c0_26 = arith.constant 0 : index
    %c0_27 = arith.constant 0 : index
    %c0_28 = arith.constant 0 : index
    %33 = vector.load %arg9[%c0_26, %c0_27, %c0_28] : memref<18x24x128xbf16, #tpu.memory_space<vmem>>, vector<16x24x128xbf16>
    %34 = vector.extract_strided_slice %33 {offsets = [0, 0, 0], sizes = [16, 16, 128], strides = [1, 1, 1]} : vector<16x24x128xbf16> to vector<16x16x128xbf16>
    %35 = vector.extract_strided_slice %33 {offsets = [0, 1, 0], sizes = [16, 16, 128], strides = [1, 1, 1]} : vector<16x24x128xbf16> to vector<16x16x128xbf16>
    %36 = vector.extract_strided_slice %33 {offsets = [0, 2, 0], sizes = [16, 16, 128], strides = [1, 1, 1]} : vector<16x24x128xbf16> to vector<16x16x128xbf16>
    %37 = tpu.concatenate %34, %35, %36 in 2 : vector<16x16x128xbf16>, vector<16x16x128xbf16>, vector<16x16x128xbf16> -> vector<16x16x384xbf16>
    %38 = vector.shape_cast %37 : vector<16x16x384xbf16> to vector<256x384xbf16>
    %c0_29 = arith.constant 0 : index
    %c0_30 = arith.constant 0 : index
    %c0_31 = arith.constant 0 : index
    %39 = vector.load %arg2[%c0_29, %c0_30, %c0_31] : memref<3x384x128xbf16, #tpu.memory_space<vmem>>, vector<1x384x128xbf16>
    %40 = vector.shape_cast %39 : vector<1x384x128xbf16> to vector<384x128xbf16>
    %cst_32 = arith.constant dense<0.000000e+00> : vector<256x128xf32>
    %41 = tpu.matmul %38, %40, %cst_32 {dimension_numbers = #tpu.dot_dimension_numbers<[1], [0], [0], [1], [0, 0, 1, 1], [], []>} : vector<256x384xbf16>, vector<384x128xbf16>, vector<256x128xf32> -> vector<256x128xf32>
    %c1_33 = arith.constant 1 : index
    %c0_34 = arith.constant 0 : index
    %c0_35 = arith.constant 0 : index
    %42 = vector.load %arg9[%c1_33, %c0_34, %c0_35] : memref<18x24x128xbf16, #tpu.memory_space<vmem>>, vector<16x24x128xbf16>
    %43 = vector.extract_strided_slice %42 {offsets = [0, 0, 0], sizes = [16, 16, 128], strides = [1, 1, 1]} : vector<16x24x128xbf16> to vector<16x16x128xbf16>
    %44 = vector.extract_strided_slice %42 {offsets = [0, 1, 0], sizes = [16, 16, 128], strides = [1, 1, 1]} : vector<16x24x128xbf16> to vector<16x16x128xbf16>
    %45 = vector.extract_strided_slice %42 {offsets = [0, 2, 0], sizes = [16, 16, 128], strides = [1, 1, 1]} : vector<16x24x128xbf16> to vector<16x16x128xbf16>
    %46 = tpu.concatenate %43, %44, %45 in 2 : vector<16x16x128xbf16>, vector<16x16x128xbf16>, vector<16x16x128xbf16> -> vector<16x16x384xbf16>
    %47 = vector.shape_cast %46 : vector<16x16x384xbf16> to vector<256x384xbf16>
    %c1_36 = arith.constant 1 : index
    %c0_37 = arith.constant 0 : index
    %c0_38 = arith.constant 0 : index
    %48 = vector.load %arg2[%c1_36, %c0_37, %c0_38] : memref<3x384x128xbf16, #tpu.memory_space<vmem>>, vector<1x384x128xbf16>
    %49 = vector.shape_cast %48 : vector<1x384x128xbf16> to vector<384x128xbf16>
    %cst_39 = arith.constant dense<0.000000e+00> : vector<256x128xf32>
    %50 = tpu.matmul %47, %49, %cst_39 {dimension_numbers = #tpu.dot_dimension_numbers<[1], [0], [0], [1], [0, 0, 1, 1], [], []>} : vector<256x384xbf16>, vector<384x128xbf16>, vector<256x128xf32> -> vector<256x128xf32>
    %51 = arith.addf %41, %50 : vector<256x128xf32>
    %c2 = arith.constant 2 : index
    %c0_40 = arith.constant 0 : index
    %c0_41 = arith.constant 0 : index
    %52 = vector.load %arg9[%c2, %c0_40, %c0_41] : memref<18x24x128xbf16, #tpu.memory_space<vmem>>, vector<16x24x128xbf16>
    %53 = vector.extract_strided_slice %52 {offsets = [0, 0, 0], sizes = [16, 16, 128], strides = [1, 1, 1]} : vector<16x24x128xbf16> to vector<16x16x128xbf16>
    %54 = vector.extract_strided_slice %52 {offsets = [0, 1, 0], sizes = [16, 16, 128], strides = [1, 1, 1]} : vector<16x24x128xbf16> to vector<16x16x128xbf16>
    %55 = vector.extract_strided_slice %52 {offsets = [0, 2, 0], sizes = [16, 16, 128], strides = [1, 1, 1]} : vector<16x24x128xbf16> to vector<16x16x128xbf16>
    %56 = tpu.concatenate %53, %54, %55 in 2 : vector<16x16x128xbf16>, vector<16x16x128xbf16>, vector<16x16x128xbf16> -> vector<16x16x384xbf16>
    %57 = vector.shape_cast %56 : vector<16x16x384xbf16> to vector<256x384xbf16>
    %c2_42 = arith.constant 2 : index
    %c0_43 = arith.constant 0 : index
    %c0_44 = arith.constant 0 : index
    %58 = vector.load %arg2[%c2_42, %c0_43, %c0_44] : memref<3x384x128xbf16, #tpu.memory_space<vmem>>, vector<1x384x128xbf16>
    %59 = vector.shape_cast %58 : vector<1x384x128xbf16> to vector<384x128xbf16>
    %cst_45 = arith.constant dense<0.000000e+00> : vector<256x128xf32>
    %60 = tpu.matmul %57, %59, %cst_45 {dimension_numbers = #tpu.dot_dimension_numbers<[1], [0], [0], [1], [0, 0, 1, 1], [], []>} : vector<256x384xbf16>, vector<384x128xbf16>, vector<256x128xf32> -> vector<256x128xf32>
    %61 = arith.addf %51, %60 : vector<256x128xf32>
    %c0_46 = arith.constant 0 : index
    %c0_47 = arith.constant 0 : index
    %62 = vector.load %arg6[%c0_46, %c0_47] : memref<1x128xf32, #tpu.memory_space<vmem>>, vector<1x128xf32>
    %63 = vector.broadcast %62 : vector<1x128xf32> to vector<256x128xf32>
    %64 = arith.mulf %61, %63 : vector<256x128xf32>
    %c0_48 = arith.constant 0 : index
    %c0_49 = arith.constant 0 : index
    %65 = vector.load %arg7[%c0_48, %c0_49] : memref<1x128xf32, #tpu.memory_space<vmem>>, vector<1x128xf32>
    %66 = vector.broadcast %65 : vector<1x128xf32> to vector<256x128xf32>
    %67 = arith.addf %64, %66 : vector<256x128xf32>
    %cst_50 = arith.constant 0.000000e+00 : f32
    %68 = vector.broadcast %cst_50 : f32 to vector<256x128xf32>
    %69 = arith.maximumf %67, %68 : vector<256x128xf32>
    %70 = arith.truncf %69 : vector<256x128xf32> to vector<256x128xbf16>
    %71 = vector.shape_cast %70 : vector<256x128xbf16> to vector<16x16x128xbf16>
    %cst_51 = arith.constant 0.000000e+00 : bf16
    %72 = vector.broadcast %cst_51 : bf16 to vector<16x1x128xbf16>
    %cst_52 = arith.constant 0.000000e+00 : bf16
    %73 = vector.broadcast %cst_52 : bf16 to vector<16x7x128xbf16>
    %74 = tpu.concatenate %72, %71, %73 in 1 : vector<16x1x128xbf16>, vector<16x16x128xbf16>, vector<16x7x128xbf16> -> vector<16x24x128xbf16>
    %c1_53 = arith.constant 1 : index
    %c0_54 = arith.constant 0 : index
    %c0_55 = arith.constant 0 : index
    %75 = vector.load %arg10[%c1_53, %c0_54, %c0_55] : memref<18x24x128xbf16, #tpu.memory_space<vmem>>, vector<16x24x128xbf16>
    tpu.vector_store %arg10[%c1_53, %c0_54, %c0_55], %74 {strides = array<i32>} : memref<18x24x128xbf16, #tpu.memory_space<vmem>>, vector<16x24x128xbf16>,
    %c0_56 = arith.constant 0 : index
    %c0_57 = arith.constant 0 : index
    %c0_58 = arith.constant 0 : index
    %76 = vector.load %arg10[%c0_56, %c0_57, %c0_58] : memref<18x24x128xbf16, #tpu.memory_space<vmem>>, vector<16x24x128xbf16>
    %77 = vector.extract_strided_slice %76 {offsets = [0, 0, 0], sizes = [16, 16, 128], strides = [1, 1, 1]} : vector<16x24x128xbf16> to vector<16x16x128xbf16>
    %78 = vector.extract_strided_slice %76 {offsets = [0, 1, 0], sizes = [16, 16, 128], strides = [1, 1, 1]} : vector<16x24x128xbf16> to vector<16x16x128xbf16>
    %79 = vector.extract_strided_slice %76 {offsets = [0, 2, 0], sizes = [16, 16, 128], strides = [1, 1, 1]} : vector<16x24x128xbf16> to vector<16x16x128xbf16>
    %80 = tpu.concatenate %77, %78, %79 in 2 : vector<16x16x128xbf16>, vector<16x16x128xbf16>, vector<16x16x128xbf16> -> vector<16x16x384xbf16>
    %81 = vector.shape_cast %80 : vector<16x16x384xbf16> to vector<256x384xbf16>
    %c0_59 = arith.constant 0 : index
    %c0_60 = arith.constant 0 : index
    %c0_61 = arith.constant 0 : index
    %82 = vector.load %arg3[%c0_59, %c0_60, %c0_61] : memref<3x384x128xbf16, #tpu.memory_space<vmem>>, vector<1x384x128xbf16>
    %83 = vector.shape_cast %82 : vector<1x384x128xbf16> to vector<384x128xbf16>
    %cst_62 = arith.constant dense<0.000000e+00> : vector<256x128xf32>
    %84 = tpu.matmul %81, %83, %cst_62 {dimension_numbers = #tpu.dot_dimension_numbers<[1], [0], [0], [1], [0, 0, 1, 1], [], []>} : vector<256x384xbf16>, vector<384x128xbf16>, vector<256x128xf32> -> vector<256x128xf32>
    %c1_63 = arith.constant 1 : index
    %c0_64 = arith.constant 0 : index
    %c0_65 = arith.constant 0 : index
    %85 = vector.load %arg10[%c1_63, %c0_64, %c0_65] : memref<18x24x128xbf16, #tpu.memory_space<vmem>>, vector<16x24x128xbf16>
    %86 = vector.extract_strided_slice %85 {offsets = [0, 0, 0], sizes = [16, 16, 128], strides = [1, 1, 1]} : vector<16x24x128xbf16> to vector<16x16x128xbf16>
    %87 = vector.extract_strided_slice %85 {offsets = [0, 1, 0], sizes = [16, 16, 128], strides = [1, 1, 1]} : vector<16x24x128xbf16> to vector<16x16x128xbf16>
    %88 = vector.extract_strided_slice %85 {offsets = [0, 2, 0], sizes = [16, 16, 128], strides = [1, 1, 1]} : vector<16x24x128xbf16> to vector<16x16x128xbf16>
    %89 = tpu.concatenate %86, %87, %88 in 2 : vector<16x16x128xbf16>, vector<16x16x128xbf16>, vector<16x16x128xbf16> -> vector<16x16x384xbf16>
    %90 = vector.shape_cast %89 : vector<16x16x384xbf16> to vector<256x384xbf16>
    %c1_66 = arith.constant 1 : index
    %c0_67 = arith.constant 0 : index
    %c0_68 = arith.constant 0 : index
    %91 = vector.load %arg3[%c1_66, %c0_67, %c0_68] : memref<3x384x128xbf16, #tpu.memory_space<vmem>>, vector<1x384x128xbf16>
    %92 = vector.shape_cast %91 : vector<1x384x128xbf16> to vector<384x128xbf16>
    %cst_69 = arith.constant dense<0.000000e+00> : vector<256x128xf32>
    %93 = tpu.matmul %90, %92, %cst_69 {dimension_numbers = #tpu.dot_dimension_numbers<[1], [0], [0], [1], [0, 0, 1, 1], [], []>} : vector<256x384xbf16>, vector<384x128xbf16>, vector<256x128xf32> -> vector<256x128xf32>
    %94 = arith.addf %84, %93 : vector<256x128xf32>
    %c2_70 = arith.constant 2 : index
    %c0_71 = arith.constant 0 : index
    %c0_72 = arith.constant 0 : index
    %95 = vector.load %arg10[%c2_70, %c0_71, %c0_72] : memref<18x24x128xbf16, #tpu.memory_space<vmem>>, vector<16x24x128xbf16>
    %96 = vector.extract_strided_slice %95 {offsets = [0, 0, 0], sizes = [16, 16, 128], strides = [1, 1, 1]} : vector<16x24x128xbf16> to vector<16x16x128xbf16>
    %97 = vector.extract_strided_slice %95 {offsets = [0, 1, 0], sizes = [16, 16, 128], strides = [1, 1, 1]} : vector<16x24x128xbf16> to vector<16x16x128xbf16>
    %98 = vector.extract_strided_slice %95 {offsets = [0, 2, 0], sizes = [16, 16, 128], strides = [1, 1, 1]} : vector<16x24x128xbf16> to vector<16x16x128xbf16>
    %99 = tpu.concatenate %96, %97, %98 in 2 : vector<16x16x128xbf16>, vector<16x16x128xbf16>, vector<16x16x128xbf16> -> vector<16x16x384xbf16>
    %100 = vector.shape_cast %99 : vector<16x16x384xbf16> to vector<256x384xbf16>
    %c2_73 = arith.constant 2 : index
    %c0_74 = arith.constant 0 : index
    %c0_75 = arith.constant 0 : index
    %101 = vector.load %arg3[%c2_73, %c0_74, %c0_75] : memref<3x384x128xbf16, #tpu.memory_space<vmem>>, vector<1x384x128xbf16>
    %102 = vector.shape_cast %101 : vector<1x384x128xbf16> to vector<384x128xbf16>
    %cst_76 = arith.constant dense<0.000000e+00> : vector<256x128xf32>
    %103 = tpu.matmul %100, %102, %cst_76 {dimension_numbers = #tpu.dot_dimension_numbers<[1], [0], [0], [1], [0, 0, 1, 1], [], []>} : vector<256x384xbf16>, vector<384x128xbf16>, vector<256x128xf32> -> vector<256x128xf32>
    %104 = arith.addf %94, %103 : vector<256x128xf32>
    %c0_77 = arith.constant 0 : index
    %c0_78 = arith.constant 0 : index
    %c0_79 = arith.constant 0 : index
    %c0_80 = arith.constant 0 : index
    %105 = vector.load %arg1[%c0_77, %c0_78, %c0_79, %c0_80] : memref<1x16x16x128xf32, #tpu.memory_space<vmem>>, vector<1x16x16x128xf32>
    %106 = vector.shape_cast %105 : vector<1x16x16x128xf32> to vector<16x16x128xf32>
    %107 = vector.shape_cast %106 : vector<16x16x128xf32> to vector<256x128xf32>
    %108 = arith.addf %104, %107 : vector<256x128xf32>
    %109 = vector.shape_cast %108 : vector<256x128xf32> to vector<16x16x128xf32>
    %c0_81 = arith.constant 0 : index
    %c0_82 = arith.constant 0 : index
    %c0_83 = arith.constant 0 : index
    %c0_84 = arith.constant 0 : index
    %110 = vector.load %arg8[%c0_81, %c0_82, %c0_83, %c0_84] : memref<1x16x16x128xf32, #tpu.memory_space<vmem>>, vector<1x16x16x128xf32>
    %111 = vector.shape_cast %110 : vector<1x16x16x128xf32> to vector<16x16x128xf32>
    %112 = vector.shape_cast %109 : vector<16x16x128xf32> to vector<1x16x16x128xf32>
    tpu.vector_store %arg8[%c0_81, %c0_82, %c0_83, %c0_84], %112 {strides = array<i32>} : memref<1x16x16x128xf32, #tpu.memory_space<vmem>>, vector<1x16x16x128xf32>,
    return
  }
  func.func @transform_0(%arg0: i32) -> (i32, i32, i32, i32) {
    %c0_i32 = arith.constant 0 : i32
    %c0_i32_0 = arith.constant 0 : i32
    %c0_i32_1 = arith.constant 0 : i32
    %c0_i32_2 = arith.constant 0 : i32
    return %arg0, %c0_i32, %c0_i32_0, %c0_i32_1 : i32, i32, i32, i32
  }
  func.func @transform_1(%arg0: i32) -> (i32, i32, i32) {
    %c0_i32 = arith.constant 0 : i32
    %c0_i32_0 = arith.constant 0 : i32
    %c0_i32_1 = arith.constant 0 : i32
    %c0_i32_2 = arith.constant 0 : i32
    return %c0_i32, %c0_i32_0, %c0_i32_1 : i32, i32, i32
  }
  func.func @transform_2(%arg0: i32) -> (i32, i32, i32) {
    %c0_i32 = arith.constant 0 : i32
    %c0_i32_0 = arith.constant 0 : i32
    %c0_i32_1 = arith.constant 0 : i32
    %c0_i32_2 = arith.constant 0 : i32
    return %c0_i32, %c0_i32_0, %c0_i32_1 : i32, i32, i32
  }
  func.func @transform_3(%arg0: i32) -> (i32, i32) {
    %c0_i32 = arith.constant 0 : i32
    %c0_i32_0 = arith.constant 0 : i32
    %c0_i32_1 = arith.constant 0 : i32
    return %c0_i32, %c0_i32_0 : i32, i32
  }
  func.func @transform_4(%arg0: i32) -> (i32, i32) {
    %c0_i32 = arith.constant 0 : i32
    %c0_i32_0 = arith.constant 0 : i32
    %c0_i32_1 = arith.constant 0 : i32
    return %c0_i32, %c0_i32_0 : i32, i32
  }
  func.func @transform_5(%arg0: i32) -> (i32, i32) {
    %c0_i32 = arith.constant 0 : i32
    %c0_i32_0 = arith.constant 0 : i32
    %c0_i32_1 = arith.constant 0 : i32
    return %c0_i32, %c0_i32_0 : i32, i32
  }
  func.func @transform_6(%arg0: i32) -> (i32, i32) {
    %c0_i32 = arith.constant 0 : i32
    %c0_i32_0 = arith.constant 0 : i32
    %c0_i32_1 = arith.constant 0 : i32
    return %c0_i32, %c0_i32_0 : i32, i32
  }
  func.func @transform_7(%arg0: i32) -> (i32, i32, i32, i32) {
    %c0_i32 = arith.constant 0 : i32
    %c0_i32_0 = arith.constant 0 : i32
    %c0_i32_1 = arith.constant 0 : i32
    %c0_i32_2 = arith.constant 0 : i32
    return %arg0, %c0_i32, %c0_i32_0, %c0_i32_1 : i32, i32, i32, i32
  }
}

</mosaic_0001>

<bundles_post_ra>
// kernel: tpu_custom_call.1
= control target key start
LH: loop header
LB: loop body
LE: loop exit
PB: predicated region body
PF: predicated region fallthrough
CT: control target
= control target key end

     0   :  { %s11180_s0 = inlined_call_operand.hbm [shape: f32[2,16,16,128], index: 0, kind: input, shape index: {}]   ;;  %s11181_s1 = inlined_call_operand.hbm [shape: bf16[3,384,128], index: 1, kind: input, shape index: {}]   ;;  %s11182_s2 = inlined_call_operand.hbm [shape: bf16[3,384,128], index: 2, kind: input, shape index: {}]   ;;  %s11183_s3 = inlined_call_operand.vmem [shape: f32[1,128], index: 3, kind: input, shape index: {}]   ;;  %s11184_s4 = inlined_call_operand.vmem [shape: f32[1,128], index: 4, kind: input, shape index: {}]   ;;  %s11185_s5 = inlined_call_operand.vmem [shape: f32[1,128], index: 5, kind: input, shape index: {}]   ;;  %s11186_s6 = inlined_call_operand.vmem [shape: f32[1,128], index: 6, kind: input, shape index: {}]   ;;  %s11187_s7 = inlined_call_operand.hbm [shape: f32[2,16,16,128], index: 7, kind: output, shape index: {}]  }
   0x1   :  { %11205 = sst [smem:[#allocation52_spill]] %s11181_s1 }
   0x2   :  { %12 = vsyncpa [#allocation5], 0 }
   0x3   :  { %14 = vsyncpa [#allocation5 + $0x1], 0 }
   0x4   :  { %15 = vsyncpa [#allocation8], 0 }
   0x5   :  { %16 = vsyncpa [#allocation6], 0 }
   0x6   :  { %18 = vsyncpa [#allocation6 + $0x1], 0  ;;  %s8987_s24 = smov 0   ;;  %s8989_s25 = smov 0  }
   0x7   :  { %s8991_s26 = smov 0   ;;  %s8993_s27 = smov 0  }
   0x8 LB: > { %s9008_s28 = sadd.s32 4294967295, %s8936_s27   ;;  %s7430_s29 = sadd.s32 4294967294, %s8936_s27   ;;  %s8936_s27 = sphi %s8993_s27, %s11318_s27   ;;  %s8932_s26 = sphi %s8991_s26, %s11317_s26   ;;  %s8928_s25 = sphi %s8989_s25, %s11316_s25   ;;  %s8924_s24 = sphi %s8987_s24, %s11315_s24  }
   0x9   : > { %p44_p0 = scmp.ne.s32.totalorder %s8928_s25, %s8924_s24  ;;  %p45_p1 = scmp.eq.s32.totalorder %s9008_s28, 0 }
   0xa   : > { %p194_p2 = scmp.eq.s32.totalorder %s9008_s28, 1  ;;  %p200_p3 = scmp.eq.s32.totalorder %s7430_s29, 1 }
   0xb   : > { %p9017_p4 = por %p45_p1, %p44_p0  ;;  %p7431_p5 = scmp.ge.s32.totalorder %s8936_s27, 1 }
   0xc   : > { %p9022_p6 = por %p200_p3, %p44_p0  ;;  %p207_p7 = scmp.lt.s32.totalorder %s8936_s27, 3 }
   0xd   : > { %s11208_s1 = sld [smem:[#allocation52_spill]]  ;;  %s8938_s13 = smov [#allocation7]  }
   0xe   : > { %p9030_p8 = pnand %p7431_p5, %p207_p7  ;;  %s220_s14 = sshll.u32 %s8938_s13, 4  ;;  %s221_s14 = int_to_ptr.vmem [resolvable:$true] %s220_s14 }
   0xf   : > { %s232_s17 = sshll.u32 %s11182_s2, 4  ;;  %s8939_s18 = smov 64   ;;  %s233_s17 = int_to_ptr.hbm [resolvable:$true] %s232_s17 }
  0x10   : > { %p8678_p9 = pneg %p9030_p8  ;;  %s8940_s19 = smov 4  }
  0x11   : > { %s8941_s20 = smov [#allocation9]   ;;  %s9043_s22 = sadd.s32 1, %s8936_s27  }
  0x12   : > { %p8679_p10 = pnand %p8678_p9, %p45_p1  ;;  %s234_s21 = sshll.u32 %s8941_s20, 4  ;;  %s235_s21 = int_to_ptr.vmem [resolvable:$true] %s234_s21 }
  0x13   : > { %s218_s11 = sshll.u32 %s11208_s1, 4  ;;  %s31_s23 = sadd.s32 1, %s8932_s26  ;;  %s219_s11 = int_to_ptr.hbm [resolvable:$true] %s218_s11 }
  0x14   : > { %8681 = dma.hbm_to_vmem [thread:$0]  (!%p8679_p10), %s219_s11, 9216, %s221_s14, [#allocation8], %s8939_s18, %s8939_s18, %s8940_s19  }
  0x15   : > { %8684 = dma.hbm_to_vmem [thread:$0]  (!%p8679_p10), %s233_s17, 9216, %s235_s21, [#allocation8], %s8939_s18, %s8939_s18, %s8940_s19  }
  0x16   : > { %s28_s29 = ssub.s32 %s8936_s27, %s9043_s22  ;;  %p38_p12 = scmp.ne.s32.totalorder %s8932_s26, %s8928_s25 }
  0x17   : > { %p29_p13 = scmp.eq.s32.totalorder %s28_s29, 0  ;;  %p39_p0 = scmp.eq.s32.totalorder %s8936_s27, 0 }
  0x18   : > { %p9053_p3 = por %p194_p2, %p38_p12  ;;  %p8695_p5 = scmp.lt.s32.totalorder %s8936_s27, 2 }
  0x19   : > { %s9059_s10 = scalar_select %p29_p13, %s8932_s26, %s31_s23  }
  0x1a   : > { %p40_p7 = por %p39_p0, %p38_p12  ;;  %s260_s11 = sand.u32 1, %s8932_s26  }
  0x1b   : > { %s7435_s13 = sshll.u32 %s260_s11, 8  ;;  %s8408_s14 = sshll.u32 %s8936_s27, 8 }
  0x1c   : > { %s269_s17 = scalar_lea.hbm %s11180_s0, %s8408_s14  ;;  %s264_s18 = scalar_lea.vmem [#allocation4], %s7435_s13 }
  0x1d   : > { %s272_s19 = sshll.u32 %s264_s18, 4  ;;  %s270_s20 = sshll.u32 %s269_s17, 4  ;;  %s273_s19 = int_to_ptr.vmem [resolvable:$true] %s272_s19  ;;  %s271_s20 = int_to_ptr.hbm [resolvable:$true] %s270_s20 }
  0x1e   : > { %p9066_p2 = pnand %p8695_p5, %p40_p7  ;;  %s261_s23 = scalar_lea.sflag [#allocation5], %s260_s11 }
  0x1f   : > { %s8836_s29 = sshra.s32 %s271_s20, 4  ;;  %s8843_s15 = scalar_lea.hbm %s11180_s0, 512  ;;  %s8837_s29 = int_to_ptr.hbm [resolvable:$true] %s8836_s29 }
  0x20   : > { %s8838_s1 = scalar_lea.hbm %s8837_s29, 256  ;;  %p8840_p10 = pneg %p9066_p2 }
  0x21   : > { %p8839_p9 = scmp.ne.s32.totalorder %s8837_s29, %s8838_s1  ;;  %p8844_p0 = scmp.lt.s32.totalorder %s8837_s29, %s11180_s0 }
  0x22   : > { %p8845_p5 = scmp.lt.s32.totalorder %s8843_s15, %s8838_s1 }
  0x23   : > { %p8841_p12 = pnand %p8840_p10, %p8839_p9 }
  0x24   : > { %p8846_p7 = por %p8845_p5, %p8844_p0 }
  0x25   : > { %p8842_p13 = pneg %p8841_p12 }
  0x27   : > { %p8847_p11 = pnand %p8846_p7, %p8842_p13 }
  0x29   : > { %8850 = shalt.err (!%p8847_p11)
}
  0x2a   : > { %s8942_s11 = smov 128   ;;  %s8943_s18 = smov 8  }
  0x2b   : > { %8688 = dma.hbm_to_vmem [thread:$0]  (!%p9066_p2), %s271_s20, 4096, %s273_s19, %s261_s23, %s8942_s11, %s8942_s11, %s8943_s18  }
  0x2c   : > { %284 = sbr.rel (%p9030_p8) target bundleno = 1560 (0x618), region = 48 }
  0x31   : > { %s9083_s14 = sand.u32 1, %s8928_s25  }
  0x32   : > { %s7439_s29 = sshll.u32 %s9083_s14, 8  ;;  %s287_s1 = scalar_lea.sflag [#allocation5], %s9083_s14 }
  0x33   : > { %s9089_s13 = scalar_lea.vmem [#allocation4], %s7439_s29 }
  0x34   : > { %8911 = dma.done.wait (%p9017_p4), %s287_s1, 4096  }
  0x35   : > { %8913 = vsyncadd (%p9017_p4), %s287_s1, 4294963200 }
  0x36   : > { %8915 = dma.done.wait (%p45_p1), [#allocation8], 18432  }
  0x37   : > { %8917 = vsyncadd (%p45_p1), [#allocation8], 4294948864  ;;  %v8472_v0 = vld [vmem:[#allocation7 + $0xf8] sm:$0xff]  ;;  %v8471_v2 = vld [vmem:[#allocation7 + $0xf0] sm:$0xff]  ;;  %vm739_vm0 = vcmask 1040384   ;;  %vm1400_vm4 = vcmask 1046528  }
  0x38   : > { %v8480_v1 = vld [vmem:[#allocation7 + $0x138] sm:$0xff]  ;;  %2170 = vmatpush.bf16.msra.mxu0 %v8472_v0  ;;  %8650 = vmatpush.bf16.msra.mxu2 %v8472_v0  ;;  %v8479_v3 = vld [vmem:[#allocation7 + $0x130] sm:$0xff]  ;;  %v8470_v4 = vld [vmem:[#allocation7 + $0xe8] sm:$0xff]  ;;  %vm740_vm1 = vsmask.f32 256  ;;  %s10961_s21 = scalar_lea.vmem [#allocation10], %s7439_s29 }
  0x39   : > { %2259 = vmatpush.bf16.msra.mxu1 %v8480_v1  ;;  %8658 = vmatpush.bf16.msra.mxu3 %v8480_v1  ;;  %v347_v5 = vld [vmem:[%s9089_s13] sm:$0xff]  ;;  %v8478_v6 = vld [vmem:[#allocation7 + $0x128] sm:$0xff]  ;;  %v9104_v8 = vld [vmem:[%s11183_s3] ss:$0 sm:$0xff]  ;;  %vm1191_vm3 = vsmask.f32 7424 }
  0x3a   : > { %v348_v7 = vld [vmem:[%s9089_s13 + $0x8] sm:$0xff]  ;;  %v9109_v9 = vld [vmem:[%s11184_s4] ss:$0 sm:$0xff]  ;;  %v363_v10 = vld [vmem:[%s9089_s13 + $0x80] sm:$0xff]  ;;  %v383_v11 = vmul.f32 %v9104_v8, %v347_v5  ;;  %s8649_s29 = sshll.u32 %s9008_s28, 8  ;;  %s7335_s17 = sshll.u32 %s10961_s21, 4  ;;  %s7336_s17 = int_to_ptr.vmem [resolvable:$true] %s7335_s17 }
  0x3b   : > { %v384_v12 = vmul.f32 %v9104_v8, %v348_v7  ;;  %v364_v13 = vld [vmem:[%s9089_s13 + $0x88] sm:$0xff]  ;;  %v399_v14 = vmul.f32 %v9104_v8, %v363_v10  ;;  %v349_v15 = vld [vmem:[%s9089_s13 + $0x10] sm:$0xff]  ;;  %v350_v16 = vld [vmem:[%s9089_s13 + $0x18] sm:$0xff]  ;;  %s7334_s16 = scalar_lea.hbm %s11187_s7, %s8649_s29  ;;  %s7323_s28 = scalar_lea.sflag [#allocation6], %s9083_s14 }
  0x3c   : > { %2171 = vmatpush.bf16.msra.mxu0 %v8471_v2  ;;  %8651 = vmatpush.bf16.msra.mxu2 %v8471_v2  ;;  %v400_v17 = vmul.f32 %v9104_v8, %v364_v13  ;;  %v385_v18 = vmul.f32 %v9104_v8, %v349_v15  ;;  %v386_v19 = vmul.f32 %v9104_v8, %v350_v16  ;;  %v365_v20 = vld [vmem:[%s9089_s13 + $0x90] sm:$0xff]  ;;  %v366_v21 = vld [vmem:[%s9089_s13 + $0x98] sm:$0xff]  ;;  %v8469_v26 = vld [vmem:[#allocation7 + $0xe0] sm:$0xff]  ;;  %v11212_v13 = vmov 0  ;;  %s7337_s11 = sshll.u32 %s7334_s16, 4  ;;  %s8886_s19 = scalar_lea.hbm %s11187_s7, 512  ;;  %s7338_s11 = int_to_ptr.hbm [resolvable:$true] %s7337_s11 }
  0x3d   : > { %2260 = vmatpush.bf16.msra.mxu1 %v8479_v3  ;;  %8659 = vmatpush.bf16.msra.mxu3 %v8479_v3  ;;  %v419_v22 = vadd.f32 %v9109_v9, %v383_v11  ;;  %v420_v23 = vadd.f32 %v9109_v9, %v384_v12  ;;  %v435_v24 = vadd.f32 %v9109_v9, %v399_v14  ;;  %v8477_v30 = vld [vmem:[#allocation7 + $0x120] sm:$0xff]  ;;  %v8468_v43 = vld [vmem:[#allocation7 + $0xd8] sm:$0xff]  ;;  %v352_v49 = vld [vmem:[%s9089_s13 + $0x28] sm:$0xff]  ;;  %s8880_s18 = sshra.s32 %s7338_s11, 4  ;;  %s8881_s18 = int_to_ptr.hbm [resolvable:$true] %s8880_s18 }
  0x3e   : > { %v401_v25 = vmul.f32 %v9104_v8, %v365_v20  ;;  %v436_v27 = vadd.f32 %v9109_v9, %v400_v17  ;;  %v421_v28 = vadd.f32 %v9109_v9, %v385_v18  ;;  %v422_v29 = vadd.f32 %v9109_v9, %v386_v19  ;;  %v351_v48 = vld [vmem:[%s9089_s13 + $0x20] sm:$0xff]  ;;  %v8476_v50 = vld [vmem:[#allocation7 + $0x118] sm:$0xff]  ;;  %v8467_v0 = vld [vmem:[#allocation7 + $0xd0] sm:$0xff]  ;;  %s8882_s1 = scalar_lea.hbm %s8881_s18, 256  ;;  %p8887_p11 = scmp.lt.s32.totalorder %s8881_s18, %s11187_s7 }
  0x3f   : > { %v451_v31 = vmax.f32 %v419_v22, 0.0  ;;  %v452_v32 = vmax.f32 %v420_v23, 0.0  ;;  %v467_v33 = vmax.f32 %v435_v24, 0.0  ;;  %v402_v34 = vmul.f32 %v9104_v8, %v366_v21  ;;  %v367_v55 = vld [vmem:[%s9089_s13 + $0xa0] sm:$0xff]  ;;  %v8475_v5 = vld [vmem:[#allocation7 + $0x110] sm:$0xff]  ;;  %v368_v12 = vld [vmem:[%s9089_s13 + $0xa8] sm:$0xff]  ;;  %p8883_p1 = scmp.ne.s32.totalorder %s8881_s18, %s8882_s1  ;;  %p8888_p2 = scmp.lt.s32.totalorder %s8886_s19, %s8882_s1 }
  0x40   : > { %2172 = vmatpush.bf16.msra.mxu0 %v8470_v4  ;;  %8652 = vmatpush.bf16.msra.mxu2 %v8470_v4  ;;  %v468_v35 = vmax.f32 %v436_v27, 0.0  ;;  %v453_v36 = vmax.f32 %v421_v28, 0.0  ;;  %v454_v37 = vmax.f32 %v422_v29, 0.0  ;;  %v437_v38 = vadd.f32 %v9109_v9, %v401_v25  ;;  %vm9145_vm2 = vmand %vm739_vm0, %vm740_vm1  ;;  %v8466_v22 = vld [vmem:[#allocation7 + $0xc8] sm:$0xff] }
  0x41   : > { %2261 = vmatpush.bf16.msra.mxu1 %v8478_v6  ;;  %8660 = vmatpush.bf16.msra.mxu3 %v8478_v6  ;;  %v483_v39 = vpack.c.bf16 %v451_v31, %v451_v31  ;;  %v484_v40 = vpack.c.bf16 %v452_v32, %v452_v32  ;;  %v499_v41 = vpack.c.bf16 %v467_v33, %v467_v33  ;;  %v11213_v13 = vsel %vm9145_vm2, 4294967295, %v11212_v13  ;;  %v8474_v28 = vld [vmem:[#allocation7 + $0x108] sm:$0xff]  ;;  %p8884_p4 = pnand %p8883_p1, %p9053_p3  ;;  %p8889_p9 = por %p8888_p2, %p8887_p11 }
  0x42   : > { %v438_v42 = vadd.f32 %v9109_v9, %v402_v34  ;;  %v500_v44 = vpack.c.bf16 %v468_v35, %v468_v35  ;;  %v485_v45 = vpack.c.bf16 %v453_v36, %v453_v36  ;;  %v486_v46 = vpack.c.bf16 %v454_v37, %v454_v37  ;;  %11214 = vst [vmem:[#allocation14_spill] sm:$0xff] %v11213_v13 }
  0x43   : > { %v469_v47 = vmax.f32 %v437_v38, 0.0  ;;  %v547_v51 = vunpack.c.l.b16 %v483_v39  ;;  %v548_v52 = vunpack.c.l.b16 %v484_v40  ;;  %v563_v53 = vunpack.c.l.b16 %v499_v41  ;;  %v8465_v40 = vld [vmem:[#allocation7 + $0xc0] sm:$0xff]  ;;  %p8885_p8 = pneg %p8884_p4 }
  0x44   : > { %2173 = vmatpush.bf16.msra.mxu0 %v8469_v26  ;;  %8653 = vmatpush.bf16.msra.mxu2 %v8469_v26  ;;  %v470_v54 = vmax.f32 %v438_v42, 0.0  ;;  %v564_v56 = vunpack.c.l.b16 %v500_v44  ;;  %v549_v57 = vunpack.c.l.b16 %v485_v45  ;;  %v550_v58 = vunpack.c.l.b16 %v486_v46 }
  0x45   : > { %2262 = vmatpush.bf16.msra.mxu1 %v8477_v30  ;;  %8661 = vmatpush.bf16.msra.mxu3 %v8477_v30  ;;  %v501_v59 = vpack.c.bf16 %v469_v47, %v469_v47  ;;  %v579_v60 = vpack.c.b16 %v548_v52, %v547_v51  ;;  %v387_v62 = vmul.f32 %v9104_v8, %v351_v48  ;;  %v8473_v47 = vld [vmem:[#allocation7 + $0x100] sm:$0xff]  ;;  %v8488_v52 = vld [vmem:[#allocation7 + $0x178] sm:$0xff]  ;;  %p8890_p10 = pnand %p8889_p9, %p8885_p8 }
  0x46   : > { %v502_v61 = vpack.c.bf16 %v470_v54, %v470_v54  ;;  %v388_v63 = vmul.f32 %v9104_v8, %v352_v49  ;;  %v587_v1 = vpack.c.b16 %v564_v56, %v563_v53  ;;  %v580_v2 = vpack.c.b16 %v550_v58, %v549_v57  ;;  %v8432_v53 = vld [vmem:[#allocation7 + $0x38] sm:$0xff] }
  0x47   : > { %v565_v3 = vunpack.c.l.b16 %v501_v59  ;;  %v403_v4 = vmul.f32 %v9104_v8, %v367_v55  ;;  %v596_v6 = vshrl.u32 %v579_v60, 16  ;;  %v599_v7 = vshll.u32 %v579_v60, 16  ;;  %v8440_v58 = vld [vmem:[#allocation7 + $0x78] sm:$0xff] }
  0x48   : > { %2174 = vmatpush.bf16.msra.mxu0 %v8468_v43  ;;  %8654 = vmatpush.bf16.msra.mxu2 %v8468_v43  ;;  %v566_v10 = vunpack.c.l.b16 %v502_v61  ;;  %v9140_v11 = vadd.f32 %v9109_v9, %v387_v62  ;;  %v652_v14 = vshrl.u32 %v587_v1, 16  ;;  %v655_v15 = vshll.u32 %v587_v1, 16  ;;  %v353_v1 = vld [vmem:[%s9089_s13 + $0x30] sm:$0xff] }
  0x49   : > { %2263 = vmatpush.bf16.msra.mxu1 %v8476_v50  ;;  %8662 = vmatpush.bf16.msra.mxu3 %v8476_v50  ;;  %v603_v16 = vshrl.u32 %v580_v2, 16  ;;  %v606_v17 = vshll.u32 %v580_v2, 16  ;;  %v598_v18 = vrot.slane %v596_v6, 7  ;;  %v9150_v20 = vadd.f32 %v9109_v9, %v388_v63 }
  0x4a   : > { %v588_v19 = vpack.c.b16 %v566_v10, %v565_v3  ;;  %v455_v21 = vmax.f32 %v9140_v11, 0.0  ;;  %v654_v23 = vrot.slane %v652_v14, 7  ;;  %v9154_v25 = vmul.f32 %v9104_v8, %v368_v12  ;;  %v354_v14 = vld [vmem:[%s9089_s13 + $0x38] sm:$0xff] }
  0x4b   : > { %v605_v24 = vrot.slane %v603_v16, 7  ;;  %v9157_v26 = vadd.f32 %v9109_v9, %v403_v4  ;;  %v601_v27 = vor.u32 %v599_v7, %v598_v18  ;;  %v758_v29 = vsel %vm9145_vm2, %v598_v18, 0  ;;  %v8431_v18 = vld [vmem:[#allocation7 + $0x30] sm:$0xff] }
  0x4c   : > { %2175 = vmatpush.bf16.msra.mxu0 %v8467_v0  ;;  %8655 = vmatpush.bf16.msra.mxu2 %v8467_v0  ;;  %v659_v30 = vshrl.u32 %v588_v19, 16  ;;  %v662_v31 = vshll.u32 %v588_v19, 16  ;;  %v657_v32 = vor.u32 %v655_v15, %v654_v23  ;;  %v808_v33 = vunpack.c.l.b16 %v758_v29  ;;  %v369_v15 = vld [vmem:[%s9089_s13 + $0xb0] sm:$0xff] }
  0x4d   : > { %2264 = vmatpush.bf16.msra.mxu1 %v8475_v5  ;;  %8663 = vmatpush.bf16.msra.mxu3 %v8475_v5  ;;  %v766_v34 = vsel %vm9145_vm2, %v654_v23, 0  ;;  %v608_v35 = vor.u32 %v606_v17, %v605_v24  ;;  %v742_v36 = vsel %vm9145_vm2, 0, %v601_v27  ;;  %v759_v39 = vsel %vm9145_vm2, %v605_v24, 0  ;;  %v8487_v17 = vld [vmem:[#allocation7 + $0x170] sm:$0xff] }
  0x4e   : > { %v832_v37 = vunpack.c.l.b16 %v766_v34  ;;  %v661_v38 = vrot.slane %v659_v30, 7  ;;  %v806_v41 = vunpack.c.l.b16 %v742_v36  ;;  %v807_v42 = vunpack.c.h.b16 %v742_v36  ;;  %v8439_v19 = vld [vmem:[#allocation7 + $0x70] sm:$0xff] }
  0x4f   : > { %v750_v43 = vsel %vm9145_vm2, 0, %v657_v32  ;;  %v856_v44 = vpack.c.b16 %v808_v33, %v808_v33  ;;  %v743_v49 = vsel %vm9145_vm2, 0, %v608_v35  ;;  %v811_v60 = vunpack.c.l.b16 %v759_v39  ;;  %v370_v35 = vld [vmem:[%s9089_s13 + $0xb8] sm:$0xff] }
  0x50   : > { %2176 = vmatpush.bf16.msra.mxu0 %v8466_v22  ;;  %8656 = vmatpush.bf16.msra.mxu2 %v8466_v22  ;;  %v830_v45 = vunpack.c.l.b16 %v750_v43  ;;  %v831_v46 = vunpack.c.h.b16 %v750_v43  ;;  %v880_v48 = vpack.c.b16 %v832_v37, %v832_v37  ;;  %v854_v50 = vpack.c.b16 %v806_v41, %v806_v41 }
  0x51   : > { %2265 = vmatpush.bf16.msra.mxu1 %v8474_v28  ;;  %8664 = vmatpush.bf16.msra.mxu3 %v8474_v28  ;;  %v855_v51 = vpack.c.b16 %v807_v42, %v807_v42  ;;  %953 = vst [vmem:[#allocation2 + $0x14] sm:$0xf] %v856_v44  ;;  %v809_v54 = vunpack.c.l.b16 %v743_v49  ;;  %v810_v55 = vunpack.c.h.b16 %v743_v49  ;;  %v664_v59 = vor.u32 %v662_v31, %v661_v38 }
  0x52   : > { %v878_v56 = vpack.c.b16 %v830_v45, %v830_v45  ;;  %v879_v57 = vpack.c.b16 %v831_v46, %v831_v46  ;;  %977 = vst [vmem:[#allocation2 + $0x74] sm:$0xf] %v880_v48  ;;  %v767_v63 = vsel %vm9145_vm2, %v661_v38, 0  ;;  %v456_v0 = vmax.f32 %v9150_v20, 0.0 }
  0x53   : > { %951 = vst [vmem:[#allocation2 + $0xc] sm:$0xf] %v854_v50  ;;  %v857_v61 = vpack.c.b16 %v809_v54, %v809_v54  ;;  %v858_v62 = vpack.c.b16 %v810_v55, %v810_v55  ;;  %v751_v2 = vsel %vm9145_vm2, 0, %v664_v59  ;;  %v859_v3 = vpack.c.b16 %v811_v60, %v811_v60 }
  0x54   : > { %2177 = vmatpush.bf16.msra.mxu0 %v8465_v40  ;;  %8657 = vmatpush.bf16.msra.mxu2 %v8465_v40  ;;  %952 = vst [vmem:[#allocation2 + $0x10] sm:$0xf] %v855_v51  ;;  %v835_v4 = vunpack.c.l.b16 %v767_v63  ;;  %v487_v5 = vpack.c.bf16 %v455_v21, %v455_v21  ;;  %v833_v6 = vunpack.c.l.b16 %v751_v2  ;;  %v834_v7 = vunpack.c.h.b16 %v751_v2 }
  0x55   : > { %2266 = vmatpush.bf16.msra.mxu1 %v8473_v47  ;;  %8665 = vmatpush.bf16.msra.mxu3 %v8473_v47  ;;  %975 = vst [vmem:[#allocation2 + $0x6c] sm:$0xf] %v878_v56  ;;  %v488_v10 = vpack.c.bf16 %v456_v0, %v456_v0  ;;  %v440_v12 = vadd.f32 %v9109_v9, %v9154_v25  ;;  %v471_v20 = vmax.f32 %v9157_v26, 0.0 }
  0x56   : > { %976 = vst [vmem:[#allocation2 + $0x70] sm:$0xf] %v879_v57  ;;  %v883_v16 = vpack.c.b16 %v835_v4, %v835_v4  ;;  %v551_v11 = vunpack.c.l.b16 %v487_v5  ;;  %v389_v21 = vmul.f32 %v9104_v8, %v353_v1  ;;  %v881_v22 = vpack.c.b16 %v833_v6, %v833_v6 }
  0x57   : > { %954 = vst [vmem:[#allocation2 + $0x18] sm:$0xf] %v857_v61  ;;  %v882_v23 = vpack.c.b16 %v834_v7, %v834_v7  ;;  %v552_v24 = vunpack.c.l.b16 %v488_v10  ;;  %v472_v27 = vmax.f32 %v440_v12, 0.0  ;;  %v503_v28 = vpack.c.bf16 %v471_v20, %v471_v20 }
  0x58   : > { %2348 = vmatpush.bf16.msrb.mxu2 %v8488_v52  ;;  %2670 = vmatpush.bf16.msrb.mxu0 %v8440_v58  ;;  %v1515_v25 = vld [vmem:[#allocation2 + $0x14] sm:$0xf]  ;;  %955 = vst [vmem:[#allocation2 + $0x1c] sm:$0xf] %v858_v62  ;;  %v390_v29 = vmul.f32 %v9104_v8, %v354_v14  ;;  %v425_v30 = vadd.f32 %v9109_v9, %v389_v21 }
  0x59   : > { %2581 = vmatpush.bf16.msrb.mxu3 %v8432_v53  ;;  %v9189_v31 = vmul.f32 %v9104_v8, %v369_v15  ;;  %v1673_v26 = vunpack.c.l.b16 %v1515_v25  ;;  %v1539_v32 = vld [vmem:[#allocation2 + $0x74] sm:$0xf]  ;;  %978 = vst [vmem:[#allocation2 + $0x78] sm:$0xf] %v881_v22  ;;  %v581_v33 = vpack.c.b16 %v552_v24, %v551_v11  ;;  %v504_v34 = vpack.c.bf16 %v472_v27, %v472_v27 }
  0x5a   : > { %v1681_v36 = vunpack.c.l.b16 %v1539_v32  ;;  %979 = vst [vmem:[#allocation2 + $0x7c] sm:$0xf] %v882_v23  ;;  %v567_v37 = vunpack.c.l.b16 %v503_v28  ;;  %v426_v38 = vadd.f32 %v9109_v9, %v390_v29  ;;  %v457_v39 = vmax.f32 %v425_v30, 0.0 }
  0x5b   : > { %v8449_v40 = vld [vmem:[#allocation2 + $0xc] sm:$0xff]  ;;  %v9193_v41 = vpack.c.b16 %v1673_v26, %v1673_v26  ;;  %956 = vst [vmem:[#allocation2 + $0x20] sm:$0xf] %v859_v3  ;;  %v610_v42 = vshrl.u32 %v581_v33, 16  ;;  %v613_v43 = vshll.u32 %v581_v33, 16  ;;  %v568_v44 = vunpack.c.l.b16 %v504_v34  ;;  %v8486_v34 = vld [vmem:[#allocation7 + $0x168] sm:$0xff] }
  0x5c   : > { %2349 = vmatpush.bf16.msrb.mxu2 %v8487_v17  ;;  %2671 = vmatpush.bf16.msrb.mxu0 %v8439_v19  ;;  %v9195_v45 = vpack.c.b16 %v1681_v36, %v1681_v36  ;;  %980 = vst [vmem:[#allocation2 + $0x80] sm:$0xf] %v883_v16  ;;  %v458_v46 = vmax.f32 %v426_v38, 0.0  ;;  %v9197_v47 = vpack.c.bf16 %v457_v39, %v457_v39  ;;  %v1706_v50 = vshrl.u32 %v8449_v40, 16  ;;  %v8438_v36 = vld [vmem:[#allocation7 + $0x68] sm:$0xff] }
  0x5d   : > { %2582 = vmatpush.bf16.msrb.mxu3 %v8431_v18  ;;  %v9200_v48 = vmul.f32 %v9104_v8, %v370_v35  ;;  %2178 = vmatmul.bf16.vlgmr.msra.gmra.mxu0 %v8449_v40  ;;  %v8457_v49 = vld [vmem:[#allocation2 + $0x6c] sm:$0xff]  ;;  %v1708_v51 = vshll.u32 %v8449_v40, 16  ;;  %v1713_v52 = vshll.u32 %v9193_v41, 16  ;;  %v612_v53 = vrot.slane %v610_v42, 7  ;;  %v8430_v35 = vld [vmem:[#allocation7 + $0x28] sm:$0xff] }
  0x5e   : > { %v1809_v54 = vshll.u32 %v9195_v45, 16  ;;  %v589_v55 = vpack.c.b16 %v568_v44, %v567_v37  ;;  %v9204_v56 = vpack.c.bf16 %v458_v46, %v458_v46  ;;  %v553_v57 = vunpack.c.l.b16 %v9197_v47  ;;  %2218 = vmatmul.bf16.vlgmr.msra.gmra.mxu2 %v8457_v49 }
  0x5f   : > { %v1710_v58 = vrot.slane %v1708_v51, 1  ;;  %v1715_v59 = vrot.slane %v1713_v52, 1  ;;  %v1802_v60 = vshrl.u32 %v8457_v49, 16  ;;  %v1804_v61 = vshll.u32 %v8457_v49, 16  ;;  %v9207_v62 = vld [vmem:[#allocation2 + $0x18] sm:$0xff] }
  0x60   : > { %v1811_v63 = vrot.slane %v1809_v54, 1  ;;  %v615_v0 = vor.u32 %v613_v43, %v612_v53  ;;  %v666_v1 = vshrl.u32 %v589_v55, 16  ;;  %v669_v2 = vshll.u32 %v589_v55, 16  ;;  %2350 = vmatpush.bf16.msrb.mxu2 %v8486_v34  ;;  %2672 = vmatpush.bf16.msrb.mxu0 %v8438_v36 }
  0x61   : > { %v1711_v3 = vor.u32 %v1710_v58, %v1706_v50  ;;  %v1806_v4 = vrot.slane %v1804_v61, 1  ;;  %v9209_v5 = vld [vmem:[#allocation2 + $0x78] sm:$0xff]  ;;  %v1718_v6 = vshrl.u32 %v9207_v62, 16  ;;  %v1720_v7 = vshll.u32 %v9207_v62, 16  ;;  %2583 = vmatpush.bf16.msrb.mxu3 %v8430_v35 }
  0x62   : > { %v1518_v10 = vld [vmem:[#allocation2 + $0x20] sm:$0xf]  ;;  %v744_v12 = vsel %vm9145_vm2, 0, %v615_v0  ;;  %v668_v14 = vrot.slane %v666_v1, 7  ;;  %v760_v15 = vsel %vm9145_vm2, %v612_v53, 0  ;;  %v554_v16 = vunpack.c.l.b16 %v9204_v56  ;;  %v355_v56 = vld [vmem:[%s9089_s13 + $0x40] sm:$0xff] }
  0x63   : > { %v1716_v17 = vsel %vm1191_vm3, %v1711_v3, %v1715_v59  ;;  %v1807_v18 = vor.u32 %v1806_v4, %v1802_v60  ;;  %v1674_v19 = vunpack.c.l.b16 %v1518_v10  ;;  %v1722_v11 = vrot.slane %v1720_v7, 1  ;;  %v1542_v20 = vld [vmem:[#allocation2 + $0x80] sm:$0xf]  ;;  %v356_v58 = vld [vmem:[%s9089_s13 + $0x48] sm:$0xff]  ;;  %v371_v59 = vld [vmem:[%s9089_s13 + $0xc0] sm:$0xff] }
  0x64   : > { %2267 = vmatmul.bf16.vlgmr.msra.gmra.mxu1 %v1716_v17  ;;  %v1682_v21 = vunpack.c.l.b16 %v1542_v20  ;;  %v1814_v22 = vshrl.u32 %v9209_v5, 16  ;;  %v1816_v23 = vshll.u32 %v9209_v5, 16  ;;  %v812_v24 = vunpack.c.l.b16 %v744_v12  ;;  %v372_v0 = vld [vmem:[%s9089_s13 + $0xc8] sm:$0xff] }
  0x65   : > { %v1812_v27 = vsel %vm1191_vm3, %v1807_v18, %v1811_v63  ;;  %v9222_v25 = vpack.c.b16 %v1674_v19, %v1674_v19  ;;  %v1723_v28 = vor.u32 %v1722_v11, %v1718_v6  ;;  %v813_v29 = vunpack.c.h.b16 %v744_v12 }
  0x66   : > { %2307 = vmatmul.bf16.vlgmr.msra.gmra.mxu3 %v1812_v27  ;;  %v9224_v30 = vpack.c.b16 %v1682_v21, %v1682_v21  ;;  %v1818_v26 = vrot.slane %v1816_v23, 1  ;;  %v860_v32 = vpack.c.b16 %v812_v24, %v812_v24  ;;  %v671_v33 = vor.u32 %v669_v2, %v668_v14 }
  0x67   : > { %v1725_v37 = vshll.u32 %v9222_v25, 16  ;;  %v861_v38 = vpack.c.b16 %v813_v29, %v813_v29  ;;  %v814_v39 = vunpack.c.l.b16 %v760_v15  ;;  %v768_v40 = vsel %vm9145_vm2, %v668_v14, 0 }
  0x68   : > { %v1819_v42 = vor.u32 %v1818_v26, %v1814_v22  ;;  %v1821_v43 = vshll.u32 %v9224_v30, 16  ;;  %957 = vst [vmem:[#allocation2 + $0x24] sm:$0xf] %v860_v32  ;;  %v752_v44 = vsel %vm9145_vm2, 0, %v671_v33  ;;  %v838_v46 = vunpack.c.l.b16 %v768_v40 }
  0x69   : > { %v1727_v47 = vrot.slane %v1725_v37, 1  ;;  %958 = vst [vmem:[#allocation2 + $0x28] sm:$0xf] %v861_v38  ;;  %v836_v49 = vunpack.c.l.b16 %v752_v44  ;;  %v837_v50 = vunpack.c.h.b16 %v752_v44  ;;  %v862_v51 = vpack.c.b16 %v814_v39, %v814_v39 }
  0x6a   : > { %v1823_v52 = vrot.slane %v1821_v43, 1  ;;  %v886_v53 = vpack.c.b16 %v838_v46, %v838_v46  ;;  %v582_v54 = vpack.c.b16 %v554_v16, %v553_v57  ;;  %v441_v55 = vadd.f32 %v9109_v9, %v9189_v31 }
  0x6b   : > { %v884_v60 = vpack.c.b16 %v836_v49, %v836_v49  ;;  %v885_v61 = vpack.c.b16 %v837_v50, %v837_v50  ;;  %959 = vst [vmem:[#allocation2 + $0x2c] sm:$0xf] %v862_v51  ;;  %v442_v63 = vadd.f32 %v9109_v9, %v9200_v48  ;;  %v1728_v1 = vsel %vm1191_vm3, %v1723_v28, %v1727_v47 }
  0x6c   : > { %983 = vst [vmem:[#allocation2 + $0x8c] sm:$0xf] %v886_v53  ;;  %v617_v2 = vshrl.u32 %v582_v54, 16  ;;  %v620_v3 = vshll.u32 %v582_v54, 16  ;;  %v473_v4 = vmax.f32 %v441_v55, 0.0  ;;  %v391_v57 = vmul.f32 %v9104_v8, %v355_v56  ;;  %v8485_v53 = vld [vmem:[#allocation7 + $0x160] sm:$0xff] }
  0x6d   : > { %2183 = vmatmul.bf16.gmra.mxu0 %v9207_v62  ;;  %981 = vst [vmem:[#allocation2 + $0x84] sm:$0xf] %v884_v60  ;;  %v474_v31 = vmax.f32 %v442_v63, 0.0  ;;  %v392_v6 = vmul.f32 %v9104_v8, %v356_v58  ;;  %v407_v7 = vmul.f32 %v9104_v8, %v371_v59  ;;  %v1824_v10 = vsel %vm1191_vm3, %v1819_v42, %v1823_v52  ;;  %v8429_v54 = vld [vmem:[#allocation7 + $0x20] sm:$0xff] }
  0x6e   : > { %982 = vst [vmem:[#allocation2 + $0x88] sm:$0xf] %v885_v61  ;;  %v619_v48 = vrot.slane %v617_v2, 7  ;;  %v505_v12 = vpack.c.bf16 %v473_v4, %v473_v4  ;;  %v408_v14 = vmul.f32 %v9104_v8, %v372_v0  ;;  %2223 = vmatmul.bf16.gmra.mxu2 %v9209_v5  ;;  %v427_v62 = vadd.f32 %v9109_v9, %v391_v57  ;;  %v8437_v55 = vld [vmem:[#allocation7 + $0x60] sm:$0xff] }
  0x6f   : > { %v506_v15 = vpack.c.bf16 %v474_v31, %v474_v31  ;;  %v428_v16 = vadd.f32 %v9109_v9, %v392_v6  ;;  %v443_v17 = vadd.f32 %v9109_v9, %v407_v7  ;;  %2351 = vmatpush.bf16.msrb.mxu2 %v8485_v53  ;;  %2584 = vmatpush.bf16.msrb.mxu3 %v8429_v54 }
  0x70   : > { %v9251_v18 = vld [vmem:[#allocation2 + $0x24] sm:$0xff]  ;;  %v622_v19 = vor.u32 %v620_v3, %v619_v48  ;;  %v569_v11 = vunpack.c.l.b16 %v505_v12  ;;  %v761_v20 = vsel %vm9145_vm2, %v619_v48, 0  ;;  %v444_v21 = vadd.f32 %v9109_v9, %v408_v14  ;;  %2673 = vmatpush.bf16.msrb.mxu0 %v8437_v55 }
  0x71   : > { %v570_v22 = vunpack.c.l.b16 %v506_v15  ;;  %v817_v23 = vunpack.c.l.b16 %v761_v20  ;;  %v459_v24 = vmax.f32 %v427_v62, 0.0  ;;  %v460_v5 = vmax.f32 %v428_v16, 0.0  ;;  %v358_v20 = vld [vmem:[%s9089_s13 + $0x58] sm:$0xff] }
  0x72   : > { %v1521_v27 = vld [vmem:[#allocation2 + $0x2c] sm:$0xf]  ;;  %v1730_v28 = vshrl.u32 %v9251_v18, 16  ;;  %v1732_v29 = vshll.u32 %v9251_v18, 16  ;;  %v745_v26 = vsel %vm9145_vm2, 0, %v622_v19  ;;  %v475_v32 = vmax.f32 %v443_v17, 0.0 }
  0x73   : > { %v1675_v33 = vunpack.c.l.b16 %v1521_v27  ;;  %v1545_v34 = vld [vmem:[#allocation2 + $0x8c] sm:$0xf]  ;;  %v815_v35 = vunpack.c.l.b16 %v745_v26  ;;  %v816_v36 = vunpack.c.h.b16 %v745_v26  ;;  %v590_v37 = vpack.c.b16 %v570_v22, %v569_v11  ;;  %v357_v11 = vld [vmem:[%s9089_s13 + $0x50] sm:$0xff] }
  0x74   : > { %2272 = vmatmul.bf16.gmra.mxu1 %v1728_v1  ;;  %v1734_v38 = vrot.slane %v1732_v29, 1  ;;  %v1683_v39 = vunpack.c.l.b16 %v1545_v34  ;;  %v865_v40 = vpack.c.b16 %v817_v23, %v817_v23  ;;  %v491_v42 = vpack.c.bf16 %v459_v24, %v459_v24  ;;  %v373_v27 = vld [vmem:[%s9089_s13 + $0xd0] sm:$0xff] }
  0x75   : > { %v8459_v43 = vld [vmem:[#allocation2 + $0x84] sm:$0xff]  ;;  %v9260_v44 = vpack.c.b16 %v1675_v33, %v1675_v33  ;;  %v863_v46 = vpack.c.b16 %v815_v35, %v815_v35  ;;  %v864_v47 = vpack.c.b16 %v816_v36, %v816_v36  ;;  %v673_v49 = vshrl.u32 %v590_v37, 16 }
  0x76   : > { %2312 = vmatmul.bf16.gmra.mxu3 %v1824_v10  ;;  %v1735_v50 = vor.u32 %v1734_v38, %v1730_v28  ;;  %v9262_v51 = vpack.c.b16 %v1683_v39, %v1683_v39  ;;  %v676_v52 = vshll.u32 %v590_v37, 16  ;;  %962 = vst [vmem:[#allocation2 + $0x38] sm:$0xf] %v865_v40  ;;  %v492_v56 = vpack.c.bf16 %v460_v5, %v460_v5  ;;  %v374_v40 = vld [vmem:[%s9089_s13 + $0xd8] sm:$0xff] }
  0x77   : > { %v1737_v58 = vshll.u32 %v9260_v44, 16  ;;  %v1826_v59 = vshrl.u32 %v8459_v43, 16  ;;  %v1828_v60 = vshll.u32 %v8459_v43, 16  ;;  %960 = vst [vmem:[#allocation2 + $0x30] sm:$0xf] %v863_v46  ;;  %v675_v61 = vrot.slane %v673_v49, 7 }
  0x78   : > { %v1833_v63 = vshll.u32 %v9262_v51, 16  ;;  %961 = vst [vmem:[#allocation2 + $0x34] sm:$0xf] %v864_v47  ;;  %v555_v0 = vunpack.c.l.b16 %v491_v42  ;;  %v556_v1 = vunpack.c.l.b16 %v492_v56  ;;  %v476_v2 = vmax.f32 %v444_v21, 0.0 }
  0x79   : > { %v1739_v3 = vrot.slane %v1737_v58, 1  ;;  %v1830_v4 = vrot.slane %v1828_v60, 1  ;;  %v678_v31 = vor.u32 %v676_v52, %v675_v61  ;;  %v769_v57 = vsel %vm9145_vm2, %v675_v61, 0 }
  0x7a   : > { %v841_v6 = vunpack.c.l.b16 %v769_v57  ;;  %v583_v7 = vpack.c.b16 %v556_v1, %v555_v0  ;;  %v507_v10 = vpack.c.bf16 %v475_v32, %v475_v32  ;;  %v1835_v12 = vrot.slane %v1833_v63, 1 }
  0x7b   : > { %v1831_v48 = vor.u32 %v1830_v4, %v1826_v59  ;;  %v753_v14 = vsel %vm9145_vm2, 0, %v678_v31  ;;  %v508_v15 = vpack.c.bf16 %v476_v2, %v476_v2  ;;  %v1740_v21 = vsel %vm1191_vm3, %v1735_v50, %v1739_v3 }
  0x7c   : > { %v839_v62 = vunpack.c.l.b16 %v753_v14  ;;  %v840_v16 = vunpack.c.h.b16 %v753_v14  ;;  %v889_v17 = vpack.c.b16 %v841_v6, %v841_v6  ;;  %v624_v19 = vshrl.u32 %v583_v7, 16 }
  0x7d   : > { %2188 = vmatmul.bf16.gmra.mxu0 %v9251_v18  ;;  %v1524_v22 = vld [vmem:[#allocation2 + $0x38] sm:$0xf]  ;;  %v627_v23 = vshll.u32 %v583_v7, 16  ;;  %v571_v24 = vunpack.c.l.b16 %v507_v10  ;;  %v572_v5 = vunpack.c.l.b16 %v508_v15  ;;  %v1836_v33 = vsel %vm1191_vm3, %v1831_v48, %v1835_v12  ;;  %v8484_v7 = vld [vmem:[#allocation7 + $0x158] sm:$0xff] }
  0x7e   : > { %v887_v28 = vpack.c.b16 %v839_v62, %v839_v62  ;;  %v888_v29 = vpack.c.b16 %v840_v16, %v840_v16  ;;  %v1676_v26 = vunpack.c.l.b16 %v1524_v22  ;;  %986 = vst [vmem:[#allocation2 + $0x98] sm:$0xf] %v889_v17  ;;  %v626_v32 = vrot.slane %v624_v19, 7  ;;  %2228 = vmatmul.bf16.gmra.mxu2 %v8459_v43  ;;  %v8428_v10 = vld [vmem:[#allocation7 + $0x18] sm:$0xff] }
  0x7f   : > { %v9276_v34 = vld [vmem:[#allocation2 + $0x30] sm:$0xff]  ;;  %v591_v35 = vpack.c.b16 %v572_v5, %v571_v24  ;;  %v393_v18 = vmul.f32 %v9104_v8, %v357_v11  ;;  %v394_v36 = vmul.f32 %v9104_v8, %v358_v20  ;;  %v409_v42 = vmul.f32 %v9104_v8, %v373_v27  ;;  %v8436_v48 = vld [vmem:[#allocation7 + $0x58] sm:$0xff]  ;;  %2352 = vmatpush.bf16.msrb.mxu2 %v8484_v7 }
  0x80   : > { %984 = vst [vmem:[#allocation2 + $0x90] sm:$0xf] %v887_v28  ;;  %v9280_v37 = vpack.c.b16 %v1676_v26, %v1676_v26  ;;  %v629_v38 = vor.u32 %v627_v23, %v626_v32  ;;  %v762_v39 = vsel %vm9145_vm2, %v626_v32, 0  ;;  %v1742_v43 = vshrl.u32 %v9276_v34, 16  ;;  %2585 = vmatpush.bf16.msrb.mxu3 %v8428_v10  ;;  %2674 = vmatpush.bf16.msrb.mxu0 %v8436_v48  ;;  %v359_v28 = vld [vmem:[%s9089_s13 + $0x60] sm:$0xff] }
  0x81   : > { %985 = vst [vmem:[#allocation2 + $0x94] sm:$0xf] %v888_v29  ;;  %v1744_v46 = vshll.u32 %v9276_v34, 16  ;;  %v680_v47 = vshrl.u32 %v591_v35, 16  ;;  %v683_v49 = vshll.u32 %v591_v35, 16  ;;  %v820_v53 = vunpack.c.l.b16 %v762_v39  ;;  %v360_v29 = vld [vmem:[%s9089_s13 + $0x68] sm:$0xff] }
  0x82   : > { %v1749_v50 = vshll.u32 %v9280_v37, 16  ;;  %v746_v52 = vsel %vm9145_vm2, 0, %v629_v38  ;;  %v429_v54 = vadd.f32 %v9109_v9, %v393_v18  ;;  %v430_v61 = vadd.f32 %v9109_v9, %v394_v36 }
  0x83   : > { %v1746_v55 = vrot.slane %v1744_v46, 1  ;;  %v818_v56 = vunpack.c.l.b16 %v746_v52  ;;  %v819_v58 = vunpack.c.h.b16 %v746_v52  ;;  %v682_v59 = vrot.slane %v680_v47, 7 }
  0x84   : > { %2277 = vmatmul.bf16.gmra.mxu1 %v1740_v21  ;;  %v868_v60 = vpack.c.b16 %v820_v53, %v820_v53  ;;  %v461_v63 = vmax.f32 %v429_v54, 0.0  ;;  %v410_v0 = vmul.f32 %v9104_v8, %v374_v40  ;;  %v1751_v1 = vrot.slane %v1749_v50, 1  ;;  %v375_v53 = vld [vmem:[%s9089_s13 + $0xe0] sm:$0xff] }
  0x85   : > { %v1548_v2 = vld [vmem:[#allocation2 + $0x98] sm:$0xf]  ;;  %v866_v3 = vpack.c.b16 %v818_v56, %v818_v56  ;;  %v867_v4 = vpack.c.b16 %v819_v58, %v819_v58  ;;  %v685_v31 = vor.u32 %v683_v49, %v682_v59  ;;  %v770_v6 = vsel %vm9145_vm2, %v682_v59, 0 }
  0x86   : > { %2317 = vmatmul.bf16.gmra.mxu3 %v1836_v33  ;;  %v1684_v57 = vunpack.c.l.b16 %v1548_v2  ;;  %965 = vst [vmem:[#allocation2 + $0x44] sm:$0xf] %v868_v60  ;;  %v493_v12 = vpack.c.bf16 %v461_v63, %v461_v63  ;;  %v445_v14 = vadd.f32 %v9109_v9, %v409_v42  ;;  %v1747_v15 = vor.u32 %v1746_v55, %v1742_v43  ;;  %v376_v59 = vld [vmem:[%s9089_s13 + $0xe8] sm:$0xff] }
  0x87   : > { %963 = vst [vmem:[#allocation2 + $0x3c] sm:$0xf] %v866_v3  ;;  %v754_v62 = vsel %vm9145_vm2, 0, %v685_v31  ;;  %v844_v16 = vunpack.c.l.b16 %v770_v6  ;;  %v462_v17 = vmax.f32 %v430_v61, 0.0  ;;  %v446_v5 = vadd.f32 %v9109_v9, %v410_v0 }
  0x88   : > { %v8460_v19 = vld [vmem:[#allocation2 + $0x90] sm:$0xff]  ;;  %v9299_v11 = vpack.c.b16 %v1684_v57, %v1684_v57  ;;  %964 = vst [vmem:[#allocation2 + $0x40] sm:$0xf] %v867_v4  ;;  %v842_v20 = vunpack.c.l.b16 %v754_v62  ;;  %v843_v21 = vunpack.c.h.b16 %v754_v62  ;;  %v557_v22 = vunpack.c.l.b16 %v493_v12 }
  0x89   : > { %v892_v23 = vpack.c.b16 %v844_v16, %v844_v16  ;;  %v494_v24 = vpack.c.bf16 %v462_v17, %v462_v17  ;;  %v477_v27 = vmax.f32 %v445_v14, 0.0  ;;  %v1838_v26 = vshrl.u32 %v8460_v19, 16 }
  0x8a   : > { %v1840_v32 = vshll.u32 %v8460_v19, 16  ;;  %v1845_v33 = vshll.u32 %v9299_v11, 16  ;;  %v890_v35 = vpack.c.b16 %v842_v20, %v842_v20  ;;  %v891_v18 = vpack.c.b16 %v843_v21, %v843_v21 }
  0x8b   : > { %989 = vst [vmem:[#allocation2 + $0xa4] sm:$0xf] %v892_v23  ;;  %v558_v36 = vunpack.c.l.b16 %v494_v24  ;;  %v478_v38 = vmax.f32 %v446_v5, 0.0  ;;  %v509_v39 = vpack.c.bf16 %v477_v27, %v477_v27  ;;  %v395_v42 = vmul.f32 %v9104_v8, %v359_v28  ;;  %v9330_v23 = vld [vmem:[%s11184_s4] ss:$0 sm:$0xff] }
  0x8c   : > { %v1842_v40 = vrot.slane %v1840_v32, 1  ;;  %987 = vst [vmem:[#allocation2 + $0x9c] sm:$0xf] %v890_v35  ;;  %v396_v43 = vmul.f32 %v9104_v8, %v360_v29  ;;  %v1847_v46 = vrot.slane %v1845_v33, 1  ;;  %v1752_v60 = vsel %vm1191_vm3, %v1747_v15, %v1751_v1  ;;  %v8483_v35 = vld [vmem:[#allocation7 + $0x150] sm:$0xff] }
  0x8d   : > { %2193 = vmatmul.bf16.gmra.mxu0 %v9276_v34  ;;  %988 = vst [vmem:[#allocation2 + $0xa0] sm:$0xf] %v891_v18  ;;  %v1527_v47 = vld [vmem:[#allocation2 + $0x44] sm:$0xf]  ;;  %v584_v49 = vpack.c.b16 %v558_v36, %v557_v22  ;;  %v510_v50 = vpack.c.bf16 %v478_v38, %v478_v38  ;;  %v573_v52 = vunpack.c.l.b16 %v509_v39  ;;  %v431_v56 = vadd.f32 %v9109_v9, %v395_v42 }
  0x8e   : > { %v1843_v54 = vor.u32 %v1842_v40, %v1838_v26  ;;  %v1677_v55 = vunpack.c.l.b16 %v1527_v47  ;;  %v432_v58 = vadd.f32 %v9109_v9, %v396_v43  ;;  %2233 = vmatmul.bf16.gmra.mxu2 %v8460_v19  ;;  %v411_v57 = vmul.f32 %v9104_v8, %v375_v53  ;;  %v8427_v18 = vld [vmem:[#allocation7 + $0x10] sm:$0xff] }
  0x8f   : > { %v9313_v61 = vld [vmem:[#allocation2 + $0x3c] sm:$0xff]  ;;  %v631_v63 = vshrl.u32 %v584_v49, 16  ;;  %v634_v0 = vshll.u32 %v584_v49, 16  ;;  %v574_v2 = vunpack.c.l.b16 %v510_v50  ;;  %v463_v4 = vmax.f32 %v431_v56, 0.0  ;;  %2353 = vmatpush.bf16.msrb.mxu2 %v8483_v35  ;;  %2586 = vmatpush.bf16.msrb.mxu3 %v8427_v18 }
  0x90   : > { %v9315_v3 = vpack.c.b16 %v1677_v55, %v1677_v55  ;;  %v464_v31 = vmax.f32 %v432_v58, 0.0  ;;  %v1756_v6 = vshll.u32 %v9313_v61, 16  ;;  %v412_v9 = vmul.f32 %v9104_v8, %v376_v59  ;;  %v8435_v36 = vld [vmem:[#allocation7 + $0x50] sm:$0xff] }
  0x91   : > { %v633_v7 = vrot.slane %v631_v63, 7  ;;  %v592_v10 = vpack.c.b16 %v574_v2, %v573_v52  ;;  %v1848_v48 = vsel %vm1191_vm3, %v1843_v54, %v1847_v46  ;;  %v1754_v1 = vshrl.u32 %v9313_v61, 16  ;;  %v361_v52 = vld [vmem:[%s9089_s13 + $0x70] sm:$0xff]  ;;  %2675 = vmatpush.bf16.msrb.mxu0 %v8435_v36 }
  0x92   : > { %v1761_v12 = vshll.u32 %v9315_v3, 16  ;;  %v1551_v14 = vld [vmem:[#allocation2 + $0xa4] sm:$0xf]  ;;  %v495_v15 = vpack.c.bf16 %v463_v4, %v463_v4  ;;  %v496_v19 = vpack.c.bf16 %v464_v31, %v464_v31  ;;  %v1758_v21 = vrot.slane %v1756_v6, 1 }
  0x93   : > { %v1685_v62 = vunpack.c.l.b16 %v1551_v14  ;;  %v636_v16 = vor.u32 %v634_v0, %v633_v7  ;;  %v687_v17 = vshrl.u32 %v592_v10, 16  ;;  %v690_v22 = vshll.u32 %v592_v10, 16  ;;  %v362_v0 = vld [vmem:[%s9089_s13 + $0x78] sm:$0xff] }
  0x94   : > { %2282 = vmatmul.bf16.gmra.mxu1 %v1752_v60  ;;  %v9323_v20 = vld [vmem:[#allocation2 + $0x9c] sm:$0xff]  ;;  %v763_v8 = vsel %vm9145_vm2, %v633_v7, 0  ;;  %v447_v24 = vadd.f32 %v9330_v23, %v411_v57  ;;  %v9333_v5 = vrot.slane %v1761_v12, 1  ;;  %v559_v38 = vunpack.c.l.b16 %v495_v15  ;;  %v378_v10 = vld [vmem:[%s9089_s13 + $0xf8] sm:$0xff] }
  0x95   : > { %v9335_v27 = vpack.c.b16 %v1685_v62, %v1685_v62  ;;  %v747_v28 = vsel %vm9145_vm2, 0, %v636_v16  ;;  %v689_v29 = vrot.slane %v687_v17, 7  ;;  %v1852_v26 = vshll.u32 %v9323_v20, 16  ;;  %v8745_v57 = vld [vmem:[%s11183_s3] ss:$0 sm:$0xff] }
  0x96   : > { %2322 = vmatmul.bf16.gmra.mxu3 %v1848_v48  ;;  %v821_v32 = vunpack.c.l.b16 %v747_v28  ;;  %v822_v33 = vunpack.c.h.b16 %v747_v28  ;;  %v1850_v39 = vshrl.u32 %v9323_v20, 16  ;;  %v823_v43 = vunpack.c.l.b16 %v763_v8  ;;  %v377_v7 = vld [vmem:[%s9089_s13 + $0xf0] sm:$0xff] }
  0x97   : > { %v1857_v40 = vshll.u32 %v9335_v27, 16  ;;  %v692_v42 = vor.u32 %v690_v22, %v689_v29  ;;  %v1854_v46 = vrot.slane %v1852_v26, 1  ;;  %v771_v50 = vsel %vm9145_vm2, %v689_v29, 0 }
  0x98   : > { %v869_v47 = vpack.c.b16 %v821_v32, %v821_v32  ;;  %v870_v49 = vpack.c.b16 %v822_v33, %v822_v33  ;;  %v1759_v53 = vor.u32 %v1758_v21, %v1754_v1  ;;  %v871_v55 = vpack.c.b16 %v823_v43, %v823_v43 }
  0x99   : > { %v755_v54 = vsel %vm9145_vm2, 0, %v692_v42  ;;  %v847_v56 = vunpack.c.l.b16 %v771_v50  ;;  %v1859_v58 = vrot.slane %v1857_v40, 1  ;;  %v560_v63 = vunpack.c.l.b16 %v496_v19 }
  0x9a   : > { %966 = vst [vmem:[#allocation2 + $0x48] sm:$0xf] %v869_v47  ;;  %v845_v59 = vunpack.c.l.b16 %v755_v54  ;;  %v846_v60 = vunpack.c.h.b16 %v755_v54  ;;  %v448_v4 = vadd.f32 %v9330_v23, %v412_v9  ;;  %v479_v31 = vmax.f32 %v447_v24, 0.0 }
  0x9b   : > { %967 = vst [vmem:[#allocation2 + $0x4c] sm:$0xf] %v870_v49  ;;  %v895_v2 = vpack.c.b16 %v847_v56, %v847_v56  ;;  %v397_v6 = vmul.f32 %v8745_v57, %v361_v52  ;;  %v1855_v48 = vor.u32 %v1854_v46, %v1850_v39  ;;  %v585_v14 = vpack.c.b16 %v560_v63, %v559_v38 }
  0x9c   : > { %v893_v1 = vpack.c.b16 %v845_v59, %v845_v59  ;;  %v894_v12 = vpack.c.b16 %v846_v60, %v846_v60  ;;  %968 = vst [vmem:[#allocation2 + $0x50] sm:$0xf] %v871_v55  ;;  %v480_v15 = vmax.f32 %v448_v4, 0.0  ;;  %v511_v62 = vpack.c.bf16 %v479_v31, %v479_v31  ;;  %v8482_v4 = vld [vmem:[#allocation7 + $0x148] sm:$0xff] }
  0x9d   : > { %2198 = vmatmul.bf16.gmra.mxu0 %v9313_v61  ;;  %992 = vst [vmem:[#allocation2 + $0xb0] sm:$0xf] %v895_v2  ;;  %v398_v16 = vmul.f32 %v8745_v57, %v362_v0  ;;  %v433_v9 = vadd.f32 %v9330_v23, %v397_v6  ;;  %v638_v17 = vshrl.u32 %v585_v14, 16  ;;  %v641_v19 = vshll.u32 %v585_v14, 16  ;;  %v8426_v31 = vld [vmem:[#allocation7 + $0x8] sm:$0xff]  ;;  %2354 = vmatpush.bf16.msrb.mxu2 %v8482_v4 }
  0x9e   : > { %990 = vst [vmem:[#allocation2 + $0xa8] sm:$0xf] %v893_v1  ;;  %v413_v21 = vmul.f32 %v8745_v57, %v377_v7  ;;  %v414_v22 = vmul.f32 %v8745_v57, %v378_v10  ;;  %2238 = vmatmul.bf16.gmra.mxu2 %v9323_v20  ;;  %v512_v8 = vpack.c.bf16 %v480_v15, %v480_v15  ;;  %v575_v24 = vunpack.c.l.b16 %v511_v62  ;;  %v8434_v1 = vld [vmem:[#allocation7 + $0x48] sm:$0xff] }
  0x9f   : > { %991 = vst [vmem:[#allocation2 + $0xac] sm:$0xf] %v894_v12  ;;  %v434_v28 = vadd.f32 %v9330_v23, %v398_v16  ;;  %v465_v29 = vmax.f32 %v433_v9, 0.0  ;;  %v640_v26 = vrot.slane %v638_v17, 7  ;;  %v1764_v35 = vsel %vm1191_vm3, %v1759_v53, %v9333_v5  ;;  %2587 = vmatpush.bf16.msrb.mxu3 %v8426_v31  ;;  %2676 = vmatpush.bf16.msrb.mxu0 %v8434_v1 }
  0xa0   : > { %v449_v32 = vadd.f32 %v9330_v23, %v413_v21  ;;  %v450_v33 = vadd.f32 %v9330_v23, %v414_v22  ;;  %v576_v18 = vunpack.c.l.b16 %v512_v8  ;;  %v1860_v38 = vsel %vm1191_vm3, %v1855_v48, %v1859_v58 }
  0xa1   : > { %v466_v36 = vmax.f32 %v434_v28, 0.0  ;;  %v643_v20 = vor.u32 %v641_v19, %v640_v26  ;;  %v764_v40 = vsel %vm9145_vm2, %v640_v26, 0  ;;  %v497_v42 = vpack.c.bf16 %v465_v29, %v465_v29 }
  0xa2   : > { %v9363_v39 = vld [vmem:[#allocation2 + $0x48] sm:$0xff]  ;;  %v593_v46 = vpack.c.b16 %v576_v18, %v575_v24  ;;  %v826_v47 = vunpack.c.l.b16 %v764_v40  ;;  %v481_v49 = vmax.f32 %v449_v32, 0.0  ;;  %v482_v50 = vmax.f32 %v450_v33, 0.0 }
  0xa3   : > { %v1530_v43 = vld [vmem:[#allocation2 + $0x50] sm:$0xf]  ;;  %v1768_v5 = vshll.u32 %v9363_v39, 16  ;;  %v748_v53 = vsel %vm9145_vm2, 0, %v643_v20  ;;  %v498_v54 = vpack.c.bf16 %v466_v36, %v466_v36  ;;  %v561_v57 = vunpack.c.l.b16 %v497_v42 }
  0xa4   : > { %2287 = vmatmul.bf16.gmra.mxu1 %v1764_v35  ;;  %v1678_v23 = vunpack.c.l.b16 %v1530_v43  ;;  %v1554_v52 = vld [vmem:[#allocation2 + $0xb0] sm:$0xf]  ;;  %v824_v56 = vunpack.c.l.b16 %v748_v53  ;;  %v825_v58 = vunpack.c.h.b16 %v748_v53  ;;  %v694_v59 = vshrl.u32 %v593_v46, 16 }
  0xa5   : > { %v1686_v55 = vunpack.c.l.b16 %v1554_v52  ;;  %v697_v0 = vshll.u32 %v593_v46, 16  ;;  %v874_v2 = vpack.c.b16 %v826_v47, %v826_v47  ;;  %v1766_v12 = vshrl.u32 %v9363_v39, 16 }
  0xa6   : > { %2327 = vmatmul.bf16.gmra.mxu3 %v1860_v38  ;;  %v8462_v60 = vld [vmem:[#allocation2 + $0xa8] sm:$0xff]  ;;  %v9370_v63 = vpack.c.b16 %v1678_v23, %v1678_v23  ;;  %v872_v7 = vpack.c.b16 %v824_v56, %v824_v56  ;;  %v873_v10 = vpack.c.b16 %v825_v58, %v825_v58  ;;  %v696_v48 = vrot.slane %v694_v59, 7  ;;  %v8447_v58 = vld [vmem:[#allocation7 + $0xb0] sm:$0xff] }
  0xa7   : > { %v9372_v6 = vpack.c.b16 %v1686_v55, %v1686_v55  ;;  %v1770_v14 = vrot.slane %v1768_v5, 1  ;;  %v1864_v62 = vshll.u32 %v8462_v60, 16  ;;  %971 = vst [vmem:[#allocation2 + $0x5c] sm:$0xf] %v874_v2  ;;  %v562_v17 = vunpack.c.l.b16 %v498_v54 }
  0xa8   : > { %v1773_v15 = vshll.u32 %v9370_v63, 16  ;;  %969 = vst [vmem:[#allocation2 + $0x54] sm:$0xf] %v872_v7  ;;  %v699_v16 = vor.u32 %v697_v0, %v696_v48  ;;  %v772_v9 = vsel %vm9145_vm2, %v696_v48, 0  ;;  %v1862_v19 = vshrl.u32 %v8462_v60, 16 }
  0xa9   : > { %v1869_v21 = vshll.u32 %v9372_v6, 16  ;;  %970 = vst [vmem:[#allocation2 + $0x58] sm:$0xf] %v873_v10  ;;  %v850_v22 = vunpack.c.l.b16 %v772_v9  ;;  %v513_v8 = vpack.c.bf16 %v481_v49, %v481_v49  ;;  %v1866_v24 = vrot.slane %v1864_v62, 1 }
  0xaa   : > { %v756_v28 = vsel %vm9145_vm2, 0, %v699_v16  ;;  %v586_v29 = vpack.c.b16 %v562_v17, %v561_v57  ;;  %v514_v26 = vpack.c.bf16 %v482_v50, %v482_v50  ;;  %v1771_v32 = vor.u32 %v1770_v14, %v1766_v12  ;;  %v8448_v50 = vld [vmem:[#allocation7 + $0xb8] sm:$0xff]  ;;  %v8481_v17 = vld [vmem:[#allocation7 + $0x140] sm:$0xff] }
  0xab   : > { %v1775_v33 = vrot.slane %v1773_v15, 1  ;;  %v848_v35 = vunpack.c.l.b16 %v756_v28  ;;  %v849_v18 = vunpack.c.h.b16 %v756_v28  ;;  %v898_v36 = vpack.c.b16 %v850_v22, %v850_v22  ;;  %2759 = vmatpush.bf16.msrb.mxu1 %v8448_v50  ;;  %2355 = vmatpush.bf16.msrb.mxu2 %v8481_v17 }
  0xac   : > { %v645_v38 = vshrl.u32 %v586_v29, 16  ;;  %v648_v20 = vshll.u32 %v586_v29, 16  ;;  %v577_v40 = vunpack.c.l.b16 %v513_v8  ;;  %v1871_v42 = vrot.slane %v1869_v21, 1  ;;  %v8446_v8 = vld [vmem:[#allocation7 + $0xa8] sm:$0xff] }
  0xad   : > { %2203 = vmatmul.bf16.gmra.mxu0 %v9363_v39  ;;  %v896_v43 = vpack.c.b16 %v848_v35, %v848_v35  ;;  %v897_v46 = vpack.c.b16 %v849_v18, %v849_v18  ;;  %v578_v47 = vunpack.c.l.b16 %v514_v26  ;;  %v1867_v49 = vor.u32 %v1866_v24, %v1862_v19  ;;  %995 = vst [vmem:[#allocation2 + $0xbc] sm:$0xf] %v898_v36  ;;  %v8425_v19 = vld [vmem:[#allocation7] sm:$0xff] }
  0xae   : > { %2243 = vmatmul.bf16.gmra.mxu2 %v8462_v60  ;;  %v1533_v23 = vld [vmem:[#allocation2 + $0x5c] sm:$0xf]  ;;  %v647_v5 = vrot.slane %v645_v38, 7  ;;  %v1776_v54 = vsel %vm1191_vm3, %v1771_v32, %v1775_v33  ;;  %v8944_v4 = vmov 0   ;;  %2588 = vmatpush.bf16.msrb.mxu3 %v8425_v19 }
  0xaf   : > { %993 = vst [vmem:[#allocation2 + $0xb4] sm:$0xf] %v896_v43  ;;  %v1679_v52 = vunpack.c.l.b16 %v1533_v23  ;;  %v594_v53 = vpack.c.b16 %v578_v47, %v577_v40  ;;  %v1872_v31 = vsel %vm1191_vm3, %v1867_v49, %v1871_v42  ;;  %2760 = vmatpush.bf16.msrb.mxu1 %v8447_v58  ;;  %v8433_v40 = vld [vmem:[#allocation7 + $0x40] sm:$0xff] }
  0xb0   : > { %v9383_v55 = vld [vmem:[#allocation2 + $0x54] sm:$0xff]  ;;  %994 = vst [vmem:[#allocation2 + $0xb8] sm:$0xf] %v897_v46  ;;  %v650_v56 = vor.u32 %v648_v20, %v647_v5  ;;  %v765_v59 = vsel %vm9145_vm2, %v647_v5, 0  ;;  %2677 = vmatpush.bf16.msrb.mxu0 %v8433_v40 }
  0xb1   : > { %v701_v60 = vshrl.u32 %v594_v53, 16  ;;  %v704_v0 = vshll.u32 %v594_v53, 16  ;;  %v829_v2 = vunpack.c.l.b16 %v765_v59  ;;  %333 = vst [vmem:[#allocation2] sm:$0xf] %v8944_v4  ;;  %v9392_v7 = vpack.c.b16 %v1679_v52, %v1679_v52  ;;  %v8445_v42 = vld [vmem:[#allocation7 + $0xa0] sm:$0xff] }
  0xb2   : > { %v749_v57 = vsel %vm9145_vm2, 0, %v650_v56  ;;  %334 = vst [vmem:[#allocation2 + $0x4] sm:$0xf] %v8944_v4  ;;  %v1780_v12 = vshll.u32 %v9383_v55, 16  ;;  %v1778_v28 = vshrl.u32 %v9383_v55, 16  ;;  %v8444_v56 = vld [vmem:[#allocation7 + $0x98] sm:$0xff] }
  0xb3   : > { %v827_v10 = vunpack.c.l.b16 %v749_v57  ;;  %v828_v48 = vunpack.c.h.b16 %v749_v57  ;;  %v703_v1 = vrot.slane %v701_v60, 7  ;;  %335 = vst [vmem:[#allocation2 + $0x8] sm:$0xf] %v8944_v4  ;;  %v877_v14 = vpack.c.b16 %v829_v2, %v829_v2  ;;  %2761 = vmatpush.bf16.msrb.mxu1 %v8446_v8 }
  0xb4   : > { %2292 = vmatmul.bf16.gmra.mxu1 %v1776_v54  ;;  %337 = vst [vmem:[#allocation2 + $0xcc] sm:$0xf] %v8944_v4  ;;  %v1557_v15 = vld [vmem:[#allocation2 + $0xbc] sm:$0xf]  ;;  %v1785_v29 = vshll.u32 %v9392_v7, 16  ;;  %v1782_v33 = vrot.slane %v1780_v12, 1 }
  0xb5   : > { %v875_v62 = vpack.c.b16 %v827_v10, %v827_v10  ;;  %v876_v16 = vpack.c.b16 %v828_v48, %v828_v48  ;;  %v706_v9 = vor.u32 %v704_v0, %v703_v1  ;;  %v1687_v21 = vunpack.c.l.b16 %v1557_v15  ;;  %974 = vst [vmem:[#allocation2 + $0x68] sm:$0xf] %v877_v14  ;;  %v8443_v0 = vld [vmem:[#allocation7 + $0x90] sm:$0xff]  ;;  %v8512_v12 = vld [vmem:[#allocation7 + $0x1b8] sm:$0xff] }
  0xb6   : > { %2332 = vmatmul.bf16.gmra.mxu3 %v1872_v31  ;;  %v773_v22 = vsel %vm9145_vm2, %v703_v1, 0  ;;  %338 = vst [vmem:[#allocation2 + $0xd0] sm:$0xf] %v8944_v4  ;;  %v1783_v5 = vor.u32 %v1782_v33, %v1778_v28  ;;  %v1787_v50 = vrot.slane %v1785_v29, 1  ;;  %v8520_v14 = vld [vmem:[#allocation7 + $0x1f8] sm:$0xff]  ;;  %3506 = vmatpush.bf16.msra.mxu2 %v8512_v12 }
  0xb7   : > { %v8463_v24 = vld [vmem:[#allocation2 + $0xb4] sm:$0xff]  ;;  %972 = vst [vmem:[#allocation2 + $0x60] sm:$0xf] %v875_v62  ;;  %v757_v26 = vsel %vm9145_vm2, 0, %v706_v9  ;;  %v853_v32 = vunpack.c.l.b16 %v773_v22  ;;  %v9403_v35 = vpack.c.b16 %v1687_v21, %v1687_v21  ;;  %2762 = vmatpush.bf16.msrb.mxu1 %v8445_v42  ;;  %3595 = vmatpush.bf16.msra.mxu3 %v8520_v14 }
  0xb8   : > { %973 = vst [vmem:[#allocation2 + $0x64] sm:$0xf] %v876_v16  ;;  %v851_v18 = vunpack.c.l.b16 %v757_v26  ;;  %v852_v36 = vunpack.c.h.b16 %v757_v26  ;;  %v1876_v38 = vshll.u32 %v8463_v24, 16  ;;  %v1874_v43 = vshrl.u32 %v8463_v24, 16  ;;  %v8442_v9 = vld [vmem:[#allocation7 + $0x88] sm:$0xff] }
  0xb9   : > { %v901_v20 = vpack.c.b16 %v853_v32, %v853_v32  ;;  %v1881_v46 = vshll.u32 %v9403_v35, 16  ;;  %339 = vst [vmem:[#allocation2 + $0xd4] sm:$0xf] %v8944_v4  ;;  %v1788_v58 = vsel %vm1191_vm3, %v1783_v5, %v1787_v50  ;;  %v8409_v22 = vld [vmem:[#allocation2] sm:$0xff]  ;;  %v1004_v5 = vld [vmem:[#allocation2 + $0x14] sm:$0xf] }
  0xba   : > { %v899_v47 = vpack.c.b16 %v851_v18, %v851_v18  ;;  %v900_v49 = vpack.c.b16 %v852_v36, %v852_v36  ;;  %v1878_v23 = vrot.slane %v1876_v38, 1  ;;  %340 = vst [vmem:[#allocation3] sm:$0xf] %v8944_v4  ;;  %v1001_v16 = vld [vmem:[#allocation2 + $0x8] sm:$0xf]  ;;  %v1195_v36 = vshll.u32 %v8409_v22, 16 }
  0xbb   : > { %998 = vst [vmem:[#allocation2 + $0xc8] sm:$0xf] %v901_v20  ;;  %v1883_v54 = vrot.slane %v1881_v46, 1  ;;  %2763 = vmatpush.bf16.msrb.mxu1 %v8444_v56  ;;  %v1159_v8 = vunpack.c.l.b16 %v1001_v16  ;;  %v1193_v42 = vshrl.u32 %v8409_v22, 16  ;;  %v8746_v50 = vld [vmem:[#allocation2 + $0xc] sm:$0xff] }
  0xbc   : > { %996 = vst [vmem:[#allocation2 + $0xc0] sm:$0xf] %v899_v47  ;;  %v1536_v52 = vld [vmem:[#allocation2 + $0x68] sm:$0xf]  ;;  %v1879_v53 = vor.u32 %v1878_v23, %v1874_v43  ;;  %v1197_v43 = vrot.slane %v1195_v36, 1 }
  0xbd   : > { %2208 = vmatmul.bf16.gmra.mxu0 %v9383_v55  ;;  %997 = vst [vmem:[#allocation2 + $0xc4] sm:$0xf] %v900_v49  ;;  %v1680_v60 = vunpack.c.l.b16 %v1536_v52  ;;  %v1175_v18 = vpack.c.b16 %v1159_v8, %v1159_v8  ;;  %v1913_v52 = vrot.slane %v8746_v50, 1  ;;  %v8511_v8 = vld [vmem:[#allocation7 + $0x1b0] sm:$0xff] }
  0xbe   : > { %2248 = vmatmul.bf16.gmra.mxu2 %v8463_v24  ;;  %341 = vst [vmem:[#allocation3 + $0x4] sm:$0xf] %v8944_v4  ;;  %v1884_v2 = vsel %vm1191_vm3, %v1879_v53, %v1883_v54  ;;  %v8528_v24 = vld [vmem:[#allocation7 + $0x238] sm:$0xff]  ;;  %v1198_v49 = vor.u32 %v1197_v43, %v1193_v42  ;;  %v1914_v53 = vrot.slane %v9193_v41, 1  ;;  %v8527_v43 = vld [vmem:[#allocation7 + $0x230] sm:$0xff] }
  0xbf   : > { %v9411_v59 = vld [vmem:[#allocation2 + $0x60] sm:$0xff]  ;;  %342 = vst [vmem:[#allocation3 + $0x8] sm:$0xf] %v8944_v4  ;;  %v9418_v48 = vpack.c.b16 %v1680_v60, %v1680_v60  ;;  %2764 = vmatpush.bf16.msrb.mxu1 %v8443_v0  ;;  %3684 = vmatpush.bf16.msra.mxu0 %v8528_v24  ;;  %v1200_v46 = vshll.u32 %v1175_v18, 16  ;;  %v1160_v60 = vunpack.c.l.b16 %v1004_v5 }
  0xc0   : > { %344 = vst [vmem:[#allocation3 + $0xcc] sm:$0xf] %v8944_v4  ;;  %v1792_v1 = vshll.u32 %v9411_v59, 16  ;;  %v1790_v17 = vshrl.u32 %v9411_v59, 16  ;;  %v1915_v0 = vsel %vm1400_vm4, %v1913_v52, %v1914_v53  ;;  %v1007_v24 = vld [vmem:[#allocation2 + $0x20] sm:$0xf]  ;;  %3507 = vmatpush.bf16.msra.mxu2 %v8511_v8 }
  0xc1   : > { %345 = vst [vmem:[#allocation3 + $0xd0] sm:$0xf] %v8944_v4  ;;  %v1797_v21 = vshll.u32 %v9418_v48, 16  ;;  %v1202_v23 = vrot.slane %v1200_v46, 1  ;;  %v1161_v42 = vunpack.c.l.b16 %v1007_v24  ;;  %v8412_v24 = vld [vmem:[#allocation2 + $0x24] sm:$0xff] }
  0xc2   : > { %v1560_v31 = vld [vmem:[#allocation2 + $0xc8] sm:$0xf]  ;;  %346 = vst [vmem:[#allocation3 + $0xd4] sm:$0xf] %v8944_v4  ;;  %v1794_v19 = vrot.slane %v1792_v1, 1  ;;  %v8441_v4 = vld [vmem:[#allocation7 + $0x80] sm:$0xff] }
  0xc3   : > { %v1688_v57 = vunpack.c.l.b16 %v1560_v31  ;;  %2765 = vmatpush.bf16.msrb.mxu1 %v8442_v9  ;;  %v1799_v33 = vrot.slane %v1797_v21, 1  ;;  %v1203_v56 = vsel %vm1191_vm3, %v1198_v49, %v1202_v23  ;;  %v1402_v31 = vrot.slane %v1175_v18, 1  ;;  %3685 = vmatpush.bf16.msra.mxu0 %v8527_v43 }
  0xc4   : > { %2297 = vmatmul.bf16.gmra.mxu1 %v1788_v58  ;;  %v8464_v10 = vld [vmem:[#allocation2 + $0xc0] sm:$0xff]  ;;  %v1795_v32 = vor.u32 %v1794_v19, %v1790_v17  ;;  %v8410_v58 = vld [vmem:[#allocation2 + $0xc] sm:$0xff]  ;;  %v1177_v49 = vpack.c.b16 %v1161_v42, %v1161_v42 }
  0xc5   : > { %v9422_v15 = vpack.c.b16 %v1688_v57, %v1688_v57  ;;  %v1888_v62 = vshll.u32 %v8464_v10, 16  ;;  %v1886_v28 = vshrl.u32 %v8464_v10, 16  ;;  %v1176_v57 = vpack.c.b16 %v1160_v60, %v1160_v60 }
  0xc6   : > { %2337 = vmatmul.bf16.gmra.mxu3 %v1884_v2  ;;  %v1800_v40 = vsel %vm1191_vm3, %v1795_v32, %v1799_v33  ;;  %v1401_v2 = vrot.slane %v8409_v22, 1  ;;  %v1205_v16 = vshrl.u32 %v8410_v58, 16 }
  0xc7   : > { %v1890_v29 = vrot.slane %v1888_v62, 1  ;;  %v1893_v26 = vshll.u32 %v9422_v15, 16  ;;  %2766 = vmatpush.bf16.msrb.mxu1 %v8441_v4  ;;  %v1212_v17 = vshll.u32 %v1176_v57, 16  ;;  %v8519_v4 = vld [vmem:[#allocation7 + $0x1f0] sm:$0xff] }
  0xc8   : > { %v1403_v12 = vsel %vm1400_vm4, %v1401_v2, %v1402_v31  ;;  %3596 = vmatpush.bf16.msra.mxu3 %v8519_v4  ;;  %v1224_v31 = vshll.u32 %v1177_v49, 16 }
  0xc9   : > { %v1891_v38 = vor.u32 %v1890_v29, %v1886_v28  ;;  %v1895_v20 = vrot.slane %v1893_v26, 1  ;;  %v1214_v21 = vrot.slane %v1212_v17, 1  ;;  %v8747_v28 = vld [vmem:[#allocation2 + $0x18] sm:$0xff]  ;;  %v1917_v26 = vrot.slane %v9222_v25, 1 }
  0xca   : > { %v1916_v29 = vrot.slane %v8747_v28, 1  ;;  %v1404_v25 = vrot.slane %v8410_v58, 1 }
  0xcb   : > { %v1896_v47 = vsel %vm1191_vm3, %v1891_v38, %v1895_v20 }
  0xcc   : > { %v1918_v46 = vsel %vm1400_vm4, %v1916_v29, %v1917_v26  ;;  %v1408_v26 = vrot.slane %v1177_v49, 1 }
  0xcd   : > { %2213 = vmatmul.bf16.gmra.mxu0 %v9411_v59 }
  0xce   : > { %2253 = vmatmul.bf16.gmra.mxu2 %v8464_v10  ;;  %v1207_v10 = vshll.u32 %v8410_v58, 16 }
  0xd0   : > { %v1209_v9 = vrot.slane %v1207_v10, 1 }
  0xd2   : > { %v1210_v19 = vor.u32 %v1209_v9, %v1205_v16 }
  0xd4   : > { %2302 = vmatmul.bf16.gmra.mxu1 %v1800_v40  ;;  %v8411_v40 = vld [vmem:[#allocation2 + $0x18] sm:$0xff] }
  0xd5   : > { %v1219_v23 = vshll.u32 %v8411_v40, 16  ;;  %v1217_v52 = vshrl.u32 %v8411_v40, 16  ;;  %v1407_v29 = vrot.slane %v8411_v40, 1 }
  0xd6   : > { %2342 = vmatmul.bf16.gmra.mxu3 %v1896_v47  ;;  %v1405_v47 = vrot.slane %v1176_v57, 1  ;;  %v1226_v57 = vrot.slane %v1224_v31, 1 }
  0xd7   : > { %v1221_v2 = vrot.slane %v1219_v23, 1 }
  0xd8   : > { %v1406_v53 = vsel %vm1400_vm4, %v1404_v25, %v1405_v47 }
  0xd9   : > { %v1222_v10 = vor.u32 %v1221_v2, %v1217_v52  ;;  %v8518_v52 = vld [vmem:[#allocation7 + $0x1e8] sm:$0xff] }
  0xda   : > { %v2179_v54 = vpop.f32.mrf.mxu0  ;;  %3597 = vmatpush.bf16.msra.mxu3 %v8518_v52 }
  0xdb   : > { %v1227_v4 = vsel %vm1191_vm3, %v1222_v10, %v1226_v57 }
  0xdd   : > { %2678 = vmatmul.bf16.vlgmr.msrb.gmra.mxu0 %v1203_v56 }
  0xde   : > { %2356 = vmatmul.bf16.vlgmr.msrb.gmra.mxu2 %v1915_v0 }
  0xe1   : > { %v2268_v1 = vpop.f32.mrf.mxu1  ;;  %v2219_v14 = vpop.f32.mrf.mxu2 }
  0xe2   : > { %v9434_v62 = vadd.f32 %v2268_v1, %v2179_v54  ;;  %v2181_v41 = vpop.f32.mrf.mxu0  ;;  %v1010_v1 = vld [vmem:[#allocation2 + $0x2c] sm:$0xf] }
  0xe3   : > { %v1162_v28 = vunpack.c.l.b16 %v1010_v1 }
  0xe4   : > { %2767 = vmatmul.bf16.vlgmr.msrb.gmra.mxu1 %v1403_v12  ;;  %v8748_v12 = vld [vmem:[#allocation2 + $0x24] sm:$0xff] }
  0xe6   : > { %2589 = vmatmul.bf16.vlgmr.msrb.gmra.mxu3 %v8409_v22  ;;  %v1215_v22 = vsel %vm1191_vm3, %v1210_v19, %v1214_v21 }
  0xe9   : > { %v2308_v32 = vpop.f32.mrf.mxu3  ;;  %v2270_v33 = vpop.f32.mrf.mxu1 }
  0xea   : > { %v9437_v18 = vadd.f32 %v2308_v32, %v2219_v14  ;;  %v2221_v36 = vpop.f32.mrf.mxu2  ;;  %v9439_v38 = vadd.f32 %v2270_v33, %v2181_v41  ;;  %v2184_v20 = vpop.f32.mrf.mxu0  ;;  %v1919_v14 = vrot.slane %v8748_v12, 1  ;;  %v1920_v41 = vrot.slane %v9260_v44, 1 }
  0xeb   : > { %v1178_v32 = vpack.c.b16 %v1162_v28, %v1162_v28  ;;  %v1231_v33 = vshll.u32 %v8412_v24, 16 }
  0xed   : > { %2683 = vmatmul.bf16.gmra.mxu0 %v1215_v22  ;;  %v1409_v22 = vsel %vm1400_vm4, %v1407_v29, %v1408_v26  ;;  %v1233_v47 = vrot.slane %v1231_v33, 1  ;;  %v1236_v23 = vshll.u32 %v1178_v32, 16 }
  0xee   : > { %2361 = vmatmul.bf16.gmra.mxu2 %v1918_v46 }
  0xef   : > { %v1238_v49 = vrot.slane %v1236_v23, 1  ;;  %v1926_v23 = vrot.slane %v9315_v3, 1 }
  0xf1   : > { %v2310_v5 = vpop.f32.mrf.mxu3  ;;  %v2273_v50 = vpop.f32.mrf.mxu1 }
  0xf2   : > { %v9444_v54 = vadd.f32 %v2310_v5, %v2221_v36  ;;  %v2224_v56 = vpop.f32.mrf.mxu2  ;;  %v9446_v60 = vadd.f32 %v2273_v50, %v2184_v20  ;;  %v2186_v0 = vpop.f32.mrf.mxu0  ;;  %v1229_v20 = vshrl.u32 %v8412_v24, 16  ;;  %v8510_v50 = vld [vmem:[#allocation7 + $0x1a8] sm:$0xff] }
  0xf3   : > { %3508 = vmatpush.bf16.msra.mxu2 %v8510_v50 }
  0xf4   : > { %2772 = vmatmul.bf16.gmra.mxu1 %v1406_v53  ;;  %v1234_v5 = vor.u32 %v1233_v47, %v1229_v20  ;;  %v1013_v53 = vld [vmem:[#allocation2 + $0x38] sm:$0xf]  ;;  %v1925_v47 = vrot.slane %v9313_v61, 1 }
  0xf6   : > { %2594 = vmatmul.bf16.gmra.mxu3 %v8410_v58  ;;  %v1921_v58 = vsel %vm1400_vm4, %v1919_v14, %v1920_v41  ;;  %v8413_v14 = vld [vmem:[#allocation2 + $0x30] sm:$0xff]  ;;  %v1163_v41 = vunpack.c.l.b16 %v1013_v53 }
  0xf9   : > { %v2313_v16 = vpop.f32.mrf.mxu3  ;;  %v2275_v9 = vpop.f32.mrf.mxu1 }
  0xfa   : > { %v9449_v17 = vadd.f32 %v2313_v16, %v2224_v56  ;;  %v2226_v19 = vpop.f32.mrf.mxu2  ;;  %v9451_v21 = vadd.f32 %v2275_v9, %v2186_v0  ;;  %v2189_v8 = vpop.f32.mrf.mxu0  ;;  %v1922_v56 = vrot.slane %v9276_v34, 1  ;;  %v1923_v0 = vrot.slane %v9280_v37, 1  ;;  %v8526_v16 = vld [vmem:[#allocation7 + $0x228] sm:$0xff] }
  0xfb   : > { %3686 = vmatpush.bf16.msra.mxu0 %v8526_v16  ;;  %v1410_v34 = vrot.slane %v8412_v24, 1  ;;  %v1411_v37 = vrot.slane %v1178_v32, 1 }
  0xfc   : > { %v1924_v9 = vsel %vm1400_vm4, %v1922_v56, %v1923_v0 }
  0xfd   : > { %2688 = vmatmul.bf16.gmra.mxu0 %v1227_v4  ;;  %v1412_v29 = vsel %vm1400_vm4, %v1410_v34, %v1411_v37 }
  0xfe   : > { %2366 = vmatmul.bf16.gmra.mxu2 %v1921_v58  ;;  %v1241_v58 = vshrl.u32 %v8413_v14, 16 }
 0x101   : > { %v2315_v44 = vpop.f32.mrf.mxu3  ;;  %v2278_v36 = vpop.f32.mrf.mxu1 }
 0x102   : > { %v9456_v42 = vadd.f32 %v2315_v44, %v2226_v19  ;;  %v2229_v43 = vpop.f32.mrf.mxu2  ;;  %v9458_v46 = vadd.f32 %v2278_v36, %v2189_v8  ;;  %v2191_v25 = vpop.f32.mrf.mxu0  ;;  %v1179_v19 = vpack.c.b16 %v1163_v41, %v1163_v41  ;;  %v1243_v8 = vshll.u32 %v8413_v14, 16 }
 0x104   : > { %2777 = vmatmul.bf16.gmra.mxu1 %v1409_v22  ;;  %v1245_v20 = vrot.slane %v1243_v8, 1  ;;  %v1248_v22 = vshll.u32 %v1179_v19, 16 }
 0x106   : > { %2599 = vmatmul.bf16.gmra.mxu3 %v8411_v40  ;;  %v1239_v40 = vsel %vm1191_vm3, %v1234_v5, %v1238_v49  ;;  %v1250_v32 = vrot.slane %v1248_v22, 1  ;;  %v1928_v22 = vrot.slane %v9363_v39, 1 }
 0x109   : > { %v2318_v2 = vpop.f32.mrf.mxu3  ;;  %v2280_v31 = vpop.f32.mrf.mxu1 }
 0x10a   : > { %v9462_v10 = vadd.f32 %v2318_v2, %v2229_v43  ;;  %v2231_v57 = vpop.f32.mrf.mxu2  ;;  %v9464_v1 = vadd.f32 %v2280_v31, %v2191_v25  ;;  %v2194_v12 = vpop.f32.mrf.mxu0  ;;  %v1246_v43 = vor.u32 %v1245_v20, %v1241_v58  ;;  %v1016_v25 = vld [vmem:[#allocation2 + $0x44] sm:$0xf]  ;;  %v8414_v2 = vld [vmem:[#allocation2 + $0x3c] sm:$0xff]  ;;  %v1019_v20 = vld [vmem:[#allocation2 + $0x50] sm:$0xf] }
 0x10b   : > { %v1164_v31 = vunpack.c.l.b16 %v1016_v25  ;;  %v1253_v16 = vshrl.u32 %v8414_v2, 16  ;;  %v1416_v39 = vrot.slane %v8414_v2, 1 }
 0x10c   : > { %v1251_v0 = vsel %vm1191_vm3, %v1246_v43, %v1250_v32  ;;  %v1929_v43 = vrot.slane %v9370_v63, 1 }
 0x10d   : > { %2693 = vmatmul.bf16.gmra.mxu0 %v1239_v40  ;;  %v1180_v61 = vpack.c.b16 %v1164_v31, %v1164_v31  ;;  %v1255_v40 = vshll.u32 %v8414_v2, 16 }
 0x10e   : > { %2371 = vmatmul.bf16.gmra.mxu2 %v1924_v9  ;;  %v1930_v31 = vsel %vm1400_vm4, %v1928_v22, %v1929_v43 }
 0x10f   : > { %v1260_v58 = vshll.u32 %v1180_v61, 16  ;;  %v1417_v63 = vrot.slane %v1180_v61, 1 }
 0x111   : > { %v2320_v4 = vpop.f32.mrf.mxu3  ;;  %v2283_v28 = vpop.f32.mrf.mxu1 }
 0x112   : > { %v9469_v26 = vadd.f32 %v2320_v4, %v2231_v57  ;;  %v2234_v33 = vpop.f32.mrf.mxu2  ;;  %v9471_v44 = vadd.f32 %v2283_v28, %v2194_v12  ;;  %v2196_v36 = vpop.f32.mrf.mxu0  ;;  %v1413_v57 = vrot.slane %v8413_v14, 1  ;;  %v1414_v12 = vrot.slane %v1179_v19, 1 }
 0x113   : > { %v1257_v28 = vrot.slane %v1255_v40, 1  ;;  %v1262_v19 = vrot.slane %v1260_v58, 1 }
 0x114   : > { %2782 = vmatmul.bf16.gmra.mxu1 %v1412_v29  ;;  %v1415_v9 = vsel %vm1400_vm4, %v1413_v57, %v1414_v12 }
 0x115   : > { %v1258_v29 = vor.u32 %v1257_v28, %v1253_v16 }
 0x116   : > { %2604 = vmatmul.bf16.gmra.mxu3 %v8412_v24  ;;  %v1927_v24 = vsel %vm1400_vm4, %v1925_v47, %v1926_v23 }
 0x119   : > { %v2323_v5 = vpop.f32.mrf.mxu3  ;;  %v2285_v49 = vpop.f32.mrf.mxu1 }
 0x11a   : > { %v9475_v50 = vadd.f32 %v2323_v5, %v2234_v33  ;;  %v2236_v52 = vpop.f32.mrf.mxu2  ;;  %v9477_v53 = vadd.f32 %v2285_v49, %v2196_v36  ;;  %v2199_v56 = vpop.f32.mrf.mxu0  ;;  %v8509_v33 = vld [vmem:[#allocation7 + $0x1a0] sm:$0xff] }
 0x11b   : > { %v8517_v36 = vld [vmem:[#allocation7 + $0x1e0] sm:$0xff]  ;;  %3509 = vmatpush.bf16.msra.mxu2 %v8509_v33  ;;  %v1931_v33 = vrot.slane %v9383_v55, 1 }
 0x11c   : > { %3598 = vmatpush.bf16.msra.mxu3 %v8517_v36  ;;  %v1932_v36 = vrot.slane %v9392_v7, 1 }
 0x11d   : > { %2698 = vmatmul.bf16.gmra.mxu0 %v1251_v0  ;;  %v8525_v0 = vld [vmem:[#allocation7 + $0x220] sm:$0xff] }
 0x11e   : > { %2376 = vmatmul.bf16.gmra.mxu2 %v1927_v24  ;;  %3687 = vmatpush.bf16.msra.mxu0 %v8525_v0 }
 0x121   : > { %v2325_v3 = vpop.f32.mrf.mxu3  ;;  %v2288_v41 = vpop.f32.mrf.mxu1 }
 0x122   : > { %v9482_v34 = vadd.f32 %v2325_v3, %v2236_v52  ;;  %v2239_v37 = vpop.f32.mrf.mxu2  ;;  %v9484_v8 = vadd.f32 %v2288_v41, %v2199_v56  ;;  %v2201_v4 = vpop.f32.mrf.mxu0  ;;  %v8415_v52 = vld [vmem:[#allocation2 + $0x48] sm:$0xff]  ;;  %v1165_v56 = vunpack.c.l.b16 %v1019_v20  ;;  %v1418_v41 = vsel %vm1400_vm4, %v1416_v39, %v1417_v63 }
 0x123   : > { %v1267_v57 = vshll.u32 %v8415_v52, 16  ;;  %v1265_v3 = vshrl.u32 %v8415_v52, 16  ;;  %v1419_v0 = vrot.slane %v8415_v52, 1 }
 0x124   : > { %2787 = vmatmul.bf16.gmra.mxu1 %v1415_v9  ;;  %v1181_v24 = vpack.c.b16 %v1165_v56, %v1165_v56 }
 0x125   : > { %v1269_v28 = vrot.slane %v1267_v57, 1 }
 0x126   : > { %2609 = vmatmul.bf16.gmra.mxu3 %v8413_v14  ;;  %v1263_v14 = vsel %vm1191_vm3, %v1258_v29, %v1262_v19  ;;  %v1272_v58 = vshll.u32 %v1181_v24, 16  ;;  %v1022_v19 = vld [vmem:[#allocation2 + $0x5c] sm:$0xf] }
 0x127   : > { %v1270_v29 = vor.u32 %v1269_v28, %v1265_v3  ;;  %v1166_v56 = vunpack.c.l.b16 %v1022_v19  ;;  %v1025_v19 = vld [vmem:[#allocation2 + $0x68] sm:$0xf] }
 0x128   : > { %v1274_v61 = vrot.slane %v1272_v58, 1 }
 0x129   : > { %v2328_v32 = vpop.f32.mrf.mxu3  ;;  %v2290_v25 = vpop.f32.mrf.mxu1  ;;  %v1182_v55 = vpack.c.b16 %v1166_v56, %v1166_v56 }
 0x12a   : > { %v9488_v47 = vadd.f32 %v2328_v32, %v2239_v37  ;;  %v2241_v23 = vpop.f32.mrf.mxu2  ;;  %v9490_v5 = vadd.f32 %v2290_v25, %v2201_v4  ;;  %v2204_v49 = vpop.f32.mrf.mxu0 }
 0x12b   : > { %v1284_v28 = vshll.u32 %v1182_v55, 16 }
 0x12d   : > { %2703 = vmatmul.bf16.gmra.mxu0 %v1263_v14  ;;  %v8416_v14 = vld [vmem:[#allocation2 + $0x54] sm:$0xff] }
 0x12e   : > { %2381 = vmatmul.bf16.gmra.mxu2 %v1930_v31  ;;  %v1420_v31 = vrot.slane %v1181_v24, 1  ;;  %v1279_v39 = vshll.u32 %v8416_v14, 16  ;;  %v1277_v57 = vshrl.u32 %v8416_v14, 16  ;;  %v1286_v24 = vrot.slane %v1284_v28, 1 }
 0x131   : > { %v2330_v12 = vpop.f32.mrf.mxu3  ;;  %v2293_v40 = vpop.f32.mrf.mxu1 }
 0x132   : > { %v9495_v16 = vadd.f32 %v2330_v12, %v2241_v23  ;;  %v2244_v9 = vpop.f32.mrf.mxu2  ;;  %v9497_v37 = vadd.f32 %v2293_v40, %v2204_v49  ;;  %v2206_v4 = vpop.f32.mrf.mxu0  ;;  %v1275_v49 = vsel %vm1191_vm3, %v1270_v29, %v1274_v61  ;;  %v1421_v12 = vsel %vm1400_vm4, %v1419_v0, %v1420_v31  ;;  %v8508_v29 = vld [vmem:[#allocation7 + $0x198] sm:$0xff] }
 0x133   : > { %v8516_v61 = vld [vmem:[#allocation7 + $0x1d8] sm:$0xff]  ;;  %3510 = vmatpush.bf16.msra.mxu2 %v8508_v29  ;;  %v1167_v0 = vunpack.c.l.b16 %v1025_v19 }
 0x134   : > { %2792 = vmatmul.bf16.gmra.mxu1 %v1418_v41  ;;  %3599 = vmatpush.bf16.msra.mxu3 %v8516_v61 }
 0x136   : > { %2614 = vmatmul.bf16.gmra.mxu3 %v8414_v2  ;;  %v1933_v2 = vsel %vm1400_vm4, %v1931_v33, %v1932_v36  ;;  %v1934_v33 = vrot.slane %v9411_v59, 1  ;;  %v1935_v36 = vrot.slane %v9418_v48, 1  ;;  %v1422_v59 = vrot.slane %v8416_v14, 1 }
 0x137   : > { %v1183_v48 = vpack.c.b16 %v1167_v0, %v1167_v0 }
 0x138   : > { %v1936_v31 = vsel %vm1400_vm4, %v1934_v33, %v1935_v36  ;;  %v1028_v33 = vld [vmem:[#allocation2 + $0x74] sm:$0xf]  ;;  %v8749_v36 = vld [vmem:[#allocation2 + $0x6c] sm:$0xff] }
 0x139   : > { %v2333_v20 = vpop.f32.mrf.mxu3  ;;  %v2295_v22 = vpop.f32.mrf.mxu1  ;;  %v1296_v61 = vshll.u32 %v1183_v48, 16 }
 0x13a   : > { %v9501_v43 = vadd.f32 %v2333_v20, %v2244_v9  ;;  %v2246_v32 = vpop.f32.mrf.mxu2  ;;  %v9503_v25 = vadd.f32 %v2295_v22, %v2206_v4  ;;  %v2209_v23 = vpop.f32.mrf.mxu0  ;;  %v1281_v4 = vrot.slane %v1279_v39, 1  ;;  %v1423_v39 = vrot.slane %v1182_v55, 1 }
 0x13b   : > { %v1298_v19 = vrot.slane %v1296_v61, 1 }
 0x13c   : > { %v1282_v58 = vor.u32 %v1281_v4, %v1277_v57 }
 0x13d   : > { %2708 = vmatmul.bf16.gmra.mxu0 %v1275_v49 }
 0x13e   : > { %2386 = vmatmul.bf16.gmra.mxu2 %v1933_v2  ;;  %v8417_v2 = vld [vmem:[#allocation2 + $0x60] sm:$0xff] }
 0x141   : > { %v2335_v7 = vpop.f32.mrf.mxu3  ;;  %v2298_v63 = vpop.f32.mrf.mxu1 }
 0x142   : > { %v9508_v40 = vadd.f32 %v2335_v7, %v2246_v32  ;;  %v2249_v3 = vpop.f32.mrf.mxu2  ;;  %v9510_v41 = vadd.f32 %v2298_v63, %v2209_v23  ;;  %v2211_v9 = vpop.f32.mrf.mxu0  ;;  %v1291_v7 = vshll.u32 %v8417_v2, 16  ;;  %v8524_v63 = vld [vmem:[#allocation7 + $0x218] sm:$0xff] }
 0x143   : > { %3688 = vmatpush.bf16.msra.mxu0 %v8524_v63 }
 0x144   : > { %2797 = vmatmul.bf16.gmra.mxu1 %v1421_v12  ;;  %v1293_v29 = vrot.slane %v1291_v7, 1  ;;  %v9531_v7 = vld [vmem:[#allocation2 + $0x6c] sm:$0xff] }
 0x146   : > { %2619 = vmatmul.bf16.gmra.mxu3 %v8415_v52  ;;  %v1287_v52 = vsel %vm1191_vm3, %v1282_v58, %v1286_v24 }
 0x149   : > { %v2338_v20 = vpop.f32.mrf.mxu3  ;;  %v2300_v22 = vpop.f32.mrf.mxu1 }
 0x14a   : > { %v9514_v32 = vadd.f32 %v2338_v20, %v2249_v3  ;;  %v2251_v23 = vpop.f32.mrf.mxu2  ;;  %v9516_v49 = vadd.f32 %v2300_v22, %v2211_v9  ;;  %v2214_v56 = vpop.f32.mrf.mxu0  ;;  %v1289_v3 = vshrl.u32 %v8417_v2, 16  ;;  %v1424_v9 = vsel %vm1400_vm4, %v1422_v59, %v1423_v39 }
 0x14b   : > { %v1937_v20 = vrot.slane %v8749_v36, 1  ;;  %v1938_v22 = vrot.slane %v9195_v45, 1  ;;  %v1303_v45 = vshll.u32 %v9531_v7, 16 }
 0x14c   : > { %v1294_v55 = vor.u32 %v1293_v29, %v1289_v3 }
 0x14d   : > { %2713 = vmatmul.bf16.gmra.mxu0 %v1287_v52  ;;  %v1939_v63 = vsel %vm1400_vm4, %v1937_v20, %v1938_v22 }
 0x14e   : > { %2391 = vmatmul.bf16.gmra.mxu2 %v1936_v31  ;;  %v1299_v39 = vsel %vm1191_vm3, %v1294_v55, %v1298_v19  ;;  %v1301_v19 = vshrl.u32 %v9531_v7, 16 }
 0x151   : > { %v2340_v57 = vpop.f32.mrf.mxu3  ;;  %v2303_v12 = vpop.f32.mrf.mxu1 }
 0x152   : > { %v9521_v4 = vadd.f32 %v2340_v57, %v2251_v23  ;;  %v2254_v28 = vpop.f32.mrf.mxu2  ;;  %v9523_v58 = vadd.f32 %v2303_v12, %v2214_v56  ;;  %v2216_v24 = vpop.f32.mrf.mxu0  ;;  %v1425_v57 = vrot.slane %v8417_v2, 1  ;;  %v1426_v12 = vrot.slane %v1183_v48, 1 }
 0x154   : > { %2802 = vmatmul.bf16.gmra.mxu1 %v1424_v9 }
 0x156   : > { %2624 = vmatmul.bf16.gmra.mxu3 %v8416_v14  ;;  %v1168_v14 = vunpack.c.l.b16 %v1028_v33  ;;  %v1305_v33 = vrot.slane %v1303_v45, 1 }
 0x158   : > { %v1184_v3 = vpack.c.b16 %v1168_v14, %v1168_v14  ;;  %v1306_v48 = vor.u32 %v1305_v33, %v1301_v19  ;;  %v8750_v14 = vld [vmem:[#allocation2 + $0x78] sm:$0xff] }
 0x159   : > { %v2343_v52 = vpop.f32.mrf.mxu3  ;;  %v2305_v0 = vpop.f32.mrf.mxu1 }
 0x15a   : > { %v9526_v31 = vadd.f32 %v2343_v52, %v2254_v28  ;;  %v2256_v23 = vpop.f32.mrf.mxu2  ;;  %v9528_v59 = vadd.f32 %v2305_v0, %v2216_v24  ;;  %v2679_v56 = vpop.f32.mrf.mxu0  ;;  %v1427_v24 = vsel %vm1400_vm4, %v1425_v57, %v1426_v12  ;;  %v1308_v36 = vshll.u32 %v1184_v3, 16  ;;  %v8507_v52 = vld [vmem:[#allocation7 + $0x190] sm:$0xff] }
 0x15b   : > { %v8515_v0 = vld [vmem:[#allocation7 + $0x1d0] sm:$0xff]  ;;  %3511 = vmatpush.bf16.msra.mxu2 %v8507_v52 }
 0x15c   : > { %v1310_v22 = vrot.slane %v1308_v36, 1  ;;  %3600 = vmatpush.bf16.msra.mxu3 %v8515_v0  ;;  %v1429_v36 = vrot.slane %v1184_v3, 1 }
 0x15d   : > { %2718 = vmatmul.bf16.gmra.mxu0 %v1299_v39  ;;  %v1031_v39 = vld [vmem:[#allocation2 + $0x80] sm:$0xf] }
 0x15e   : > { %2396 = vmatmul.bf16.gmra.mxu2 %v1939_v63  ;;  %v1940_v63 = vrot.slane %v8750_v14, 1  ;;  %v8523_v14 = vld [vmem:[#allocation7 + $0x210] sm:$0xff] }
 0x15f   : > { %3689 = vmatpush.bf16.msra.mxu0 %v8523_v14 }
 0x161   : > { %v2345_v9 = vpop.f32.mrf.mxu3  ;;  %v2768_v28 = vpop.f32.mrf.mxu1 }
 0x162   : > { %v9536_v29 = vadd.f32 %v2345_v9, %v2256_v23  ;;  %v2357_v61 = vpop.f32.mrf.mxu2  ;;  %v2681_v55 = vpop.f32.mrf.mxu0  ;;  %v1941_v23 = vrot.slane %v9224_v30, 1  ;;  %v1428_v30 = vrot.slane %v9531_v7, 1 }
 0x163   : > { %v2358_v20 = vadd.f32 %v2357_v61, %v9434_v62  ;;  %v1311_v62 = vsel %vm1191_vm3, %v1306_v48, %v1310_v22 }
 0x164   : > { %2807 = vmatmul.bf16.gmra.mxu1 %v1427_v24  ;;  %v9542_v24 = vld [vmem:[#allocation2 + $0x78] sm:$0xff]  ;;  %v1942_v33 = vsel %vm1400_vm4, %v1940_v63, %v1941_v23 }
 0x165   : > { %v1313_v63 = vshrl.u32 %v9542_v24, 16 }
 0x166   : > { %2629 = vmatmul.bf16.gmra.mxu3 %v8417_v2  ;;  %v1169_v2 = vunpack.c.l.b16 %v1031_v39  ;;  %v1430_v39 = vsel %vm1400_vm4, %v1428_v30, %v1429_v36 }
 0x168   : > { %v1185_v0 = vpack.c.b16 %v1169_v2, %v1169_v2 }
 0x169   : > { %v2590_v57 = vpop.f32.mrf.mxu3  ;;  %v2770_v12 = vpop.f32.mrf.mxu1 }
 0x16a   : > { %v2591_v9 = vadd.f32 %v2590_v57, %v2358_v20  ;;  %v2359_v45 = vpop.f32.mrf.mxu2  ;;  %v2684_v13 = vpop.f32.mrf.mxu0  ;;  %v1315_v20 = vshll.u32 %v9542_v24, 16 }
 0x16b   : > { %v2360_v61 = vadd.f32 %v2359_v45, %v9439_v38 }
 0x16c   : > { %v2680_v19 = vadd.f32 %v2679_v56, %v2591_v9  ;;  %v1317_v23 = vrot.slane %v1315_v20, 1  ;;  %v1320_v9 = vshll.u32 %v1185_v0, 16 }
 0x16d   : > { %2723 = vmatmul.bf16.gmra.mxu0 %v1311_v62 }
 0x16e   : > { %v9547_v52 = vadd.f32 %v2768_v28, %v2680_v19  ;;  %2401 = vmatmul.bf16.gmra.mxu2 %v1942_v33  ;;  %v1318_v62 = vor.u32 %v1317_v23, %v1313_v63  ;;  %v1322_v2 = vrot.slane %v1320_v9, 1  ;;  %v1034_v19 = vld [vmem:[#allocation2 + $0x8c] sm:$0xf]  ;;  %v8751_v33 = vld [vmem:[#allocation2 + $0x84] sm:$0xff]  ;;  %v1432_v63 = vrot.slane %v1185_v0, 1 }
 0x16f   : > { %v1943_v30 = vrot.slane %v8751_v33, 1 }
 0x170   : > { %11215 = vst [vmem:[#allocation15_spill] sm:$0xff] %v9547_v52 }
 0x171   : > { %v2592_v48 = vpop.f32.mrf.mxu3  ;;  %v2773_v22 = vpop.f32.mrf.mxu1 }
 0x172   : > { %v2593_v38 = vadd.f32 %v2592_v48, %v2360_v61  ;;  %v2362_v56 = vpop.f32.mrf.mxu2  ;;  %v2686_v57 = vpop.f32.mrf.mxu0  ;;  %v1944_v61 = vrot.slane %v9262_v51, 1  ;;  %v1431_v51 = vrot.slane %v9542_v24, 1 }
 0x173   : > { %v2363_v3 = vadd.f32 %v2362_v56, %v9446_v60  ;;  %v1323_v60 = vsel %vm1191_vm3, %v1318_v62, %v1322_v2 }
 0x174   : > { %v2682_v28 = vadd.f32 %v2681_v55, %v2593_v38  ;;  %2812 = vmatmul.bf16.gmra.mxu1 %v1430_v39  ;;  %v9558_v55 = vld [vmem:[#allocation2 + $0x84] sm:$0xff]  ;;  %v1945_v56 = vsel %vm1400_vm4, %v1943_v30, %v1944_v61  ;;  %v1433_v2 = vsel %vm1400_vm4, %v1431_v51, %v1432_v63 }
 0x175   : > { %v8592_v39 = vld [vmem:[#allocation9 + $0xf8] sm:$0xff]  ;;  %v1325_v33 = vshrl.u32 %v9558_v55, 16 }
 0x176   : > { %v9553_v45 = vadd.f32 %v2770_v12, %v2682_v28  ;;  %2634 = vmatmul.bf16.gmra.mxu3 %v9531_v7  ;;  %v1170_v12 = vunpack.c.l.b16 %v1034_v19  ;;  %5591 = vmatpush.bf16.msra.mxu1 %v8592_v39  ;;  %v1037_v39 = vld [vmem:[#allocation2 + $0x98] sm:$0xf] }
 0x178   : > { %v1186_v9 = vpack.c.b16 %v1170_v12, %v1170_v12  ;;  %v8514_v12 = vld [vmem:[#allocation7 + $0x1c8] sm:$0xff] }
 0x179   : > { %v2595_v36 = vpop.f32.mrf.mxu3  ;;  %v2775_v14 = vpop.f32.mrf.mxu1  ;;  %3601 = vmatpush.bf16.msra.mxu3 %v8514_v12 }
 0x17a   : > { %v2596_v48 = vadd.f32 %v2595_v36, %v2363_v3  ;;  %v2364_v20 = vpop.f32.mrf.mxu2  ;;  %v2689_v52 = vpop.f32.mrf.mxu0  ;;  %v1327_v3 = vshll.u32 %v9558_v55, 16  ;;  %v1332_v61 = vshll.u32 %v1186_v9, 16 }
 0x17b   : > { %v2365_v7 = vadd.f32 %v2364_v20, %v9451_v21 }
 0x17c   : > { %v2685_v38 = vadd.f32 %v2684_v13, %v2596_v48  ;;  %v1329_v30 = vrot.slane %v1327_v3, 1  ;;  %v1334_v20 = vrot.slane %v1332_v61, 1 }
 0x17d   : > { %2728 = vmatmul.bf16.gmra.mxu0 %v1323_v60  ;;  %v8506_v60 = vld [vmem:[#allocation7 + $0x188] sm:$0xff] }
 0x17e   : > { %v9563_v23 = vadd.f32 %v2773_v22, %v2685_v38  ;;  %2406 = vmatmul.bf16.gmra.mxu2 %v1945_v56  ;;  %v1330_v48 = vor.u32 %v1329_v30, %v1325_v33  ;;  %v1947_v56 = vrot.slane %v9299_v11, 1  ;;  %v1434_v11 = vrot.slane %v9558_v55, 1 }
 0x17f   : > { %3512 = vmatpush.bf16.msra.mxu2 %v8506_v60  ;;  %v1435_v33 = vrot.slane %v1186_v9, 1 }
 0x181   : > { %v2597_v28 = vpop.f32.mrf.mxu3  ;;  %v2778_v62 = vpop.f32.mrf.mxu1  ;;  %v1436_v60 = vsel %vm1400_vm4, %v1434_v11, %v1435_v33 }
 0x182   : > { %v2598_v19 = vadd.f32 %v2597_v28, %v2365_v7  ;;  %v2367_v21 = vpop.f32.mrf.mxu2  ;;  %v2691_v13 = vpop.f32.mrf.mxu0  ;;  %v8752_v7 = vld [vmem:[#allocation2 + $0x90] sm:$0xff] }
 0x183   : > { %v2368_v36 = vadd.f32 %v2367_v21, %v9458_v46  ;;  %v1946_v38 = vrot.slane %v8752_v7, 1  ;;  %v9574_v28 = vld [vmem:[#allocation2 + $0x90] sm:$0xff] }
 0x184   : > { %v2687_v0 = vadd.f32 %v2686_v57, %v2598_v19  ;;  %2817 = vmatmul.bf16.gmra.mxu1 %v1433_v2 }
 0x185   : > { %v1948_v21 = vsel %vm1400_vm4, %v1946_v38, %v1947_v56 }
 0x186   : > { %v9569_v22 = vadd.f32 %v2775_v14, %v2687_v0  ;;  %2639 = vmatmul.bf16.gmra.mxu3 %v9542_v24  ;;  %v1335_v14 = vsel %vm1191_vm3, %v1330_v48, %v1334_v20  ;;  %v1171_v24 = vunpack.c.l.b16 %v1037_v39  ;;  %v8522_v0 = vld [vmem:[#allocation7 + $0x208] sm:$0xff]  ;;  %v1337_v39 = vshrl.u32 %v9574_v28, 16 }
 0x187   : > { %3690 = vmatpush.bf16.msra.mxu0 %v8522_v0  ;;  %v8591_v0 = vld [vmem:[#allocation9 + $0xf0] sm:$0xff] }
 0x188   : > { %v1187_v61 = vpack.c.b16 %v1171_v24, %v1171_v24  ;;  %5592 = vmatpush.bf16.msra.mxu1 %v8591_v0 }
 0x189   : > { %v2600_v51 = vpop.f32.mrf.mxu3  ;;  %v2780_v63 = vpop.f32.mrf.mxu1 }
 0x18a   : > { %v2601_v46 = vadd.f32 %v2600_v51, %v2368_v36  ;;  %v2369_v57 = vpop.f32.mrf.mxu2  ;;  %v2694_v3 = vpop.f32.mrf.mxu0  ;;  %v1339_v36 = vshll.u32 %v9574_v28, 16  ;;  %v1344_v38 = vshll.u32 %v1187_v61, 16 }
 0x18b   : > { %v2370_v2 = vadd.f32 %v2369_v57, %v9464_v1  ;;  %v1040_v57 = vld [vmem:[#allocation2 + $0xa4] sm:$0xf] }
 0x18c   : > { %v2690_v19 = vadd.f32 %v2689_v52, %v2601_v46  ;;  %v1341_v7 = vrot.slane %v1339_v36, 1  ;;  %v1346_v46 = vrot.slane %v1344_v38, 1 }
 0x18d   : > { %2733 = vmatmul.bf16.gmra.mxu0 %v1335_v14  ;;  %v8753_v14 = vld [vmem:[#allocation2 + $0x9c] sm:$0xff] }
 0x18e   : > { %v9579_v30 = vadd.f32 %v2778_v62, %v2690_v19  ;;  %2411 = vmatmul.bf16.gmra.mxu2 %v1948_v21  ;;  %v1342_v51 = vor.u32 %v1341_v7, %v1337_v39  ;;  %v1949_v24 = vrot.slane %v8753_v14, 1 }
 0x191   : > { %v2602_v48 = vpop.f32.mrf.mxu3  ;;  %v2783_v20 = vpop.f32.mrf.mxu1 }
 0x192   : > { %v2603_v1 = vadd.f32 %v2602_v48, %v2370_v2  ;;  %v2372_v52 = vpop.f32.mrf.mxu2  ;;  %v2696_v12 = vpop.f32.mrf.mxu0  ;;  %v1950_v2 = vrot.slane %v9335_v27, 1  ;;  %v1437_v27 = vrot.slane %v9574_v28, 1 }
 0x193   : > { %v2373_v9 = vadd.f32 %v2372_v52, %v9471_v44  ;;  %v1347_v44 = vsel %vm1191_vm3, %v1342_v51, %v1346_v46 }
 0x194   : > { %v2692_v62 = vadd.f32 %v2691_v13, %v2603_v1  ;;  %2822 = vmatmul.bf16.gmra.mxu1 %v1436_v60  ;;  %v9590_v13 = vld [vmem:[#allocation2 + $0x9c] sm:$0xff]  ;;  %v1951_v60 = vsel %vm1400_vm4, %v1949_v24, %v1950_v2  ;;  %v1438_v1 = vrot.slane %v1187_v61, 1 }
 0x195   : > { %v1351_v7 = vshll.u32 %v9590_v13, 16  ;;  %v1349_v46 = vshrl.u32 %v9590_v13, 16 }
 0x196   : > { %v9585_v56 = vadd.f32 %v2780_v63, %v2692_v62  ;;  %2644 = vmatmul.bf16.gmra.mxu3 %v9558_v55  ;;  %v1172_v63 = vunpack.c.l.b16 %v1040_v57  ;;  %v1439_v62 = vsel %vm1400_vm4, %v1437_v27, %v1438_v1 }
 0x197   : > { %v1353_v57 = vrot.slane %v1351_v7, 1 }
 0x198   : > { %v1188_v39 = vpack.c.b16 %v1172_v63, %v1172_v63  ;;  %v8754_v63 = vld [vmem:[#allocation2 + $0xa8] sm:$0xff] }
 0x199   : > { %v2605_v19 = vpop.f32.mrf.mxu3  ;;  %v2785_v21 = vpop.f32.mrf.mxu1  ;;  %v1354_v2 = vor.u32 %v1353_v57, %v1349_v46  ;;  %v1952_v0 = vrot.slane %v8754_v63, 1 }
 0x19a   : > { %v2606_v11 = vadd.f32 %v2605_v19, %v2373_v9  ;;  %v2374_v33 = vpop.f32.mrf.mxu2  ;;  %v2699_v36 = vpop.f32.mrf.mxu0  ;;  %v1356_v14 = vshll.u32 %v1188_v39, 16 }
 0x19b   : > { %v2375_v55 = vadd.f32 %v2374_v33, %v9477_v53  ;;  %v8513_v33 = vld [vmem:[#allocation7 + $0x1c0] sm:$0xff] }
 0x19c   : > { %v2695_v48 = vadd.f32 %v2694_v3, %v2606_v11  ;;  %v1358_v19 = vrot.slane %v1356_v14, 1  ;;  %v8505_v11 = vld [vmem:[#allocation7 + $0x180] sm:$0xff]  ;;  %3602 = vmatpush.bf16.msra.mxu3 %v8513_v33 }
 0x19d   : > { %2738 = vmatmul.bf16.gmra.mxu0 %v1347_v44  ;;  %v1043_v44 = vld [vmem:[#allocation2 + $0xb0] sm:$0xf]  ;;  %3513 = vmatpush.bf16.msra.mxu2 %v8505_v11 }
 0x19e   : > { %v9595_v52 = vadd.f32 %v2783_v20, %v2695_v48  ;;  %2416 = vmatmul.bf16.gmra.mxu2 %v1951_v60  ;;  %v1359_v27 = vsel %vm1191_vm3, %v1354_v2, %v1358_v19  ;;  %v1173_v1 = vunpack.c.l.b16 %v1043_v44  ;;  %v8521_v14 = vld [vmem:[#allocation7 + $0x200] sm:$0xff] }
 0x19f   : > { %3691 = vmatpush.bf16.msra.mxu0 %v8521_v14 }
 0x1a0   : > { %v1189_v46 = vpack.c.b16 %v1173_v1, %v1173_v1 }
 0x1a1   : > { %v2607_v38 = vpop.f32.mrf.mxu3  ;;  %v2788_v9 = vpop.f32.mrf.mxu1 }
 0x1a2   : > { %v2608_v51 = vadd.f32 %v2607_v38, %v2375_v55  ;;  %v2377_v53 = vpop.f32.mrf.mxu2  ;;  %v2701_v3 = vpop.f32.mrf.mxu0  ;;  %v1953_v55 = vrot.slane %v9372_v6, 1  ;;  %v1440_v6 = vrot.slane %v9590_v13, 1  ;;  %v1368_v44 = vshll.u32 %v1189_v46, 16 }
 0x1a3   : > { %v2378_v24 = vadd.f32 %v2377_v53, %v9484_v8 }
 0x1a4   : > { %v2697_v61 = vadd.f32 %v2696_v12, %v2608_v51  ;;  %2827 = vmatmul.bf16.gmra.mxu1 %v1439_v62  ;;  %v1954_v62 = vsel %vm1400_vm4, %v1952_v0, %v1953_v55  ;;  %v1441_v51 = vrot.slane %v1188_v39, 1  ;;  %v1370_v0 = vrot.slane %v1368_v44, 1  ;;  %v1046_v55 = vld [vmem:[#allocation2 + $0xbc] sm:$0xf] }
 0x1a6   : > { %v9601_v20 = vadd.f32 %v2785_v21, %v2697_v61  ;;  %2649 = vmatmul.bf16.gmra.mxu3 %v9574_v28  ;;  %v9608_v28 = vld [vmem:[#allocation2 + $0xa8] sm:$0xff]  ;;  %v1442_v2 = vsel %vm1400_vm4, %v1440_v6, %v1441_v51  ;;  %v1174_v6 = vunpack.c.l.b16 %v1046_v55  ;;  %v8590_v51 = vld [vmem:[#allocation9 + $0xe8] sm:$0xff] }
 0x1a7   : > { %v1363_v57 = vshll.u32 %v9608_v28, 16  ;;  %v1361_v11 = vshrl.u32 %v9608_v28, 16  ;;  %5593 = vmatpush.bf16.msra.mxu1 %v8590_v51 }
 0x1a9   : > { %v2610_v48 = vpop.f32.mrf.mxu3  ;;  %v9605_v60 = vpop.f32.mrf.mxu1  ;;  %v1365_v33 = vrot.slane %v1363_v57, 1 }
 0x1aa   : > { %v2611_v8 = vadd.f32 %v2610_v48, %v2378_v24  ;;  %v2379_v12 = vpop.f32.mrf.mxu2  ;;  %v2704_v21 = vpop.f32.mrf.mxu0  ;;  %v8755_v48 = vld [vmem:[#allocation2 + $0xb4] sm:$0xff] }
 0x1ab   : > { %v2380_v7 = vadd.f32 %v2379_v12, %v9490_v5  ;;  %v1366_v63 = vor.u32 %v1365_v33, %v1361_v11  ;;  %v1956_v12 = vrot.slane %v9403_v35, 1  ;;  %v1443_v35 = vrot.slane %v9608_v28, 1 }
 0x1ac   : > { %v2700_v38 = vadd.f32 %v2699_v36, %v2611_v8  ;;  %v1955_v8 = vrot.slane %v8755_v48, 1 }
 0x1ad   : > { %2743 = vmatmul.bf16.gmra.mxu0 %v1359_v27 }
 0x1ae   : > { %v9613_v53 = vadd.f32 %v2788_v9, %v2700_v38  ;;  %2421 = vmatmul.bf16.gmra.mxu2 %v1954_v62  ;;  %v1957_v14 = vsel %vm1400_vm4, %v1955_v8, %v1956_v12  ;;  %v8756_v12 = vld [vmem:[#allocation2 + $0xc0] sm:$0xff] }
 0x1b1   : > { %v2612_v24 = vpop.f32.mrf.mxu3  ;;  %v2793_v61 = vpop.f32.mrf.mxu1 }
 0x1b2   : > { %v2613_v5 = vadd.f32 %v2612_v24, %v2380_v7  ;;  %v2382_v36 = vpop.f32.mrf.mxu2  ;;  %v2706_v19 = vpop.f32.mrf.mxu0  ;;  %v1444_v24 = vrot.slane %v1189_v46, 1 }
 0x1b3   : > { %v2383_v39 = vadd.f32 %v2382_v36, %v9497_v37  ;;  %v1371_v37 = vsel %vm1191_vm3, %v1366_v63, %v1370_v0 }
 0x1b4   : > { %v9619_v9 = vadd.f32 %v2701_v3, %v2613_v5  ;;  %2832 = vmatmul.bf16.gmra.mxu1 %v1442_v2  ;;  %v8424_v3 = vld [vmem:[#allocation2 + $0xb4] sm:$0xff]  ;;  %v1190_v5 = vpack.c.b16 %v1174_v6, %v1174_v6  ;;  %v1445_v44 = vsel %vm1400_vm4, %v1443_v35, %v1444_v24 }
 0x1b5   : > { %v1375_v36 = vshll.u32 %v8424_v3, 16  ;;  %v1446_v35 = vrot.slane %v8424_v3, 1 }
 0x1b6   : > { %2654 = vmatmul.bf16.gmra.mxu3 %v9590_v13  ;;  %v1380_v55 = vshll.u32 %v1190_v5, 16  ;;  %v1447_v24 = vrot.slane %v1190_v5, 1 }
 0x1b7   : > { %v1377_v0 = vrot.slane %v1375_v36, 1 }
 0x1b9   : > { %v2615_v27 = vpop.f32.mrf.mxu3  ;;  %v9623_v1 = vpop.f32.mrf.mxu1 }
 0x1ba   : > { %v2616_v7 = vadd.f32 %v2615_v27, %v2383_v39  ;;  %v2384_v38 = vpop.f32.mrf.mxu2  ;;  %v2709_v62 = vpop.f32.mrf.mxu0  ;;  %v1958_v27 = vrot.slane %v8756_v12, 1 }
 0x1bb   : > { %v2385_v13 = vadd.f32 %v2384_v38, %v9503_v25 }
 0x1bc   : > { %v2705_v57 = vadd.f32 %v2704_v21, %v2616_v7  ;;  %v1373_v21 = vshrl.u32 %v8424_v3, 16  ;;  %v1959_v7 = vrot.slane %v9422_v15, 1 }
 0x1bd   : > { %2748 = vmatmul.bf16.gmra.mxu0 %v1371_v37 }
 0x1be   : > { %v9629_v2 = vadd.f32 %v2793_v61, %v2705_v57  ;;  %2426 = vmatmul.bf16.gmra.mxu2 %v1957_v14  ;;  %v1378_v46 = vor.u32 %v1377_v0, %v1373_v21  ;;  %v1382_v61 = vrot.slane %v1380_v55, 1  ;;  %v8489_v55 = vld [vmem:[#allocation2 + $0x18] sm:$0xff] }
 0x1bf   : > { %v3249_v5 = vrot.slane %v8489_v55, 1 }
 0x1c0   : > { %v1383_v57 = vsel %vm1191_vm3, %v1378_v46, %v1382_v61  ;;  %v3044_v46 = vshll.u32 %v8489_v55, 16 }
 0x1c1   : > { %v2617_v11 = vpop.f32.mrf.mxu3  ;;  %v2798_v33 = vpop.f32.mrf.mxu1 }
 0x1c2   : > { %v2618_v39 = vadd.f32 %v2617_v11, %v2385_v13  ;;  %v2387_v63 = vpop.f32.mrf.mxu2  ;;  %v2711_v25 = vpop.f32.mrf.mxu0 }
 0x1c3   : > { %v2388_v48 = vadd.f32 %v2387_v63, %v9510_v41 }
 0x1c4   : > { %v9633_v8 = vadd.f32 %v2706_v19, %v2618_v39  ;;  %2837 = vmatmul.bf16.gmra.mxu1 %v1445_v44  ;;  %v2851_v19 = vld [vmem:[#allocation2 + $0x20] sm:$0xf]  ;;  %v1448_v39 = vsel %vm1400_vm4, %v1446_v35, %v1447_v24 }
 0x1c5   : > { %v3009_v15 = vunpack.c.l.b16 %v2851_v19  ;;  %v2854_v19 = vld [vmem:[#allocation2 + $0x2c] sm:$0xf] }
 0x1c6   : > { %2659 = vmatmul.bf16.gmra.mxu3 %v9608_v28  ;;  %v1960_v28 = vsel %vm1400_vm4, %v1958_v27, %v1959_v7 }
 0x1c9   : > { %v2620_v38 = vpop.f32.mrf.mxu3  ;;  %v9637_v37 = vpop.f32.mrf.mxu1 }
 0x1ca   : > { %v2621_v6 = vadd.f32 %v2620_v38, %v2388_v48  ;;  %v2389_v51 = vpop.f32.mrf.mxu2  ;;  %v2714_v13 = vpop.f32.mrf.mxu0 }
 0x1cb   : > { %v2390_v41 = vadd.f32 %v2389_v51, %v9516_v49  ;;  %v3025_v49 = vpack.c.b16 %v3009_v15, %v3009_v15  ;;  %v8589_v51 = vld [vmem:[#allocation9 + $0xe0] sm:$0xff] }
 0x1cc   : > { %v2710_v14 = vadd.f32 %v2709_v62, %v2621_v6  ;;  %5594 = vmatpush.bf16.msra.mxu1 %v8589_v51 }
 0x1cd   : > { %2753 = vmatmul.bf16.gmra.mxu0 %v1383_v57 }
 0x1ce   : > { %v9642_v36 = vadd.f32 %v2798_v33, %v2710_v14  ;;  %2431 = vmatmul.bf16.gmra.mxu2 %v1960_v28  ;;  %v3250_v33 = vrot.slane %v3025_v49, 1  ;;  %v3010_v28 = vunpack.c.l.b16 %v2854_v19 }
 0x1d0   : > { %v3251_v6 = vsel %vm1400_vm4, %v3249_v5, %v3250_v33 }
 0x1d1   : > { %v2622_v11 = vpop.f32.mrf.mxu3  ;;  %v2803_v44 = vpop.f32.mrf.mxu1 }
 0x1d2   : > { %v2623_v63 = vadd.f32 %v2622_v11, %v2390_v41  ;;  %v2392_v21 = vpop.f32.mrf.mxu2  ;;  %v2716_v0 = vpop.f32.mrf.mxu0  ;;  %v3042_v41 = vshrl.u32 %v8489_v55, 16 }
 0x1d3   : > { %v2393_v62 = vadd.f32 %v2392_v21, %v9523_v58  ;;  %v3046_v58 = vrot.slane %v3044_v46, 1 }
 0x1d4   : > { %v9646_v48 = vadd.f32 %v2711_v25, %v2623_v63  ;;  %2842 = vmatmul.bf16.gmra.mxu1 %v1448_v39  ;;  %v3049_v25 = vshll.u32 %v3025_v49, 16 }
 0x1d5   : > { %v3047_v35 = vor.u32 %v3046_v58, %v3042_v41 }
 0x1d6   : > { %2664 = vmatmul.bf16.gmra.mxu3 %v8424_v3  ;;  %v3051_v24 = vrot.slane %v3049_v25, 1  ;;  %v2857_v25 = vld [vmem:[#allocation2 + $0x38] sm:$0xf] }
 0x1d8   : > { %v3052_v49 = vsel %vm1191_vm3, %v3047_v35, %v3051_v24 }
 0x1d9   : > { %v2625_v61 = vpop.f32.mrf.mxu3  ;;  %v9648_v12 = vpop.f32.mrf.mxu1 }
 0x1da   : > { %v2626_v27 = vadd.f32 %v2625_v61, %v2393_v62  ;;  %v2394_v7 = vpop.f32.mrf.mxu2  ;;  %v2719_v38 = vpop.f32.mrf.mxu0  ;;  %v8490_v62 = vld [vmem:[#allocation2 + $0x24] sm:$0xff] }
 0x1db   : > { %v2395_v57 = vadd.f32 %v2394_v7, %v9528_v59  ;;  %v3026_v59 = vpack.c.b16 %v3010_v28, %v3010_v28  ;;  %v3056_v46 = vshll.u32 %v8490_v62, 16  ;;  %v3054_v41 = vshrl.u32 %v8490_v62, 16 }
 0x1dc   : > { %v2715_v14 = vadd.f32 %v2714_v13, %v2626_v27 }
 0x1dd   : > { %3692 = vmatmul.bf16.vlgmr.msra.gmra.mxu0 %v3251_v6  ;;  %v3253_v33 = vrot.slane %v3026_v59, 1  ;;  %v3061_v58 = vshll.u32 %v3026_v59, 16 }
 0x1de   : > { %v9652_v3 = vadd.f32 %v2803_v44, %v2715_v14  ;;  %3514 = vmatmul.bf16.vlgmr.msra.gmra.mxu2 %v8489_v55  ;;  %v3252_v44 = vrot.slane %v8490_v62, 1  ;;  %v3011_v14 = vunpack.c.l.b16 %v2857_v25 }
 0x1df   : > { %v3063_v35 = vrot.slane %v3061_v58, 1 }
 0x1e0   : > { %v3254_v51 = vsel %vm1400_vm4, %v3252_v44, %v3253_v33  ;;  %v3027_v44 = vpack.c.b16 %v3011_v14, %v3011_v14 }
 0x1e1   : > { %v2627_v15 = vpop.f32.mrf.mxu3  ;;  %v2808_v11 = vpop.f32.mrf.mxu1 }
 0x1e2   : > { %v2628_v39 = vadd.f32 %v2627_v15, %v2395_v57  ;;  %v2397_v63 = vpop.f32.mrf.mxu2  ;;  %v2721_v21 = vpop.f32.mrf.mxu0  ;;  %v3073_v25 = vshll.u32 %v3027_v44, 16 }
 0x1e3   : > { %v2398_v5 = vadd.f32 %v2397_v63, %v9437_v18  ;;  %v3058_v18 = vrot.slane %v3056_v46, 1 }
 0x1e4   : > { %v9656_v13 = vadd.f32 %v2716_v0, %v2628_v39 }
 0x1e5   : > { %v3059_v28 = vor.u32 %v3058_v18, %v3054_v41  ;;  %v8588_v41 = vld [vmem:[#allocation9 + $0xd8] sm:$0xff] }
 0x1e6   : > { %3603 = vmatmul.bf16.vlgmr.msra.gmra.mxu3 %v3052_v49  ;;  %v8491_v49 = vld [vmem:[#allocation2 + $0x30] sm:$0xff]  ;;  %5595 = vmatpush.bf16.msra.mxu1 %v8588_v41 }
 0x1e7   : > { %v3064_v59 = vsel %vm1191_vm3, %v3059_v28, %v3063_v35  ;;  %v3068_v46 = vshll.u32 %v8491_v49, 16 }
 0x1e9   : > { %v2630_v55 = vpop.f32.mrf.mxu3  ;;  %v9658_v61 = vpop.f32.mrf.mxu1  ;;  %v3070_v58 = vrot.slane %v3068_v46, 1 }
 0x1ea   : > { %v2631_v27 = vadd.f32 %v2630_v55, %v2398_v5  ;;  %v2399_v7 = vpop.f32.mrf.mxu2  ;;  %v2724_v6 = vpop.f32.mrf.mxu0 }
 0x1eb   : > { %v2400_v57 = vadd.f32 %v2399_v7, %v9444_v54 }
 0x1ec   : > { %v2720_v0 = vadd.f32 %v2719_v38, %v2631_v27  ;;  %v3255_v38 = vrot.slane %v8491_v49, 1 }
 0x1ed   : > { %3697 = vmatmul.bf16.gmra.mxu0 %v3254_v51 }
 0x1ee   : > { %v9662_v19 = vadd.f32 %v2808_v11, %v2720_v0  ;;  %3519 = vmatmul.bf16.gmra.mxu2 %v8490_v62  ;;  %v3256_v11 = vrot.slane %v3027_v44, 1 }
 0x1f1   : > { %v2632_v24 = vpop.f32.mrf.mxu3  ;;  %v2813_v15 = vpop.f32.mrf.mxu1 }
 0x1f2   : > { %v2633_v39 = vadd.f32 %v2632_v24, %v2400_v57  ;;  %v2402_v63 = vpop.f32.mrf.mxu2  ;;  %v2726_v5 = vpop.f32.mrf.mxu0  ;;  %v3257_v57 = vsel %vm1400_vm4, %v3255_v38, %v3256_v11  ;;  %v3075_v24 = vrot.slane %v3073_v25, 1  ;;  %v8492_v11 = vld [vmem:[#allocation2 + $0x3c] sm:$0xff] }
 0x1f3   : > { %v2403_v54 = vadd.f32 %v2402_v63, %v9449_v17  ;;  %v3066_v17 = vshrl.u32 %v8491_v49, 16  ;;  %v3078_v25 = vshrl.u32 %v8492_v11, 16 }
 0x1f4   : > { %v9666_v33 = vadd.f32 %v2721_v21, %v2633_v39  ;;  %v2860_v21 = vld [vmem:[#allocation2 + $0x44] sm:$0xf] }
 0x1f5   : > { %v3012_v28 = vunpack.c.l.b16 %v2860_v21  ;;  %v3071_v35 = vor.u32 %v3070_v58, %v3066_v17 }
 0x1f6   : > { %3608 = vmatmul.bf16.gmra.mxu3 %v3064_v59 }
 0x1f7   : > { %v3076_v44 = vsel %vm1191_vm3, %v3071_v35, %v3075_v24 }
 0x1f9   : > { %v2635_v62 = vpop.f32.mrf.mxu3  ;;  %v9668_v55 = vpop.f32.mrf.mxu1 }
 0x1fa   : > { %v2636_v27 = vadd.f32 %v2635_v62, %v2403_v54  ;;  %v2404_v7 = vpop.f32.mrf.mxu2  ;;  %v2729_v51 = vpop.f32.mrf.mxu0 }
 0x1fb   : > { %v2405_v18 = vadd.f32 %v2404_v7, %v9456_v42  ;;  %v3028_v42 = vpack.c.b16 %v3012_v28, %v3012_v28 }
 0x1fc   : > { %v2725_v0 = vadd.f32 %v2724_v6, %v2636_v27  ;;  %v3080_v27 = vshll.u32 %v8492_v11, 16 }
 0x1fd   : > { %3702 = vmatmul.bf16.gmra.mxu0 %v3257_v57  ;;  %v3259_v62 = vrot.slane %v3028_v42, 1  ;;  %v3085_v21 = vshll.u32 %v3028_v42, 16 }
 0x1fe   : > { %v9672_v14 = vadd.f32 %v2813_v15, %v2725_v0  ;;  %3524 = vmatmul.bf16.gmra.mxu2 %v8491_v49  ;;  %v3258_v15 = vrot.slane %v8492_v11, 1  ;;  %v2863_v0 = vld [vmem:[#allocation2 + $0x50] sm:$0xf] }
 0x1ff   : > { %v3013_v35 = vunpack.c.l.b16 %v2863_v0 }
 0x200   : > { %v3260_v17 = vsel %vm1400_vm4, %v3258_v15, %v3259_v62  ;;  %v8493_v15 = vld [vmem:[#allocation2 + $0x48] sm:$0xff] }
 0x201   : > { %v2637_v39 = vpop.f32.mrf.mxu3  ;;  %v2818_v63 = vpop.f32.mrf.mxu1  ;;  %v3029_v62 = vpack.c.b16 %v3013_v35, %v3013_v35 }
 0x202   : > { %v2638_v54 = vadd.f32 %v2637_v39, %v2405_v18  ;;  %v2407_v59 = vpop.f32.mrf.mxu2  ;;  %v2731_v38 = vpop.f32.mrf.mxu0  ;;  %v3087_v39 = vrot.slane %v3085_v21, 1  ;;  %v8587_v21 = vld [vmem:[#allocation9 + $0xd0] sm:$0xff] }
 0x203   : > { %v2408_v46 = vadd.f32 %v2407_v59, %v9462_v10  ;;  %v3082_v10 = vrot.slane %v3080_v27, 1  ;;  %v3097_v35 = vshll.u32 %v3029_v62, 16  ;;  %5596 = vmatpush.bf16.msra.mxu1 %v8587_v21 }
 0x204   : > { %v9676_v6 = vadd.f32 %v2726_v5, %v2638_v54 }
 0x205   : > { %v3083_v24 = vor.u32 %v3082_v10, %v3078_v25 }
 0x206   : > { %3613 = vmatmul.bf16.gmra.mxu3 %v3076_v44 }
 0x207   : > { %v3088_v42 = vsel %vm1191_vm3, %v3083_v24, %v3087_v39 }
 0x209   : > { %v2640_v49 = vpop.f32.mrf.mxu3  ;;  %v9678_v7 = vpop.f32.mrf.mxu1 }
 0x20a   : > { %v2641_v57 = vadd.f32 %v2640_v49, %v2408_v46  ;;  %v2409_v41 = vpop.f32.mrf.mxu2  ;;  %v2734_v18 = vpop.f32.mrf.mxu0 }
 0x20b   : > { %v2410_v58 = vadd.f32 %v2409_v41, %v9469_v26 }
 0x20c   : > { %v2730_v5 = vadd.f32 %v2729_v51, %v2641_v57  ;;  %v3261_v51 = vrot.slane %v8493_v15, 1  ;;  %v3092_v57 = vshll.u32 %v8493_v15, 16 }
 0x20d   : > { %3707 = vmatmul.bf16.gmra.mxu0 %v3260_v17 }
 0x20e   : > { %v9682_v28 = vadd.f32 %v2818_v63, %v2730_v5  ;;  %3529 = vmatmul.bf16.gmra.mxu2 %v8492_v11  ;;  %v3262_v63 = vrot.slane %v3029_v62, 1  ;;  %v3094_v5 = vrot.slane %v3092_v57, 1 }
 0x210   : > { %v3263_v10 = vsel %vm1400_vm4, %v3261_v51, %v3262_v63 }
 0x211   : > { %v2642_v54 = vpop.f32.mrf.mxu3  ;;  %v2823_v59 = vpop.f32.mrf.mxu1 }
 0x212   : > { %v2643_v46 = vadd.f32 %v2642_v54, %v2410_v58  ;;  %v2412_v44 = vpop.f32.mrf.mxu2  ;;  %v2736_v49 = vpop.f32.mrf.mxu0 }
 0x213   : > { %v2413_v26 = vadd.f32 %v2412_v44, %v9475_v50  ;;  %v3090_v50 = vshrl.u32 %v8493_v15, 16  ;;  %v3099_v44 = vrot.slane %v3097_v35, 1 }
 0x214   : > { %v9686_v27 = vadd.f32 %v2731_v38, %v2643_v46  ;;  %v2866_v38 = vld [vmem:[#allocation2 + $0x5c] sm:$0xf] }
 0x215   : > { %v3014_v54 = vunpack.c.l.b16 %v2866_v38  ;;  %v3095_v46 = vor.u32 %v3094_v5, %v3090_v50 }
 0x216   : > { %3618 = vmatmul.bf16.gmra.mxu3 %v3088_v42 }
 0x217   : > { %v3100_v62 = vsel %vm1191_vm3, %v3095_v46, %v3099_v44 }
 0x219   : > { %v2645_v11 = vpop.f32.mrf.mxu3  ;;  %v9688_v41 = vpop.f32.mrf.mxu1 }
 0x21a   : > { %11216 = vst [vmem:[#allocation16_spill] sm:$0xff] %v9688_v41  ;;  %v2646_v17 = vadd.f32 %v2645_v11, %v2413_v26  ;;  %v2414_v25 = vpop.f32.mrf.mxu2  ;;  %v2739_v58 = vpop.f32.mrf.mxu0  ;;  %v8494_v41 = vld [vmem:[#allocation2 + $0x54] sm:$0xff] }
 0x21b   : > { %v2415_v0 = vadd.f32 %v2414_v25, %v9482_v34  ;;  %v3030_v34 = vpack.c.b16 %v3014_v54, %v3014_v54  ;;  %v3104_v25 = vshll.u32 %v8494_v41, 16  ;;  %v3102_v38 = vshrl.u32 %v8494_v41, 16  ;;  %v2869_v54 = vld [vmem:[#allocation2 + $0x68] sm:$0xf] }
 0x21c   : > { %v2735_v24 = vadd.f32 %v2734_v18, %v2646_v17  ;;  %v3015_v44 = vunpack.c.l.b16 %v2869_v54 }
 0x21d   : > { %3712 = vmatmul.bf16.gmra.mxu0 %v3263_v10  ;;  %v3265_v17 = vrot.slane %v3030_v34, 1 }
 0x21e   : > { %v9692_v39 = vadd.f32 %v2823_v59, %v2735_v24  ;;  %3534 = vmatmul.bf16.gmra.mxu2 %v8493_v15  ;;  %v3264_v59 = vrot.slane %v8494_v41, 1  ;;  %v3109_v24 = vshll.u32 %v3030_v34, 16 }
 0x220   : > { %v3266_v5 = vsel %vm1400_vm4, %v3264_v59, %v3265_v17  ;;  %v3031_v59 = vpack.c.b16 %v3015_v44, %v3015_v44  ;;  %v2872_v44 = vld [vmem:[#allocation2 + $0x74] sm:$0xf] }
 0x221   : > { %v2647_v26 = vpop.f32.mrf.mxu3  ;;  %v2828_v42 = vpop.f32.mrf.mxu1 }
 0x222   : > { %v2648_v11 = vadd.f32 %v2647_v26, %v2415_v0  ;;  %v2417_v51 = vpop.f32.mrf.mxu2  ;;  %v2741_v63 = vpop.f32.mrf.mxu0 }
 0x223   : > { %v2418_v57 = vadd.f32 %v2417_v51, %v9488_v47  ;;  %v3106_v47 = vrot.slane %v3104_v25, 1 }
 0x224   : > { %v9696_v18 = vadd.f32 %v2736_v49, %v2648_v11  ;;  %v3111_v11 = vrot.slane %v3109_v24, 1 }
 0x225   : > { %v3107_v26 = vor.u32 %v3106_v47, %v3102_v38  ;;  %v8586_v47 = vld [vmem:[#allocation9 + $0xc8] sm:$0xff] }
 0x226   : > { %3623 = vmatmul.bf16.gmra.mxu3 %v3100_v62  ;;  %5597 = vmatpush.bf16.msra.mxu1 %v8586_v47 }
 0x227   : > { %v3112_v17 = vsel %vm1191_vm3, %v3107_v26, %v3111_v11 }
 0x229   : > { %v2650_v15 = vpop.f32.mrf.mxu3  ;;  %v9698_v10 = vpop.f32.mrf.mxu1 }
 0x22a   : > { %11217 = vst [vmem:[#allocation17_spill] sm:$0xff] %v9698_v10  ;;  %v2651_v21 = vadd.f32 %v2650_v15, %v2418_v57  ;;  %v2419_v50 = vpop.f32.mrf.mxu2  ;;  %v2744_v0 = vpop.f32.mrf.mxu0  ;;  %v8495_v10 = vld [vmem:[#allocation2 + $0x60] sm:$0xff] }
 0x22b   : > { %v2420_v35 = vadd.f32 %v2419_v50, %v9495_v16  ;;  %v3114_v54 = vshrl.u32 %v8495_v10, 16 }
 0x22c   : > { %v2740_v49 = vadd.f32 %v2739_v58, %v2651_v21  ;;  %v3267_v58 = vrot.slane %v8495_v10, 1  ;;  %v3116_v21 = vshll.u32 %v8495_v10, 16 }
 0x22d   : > { %3717 = vmatmul.bf16.gmra.mxu0 %v3266_v5 }
 0x22e   : > { %v9702_v46 = vadd.f32 %v2828_v42, %v2740_v49  ;;  %3539 = vmatmul.bf16.gmra.mxu2 %v8494_v41  ;;  %v3268_v42 = vrot.slane %v3031_v59, 1  ;;  %v3121_v49 = vshll.u32 %v3031_v59, 16 }
 0x231   : > { %v2652_v51 = vpop.f32.mrf.mxu3  ;;  %v2833_v34 = vpop.f32.mrf.mxu1 }
 0x232   : > { %v2653_v57 = vadd.f32 %v2652_v51, %v2420_v35  ;;  %v2422_v62 = vpop.f32.mrf.mxu2  ;;  %v2746_v15 = vpop.f32.mrf.mxu0  ;;  %v3269_v35 = vsel %vm1400_vm4, %v3267_v58, %v3268_v42  ;;  %v3016_v51 = vunpack.c.l.b16 %v2872_v44 }
 0x233   : > { %v2423_v16 = vadd.f32 %v2422_v62, %v9501_v43  ;;  %v3118_v43 = vrot.slane %v3116_v21, 1  ;;  %v3123_v62 = vrot.slane %v3121_v49, 1 }
 0x234   : > { %v9706_v25 = vadd.f32 %v2741_v63, %v2653_v57 }
 0x235   : > { %v3119_v57 = vor.u32 %v3118_v43, %v3114_v54 }
 0x236   : > { %3628 = vmatmul.bf16.gmra.mxu3 %v3112_v17 }
 0x239   : > { %v2655_v41 = vpop.f32.mrf.mxu3  ;;  %v9710_v63 = vpop.f32.mrf.mxu1 }
 0x23a   : > { %v2656_v50 = vadd.f32 %v2655_v41, %v2423_v16  ;;  %v2424_v5 = vpop.f32.mrf.mxu2  ;;  %v2749_v38 = vpop.f32.mrf.mxu0  ;;  %11218 = vst [vmem:[#allocation18_spill] sm:$0xff] %v9710_v63  ;;  %v3032_v41 = vpack.c.b16 %v3016_v51, %v3016_v51  ;;  %v2875_v51 = vld [vmem:[#allocation2 + $0x80] sm:$0xf] }
 0x23b   : > { %v2425_v24 = vadd.f32 %v2424_v5, %v9508_v40  ;;  %v8496_v40 = vld [vmem:[#allocation2 + $0x6c] sm:$0xff] }
 0x23c   : > { %v2745_v26 = vadd.f32 %v2744_v0, %v2656_v50  ;;  %v3124_v0 = vsel %vm1191_vm3, %v3119_v57, %v3123_v62  ;;  %v3270_v50 = vrot.slane %v8496_v40, 1  ;;  %v3126_v44 = vshrl.u32 %v8496_v40, 16 }
 0x23d   : > { %3722 = vmatmul.bf16.gmra.mxu0 %v3269_v35  ;;  %v3128_v35 = vshll.u32 %v8496_v40, 16  ;;  %v3017_v62 = vunpack.c.l.b16 %v2875_v51 }
 0x23e   : > { %v9712_v11 = vadd.f32 %v2833_v34, %v2745_v26  ;;  %3544 = vmatmul.bf16.gmra.mxu2 %v8495_v10  ;;  %v3271_v34 = vrot.slane %v3032_v41, 1 }
 0x23f   : > { %v3130_v26 = vrot.slane %v3128_v35, 1 }
 0x241   : > { %v2657_v16 = vpop.f32.mrf.mxu3  ;;  %v2838_v5 = vpop.f32.mrf.mxu1 }
 0x242   : > { %v2658_v17 = vadd.f32 %v2657_v16, %v2425_v24  ;;  %v2427_v58 = vpop.f32.mrf.mxu2  ;;  %v2751_v42 = vpop.f32.mrf.mxu0  ;;  %v3272_v24 = vsel %vm1400_vm4, %v3270_v50, %v3271_v34  ;;  %v3131_v16 = vor.u32 %v3130_v26, %v3126_v44  ;;  %v8497_v34 = vld [vmem:[#allocation2 + $0x78] sm:$0xff] }
 0x243   : > { %v2428_v59 = vadd.f32 %v2427_v58, %v9514_v32  ;;  %v3133_v32 = vshll.u32 %v3032_v41, 16 }
 0x244   : > { %v9716_v21 = vadd.f32 %v2746_v15, %v2658_v17 }
 0x245   : > { %v3135_v17 = vrot.slane %v3133_v32, 1 }
 0x246   : > { %3633 = vmatmul.bf16.gmra.mxu3 %v3124_v0 }
 0x247   : > { %v3136_v41 = vsel %vm1191_vm3, %v3131_v16, %v3135_v17 }
 0x249   : > { %v2660_v10 = vpop.f32.mrf.mxu3 }
 0x24a   : > { %v2661_v47 = vadd.f32 %v2660_v10, %v2428_v59  ;;  %v2429_v54 = vpop.f32.mrf.mxu2  ;;  %v2754_v43 = vpop.f32.mrf.mxu0 }
 0x24b   : > { %v2430_v49 = vadd.f32 %v2429_v54, %v9521_v4  ;;  %v9722_v59 = vpop.f32.mrf.mxu1  ;;  %v3033_v4 = vpack.c.b16 %v3017_v62, %v3017_v62 }
 0x24c   : > { %v2750_v57 = vadd.f32 %v2749_v38, %v2661_v47  ;;  %11220 = vst [vmem:[#allocation20_spill] sm:$0xff] %v9722_v59 }
 0x24d   : > { %3727 = vmatmul.bf16.gmra.mxu0 %v3272_v24  ;;  %v3274_v47 = vrot.slane %v3033_v4, 1 }
 0x24e   : > { %v9720_v15 = vadd.f32 %v2838_v5, %v2750_v57  ;;  %3549 = vmatmul.bf16.gmra.mxu2 %v8496_v40  ;;  %v3273_v5 = vrot.slane %v8497_v34, 1  ;;  %v3140_v40 = vshll.u32 %v8497_v34, 16  ;;  %v3138_v57 = vshrl.u32 %v8497_v34, 16 }
 0x250   : > { %11219 = vst [vmem:[#allocation19_spill] sm:$0xff] %v9720_v15  ;;  %v3142_v62 = vrot.slane %v3140_v40, 1 }
 0x251   : > { %v2662_v58 = vpop.f32.mrf.mxu3 }
 0x252   : > { %v2663_v0 = vadd.f32 %v2662_v58, %v2430_v49  ;;  %v2432_v10 = vpop.f32.mrf.mxu2  ;;  %v2756_v50 = vpop.f32.mrf.mxu0  ;;  %v3275_v49 = vsel %vm1400_vm4, %v3273_v5, %v3274_v47  ;;  %v2878_v58 = vld [vmem:[#allocation2 + $0x8c] sm:$0xf]  ;;  %v8498_v5 = vld [vmem:[#allocation2 + $0x84] sm:$0xff] }
 0x253   : > { %v2433_v35 = vadd.f32 %v2432_v10, %v9526_v31  ;;  %v2843_v51 = vpop.f32.mrf.mxu1  ;;  %v3145_v31 = vshll.u32 %v3033_v4, 16  ;;  %v3018_v17 = vunpack.c.l.b16 %v2878_v58  ;;  %v3276_v4 = vrot.slane %v8498_v5, 1  ;;  %v2881_v58 = vld [vmem:[#allocation2 + $0x98] sm:$0xf] }
 0x254   : > { %v9726_v38 = vadd.f32 %v2751_v42, %v2663_v0  ;;  %v3143_v0 = vor.u32 %v3142_v62, %v3138_v57  ;;  %v3152_v40 = vshll.u32 %v8498_v5, 16  ;;  %v3150_v62 = vshrl.u32 %v8498_v5, 16 }
 0x255   : > { %v3147_v10 = vrot.slane %v3145_v31, 1  ;;  %v3034_v47 = vpack.c.b16 %v3018_v17, %v3018_v17  ;;  %v11224_v17 = vld [vmem:[#allocation15_spill] sm:$0xff] }
 0x256   : > { %11221 = vst [vmem:[#allocation21_spill] sm:$0xff] %v9726_v38  ;;  %3638 = vmatmul.bf16.gmra.mxu3 %v3136_v41 }
 0x257   : > { %v3157_v31 = vshll.u32 %v3034_v47, 16 }
 0x259   : > { %v2665_v54 = vpop.f32.mrf.mxu3 }
 0x25a   : > { %v2666_v24 = vadd.f32 %v2665_v54, %v2433_v35  ;;  %v2434_v44 = vpop.f32.mrf.mxu2  ;;  %v3693_v26 = vpop.f32.mrf.mxu0 }
 0x25b   : > { %v2435_v32 = vadd.f32 %v2434_v44, %v9536_v29  ;;  %v3148_v29 = vsel %vm1191_vm3, %v3143_v0, %v3147_v10  ;;  %v3019_v10 = vunpack.c.l.b16 %v2881_v58 }
 0x25c   : > { %v2755_v16 = vadd.f32 %v2754_v43, %v2666_v24  ;;  %v3277_v43 = vrot.slane %v3034_v47, 1  ;;  %v9746_v47 = vld [vmem:[%s11186_s6] ss:$0 sm:$0xff] }
 0x25d   : > { %3732 = vmatmul.bf16.gmra.mxu0 %v3275_v49 }
 0x25e   : > { %v9730_v42 = vadd.f32 %v2843_v51, %v2755_v16  ;;  %3554 = vmatmul.bf16.gmra.mxu2 %v8497_v34  ;;  %v3278_v57 = vsel %vm1400_vm4, %v3276_v4, %v3277_v43 }
 0x260   : > { %11222 = vst [vmem:[#allocation22_spill] sm:$0xff] %v9730_v42 }
 0x261   : > { %v2667_v35 = vpop.f32.mrf.mxu3 }
 0x262   : > { %v2668_v41 = vadd.f32 %v2667_v35, %v2435_v32  ;;  %v3515_v54 = vpop.f32.mrf.mxu2  ;;  %v3695_v59 = vpop.f32.mrf.mxu0  ;;  %v3154_v32 = vrot.slane %v3152_v40, 1 }
 0x264   : > { %v9733_v44 = vadd.f32 %v2756_v50, %v2668_v41  ;;  %v9739_v50 = vld [vmem:[%s11185_s5] ss:$0 sm:$0xff]  ;;  %v3155_v35 = vor.u32 %v3154_v32, %v3150_v62  ;;  %v3159_v41 = vrot.slane %v3157_v31, 1 }
 0x266   : > { %11223 = vst [vmem:[#allocation23_spill] sm:$0xff] %v9733_v44  ;;  %3643 = vmatmul.bf16.gmra.mxu3 %v3148_v29 }
 0x269   : > { %v3604_v24 = vpop.f32.mrf.mxu3 }
 0x26a   : > { %v3605_v49 = vadd.f32 %v3604_v24, %v3515_v54  ;;  %v3517_v51 = vpop.f32.mrf.mxu2  ;;  %v3698_v34 = vpop.f32.mrf.mxu0  ;;  %v8499_v24 = vld [vmem:[#allocation2 + $0x90] sm:$0xff] }
 0x26b   : > { %v3279_v31 = vrot.slane %v8499_v24, 1 }
 0x26c   : > { %v3694_v16 = vadd.f32 %v3693_v26, %v3605_v49  ;;  %v8585_v26 = vld [vmem:[#allocation9 + $0xc0] sm:$0xff]  ;;  %v3035_v49 = vpack.c.b16 %v3019_v10, %v3019_v10 }
 0x26d   : > { %3737 = vmatmul.bf16.gmra.mxu0 %v3278_v57  ;;  %5598 = vmatpush.bf16.msra.mxu1 %v8585_v26  ;;  %v3160_v57 = vsel %vm1191_vm3, %v3155_v35, %v3159_v41  ;;  %v2884_v41 = vld [vmem:[#allocation2 + $0xa4] sm:$0xf] }
 0x26e   : > { %v3773_v0 = vadd.f32 %v3694_v16, %v11224_v17  ;;  %3559 = vmatmul.bf16.gmra.mxu2 %v8498_v5  ;;  %v3280_v58 = vrot.slane %v3035_v49, 1  ;;  %v3164_v16 = vshll.u32 %v8499_v24, 16  ;;  %v3020_v42 = vunpack.c.l.b16 %v2884_v41 }
 0x270   : > { %v3809_v54 = vmul.f32 %v9739_v50, %v3773_v0  ;;  %v3281_v35 = vsel %vm1400_vm4, %v3279_v31, %v3280_v58  ;;  %v8500_v58 = vld [vmem:[#allocation2 + $0x9c] sm:$0xff]  ;;  %v3036_v63 = vpack.c.b16 %v3020_v42, %v3020_v42 }
 0x271   : > { %v3606_v29 = vpop.f32.mrf.mxu3 }
 0x272   : > { %v3607_v4 = vadd.f32 %v3606_v29, %v3517_v51  ;;  %v3520_v43 = vpop.f32.mrf.mxu2  ;;  %v3700_v40 = vpop.f32.mrf.mxu0  ;;  %v3845_v5 = vadd.f32 %v9746_v47, %v3809_v54  ;;  %v3162_v54 = vshrl.u32 %v8499_v24, 16  ;;  %v3283_v41 = vrot.slane %v3036_v63, 1 }
 0x274   : > { %v3696_v62 = vadd.f32 %v3695_v59, %v3607_v4  ;;  %v3877_v17 = vmax.f32 %v3845_v5, 0.0  ;;  %v3166_v59 = vrot.slane %v3164_v16, 1  ;;  %v3169_v4 = vshll.u32 %v3035_v49, 16 }
 0x276   : > { %v3774_v32 = vadd.f32 %v3696_v62, %v9553_v45  ;;  %3648 = vmatmul.bf16.gmra.mxu3 %v3160_v57  ;;  %v3909_v45 = vpack.c.bf16 %v3877_v17, %v3877_v17  ;;  %v3167_v38 = vor.u32 %v3166_v59, %v3162_v54 }
 0x278   : > { %v3810_v0 = vmul.f32 %v9739_v50, %v3774_v32 }
 0x279   : > { %v3609_v51 = vpop.f32.mrf.mxu3 }
 0x27a   : > { %v3846_v29 = vadd.f32 %v9746_v47, %v3810_v0  ;;  %v3610_v26 = vadd.f32 %v3609_v51, %v3520_v43  ;;  %v3522_v44 = vpop.f32.mrf.mxu2  ;;  %v3703_v10 = vpop.f32.mrf.mxu0  ;;  %v3171_v0 = vrot.slane %v3169_v4, 1  ;;  %v3973_v43 = vunpack.c.l.b16 %v3909_v45 }
 0x27b   : > { %v3176_v45 = vshll.u32 %v8500_v58, 16 }
 0x27c   : > { %v3878_v57 = vmax.f32 %v3846_v29, 0.0  ;;  %v3699_v62 = vadd.f32 %v3698_v34, %v3610_v26  ;;  %v3172_v34 = vsel %vm1191_vm3, %v3167_v38, %v3171_v0 }
 0x27d   : > { %3742 = vmatmul.bf16.gmra.mxu0 %v3281_v35  ;;  %v3282_v35 = vrot.slane %v8500_v58, 1 }
 0x27e   : > { %v3910_v5 = vpack.c.bf16 %v3878_v57, %v3878_v57  ;;  %v3775_v32 = vadd.f32 %v3699_v62, %v9563_v23  ;;  %3564 = vmatmul.bf16.gmra.mxu2 %v8499_v24 }
 0x280   : > { %v3974_v51 = vunpack.c.l.b16 %v3910_v5  ;;  %v3811_v15 = vmul.f32 %v9739_v50, %v3775_v32 }
 0x281   : > { %v3611_v31 = vpop.f32.mrf.mxu3 }
 0x282   : > { %v4005_v16 = vpack.c.b16 %v3974_v51, %v3973_v43  ;;  %v3612_v49 = vadd.f32 %v3611_v31, %v3522_v44  ;;  %v3525_v17 = vpop.f32.mrf.mxu2  ;;  %v9756_v29 = vpop.f32.mrf.mxu0  ;;  %v3847_v23 = vadd.f32 %v9746_v47, %v3811_v15  ;;  %v3284_v15 = vsel %vm1400_vm4, %v3282_v35, %v3283_v41 }
 0x284   : > { %v4022_v26 = vshrl.u32 %v4005_v16, 16  ;;  %v3701_v24 = vadd.f32 %v3700_v40, %v3612_v49  ;;  %v4025_v59 = vshll.u32 %v4005_v16, 16  ;;  %v3879_v62 = vmax.f32 %v3847_v23, 0.0  ;;  %v2887_v49 = vld [vmem:[#allocation2 + $0xb0] sm:$0xf] }
 0x285   : > { %v3174_v40 = vshrl.u32 %v8500_v58, 16  ;;  %v3178_v16 = vrot.slane %v3176_v45, 1 }
 0x286   : > { %v4024_v54 = vrot.slane %v4022_v26, 7  ;;  %v3776_v4 = vadd.f32 %v3701_v24, %v9569_v22  ;;  %3653 = vmatmul.bf16.gmra.mxu3 %v3172_v34  ;;  %v3181_v24 = vshll.u32 %v3036_v63, 16 }
 0x288   : > { %v4027_v42 = vor.u32 %v4025_v59, %v4024_v54  ;;  %v4181_v44 = vsel %vm9145_vm2, %v4024_v54, 0  ;;  %v3812_v5 = vmul.f32 %v9739_v50, %v3776_v4  ;;  %v3911_v54 = vpack.c.bf16 %v3879_v62, %v3879_v62  ;;  %v8608_v62 = vld [vmem:[#allocation9 + $0x178] sm:$0xff] }
 0x289   : > { %v4231_v38 = vunpack.c.l.b16 %v4181_v44  ;;  %v3614_v32 = vpop.f32.mrf.mxu3  ;;  %v3183_v45 = vrot.slane %v3181_v24, 1  ;;  %5769 = vmatpush.bf16.msrb.mxu3 %v8608_v62 }
 0x28a   : > { %v4165_v0 = vsel %vm9145_vm2, 0, %v4027_v42  ;;  %v3848_v43 = vadd.f32 %v9746_v47, %v3812_v5  ;;  %v3615_v22 = vadd.f32 %v3614_v32, %v3525_v17  ;;  %v3527_v51 = vpop.f32.mrf.mxu2  ;;  %v9768_v31 = vpop.f32.mrf.mxu0  ;;  %v3021_v42 = vunpack.c.l.b16 %v2887_v49 }
 0x28b   : > { %v4229_v34 = vunpack.c.l.b16 %v4165_v0  ;;  %v4230_v26 = vunpack.c.h.b16 %v4165_v0  ;;  %v4279_v23 = vpack.c.b16 %v4231_v38, %v4231_v38  ;;  %v3179_v5 = vor.u32 %v3178_v16, %v3174_v40  ;;  %v8600_v38 = vld [vmem:[#allocation9 + $0x138] sm:$0xff] }
 0x28c   : > { %v3880_v59 = vmax.f32 %v3848_v43, 0.0  ;;  %v3704_v4 = vadd.f32 %v3703_v10, %v3615_v22  ;;  %v3975_v32 = vunpack.c.l.b16 %v3911_v54  ;;  %v8552_v10 = vld [vmem:[#allocation9 + $0x38] sm:$0xff]  ;;  %5680 = vmatpush.bf16.msrb.mxu2 %v8600_v38 }
 0x28d   : > { %v4277_v35 = vpack.c.b16 %v4229_v34, %v4229_v34  ;;  %v4278_v41 = vpack.c.b16 %v4230_v26, %v4230_v26  ;;  %4376 = vst [vmem:[#allocation3 + $0x14] sm:$0xf] %v4279_v23  ;;  %3747 = vmatmul.bf16.gmra.mxu0 %v3284_v15  ;;  %v8560_v22 = vld [vmem:[#allocation9 + $0x78] sm:$0xff]  ;;  %v3037_v15 = vpack.c.b16 %v3021_v42, %v3021_v42 }
 0x28e   : > { %v3912_v44 = vpack.c.bf16 %v3880_v59, %v3880_v59  ;;  %v3777_v17 = vadd.f32 %v3704_v4, %v9579_v30  ;;  %3569 = vmatmul.bf16.gmra.mxu2 %v8500_v58  ;;  %v8501_v34 = vld [vmem:[#allocation2 + $0xa8] sm:$0xff]  ;;  %v3184_v40 = vsel %vm1191_vm3, %v3179_v5, %v3183_v45  ;;  %6002 = vmatpush.bf16.msrb.mxu0 %v8552_v10 }
 0x28f   : > { %4374 = vst [vmem:[#allocation3 + $0xc] sm:$0xf] %v4277_v35  ;;  %6091 = vmatpush.bf16.msrb.mxu1 %v8560_v22  ;;  %v3285_v54 = vrot.slane %v8501_v34, 1  ;;  %v3286_v59 = vrot.slane %v3037_v15, 1 }
 0x290   : > { %4375 = vst [vmem:[#allocation3 + $0x10] sm:$0xf] %v4278_v41  ;;  %v3976_v0 = vunpack.c.l.b16 %v3912_v44  ;;  %v3813_v63 = vmul.f32 %v9739_v50, %v3777_v17  ;;  %v3188_v41 = vshll.u32 %v8501_v34, 16 }
 0x291   : > { %v3616_v43 = vpop.f32.mrf.mxu3 }
 0x292   : > { %v4006_v49 = vpack.c.b16 %v3976_v0, %v3975_v32  ;;  %v3617_v26 = vadd.f32 %v3616_v43, %v3527_v51  ;;  %v3530_v30 = vpop.f32.mrf.mxu2  ;;  %v9772_v58 = vpop.f32.mrf.mxu0  ;;  %v3849_v23 = vadd.f32 %v9746_v47, %v3813_v63  ;;  %v3186_v63 = vshrl.u32 %v8501_v34, 16 }
 0x293   : > { %v3190_v22 = vrot.slane %v3188_v41, 1 }
 0x294   : > { %v4029_v16 = vshrl.u32 %v4006_v49, 16  ;;  %v3706_v24 = vadd.f32 %v9756_v29, %v3617_v26  ;;  %v4032_v35 = vshll.u32 %v4006_v49, 16  ;;  %v3881_v5 = vmax.f32 %v3849_v23, 0.0  ;;  %v2890_v49 = vld [vmem:[#allocation2 + $0xbc] sm:$0xf] }
 0x295   : > { %v3287_v29 = vsel %vm1400_vm4, %v3285_v54, %v3286_v59  ;;  %v3193_v23 = vshll.u32 %v3037_v15, 16  ;;  %v3191_v41 = vor.u32 %v3190_v22, %v3186_v63  ;;  %v8551_v63 = vld [vmem:[#allocation9 + $0x30] sm:$0xff] }
 0x296   : > { %v4031_v4 = vrot.slane %v4029_v16, 7  ;;  %v3778_v51 = vadd.f32 %v3706_v24, %v9585_v56  ;;  %3658 = vmatmul.bf16.gmra.mxu3 %v3184_v40  ;;  %v3913_v24 = vpack.c.bf16 %v3881_v5, %v3881_v5  ;;  %6003 = vmatpush.bf16.msrb.mxu0 %v8551_v63  ;;  %v2893_v63 = vld [vmem:[#allocation2 + $0xc8] sm:$0xf] }
 0x297   : > { %v9778_v42 = vld [vmem:[#allocation3 + $0xc] sm:$0xff] }
 0x298   : > { %v4034_v44 = vor.u32 %v4032_v35, %v4031_v4  ;;  %v4182_v17 = vsel %vm9145_vm2, %v4031_v4, 0  ;;  %v3814_v45 = vmul.f32 %v9739_v50, %v3778_v51  ;;  %5599 = vmatmul.bf16.vlgmr.msra.gmra.mxu1 %v9778_v42  ;;  %v3022_v51 = vunpack.c.l.b16 %v2890_v49 }
 0x299   : > { %v4234_v32 = vunpack.c.l.b16 %v4182_v17  ;;  %v3619_v0 = vpop.f32.mrf.mxu3  ;;  %v3195_v17 = vrot.slane %v3193_v23, 1 }
 0x29a   : > { %v4166_v56 = vsel %vm9145_vm2, 0, %v4034_v44  ;;  %v3850_v62 = vadd.f32 %v9746_v47, %v3814_v45  ;;  %v3620_v38 = vadd.f32 %v3619_v0, %v3530_v30  ;;  %v3532_v10 = vpop.f32.mrf.mxu2  ;;  %v9788_v43 = vpop.f32.mrf.mxu0  ;;  %v3977_v45 = vunpack.c.l.b16 %v3913_v24  ;;  %v9793_v0 = vld [vmem:[#allocation2 + $0xb4] sm:$0xff] }
 0x29b   : > { %v4232_v26 = vunpack.c.l.b16 %v4166_v56  ;;  %v4233_v40 = vunpack.c.h.b16 %v4166_v56  ;;  %v4282_v16 = vpack.c.b16 %v4234_v32, %v4234_v32 }
 0x29c   : > { %v3882_v4 = vmax.f32 %v3850_v62, 0.0  ;;  %v3709_v54 = vadd.f32 %v9768_v31, %v3620_v38  ;;  %v9795_v31 = vpack.c.b16 %v3022_v51, %v3022_v51 }
 0x29d   : > { %v4280_v59 = vpack.c.b16 %v4232_v26, %v4232_v26  ;;  %v4281_v35 = vpack.c.b16 %v4233_v40, %v4233_v40  ;;  %4379 = vst [vmem:[#allocation3 + $0x20] sm:$0xf] %v4282_v16  ;;  %3752 = vmatmul.bf16.gmra.mxu0 %v3287_v29  ;;  %v3288_v40 = vrot.slane %v9793_v0, 1 }
 0x29e   : > { %v3914_v44 = vpack.c.bf16 %v3882_v4, %v3882_v4  ;;  %v3779_v30 = vadd.f32 %v3709_v54, %v9595_v52  ;;  %3574 = vmatmul.bf16.gmra.mxu2 %v8501_v34  ;;  %v3196_v52 = vsel %vm1191_vm3, %v3191_v41, %v3195_v17  ;;  %v8599_v34 = vld [vmem:[#allocation9 + $0x130] sm:$0xff]  ;;  %v3289_v16 = vrot.slane %v9795_v31, 1 }
 0x29f   : > { %4377 = vst [vmem:[#allocation3 + $0x18] sm:$0xf] %v4280_v59  ;;  %5681 = vmatpush.bf16.msrb.mxu2 %v8599_v34  ;;  %v3200_v4 = vshll.u32 %v9793_v0, 16  ;;  %v8598_v59 = vld [vmem:[#allocation9 + $0x128] sm:$0xff] }
 0x2a0   : > { %4378 = vst [vmem:[#allocation3 + $0x1c] sm:$0xf] %v4281_v35  ;;  %v3978_v32 = vunpack.c.l.b16 %v3914_v44  ;;  %v3815_v15 = vmul.f32 %v9739_v50, %v3779_v30  ;;  %v8550_v35 = vld [vmem:[#allocation9 + $0x28] sm:$0xff] }
 0x2a1   : > { %v3621_v5 = vpop.f32.mrf.mxu3  ;;  %v3202_v34 = vrot.slane %v3200_v4, 1  ;;  %6004 = vmatpush.bf16.msrb.mxu0 %v8550_v35 }
 0x2a2   : > { %v4007_v56 = vpack.c.b16 %v3978_v32, %v3977_v45  ;;  %v3622_v29 = vadd.f32 %v3621_v5, %v3532_v10  ;;  %v3535_v62 = vpop.f32.mrf.mxu2  ;;  %v9797_v38 = vpop.f32.mrf.mxu0  ;;  %v3851_v49 = vadd.f32 %v9746_v47, %v3815_v15  ;;  %v3198_v45 = vshrl.u32 %v9793_v0, 16 }
 0x2a3   : > { %5682 = vmatpush.bf16.msrb.mxu2 %v8598_v59 }
 0x2a4   : > { %v4036_v22 = vshrl.u32 %v4007_v56, 16  ;;  %v3711_v26 = vadd.f32 %v9772_v58, %v3622_v29  ;;  %v4039_v10 = vshll.u32 %v4007_v56, 16  ;;  %v3883_v44 = vmax.f32 %v3851_v49, 0.0 }
 0x2a6   : > { %v4038_v23 = vrot.slane %v4036_v22, 7  ;;  %v3780_v24 = vadd.f32 %v3711_v26, %v9601_v20  ;;  %3663 = vmatmul.bf16.gmra.mxu3 %v3196_v52  ;;  %v3290_v20 = vsel %vm1400_vm4, %v3288_v40, %v3289_v16  ;;  %v8607_v52 = vld [vmem:[#allocation9 + $0x170] sm:$0xff]  ;;  %v3205_v40 = vshll.u32 %v9795_v31, 16  ;;  %v8597_v16 = vld [vmem:[#allocation9 + $0x120] sm:$0xff] }
 0x2a7   : > { %v9806_v54 = vld [vmem:[#allocation3 + $0x18] sm:$0xff]  ;;  %5770 = vmatpush.bf16.msrb.mxu3 %v8607_v52  ;;  %5683 = vmatpush.bf16.msrb.mxu2 %v8597_v16  ;;  %v3203_v31 = vor.u32 %v3202_v34, %v3198_v45  ;;  %v9824_v52 = vld [vmem:[#allocation2 + $0xc0] sm:$0xff]  ;;  %v2791_v16 = vadd.f32 %v9605_v60, %v9619_v9  ;;  %v8594_v9 = vld [vmem:[#allocation9 + $0x108] sm:$0xff] }
 0x2a8   : > { %v4041_v51 = vor.u32 %v4039_v10, %v4038_v23  ;;  %v4183_v58 = vsel %vm9145_vm2, %v4038_v23, 0  ;;  %v3816_v30 = vmul.f32 %v9739_v50, %v3780_v24  ;;  %5604 = vmatmul.bf16.gmra.mxu1 %v9806_v54  ;;  %v8549_v23 = vld [vmem:[#allocation9 + $0x20] sm:$0xff]  ;;  %v3915_v10 = vpack.c.bf16 %v3883_v44, %v3883_v44 }
 0x2a9   : > { %v4237_v41 = vunpack.c.l.b16 %v4183_v58  ;;  %v3624_v17 = vpop.f32.mrf.mxu3  ;;  %v3023_v58 = vunpack.c.l.b16 %v2893_v63  ;;  %6005 = vmatpush.bf16.msrb.mxu0 %v8549_v23  ;;  %v3207_v44 = vrot.slane %v3205_v40, 1  ;;  %v8605_v34 = vld [vmem:[#allocation9 + $0x160] sm:$0xff]  ;;  %v8547_v40 = vld [vmem:[#allocation9 + $0x10] sm:$0xff] }
 0x2aa   : > { %v4167_v32 = vsel %vm9145_vm2, 0, %v4041_v51  ;;  %v3852_v15 = vadd.f32 %v9746_v47, %v3816_v30  ;;  %v3625_v5 = vadd.f32 %v3624_v17, %v3535_v62  ;;  %v3537_v56 = vpop.f32.mrf.mxu2  ;;  %v9817_v29 = vpop.f32.mrf.mxu0  ;;  %v8606_v30 = vld [vmem:[#allocation9 + $0x168] sm:$0xff]  ;;  %v8548_v17 = vld [vmem:[#allocation9 + $0x18] sm:$0xff] }
 0x2ab   : > { %v4235_v22 = vunpack.c.l.b16 %v4167_v32  ;;  %v4236_v49 = vunpack.c.h.b16 %v4167_v32  ;;  %v4285_v26 = vpack.c.b16 %v4237_v41, %v4237_v41  ;;  %v8596_v41 = vld [vmem:[#allocation9 + $0x118] sm:$0xff]  ;;  %5771 = vmatpush.bf16.msrb.mxu3 %v8606_v30  ;;  %v8546_v30 = vld [vmem:[#allocation9 + $0x8] sm:$0xff] }
 0x2ac   : > { %v3884_v24 = vmax.f32 %v3852_v15, 0.0  ;;  %v3714_v59 = vadd.f32 %v9788_v43, %v3625_v5  ;;  %v3979_v43 = vunpack.c.l.b16 %v3915_v10  ;;  %5684 = vmatpush.bf16.msrb.mxu2 %v8596_v41 }
 0x2ad   : > { %v4283_v62 = vpack.c.b16 %v4235_v22, %v4235_v22  ;;  %v4284_v51 = vpack.c.b16 %v4236_v49, %v4236_v49  ;;  %4382 = vst [vmem:[#allocation3 + $0x2c] sm:$0xf] %v4285_v26  ;;  %3757 = vmatmul.bf16.gmra.mxu0 %v3290_v20  ;;  %v8559_v20 = vld [vmem:[#allocation9 + $0x70] sm:$0xff]  ;;  %v3208_v49 = vsel %vm1191_vm3, %v3203_v31, %v3207_v44 }
 0x2ae   : > { %v3916_v4 = vpack.c.bf16 %v3884_v24, %v3884_v24  ;;  %v3781_v35 = vadd.f32 %v3714_v59, %v9613_v53  ;;  %3579 = vmatmul.bf16.gmra.mxu2 %v9793_v0  ;;  %v9826_v53 = vpack.c.b16 %v3023_v58, %v3023_v58  ;;  %6092 = vmatpush.bf16.msrb.mxu1 %v8559_v20  ;;  %v8595_v26 = vld [vmem:[#allocation9 + $0x110] sm:$0xff] }
 0x2af   : > { %4380 = vst [vmem:[#allocation3 + $0x24] sm:$0xf] %v4283_v62  ;;  %6006 = vmatpush.bf16.msrb.mxu0 %v8548_v17  ;;  %5772 = vmatpush.bf16.msrb.mxu3 %v8605_v34 }
 0x2b0   : > { %4381 = vst [vmem:[#allocation3 + $0x28] sm:$0xf] %v4284_v51  ;;  %v3980_v32 = vunpack.c.l.b16 %v3916_v4  ;;  %v3817_v15 = vmul.f32 %v9739_v50, %v3781_v35  ;;  %v3292_v59 = vrot.slane %v9826_v53, 1  ;;  %5685 = vmatpush.bf16.msrb.mxu2 %v8595_v26  ;;  %v3212_v4 = vshll.u32 %v9824_v52, 16  ;;  %v8604_v35 = vld [vmem:[#allocation9 + $0x158] sm:$0xff] }
 0x2b1   : > { %v3626_v5 = vpop.f32.mrf.mxu3  ;;  %v2896_v26 = vld [vmem:[#allocation2 + $0xd4] sm:$0xf] }
 0x2b2   : > { %v4008_v63 = vpack.c.b16 %v3980_v32, %v3979_v43  ;;  %v3627_v22 = vadd.f32 %v3626_v5, %v3537_v56  ;;  %v3540_v0 = vpop.f32.mrf.mxu2  ;;  %v9828_v45 = vpop.f32.mrf.mxu0  ;;  %v3853_v10 = vadd.f32 %v9746_v47, %v3817_v15  ;;  %v3291_v56 = vrot.slane %v9824_v52, 1 }
 0x2b3   : > { %6007 = vmatpush.bf16.msrb.mxu0 %v8547_v40  ;;  %5773 = vmatpush.bf16.msrb.mxu3 %v8604_v35  ;;  %v3210_v15 = vshrl.u32 %v9824_v52, 16  ;;  %v8603_v40 = vld [vmem:[#allocation9 + $0x150] sm:$0xff] }
 0x2b4   : > { %v4043_v23 = vshrl.u32 %v4008_v63, 16  ;;  %v3716_v24 = vadd.f32 %v9797_v38, %v3627_v22  ;;  %v4046_v51 = vshll.u32 %v4008_v63, 16  ;;  %v3885_v44 = vmax.f32 %v3853_v10, 0.0  ;;  %5686 = vmatpush.bf16.msrb.mxu2 %v8594_v9 }
 0x2b5   : > { %v3293_v32 = vsel %vm1400_vm4, %v3291_v56, %v3292_v59  ;;  %v8593_v56 = vld [vmem:[#allocation9 + $0x100] sm:$0xff] }
 0x2b6   : > { %v4045_v62 = vrot.slane %v4043_v23, 7  ;;  %v3782_v58 = vadd.f32 %v3716_v24, %v2791_v16  ;;  %3668 = vmatmul.bf16.gmra.mxu3 %v3208_v49  ;;  %v3214_v49 = vrot.slane %v3212_v4, 1  ;;  %v3217_v24 = vshll.u32 %v9826_v53, 16  ;;  %v8545_v59 = vld [vmem:[#allocation9] sm:$0xff] }
 0x2b7   : > { %v9838_v60 = vld [vmem:[#allocation3 + $0x24] sm:$0xff]  ;;  %6008 = vmatpush.bf16.msrb.mxu0 %v8546_v30  ;;  %5774 = vmatpush.bf16.msrb.mxu3 %v8603_v40  ;;  %v3024_v4 = vunpack.c.l.b16 %v2896_v26 }
 0x2b8   : > { %v4048_v31 = vor.u32 %v4046_v51, %v4045_v62  ;;  %v4184_v38 = vsel %vm9145_vm2, %v4045_v62, 0  ;;  %v3818_v41 = vmul.f32 %v9739_v50, %v3782_v58  ;;  %5609 = vmatmul.bf16.gmra.mxu1 %v9838_v60  ;;  %v3917_v62 = vpack.c.bf16 %v3885_v44, %v3885_v44  ;;  %5687 = vmatpush.bf16.msrb.mxu2 %v8593_v56 }
 0x2b9   : > { %v4240_v17 = vunpack.c.l.b16 %v4184_v38  ;;  %v3629_v43 = vpop.f32.mrf.mxu3  ;;  %v3215_v53 = vor.u32 %v3214_v49, %v3210_v15  ;;  %v8602_v38 = vld [vmem:[#allocation9 + $0x148] sm:$0xff]  ;;  %v2796_v15 = vadd.f32 %v9623_v1, %v9633_v8 }
 0x2ba   : > { %v4168_v20 = vsel %vm9145_vm2, 0, %v4048_v31  ;;  %v3854_v5 = vadd.f32 %v9746_v47, %v3818_v41  ;;  %v3630_v63 = vadd.f32 %v3629_v43, %v3540_v0  ;;  %v3542_v22 = vpop.f32.mrf.mxu2  ;;  %v9849_v34 = vpop.f32.mrf.mxu0  ;;  %v3219_v31 = vrot.slane %v3217_v24, 1  ;;  %v8504_v43 = vld [vmem:[#allocation2 + $0xcc] sm:$0xff] }
 0x2bb   : > { %v4238_v16 = vunpack.c.l.b16 %v4168_v20  ;;  %v4239_v23 = vunpack.c.h.b16 %v4168_v20  ;;  %v4288_v10 = vpack.c.b16 %v4240_v17, %v4240_v17  ;;  %6009 = vmatpush.bf16.msrb.mxu0 %v8545_v59  ;;  %v3981_v44 = vunpack.c.l.b16 %v3917_v62  ;;  %5775 = vmatpush.bf16.msrb.mxu3 %v8602_v38 }
 0x2bc   : > { %v3886_v51 = vmax.f32 %v3854_v5, 0.0  ;;  %v3719_v58 = vadd.f32 %v9817_v29, %v3630_v63  ;;  %v3220_v26 = vsel %vm1191_vm3, %v3215_v53, %v3219_v31  ;;  %v3224_v59 = vshll.u32 %v8504_v43, 16 }
 0x2bd   : > { %v4286_v0 = vpack.c.b16 %v4238_v16, %v4238_v16  ;;  %v4287_v35 = vpack.c.b16 %v4239_v23, %v4239_v23  ;;  %4385 = vst [vmem:[#allocation3 + $0x38] sm:$0xf] %v4288_v10  ;;  %3762 = vmatmul.bf16.gmra.mxu0 %v3293_v32  ;;  %v3040_v32 = vpack.c.b16 %v3024_v4, %v3024_v4  ;;  %v3294_v23 = vrot.slane %v8504_v43, 1 }
 0x2be   : > { %v3918_v9 = vpack.c.bf16 %v3886_v51, %v3886_v51  ;;  %v3783_v30 = vadd.f32 %v3719_v58, %v9629_v2  ;;  %3584 = vmatmul.bf16.gmra.mxu2 %v9824_v52  ;;  %v8601_v52 = vld [vmem:[#allocation9 + $0x140] sm:$0xff]  ;;  %v3222_v4 = vshrl.u32 %v8504_v43, 16 }
 0x2bf   : > { %4383 = vst [vmem:[#allocation3 + $0x30] sm:$0xf] %v4286_v0  ;;  %v3295_v10 = vrot.slane %v3040_v32, 1  ;;  %5776 = vmatpush.bf16.msrb.mxu3 %v8601_v52 }
 0x2c0   : > { %4384 = vst [vmem:[#allocation3 + $0x34] sm:$0xf] %v4287_v35  ;;  %v3982_v29 = vunpack.c.l.b16 %v3918_v9  ;;  %v3819_v41 = vmul.f32 %v9739_v50, %v3783_v30 }
 0x2c1   : > { %v3631_v17 = vpop.f32.mrf.mxu3 }
 0x2c2   : > { %v4009_v20 = vpack.c.b16 %v3982_v29, %v3981_v44  ;;  %v3632_v5 = vadd.f32 %v3631_v17, %v3542_v22  ;;  %v3545_v63 = vpop.f32.mrf.mxu2  ;;  %v9856_v2 = vpop.f32.mrf.mxu0  ;;  %v3855_v40 = vadd.f32 %v9746_v47, %v3819_v41  ;;  %v3226_v44 = vrot.slane %v3224_v59, 1  ;;  %v4936_v29 = vld [vmem:[#allocation3 + $0x14] sm:$0xf]  ;;  %v8558_v59 = vld [vmem:[#allocation9 + $0x68] sm:$0xff] }
 0x2c3   : > { %6093 = vmatpush.bf16.msrb.mxu1 %v8558_v59 }
 0x2c4   : > { %v4050_v49 = vshrl.u32 %v4009_v20, 16  ;;  %v3721_v16 = vadd.f32 %v9828_v45, %v3632_v5  ;;  %v4053_v56 = vshll.u32 %v4009_v20, 16  ;;  %v3887_v1 = vmax.f32 %v3855_v40, 0.0 }
 0x2c5   : > { %v3296_v45 = vsel %vm1400_vm4, %v3294_v23, %v3295_v10  ;;  %v3229_v5 = vshll.u32 %v3040_v32, 16  ;;  %v3227_v10 = vor.u32 %v3226_v44, %v3222_v4 }
 0x2c6   : > { %v4052_v24 = vrot.slane %v4050_v49, 7  ;;  %v3784_v22 = vadd.f32 %v3721_v16, %v2796_v15  ;;  %3673 = vmatmul.bf16.gmra.mxu3 %v3220_v26  ;;  %v3919_v26 = vpack.c.bf16 %v3887_v1, %v3887_v1  ;;  %v5094_v16 = vunpack.c.l.b16 %v4936_v29 }
 0x2c7   : > { %v9863_v62 = vld [vmem:[#allocation3 + $0x30] sm:$0xff] }
 0x2c8   : > { %v4055_v51 = vor.u32 %v4053_v56, %v4052_v24  ;;  %v4185_v58 = vsel %vm9145_vm2, %v4052_v24, 0  ;;  %v3820_v8 = vmul.f32 %v9739_v50, %v3784_v22  ;;  %5614 = vmatmul.bf16.gmra.mxu1 %v9863_v62  ;;  %v3231_v24 = vrot.slane %v3229_v5, 1 }
 0x2c9   : > { %v4243_v0 = vunpack.c.l.b16 %v4185_v58  ;;  %v3634_v35 = vpop.f32.mrf.mxu3  ;;  %v3983_v56 = vunpack.c.l.b16 %v3919_v26 }
 0x2ca   : > { %v4169_v9 = vsel %vm9145_vm2, 0, %v4055_v51  ;;  %v3856_v30 = vadd.f32 %v9746_v47, %v3820_v8  ;;  %v3635_v53 = vadd.f32 %v3634_v35, %v3545_v63  ;;  %v3547_v31 = vpop.f32.mrf.mxu2  ;;  %v9873_v38 = vpop.f32.mrf.mxu0  ;;  %v2801_v35 = vadd.f32 %v9637_v37, %v9646_v48 }
 0x2cb   : > { %v4241_v41 = vunpack.c.l.b16 %v4169_v9  ;;  %v4242_v17 = vunpack.c.h.b16 %v4169_v9  ;;  %v4291_v20 = vpack.c.b16 %v4243_v0, %v4243_v0 }
 0x2cc   : > { %v3888_v52 = vmax.f32 %v3856_v30, 0.0  ;;  %v3724_v15 = vadd.f32 %v9849_v34, %v3635_v53  ;;  %v9878_v34 = vpack.c.b16 %v5094_v16, %v5094_v16 }
 0x2cd   : > { %v4289_v49 = vpack.c.b16 %v4241_v41, %v4241_v41  ;;  %v4290_v40 = vpack.c.b16 %v4242_v17, %v4242_v17  ;;  %4388 = vst [vmem:[#allocation3 + $0x44] sm:$0xf] %v4291_v20  ;;  %3767 = vmatmul.bf16.gmra.mxu0 %v3296_v45  ;;  %v5127_v17 = vshrl.u32 %v9778_v42, 16 }
 0x2ce   : > { %v3920_v23 = vpack.c.bf16 %v3888_v52, %v3888_v52  ;;  %v3785_v63 = vadd.f32 %v3724_v15, %v9642_v36  ;;  %3589 = vmatmul.bf16.gmra.mxu2 %v8504_v43  ;;  %v5129_v36 = vshll.u32 %v9778_v42, 16  ;;  %v3232_v43 = vsel %vm1191_vm3, %v3227_v10, %v3231_v24  ;;  %v8529_v15 = vld [vmem:[#allocation3] sm:$0xff] }
 0x2cf   : > { %4386 = vst [vmem:[#allocation3 + $0x3c] sm:$0xf] %v4289_v49  ;;  %v5134_v30 = vshll.u32 %v9878_v34, 16  ;;  %v4939_v24 = vld [vmem:[#allocation3 + $0x20] sm:$0xf] }
 0x2d0   : > { %4387 = vst [vmem:[#allocation3 + $0x40] sm:$0xf] %v4290_v40  ;;  %v3984_v22 = vunpack.c.l.b16 %v3920_v23  ;;  %v3821_v32 = vmul.f32 %v9739_v50, %v3785_v63  ;;  %v5131_v29 = vrot.slane %v5129_v36, 1 }
 0x2d1   : > { %v3636_v51 = vpop.f32.mrf.mxu3  ;;  %v5136_v52 = vrot.slane %v5134_v30, 1 }
 0x2d2   : > { %v4010_v58 = vpack.c.b16 %v3984_v22, %v3983_v56  ;;  %v3637_v1 = vadd.f32 %v3636_v51, %v3547_v31  ;;  %v3550_v8 = vpop.f32.mrf.mxu2  ;;  %v9880_v0 = vpop.f32.mrf.mxu0  ;;  %v3857_v4 = vadd.f32 %v9746_v47, %v3821_v32  ;;  %v5132_v10 = vor.u32 %v5131_v29, %v5127_v17 }
 0x2d4   : > { %v4057_v45 = vshrl.u32 %v4010_v58, 16  ;;  %v3726_v9 = vadd.f32 %v9856_v2, %v3637_v1  ;;  %v4060_v31 = vshll.u32 %v4010_v58, 16  ;;  %v3889_v48 = vmax.f32 %v3857_v4, 0.0 }
 0x2d6   : > { %v4059_v53 = vrot.slane %v4057_v45, 7  ;;  %v3786_v44 = vadd.f32 %v3726_v9, %v2801_v35  ;;  %3678 = vmatmul.bf16.gmra.mxu3 %v3232_v43  ;;  %v3921_v59 = vpack.c.bf16 %v3889_v48, %v3889_v48  ;;  %v5095_v43 = vunpack.c.l.b16 %v4939_v24 }
 0x2d7   : > { %v9889_v41 = vld [vmem:[#allocation3 + $0x3c] sm:$0xff]  ;;  %v5137_v45 = vsel %vm1191_vm3, %v5132_v10, %v5136_v52  ;;  %v2806_v48 = vadd.f32 %v9648_v12, %v9656_v13 }
 0x2d8   : > { %v4062_v20 = vor.u32 %v4060_v31, %v4059_v53  ;;  %v4186_v37 = vsel %vm9145_vm2, %v4059_v53, 0  ;;  %v3822_v5 = vmul.f32 %v9739_v50, %v3786_v44  ;;  %5619 = vmatmul.bf16.gmra.mxu1 %v9889_v41  ;;  %v3985_v4 = vunpack.c.l.b16 %v3921_v59 }
 0x2d9   : > { %v4246_v26 = vunpack.c.l.b16 %v4186_v37  ;;  %v3639_v2 = vpop.f32.mrf.mxu3  ;;  %v5335_v31 = vrot.slane %v9878_v34, 1  ;;  %v9907_v44 = vpack.c.b16 %v5095_v43, %v5095_v43  ;;  %v5141_v37 = vshll.u32 %v9806_v54, 16  ;;  %v4942_v43 = vld [vmem:[#allocation3 + $0x2c] sm:$0xf] }
 0x2da   : > { %v4170_v49 = vsel %vm9145_vm2, 0, %v4062_v20  ;;  %v3858_v40 = vadd.f32 %v9746_v47, %v3822_v5  ;;  %v3640_v16 = vadd.f32 %v3639_v2, %v3550_v8  ;;  %v3552_v23 = vpop.f32.mrf.mxu2  ;;  %v9899_v63 = vpop.f32.mrf.mxu0 }
 0x2db   : > { %v4244_v56 = vunpack.c.l.b16 %v4170_v49  ;;  %v4245_v22 = vunpack.c.h.b16 %v4170_v49  ;;  %v4294_v32 = vpack.c.b16 %v4246_v26, %v4246_v26  ;;  %v5146_v34 = vshll.u32 %v9907_v44, 16 }
 0x2dc   : > { %v3890_v51 = vmax.f32 %v3858_v40, 0.0  ;;  %v3729_v58 = vadd.f32 %v9873_v38, %v3640_v16  ;;  %v5334_v38 = vrot.slane %v9778_v42, 1  ;;  %v5143_v40 = vrot.slane %v5141_v37, 1 }
 0x2dd   : > { %v4292_v1 = vpack.c.b16 %v4244_v56, %v4244_v56  ;;  %v4293_v36 = vpack.c.b16 %v4245_v22, %v4245_v22  ;;  %4391 = vst [vmem:[#allocation3 + $0x50] sm:$0xf] %v4294_v32  ;;  %6010 = vmatmul.bf16.vlgmr.msrb.gmra.mxu0 %v8529_v15  ;;  %v5148_v22 = vrot.slane %v5146_v34, 1  ;;  %v5338_v34 = vrot.slane %v9907_v44, 1 }
 0x2de   : > { %v3922_v35 = vpack.c.bf16 %v3890_v51, %v3890_v51  ;;  %v3787_v8 = vadd.f32 %v3729_v58, %v9652_v3  ;;  %5688 = vmatmul.bf16.vlgmr.msrb.gmra.mxu2 %v5137_v45  ;;  %v5336_v42 = vsel %vm1400_vm4, %v5334_v38, %v5335_v31 }
 0x2df   : > { %4389 = vst [vmem:[#allocation3 + $0x48] sm:$0xf] %v4292_v1 }
 0x2e0   : > { %4390 = vst [vmem:[#allocation3 + $0x4c] sm:$0xf] %v4293_v36  ;;  %v3986_v9 = vunpack.c.l.b16 %v3922_v35  ;;  %v3823_v30 = vmul.f32 %v9739_v50, %v3787_v8 }
 0x2e1   : > { %v3641_v53 = vpop.f32.mrf.mxu3 }
 0x2e2   : > { %v4011_v29 = vpack.c.b16 %v3986_v9, %v3985_v4  ;;  %v3642_v17 = vadd.f32 %v3641_v53, %v3552_v23  ;;  %v3555_v20 = vpop.f32.mrf.mxu2  ;;  %v9909_v3 = vpop.f32.mrf.mxu0  ;;  %v3859_v26 = vadd.f32 %v9746_v47, %v3823_v30  ;;  %v5139_v23 = vshrl.u32 %v9806_v54, 16  ;;  %v8530_v4 = vld [vmem:[#allocation3 + $0xc] sm:$0xff] }
 0x2e4   : > { %v4064_v5 = vshrl.u32 %v4011_v29, 16  ;;  %v3731_v2 = vadd.f32 %v9880_v0, %v3642_v17  ;;  %v4067_v15 = vshll.u32 %v4011_v29, 16  ;;  %v3891_v13 = vmax.f32 %v3859_v26, 0.0 }
 0x2e5   : > { %v5144_v36 = vor.u32 %v5143_v40, %v5139_v23  ;;  %v5096_v29 = vunpack.c.l.b16 %v4942_v43  ;;  %v5153_v23 = vshll.u32 %v9838_v60, 16 }
 0x2e6   : > { %v4066_v52 = vrot.slane %v4064_v5, 7  ;;  %v3788_v49 = vadd.f32 %v3731_v2, %v2806_v48  ;;  %5777 = vmatmul.bf16.vlgmr.msrb.gmra.mxu3 %v5336_v42  ;;  %v3923_v9 = vpack.c.bf16 %v3891_v13, %v3891_v13  ;;  %v8557_v2 = vld [vmem:[#allocation9 + $0x60] sm:$0xff] }
 0x2e7   : > { %v9918_v16 = vld [vmem:[#allocation3 + $0x48] sm:$0xff]  ;;  %v5149_v37 = vsel %vm1191_vm3, %v5144_v36, %v5148_v22  ;;  %6094 = vmatpush.bf16.msrb.mxu1 %v8557_v2  ;;  %v5155_v22 = vrot.slane %v5153_v23, 1 }
 0x2e8   : > { %v4069_v10 = vor.u32 %v4067_v15, %v4066_v52  ;;  %v4187_v12 = vsel %vm9145_vm2, %v4066_v52, 0  ;;  %v3824_v0 = vmul.f32 %v9739_v50, %v3788_v49  ;;  %5624 = vmatmul.bf16.gmra.mxu1 %v9918_v16  ;;  %v3987_v48 = vunpack.c.l.b16 %v3923_v9 }
 0x2e9   : > { %v4249_v24 = vunpack.c.l.b16 %v4187_v12  ;;  %v3644_v56 = vpop.f32.mrf.mxu3  ;;  %v9936_v52 = vpack.c.b16 %v5096_v29, %v5096_v29 }
 0x2ea   : > { %v4171_v32 = vsel %vm9145_vm2, 0, %v4069_v10  ;;  %v3860_v59 = vadd.f32 %v9746_v47, %v3824_v0  ;;  %v3645_v51 = vadd.f32 %v3644_v56, %v3555_v20  ;;  %v3557_v58 = vpop.f32.mrf.mxu2  ;;  %v9928_v1 = vpop.f32.mrf.mxu0  ;;  %v2811_v10 = vadd.f32 %v9658_v61, %v9666_v33 }
 0x2eb   : > { %v4247_v35 = vunpack.c.l.b16 %v4171_v32  ;;  %v4248_v8 = vunpack.c.h.b16 %v4171_v32  ;;  %v4297_v45 = vpack.c.b16 %v4249_v24, %v4249_v24  ;;  %v5158_v13 = vshll.u32 %v9936_v52, 16 }
 0x2ec   : > { %v3892_v30 = vmax.f32 %v3860_v59, 0.0  ;;  %v3734_v53 = vadd.f32 %v9899_v63, %v3645_v51  ;;  %v5337_v63 = vrot.slane %v9806_v54, 1  ;;  %v5151_v59 = vshrl.u32 %v9838_v60, 16 }
 0x2ed   : > { %v4295_v38 = vpack.c.b16 %v4247_v35, %v4247_v35  ;;  %v4296_v31 = vpack.c.b16 %v4248_v8, %v4248_v8  ;;  %4394 = vst [vmem:[#allocation3 + $0x5c] sm:$0xf] %v4297_v45  ;;  %6015 = vmatmul.bf16.gmra.mxu0 %v8530_v4  ;;  %v5160_v43 = vrot.slane %v5158_v13, 1  ;;  %v9964_v8 = vld [vmem:[%s11186_s6] ss:$0 sm:$0xff] }
 0x2ee   : > { %v3924_v17 = vpack.c.bf16 %v3892_v30, %v3892_v30  ;;  %v3789_v20 = vadd.f32 %v3734_v53, %v9662_v19  ;;  %5693 = vmatmul.bf16.gmra.mxu2 %v5149_v37  ;;  %v5339_v44 = vsel %vm1400_vm4, %v5337_v63, %v5338_v34  ;;  %v5156_v53 = vor.u32 %v5155_v22, %v5151_v59 }
 0x2ef   : > { %4392 = vst [vmem:[#allocation3 + $0x54] sm:$0xf] %v4295_v38  ;;  %v4945_v38 = vld [vmem:[#allocation3 + $0x38] sm:$0xf] }
 0x2f0   : > { %4393 = vst [vmem:[#allocation3 + $0x58] sm:$0xf] %v4296_v31  ;;  %v3988_v5 = vunpack.c.l.b16 %v3924_v17  ;;  %v3825_v26 = vmul.f32 %v9739_v50, %v3789_v20  ;;  %v8531_v20 = vld [vmem:[#allocation3 + $0x18] sm:$0xff] }
 0x2f1   : > { %v3646_v42 = vpop.f32.mrf.mxu3 }
 0x2f2   : > { %v4012_v15 = vpack.c.b16 %v3988_v5, %v3987_v48  ;;  %v3647_v49 = vadd.f32 %v3646_v42, %v3557_v58  ;;  %v3560_v19 = vpop.f32.mrf.mxu2  ;;  %v9938_v40 = vpop.f32.mrf.mxu0  ;;  %v3861_v12 = vadd.f32 %v9746_v47, %v3825_v26  ;;  %v9955_v47 = vld [vmem:[%s11185_s5] ss:$0 sm:$0xff]  ;;  %v5097_v42 = vunpack.c.l.b16 %v4945_v38 }
 0x2f4   : > { %v4071_v50 = vshrl.u32 %v4012_v15, 16  ;;  %v3736_v54 = vadd.f32 %v9909_v3, %v3647_v49  ;;  %v4074_v24 = vshll.u32 %v4012_v15, 16  ;;  %v3893_v33 = vmax.f32 %v3861_v12, 0.0 }
 0x2f5   : > { %v5161_v15 = vsel %vm1191_vm3, %v5156_v53, %v5160_v43  ;;  %v9975_v12 = vpack.c.b16 %v5097_v42, %v5097_v42 }
 0x2f6   : > { %v4073_v0 = vrot.slane %v4071_v50, 7  ;;  %v3790_v56 = vadd.f32 %v3736_v54, %v2811_v10  ;;  %5782 = vmatmul.bf16.gmra.mxu3 %v5339_v44  ;;  %v3925_v37 = vpack.c.bf16 %v3893_v33, %v3893_v33  ;;  %v5341_v50 = vrot.slane %v9936_v52, 1 }
 0x2f7   : > { %v9947_v32 = vld [vmem:[#allocation3 + $0x54] sm:$0xff]  ;;  %v5170_v52 = vshll.u32 %v9975_v12, 16 }
 0x2f8   : > { %v4076_v51 = vor.u32 %v4074_v24, %v4073_v0  ;;  %v4188_v61 = vsel %vm9145_vm2, %v4073_v0, 0  ;;  %v3826_v3 = vmul.f32 %v9955_v47, %v3790_v56  ;;  %5629 = vmatmul.bf16.gmra.mxu1 %v9947_v32  ;;  %v3989_v49 = vunpack.c.l.b16 %v3925_v37 }
 0x2f9   : > { %v4252_v58 = vunpack.c.l.b16 %v4188_v61  ;;  %v3649_v36 = vpop.f32.mrf.mxu3  ;;  %v5165_v0 = vshll.u32 %v9863_v62, 16  ;;  %v2816_v24 = vadd.f32 %v9668_v55, %v9676_v6 }
 0x2fa   : > { %v4172_v35 = vsel %vm9145_vm2, 0, %v4076_v51  ;;  %v3862_v45 = vadd.f32 %v9964_v8, %v3826_v3  ;;  %v3650_v4 = vadd.f32 %v3649_v36, %v3560_v19  ;;  %v3562_v9 = vpop.f32.mrf.mxu2  ;;  %v9967_v30 = vpop.f32.mrf.mxu0  ;;  %v5163_v36 = vshrl.u32 %v9863_v62, 16 }
 0x2fb   : > { %v4250_v31 = vunpack.c.l.b16 %v4172_v35  ;;  %v4251_v29 = vunpack.c.h.b16 %v4172_v35  ;;  %v4300_v17 = vpack.c.b16 %v4252_v58, %v4252_v58  ;;  %v5167_v3 = vrot.slane %v5165_v0, 1 }
 0x2fc   : > { %v3894_v48 = vmax.f32 %v3862_v45, 0.0  ;;  %v3739_v5 = vadd.f32 %v9928_v1, %v3650_v4  ;;  %v5340_v1 = vrot.slane %v9838_v60, 1  ;;  %v5172_v4 = vrot.slane %v5170_v52, 1 }
 0x2fd   : > { %v4298_v26 = vpack.c.b16 %v4250_v31, %v4250_v31  ;;  %v4299_v2 = vpack.c.b16 %v4251_v29, %v4251_v29  ;;  %4397 = vst [vmem:[#allocation3 + $0x68] sm:$0xf] %v4300_v17  ;;  %6020 = vmatmul.bf16.gmra.mxu0 %v8531_v20  ;;  %v5168_v17 = vor.u32 %v5167_v3, %v5163_v36  ;;  %v4948_v20 = vld [vmem:[#allocation3 + $0x44] sm:$0xf]  ;;  %v5343_v0 = vrot.slane %v9863_v62, 1 }
 0x2fe   : > { %v3926_v63 = vpack.c.bf16 %v3894_v48, %v3894_v48  ;;  %v3791_v34 = vadd.f32 %v3739_v5, %v9672_v14  ;;  %5698 = vmatmul.bf16.gmra.mxu2 %v5161_v15  ;;  %v5342_v60 = vsel %vm1400_vm4, %v5340_v1, %v5341_v50  ;;  %v5177_v52 = vshll.u32 %v9889_v41, 16 }
 0x2ff   : > { %4395 = vst [vmem:[#allocation3 + $0x60] sm:$0xf] %v4298_v26  ;;  %v8532_v26 = vld [vmem:[#allocation3 + $0x24] sm:$0xff]  ;;  %v5173_v1 = vsel %vm1191_vm3, %v5168_v17, %v5172_v4 }
 0x300   : > { %4396 = vst [vmem:[#allocation3 + $0x64] sm:$0xf] %v4299_v2  ;;  %v3990_v19 = vunpack.c.l.b16 %v3926_v63  ;;  %v3827_v23 = vmul.f32 %v9955_v47, %v3791_v34 }
 0x301   : > { %v3651_v10 = vpop.f32.mrf.mxu3 }
 0x302   : > { %v4013_v54 = vpack.c.b16 %v3990_v19, %v3989_v49  ;;  %v3652_v44 = vadd.f32 %v3651_v10, %v3562_v9  ;;  %v3565_v13 = vpop.f32.mrf.mxu2  ;;  %v9977_v14 = vpop.f32.mrf.mxu0  ;;  %v3863_v22 = vadd.f32 %v9964_v8, %v3827_v23  ;;  %v5098_v49 = vunpack.c.l.b16 %v4948_v20 }
 0x303   : > { %v9999_v19 = vpop.f32.mrf.mxu1 }
 0x304   : > { %v4078_v56 = vshrl.u32 %v4013_v54, 16  ;;  %v3741_v59 = vadd.f32 %v9938_v40, %v3652_v44  ;;  %v4081_v61 = vshll.u32 %v4013_v54, 16  ;;  %v3895_v6 = vmax.f32 %v3863_v22, 0.0 }
 0x306   : > { %v4080_v51 = vrot.slane %v4078_v56, 7  ;;  %v3792_v33 = vadd.f32 %v3741_v59, %v2816_v24  ;;  %5787 = vmatmul.bf16.gmra.mxu3 %v5342_v60  ;;  %v3927_v2 = vpack.c.bf16 %v3895_v6, %v3895_v6  ;;  %v5344_v24 = vrot.slane %v9975_v12, 1 }
 0x307   : > { %v9986_v58 = vld [vmem:[#allocation3 + $0x60] sm:$0xff]  ;;  %v10006_v56 = vpack.c.b16 %v5098_v49, %v5098_v49 }
 0x308   : > { %v4083_v43 = vor.u32 %v4081_v61, %v4080_v51  ;;  %v4189_v55 = vsel %vm9145_vm2, %v4080_v51, 0  ;;  %v3828_v40 = vmul.f32 %v9955_v47, %v3792_v33  ;;  %5634 = vmatmul.bf16.gmra.mxu1 %v9986_v58  ;;  %v3991_v50 = vunpack.c.l.b16 %v3927_v2 }
 0x309   : > { %v4255_v35 = vunpack.c.l.b16 %v4189_v55  ;;  %v3654_v45 = vpop.f32.mrf.mxu3  ;;  %v2821_v51 = vadd.f32 %v9678_v7, %v9686_v27  ;;  %v5345_v12 = vsel %vm1400_vm4, %v5343_v0, %v5344_v24  ;;  %v5182_v3 = vshll.u32 %v10006_v56, 16 }
 0x30a   : > { %v4173_v9 = vsel %vm9145_vm2, 0, %v4083_v43  ;;  %v3864_v53 = vadd.f32 %v9964_v8, %v3828_v40  ;;  %v3655_v38 = vadd.f32 %v3654_v45, %v3565_v13  ;;  %v3567_v31 = vpop.f32.mrf.mxu2  ;;  %v9996_v29 = vpop.f32.mrf.mxu0  ;;  %v5179_v40 = vrot.slane %v5177_v52, 1 }
 0x30b   : > { %v4253_v37 = vunpack.c.l.b16 %v4173_v9  ;;  %v4254_v48 = vunpack.c.h.b16 %v4173_v9  ;;  %v4303_v5 = vpack.c.b16 %v4255_v35, %v4255_v35  ;;  %v5175_v7 = vshrl.u32 %v9889_v41, 16 }
 0x30c   : > { %v3896_v42 = vmax.f32 %v3864_v53, 0.0  ;;  %v3744_v63 = vadd.f32 %v9967_v30, %v3655_v38  ;;  %v8556_v30 = vld [vmem:[#allocation9 + $0x58] sm:$0xff]  ;;  %v5184_v38 = vrot.slane %v5182_v3, 1 }
 0x30d   : > { %v4301_v34 = vpack.c.b16 %v4253_v37, %v4253_v37  ;;  %v4302_v15 = vpack.c.b16 %v4254_v48, %v4254_v48  ;;  %4400 = vst [vmem:[#allocation3 + $0x74] sm:$0xf] %v4303_v5  ;;  %6025 = vmatmul.bf16.gmra.mxu0 %v8532_v26  ;;  %6095 = vmatpush.bf16.msrb.mxu1 %v8556_v30  ;;  %v4951_v26 = vld [vmem:[#allocation3 + $0x50] sm:$0xf] }
 0x30e   : > { %v3928_v23 = vpack.c.bf16 %v3896_v42, %v3896_v42  ;;  %v3793_v10 = vadd.f32 %v3744_v63, %v9682_v28  ;;  %5703 = vmatmul.bf16.gmra.mxu2 %v5173_v1  ;;  %v5180_v5 = vor.u32 %v5179_v40, %v5175_v7 }
 0x30f   : > { %4398 = vst [vmem:[#allocation3 + $0x6c] sm:$0xf] %v4301_v34  ;;  %v8533_v34 = vld [vmem:[#allocation3 + $0x30] sm:$0xff] }
 0x310   : > { %4399 = vst [vmem:[#allocation3 + $0x70] sm:$0xf] %v4302_v15  ;;  %v3992_v54 = vunpack.c.l.b16 %v3928_v23  ;;  %v3829_v44 = vmul.f32 %v9955_v47, %v3793_v10 }
 0x311   : > { %v3656_v13 = vpop.f32.mrf.mxu3 }
 0x312   : > { %v4014_v22 = vpack.c.b16 %v3992_v54, %v3991_v50  ;;  %v3657_v59 = vadd.f32 %v3656_v13, %v3567_v31  ;;  %v3570_v28 = vpop.f32.mrf.mxu2  ;;  %v10008_v60 = vpop.f32.mrf.mxu0  ;;  %v3865_v33 = vadd.f32 %v9964_v8, %v3829_v44  ;;  %v5099_v50 = vunpack.c.l.b16 %v4951_v26 }
 0x313   : > { %v5185_v13 = vsel %vm1191_vm3, %v5180_v5, %v5184_v38 }
 0x314   : > { %v4085_v61 = vshrl.u32 %v4014_v22, 16  ;;  %v3746_v62 = vadd.f32 %v9977_v14, %v3657_v59  ;;  %v4088_v43 = vshll.u32 %v4014_v22, 16  ;;  %v3897_v14 = vmax.f32 %v3865_v33, 0.0 }
 0x315   : > { %v10017_v6 = vpop.f32.mrf.mxu1  ;;  %v5346_v59 = vrot.slane %v9889_v41, 1  ;;  %v10039_v52 = vpack.c.b16 %v5099_v50, %v5099_v50 }
 0x316   : > { %v4087_v36 = vrot.slane %v4085_v61, 7  ;;  %v3794_v55 = vadd.f32 %v3746_v62, %v2821_v51  ;;  %5792 = vmatmul.bf16.gmra.mxu3 %v5345_v12  ;;  %v3929_v15 = vpack.c.bf16 %v3897_v14, %v3897_v14  ;;  %v5189_v62 = vshll.u32 %v9918_v16, 16  ;;  %v11226_v12 = vld [vmem:[#allocation16_spill] sm:$0xff] }
 0x317   : > { %v10019_v35 = vld [vmem:[#allocation3 + $0x6c] sm:$0xff]  ;;  %v2826_v3 = vadd.f32 %v11226_v12, %v9696_v18  ;;  %v5187_v18 = vshrl.u32 %v9918_v16, 16  ;;  %v5350_v12 = vrot.slane %v10039_v52, 1 }
 0x318   : > { %v4090_v27 = vor.u32 %v4088_v43, %v4087_v36  ;;  %v4190_v45 = vsel %vm9145_vm2, %v4087_v36, 0  ;;  %v3830_v4 = vmul.f32 %v9955_v47, %v3794_v55  ;;  %5639 = vmatmul.bf16.gmra.mxu1 %v10019_v35  ;;  %v3993_v0 = vunpack.c.l.b16 %v3929_v15 }
 0x319   : > { %v4258_v9 = vunpack.c.l.b16 %v4190_v45  ;;  %v3659_v53 = vpop.f32.mrf.mxu3  ;;  %v5191_v14 = vrot.slane %v5189_v62, 1  ;;  %v5349_v62 = vrot.slane %v9918_v16, 1 }
 0x31a   : > { %v4174_v31 = vsel %vm9145_vm2, 0, %v4090_v27  ;;  %v3866_v17 = vadd.f32 %v9964_v8, %v3830_v4  ;;  %v3660_v20 = vadd.f32 %v3659_v53, %v3570_v28  ;;  %v3572_v37 = vpop.f32.mrf.mxu2  ;;  %v10029_v48 = vpop.f32.mrf.mxu0  ;;  %v5347_v28 = vrot.slane %v10006_v56, 1 }
 0x31b   : > { %v4256_v2 = vunpack.c.l.b16 %v4174_v31  ;;  %v4257_v42 = vunpack.c.h.b16 %v4174_v31  ;;  %v4306_v63 = vpack.c.b16 %v4258_v9, %v4258_v9  ;;  %v5194_v56 = vshll.u32 %v10039_v52, 16 }
 0x31c   : > { %v3898_v49 = vmax.f32 %v3866_v17, 0.0  ;;  %v3749_v23 = vadd.f32 %v9996_v29, %v3660_v20  ;;  %v5348_v41 = vsel %vm1400_vm4, %v5346_v59, %v5347_v28  ;;  %v5351_v52 = vsel %vm1400_vm4, %v5349_v62, %v5350_v12 }
 0x31d   : > { %v4304_v10 = vpack.c.b16 %v4256_v2, %v4256_v2  ;;  %v4305_v1 = vpack.c.b16 %v4257_v42, %v4257_v42  ;;  %4403 = vst [vmem:[#allocation3 + $0x80] sm:$0xf] %v4306_v63  ;;  %6030 = vmatmul.bf16.gmra.mxu0 %v8533_v34  ;;  %v10033_v30 = vpop.f32.mrf.mxu1  ;;  %v5196_v20 = vrot.slane %v5194_v56, 1  ;;  %v5192_v63 = vor.u32 %v5191_v14, %v5187_v18  ;;  %v4954_v34 = vld [vmem:[#allocation3 + $0x5c] sm:$0xf]  ;;  %v11227_v56 = vld [vmem:[#allocation17_spill] sm:$0xff] }
 0x31e   : > { %v3930_v54 = vpack.c.bf16 %v3898_v49, %v3898_v49  ;;  %v3795_v44 = vadd.f32 %v3749_v23, %v9692_v39  ;;  %5708 = vmatmul.bf16.gmra.mxu2 %v5185_v13 }
 0x31f   : > { %4401 = vst [vmem:[#allocation3 + $0x78] sm:$0xf] %v4304_v10  ;;  %v8534_v10 = vld [vmem:[#allocation3 + $0x3c] sm:$0xff]  ;;  %v5197_v59 = vsel %vm1191_vm3, %v5192_v63, %v5196_v20 }
 0x320   : > { %4402 = vst [vmem:[#allocation3 + $0x7c] sm:$0xf] %v4305_v1  ;;  %v3994_v24 = vunpack.c.l.b16 %v3930_v54  ;;  %v3831_v22 = vmul.f32 %v9955_v47, %v3795_v44 }
 0x321   : > { %v3661_v29 = vpop.f32.mrf.mxu3 }
 0x322   : > { %v4015_v51 = vpack.c.b16 %v3994_v24, %v3993_v0  ;;  %v3662_v39 = vadd.f32 %v3661_v29, %v3572_v37  ;;  %v3575_v61 = vpop.f32.mrf.mxu2  ;;  %v10041_v33 = vpop.f32.mrf.mxu0  ;;  %v3867_v43 = vadd.f32 %v9964_v8, %v3831_v22  ;;  %v5100_v0 = vunpack.c.l.b16 %v4954_v34 }
 0x324   : > { %v4092_v36 = vshrl.u32 %v4015_v51, 16  ;;  %v3751_v55 = vadd.f32 %v10008_v60, %v3662_v39  ;;  %v4095_v7 = vshll.u32 %v4015_v51, 16  ;;  %v3899_v60 = vmax.f32 %v3867_v43, 0.0 }
 0x325   : > { %v10050_v45 = vpop.f32.mrf.mxu1 }
 0x326   : > { %v4094_v40 = vrot.slane %v4092_v36, 7  ;;  %v3796_v27 = vadd.f32 %v3751_v55, %v2826_v3  ;;  %5797 = vmatmul.bf16.gmra.mxu3 %v5348_v41  ;;  %v3931_v1 = vpack.c.bf16 %v3899_v60, %v3899_v60  ;;  %v10072_v3 = vpack.c.b16 %v5100_v0, %v5100_v0 }
 0x327   : > { %v10052_v4 = vld [vmem:[#allocation3 + $0x78] sm:$0xff]  ;;  %v5201_v41 = vshll.u32 %v9947_v32, 16 }
 0x328   : > { %v4097_v9 = vor.u32 %v4095_v7, %v4094_v40  ;;  %v4191_v53 = vsel %vm9145_vm2, %v4094_v40, 0  ;;  %v3832_v38 = vmul.f32 %v9955_v47, %v3796_v27  ;;  %5644 = vmatmul.bf16.gmra.mxu1 %v10052_v4  ;;  %v3995_v28 = vunpack.c.l.b16 %v3931_v1  ;;  %v4957_v1 = vld [vmem:[#allocation3 + $0x68] sm:$0xf] }
 0x329   : > { %v4261_v31 = vunpack.c.l.b16 %v4191_v53  ;;  %v3664_v17 = vpop.f32.mrf.mxu3  ;;  %v2831_v40 = vadd.f32 %v11227_v56, %v9706_v25  ;;  %v5206_v14 = vshll.u32 %v10072_v3, 16  ;;  %v5199_v25 = vshrl.u32 %v9947_v32, 16 }
 0x32a   : > { %v4175_v37 = vsel %vm9145_vm2, 0, %v4097_v9  ;;  %v3868_v5 = vadd.f32 %v9964_v8, %v3832_v38  ;;  %v3665_v26 = vadd.f32 %v3664_v17, %v3575_v61  ;;  %v3577_v2 = vpop.f32.mrf.mxu2  ;;  %v10062_v42 = vpop.f32.mrf.mxu0  ;;  %v5203_v38 = vrot.slane %v5201_v41, 1 }
 0x32b   : > { %v4259_v15 = vunpack.c.l.b16 %v4175_v37  ;;  %v4260_v49 = vunpack.c.h.b16 %v4175_v37  ;;  %v4309_v23 = vpack.c.b16 %v4261_v31, %v4261_v31  ;;  %v5353_v41 = vrot.slane %v10072_v3, 1 }
 0x32c   : > { %v3900_v50 = vmax.f32 %v3868_v5, 0.0  ;;  %v3754_v54 = vadd.f32 %v10029_v48, %v3665_v26  ;;  %v8555_v48 = vld [vmem:[#allocation9 + $0x50] sm:$0xff] }
 0x32d   : > { %v4307_v44 = vpack.c.b16 %v4259_v15, %v4259_v15  ;;  %v4308_v13 = vpack.c.b16 %v4260_v49, %v4260_v49  ;;  %4406 = vst [vmem:[#allocation3 + $0x8c] sm:$0xf] %v4309_v23  ;;  %6035 = vmatmul.bf16.gmra.mxu0 %v8534_v10  ;;  %v10066_v29 = vpop.f32.mrf.mxu1  ;;  %6096 = vmatpush.bf16.msrb.mxu1 %v8555_v48 }
 0x32e   : > { %v3932_v24 = vpack.c.bf16 %v3900_v50, %v3900_v50  ;;  %v3797_v22 = vadd.f32 %v3754_v54, %v9702_v46  ;;  %5713 = vmatmul.bf16.gmra.mxu2 %v5197_v59  ;;  %v5204_v10 = vor.u32 %v5203_v38, %v5199_v25 }
 0x32f   : > { %4404 = vst [vmem:[#allocation3 + $0x84] sm:$0xf] %v4307_v44 }
 0x330   : > { %4405 = vst [vmem:[#allocation3 + $0x88] sm:$0xf] %v4308_v13  ;;  %v3996_v51 = vunpack.c.l.b16 %v3932_v24  ;;  %v3833_v39 = vmul.f32 %v9955_v47, %v3797_v22  ;;  %v8535_v13 = vld [vmem:[#allocation3 + $0x48] sm:$0xff] }
 0x331   : > { %v3666_v61 = vpop.f32.mrf.mxu3 }
 0x332   : > { %v4016_v46 = vpack.c.b16 %v3996_v51, %v3995_v28  ;;  %v3667_v36 = vadd.f32 %v3666_v61, %v3577_v2  ;;  %v3580_v43 = vpop.f32.mrf.mxu2  ;;  %v10074_v55 = vpop.f32.mrf.mxu0  ;;  %v3869_v27 = vadd.f32 %v9964_v8, %v3833_v39  ;;  %v5208_v2 = vrot.slane %v5206_v14, 1 }
 0x333   : > { %v5101_v51 = vunpack.c.l.b16 %v4957_v1 }
 0x334   : > { %v4099_v7 = vshrl.u32 %v4016_v46, 16  ;;  %v3756_v16 = vadd.f32 %v10041_v33, %v3667_v36  ;;  %v4102_v9 = vshll.u32 %v4016_v46, 16  ;;  %v3901_v33 = vmax.f32 %v3869_v27, 0.0 }
 0x335   : > { %v10083_v60 = vpop.f32.mrf.mxu1  ;;  %v5209_v62 = vsel %vm1191_vm3, %v5204_v10, %v5208_v2  ;;  %v10105_v56 = vpack.c.b16 %v5101_v51, %v5101_v51 }
 0x336   : > { %v4101_v18 = vrot.slane %v4099_v7, 7  ;;  %v3798_v53 = vadd.f32 %v3756_v16, %v2831_v40  ;;  %5802 = vmatmul.bf16.gmra.mxu3 %v5351_v52  ;;  %v3933_v0 = vpack.c.bf16 %v3901_v33, %v3901_v33  ;;  %v5213_v16 = vshll.u32 %v9986_v58, 16  ;;  %v11228_v52 = vld [vmem:[#allocation18_spill] sm:$0xff] }
 0x337   : > { %v10085_v31 = vld [vmem:[#allocation3 + $0x84] sm:$0xff]  ;;  %v2836_v14 = vadd.f32 %v11228_v52, %v9716_v21  ;;  %v5218_v3 = vshll.u32 %v10105_v56, 16  ;;  %v5211_v21 = vshrl.u32 %v9986_v58, 16  ;;  %v5355_v52 = vrot.slane %v9986_v58, 1 }
 0x338   : > { %v4104_v17 = vor.u32 %v4102_v9, %v4101_v18  ;;  %v4192_v20 = vsel %vm9145_vm2, %v4101_v18, 0  ;;  %v3834_v37 = vmul.f32 %v9955_v47, %v3798_v53  ;;  %5649 = vmatmul.bf16.gmra.mxu1 %v10085_v31  ;;  %v3997_v12 = vunpack.c.l.b16 %v3933_v0 }
 0x339   : > { %v4264_v5 = vunpack.c.l.b16 %v4192_v20  ;;  %v3669_v26 = vpop.f32.mrf.mxu3  ;;  %v5215_v33 = vrot.slane %v5213_v16, 1 }
 0x33a   : > { %v4176_v63 = vsel %vm9145_vm2, 0, %v4104_v17  ;;  %v3870_v34 = vadd.f32 %v9964_v8, %v3834_v37  ;;  %v3670_v15 = vadd.f32 %v3669_v26, %v3580_v43  ;;  %v3582_v49 = vpop.f32.mrf.mxu2  ;;  %v10095_v23 = vpop.f32.mrf.mxu0  ;;  %v5352_v43 = vrot.slane %v9947_v32, 1 }
 0x33b   : > { %v4262_v50 = vunpack.c.l.b16 %v4176_v63  ;;  %v4263_v54 = vunpack.c.h.b16 %v4176_v63  ;;  %v4312_v44 = vpack.c.b16 %v4264_v5, %v4264_v5 }
 0x33c   : > { %v3902_v24 = vmax.f32 %v3870_v34, 0.0  ;;  %v3759_v22 = vadd.f32 %v10062_v42, %v3670_v15  ;;  %v5354_v32 = vsel %vm1400_vm4, %v5352_v43, %v5353_v41  ;;  %v5220_v15 = vrot.slane %v5218_v3, 1 }
 0x33d   : > { %v4310_v59 = vpack.c.b16 %v4262_v50, %v4262_v50  ;;  %v4311_v28 = vpack.c.b16 %v4263_v54, %v4263_v54  ;;  %4409 = vst [vmem:[#allocation3 + $0x98] sm:$0xf] %v4312_v44  ;;  %6040 = vmatmul.bf16.gmra.mxu0 %v8535_v13  ;;  %v10099_v61 = vpop.f32.mrf.mxu1  ;;  %v5216_v44 = vor.u32 %v5215_v33, %v5211_v21  ;;  %v4960_v13 = vld [vmem:[#allocation3 + $0x74] sm:$0xf] }
 0x33e   : > { %v3934_v39 = vpack.c.bf16 %v3902_v24, %v3902_v24  ;;  %v3799_v48 = vadd.f32 %v3759_v22, %v9712_v11  ;;  %5718 = vmatmul.bf16.gmra.mxu2 %v5209_v62 }
 0x33f   : > { %4407 = vst [vmem:[#allocation3 + $0x90] sm:$0xf] %v4310_v59  ;;  %v8536_v59 = vld [vmem:[#allocation3 + $0x54] sm:$0xff]  ;;  %v5221_v41 = vsel %vm1191_vm3, %v5216_v44, %v5220_v15 }
 0x340   : > { %4408 = vst [vmem:[#allocation3 + $0x94] sm:$0xf] %v4311_v28  ;;  %v3998_v46 = vunpack.c.l.b16 %v3934_v39  ;;  %v3835_v36 = vmul.f32 %v9955_v47, %v3799_v48 }
 0x341   : > { %v3671_v42 = vpop.f32.mrf.mxu3 }
 0x342   : > { %v4017_v40 = vpack.c.b16 %v3998_v46, %v3997_v12  ;;  %v3672_v11 = vadd.f32 %v3671_v42, %v3582_v49  ;;  %v3585_v7 = vpop.f32.mrf.mxu2  ;;  %v10107_v27 = vpop.f32.mrf.mxu0  ;;  %v3871_v9 = vadd.f32 %v9964_v8, %v3835_v36  ;;  %v5102_v12 = vunpack.c.l.b16 %v4960_v13  ;;  %v11229_v36 = vld [vmem:[#allocation19_spill] sm:$0xff] }
 0x344   : > { %v4106_v18 = vshrl.u32 %v4017_v40, 16  ;;  %v3761_v53 = vadd.f32 %v10074_v55, %v3672_v11  ;;  %v4109_v25 = vshll.u32 %v4017_v40, 16  ;;  %v3903_v55 = vmax.f32 %v3871_v9, 0.0 }
 0x345   : > { %v10116_v20 = vpop.f32.mrf.mxu1 }
 0x346   : > { %v4108_v38 = vrot.slane %v4106_v18, 7  ;;  %v3800_v17 = vadd.f32 %v3761_v53, %v2836_v14  ;;  %5807 = vmatmul.bf16.gmra.mxu3 %v5354_v32  ;;  %v3935_v28 = vpack.c.bf16 %v3903_v55, %v3903_v55  ;;  %v5356_v14 = vrot.slane %v10105_v56, 1 }
 0x347   : > { %v10118_v37 = vld [vmem:[#allocation3 + $0x90] sm:$0xff]  ;;  %v10138_v18 = vpack.c.b16 %v5102_v12, %v5102_v12 }
 0x348   : > { %v4111_v5 = vor.u32 %v4109_v25, %v4108_v38  ;;  %v4193_v26 = vsel %vm9145_vm2, %v4108_v38, 0  ;;  %v3836_v2 = vmul.f32 %v9955_v47, %v3800_v17  ;;  %5654 = vmatmul.bf16.gmra.mxu1 %v10118_v37  ;;  %v3999_v40 = vunpack.c.l.b16 %v3935_v28  ;;  %v11230_v25 = vld [vmem:[#allocation21_spill] sm:$0xff]  ;;  %v11231_v17 = vld [vmem:[#allocation20_spill] sm:$0xff] }
 0x349   : > { %v4267_v63 = vunpack.c.l.b16 %v4193_v26  ;;  %v3674_v34 = vpop.f32.mrf.mxu3  ;;  %v5225_v38 = vshll.u32 %v10019_v35, 16  ;;  %v2841_v33 = vadd.f32 %v11231_v17, %v11230_v25  ;;  %v5357_v56 = vsel %vm1400_vm4, %v5355_v52, %v5356_v14  ;;  %v11232_v14 = vld [vmem:[#allocation22_spill] sm:$0xff] }
 0x34a   : > { %v4177_v49 = vsel %vm9145_vm2, 0, %v4111_v5  ;;  %v3872_v10 = vadd.f32 %v9964_v8, %v3836_v2  ;;  %v3675_v1 = vadd.f32 %v3674_v34, %v3585_v7  ;;  %v3587_v50 = vpop.f32.mrf.mxu2  ;;  %v10128_v54 = vpop.f32.mrf.mxu0  ;;  %v5230_v26 = vshll.u32 %v10138_v18, 16 }
 0x34b   : > { %v4265_v0 = vunpack.c.l.b16 %v4177_v49  ;;  %v4266_v24 = vunpack.c.h.b16 %v4177_v49  ;;  %v4315_v22 = vpack.c.b16 %v4267_v63, %v4267_v63  ;;  %v5227_v15 = vrot.slane %v5225_v38, 1 }
 0x34c   : > { %v3904_v51 = vmax.f32 %v3872_v10, 0.0  ;;  %v3764_v39 = vadd.f32 %v10095_v23, %v3675_v1  ;;  %v8554_v23 = vld [vmem:[#allocation9 + $0x48] sm:$0xff]  ;;  %v5223_v10 = vshrl.u32 %v10019_v35, 16 }
 0x34d   : > { %v4313_v48 = vpack.c.b16 %v4265_v0, %v4265_v0  ;;  %v4314_v62 = vpack.c.b16 %v4266_v24, %v4266_v24  ;;  %4412 = vst [vmem:[#allocation3 + $0xa4] sm:$0xf] %v4315_v22  ;;  %6045 = vmatmul.bf16.gmra.mxu0 %v8536_v59  ;;  %v10132_v43 = vpop.f32.mrf.mxu1  ;;  %6097 = vmatpush.bf16.msrb.mxu1 %v8554_v23  ;;  %v5232_v24 = vrot.slane %v5230_v26, 1 }
 0x34e   : > { %v3936_v46 = vpack.c.bf16 %v3904_v51, %v3904_v51  ;;  %v3801_v42 = vadd.f32 %v3764_v39, %v11229_v36  ;;  %5723 = vmatmul.bf16.gmra.mxu2 %v5221_v41 }
 0x34f   : > { %4410 = vst [vmem:[#allocation3 + $0x9c] sm:$0xf] %v4313_v48  ;;  %v5228_v48 = vor.u32 %v5227_v15, %v5223_v10  ;;  %v11233_v15 = vld [vmem:[#allocation23_spill] sm:$0xff] }
 0x350   : > { %4411 = vst [vmem:[#allocation3 + $0xa0] sm:$0xf] %v4314_v62  ;;  %v4000_v11 = vunpack.c.l.b16 %v3936_v46  ;;  %v3837_v7 = vmul.f32 %v9955_v47, %v3801_v42  ;;  %v4963_v62 = vld [vmem:[#allocation3 + $0x80] sm:$0xf]  ;;  %v2846_v10 = vadd.f32 %v9999_v19, %v11233_v15  ;;  %v5235_v19 = vshrl.u32 %v10052_v4, 16 }
 0x351   : > { %v3676_v16 = vpop.f32.mrf.mxu3  ;;  %v8537_v42 = vld [vmem:[#allocation3 + $0x60] sm:$0xff] }
 0x352   : > { %v4018_v9 = vpack.c.b16 %v4000_v11, %v3999_v40  ;;  %v3677_v53 = vadd.f32 %v3676_v16, %v3587_v50  ;;  %v3590_v32 = vpop.f32.mrf.mxu2  ;;  %v10140_v3 = vpop.f32.mrf.mxu0  ;;  %v3873_v5 = vadd.f32 %v9964_v8, %v3837_v7  ;;  %v5103_v16 = vunpack.c.l.b16 %v4963_v62 }
 0x354   : > { %v4113_v21 = vshrl.u32 %v4018_v9, 16  ;;  %v3766_v58 = vadd.f32 %v10107_v27, %v3677_v53  ;;  %v4116_v2 = vshll.u32 %v4018_v9, 16  ;;  %v3905_v27 = vmax.f32 %v3873_v5, 0.0 }
 0x355   : > { %v10149_v34 = vpop.f32.mrf.mxu1  ;;  %v5359_v5 = vrot.slane %v10138_v18, 1 }
 0x356   : > { %v4115_v55 = vrot.slane %v4113_v21, 7  ;;  %v3802_v63 = vadd.f32 %v3766_v58, %v2841_v33  ;;  %5812 = vmatmul.bf16.gmra.mxu3 %v5357_v56  ;;  %v3937_v41 = vpack.c.bf16 %v3905_v27, %v3905_v27  ;;  %v5358_v21 = vrot.slane %v10019_v35, 1 }
 0x357   : > { %v10151_v49 = vld [vmem:[#allocation3 + $0x9c] sm:$0xff]  ;;  %v10171_v58 = vpack.c.b16 %v5103_v16, %v5103_v16 }
 0x358   : > { %v4118_v1 = vor.u32 %v4116_v2, %v4115_v55  ;;  %v4194_v50 = vsel %vm9145_vm2, %v4115_v55, 0  ;;  %v3838_v44 = vmul.f32 %v9955_v47, %v3802_v63  ;;  %5659 = vmatmul.bf16.gmra.mxu1 %v10151_v49  ;;  %v4001_v38 = vunpack.c.l.b16 %v3937_v41 }
 0x359   : > { %v4270_v13 = vunpack.c.l.b16 %v4194_v50  ;;  %v3679_v0 = vpop.f32.mrf.mxu3  ;;  %v5237_v63 = vshll.u32 %v10052_v4, 16  ;;  %v5360_v18 = vsel %vm1400_vm4, %v5358_v21, %v5359_v5  ;;  %v5242_v27 = vshll.u32 %v10171_v58, 16 }
 0x35a   : > { %v4178_v22 = vsel %vm9145_vm2, 0, %v4118_v1  ;;  %v3874_v59 = vadd.f32 %v9964_v8, %v3838_v44  ;;  %v3680_v28 = vadd.f32 %v3679_v0, %v3590_v32  ;;  %v3592_v51 = vpop.f32.mrf.mxu2  ;;  %v10161_v39 = vpop.f32.mrf.mxu0  ;;  %v5233_v32 = vsel %vm1191_vm3, %v5228_v48, %v5232_v24 }
 0x35b   : > { %v4268_v12 = vunpack.c.l.b16 %v4178_v22  ;;  %v4269_v46 = vunpack.c.h.b16 %v4178_v22  ;;  %v4318_v36 = vpack.c.b16 %v4270_v13, %v4270_v13  ;;  %v5239_v22 = vrot.slane %v5237_v63, 1 }
 0x35c   : > { %v3906_v40 = vmax.f32 %v3874_v59, 0.0  ;;  %v3769_v11 = vadd.f32 %v10128_v54, %v3680_v28  ;;  %v8553_v54 = vld [vmem:[#allocation9 + $0x40] sm:$0xff]  ;;  %v5362_v63 = vrot.slane %v10171_v58, 1 }
 0x35d   : > { %v4316_v7 = vpack.c.b16 %v4268_v12, %v4268_v12  ;;  %v4317_v23 = vpack.c.b16 %v4269_v46, %v4269_v46  ;;  %4415 = vst [vmem:[#allocation3 + $0xb0] sm:$0xf] %v4318_v36  ;;  %6050 = vmatmul.bf16.gmra.mxu0 %v8537_v42  ;;  %v10165_v53 = vpop.f32.mrf.mxu1  ;;  %6098 = vmatpush.bf16.msrb.mxu1 %v8553_v54  ;;  %v5244_v36 = vrot.slane %v5242_v27, 1  ;;  %v8632_v27 = vld [vmem:[#allocation9 + $0x1b8] sm:$0xff] }
 0x35e   : > { %v3938_v52 = vpack.c.bf16 %v3906_v40, %v3906_v40  ;;  %v3803_v9 = vadd.f32 %v3769_v11, %v11232_v14  ;;  %5728 = vmatmul.bf16.gmra.mxu2 %v5233_v32  ;;  %v8538_v14 = vld [vmem:[#allocation3 + $0x6c] sm:$0xff]  ;;  %6927 = vmatpush.bf16.msra.mxu3 %v8632_v27 }
 0x35f   : > { %4413 = vst [vmem:[#allocation3 + $0xa8] sm:$0xf] %v4316_v7  ;;  %v5240_v7 = vor.u32 %v5239_v22, %v5235_v19 }
 0x360   : > { %4414 = vst [vmem:[#allocation3 + $0xac] sm:$0xf] %v4317_v23  ;;  %v4002_v25 = vunpack.c.l.b16 %v3938_v52  ;;  %v3839_v17 = vmul.f32 %v9955_v47, %v3803_v9 }
 0x361   : > { %v3681_v33 = vpop.f32.mrf.mxu3 }
 0x362   : > { %v4019_v56 = vpack.c.b16 %v4002_v25, %v4001_v38  ;;  %v3682_v26 = vadd.f32 %v3681_v33, %v3592_v51  ;;  %v5689_v55 = vpop.f32.mrf.mxu2  ;;  %v10173_v2 = vpop.f32.mrf.mxu0  ;;  %v3875_v50 = vadd.f32 %v9964_v8, %v3839_v17 }
 0x363   : > { %v5690_v59 = vadd.f32 %v5689_v55, %v10017_v6  ;;  %v5361_v55 = vrot.slane %v10052_v4, 1 }
 0x364   : > { %v4120_v1 = vshrl.u32 %v4019_v56, 16  ;;  %v3771_v35 = vadd.f32 %v10140_v3, %v3682_v26  ;;  %v4123_v13 = vshll.u32 %v4019_v56, 16  ;;  %v3907_v48 = vmax.f32 %v3875_v50, 0.0 }
 0x365   : > { %v10182_v24 = vpop.f32.mrf.mxu1 }
 0x366   : > { %v4122_v44 = vrot.slane %v4120_v1, 7  ;;  %v3804_v0 = vadd.f32 %v3771_v35, %v2846_v10  ;;  %5817 = vmatmul.bf16.gmra.mxu3 %v5360_v18  ;;  %v3939_v9 = vpack.c.bf16 %v3907_v48, %v3907_v48  ;;  %v5249_v18 = vshll.u32 %v10085_v31, 16 }
 0x367   : > { %v10185_v28 = vld [vmem:[#allocation3 + $0xa8] sm:$0xff] }
 0x368   : > { %v4125_v51 = vor.u32 %v4123_v13, %v4122_v44  ;;  %v4195_v3 = vsel %vm9145_vm2, %v4122_v44, 0  ;;  %v3840_v62 = vmul.f32 %v9955_v47, %v3804_v0  ;;  %5664 = vmatmul.bf16.gmra.mxu1 %v10185_v28  ;;  %v4966_v47 = vld [vmem:[#allocation3 + $0x8c] sm:$0xf]  ;;  %v4003_v21 = vunpack.c.l.b16 %v3939_v9  ;;  %v8568_v44 = vld [vmem:[#allocation9 + $0xb8] sm:$0xff]  ;;  %v8539_v9 = vld [vmem:[#allocation3 + $0x78] sm:$0xff] }
 0x369   : > { %v4273_v12 = vunpack.c.l.b16 %v4195_v3  ;;  %v5778_v46 = vpop.f32.mrf.mxu3  ;;  %v5104_v33 = vunpack.c.l.b16 %v4966_v47  ;;  %6180 = vmatpush.bf16.msra.mxu2 %v8568_v44 }
 0x36a   : > { %v4179_v42 = vsel %vm9145_vm2, 0, %v4125_v51  ;;  %v3876_v6 = vadd.f32 %v9964_v8, %v3840_v62  ;;  %v5779_v41 = vadd.f32 %v5778_v46, %v5690_v59  ;;  %v5691_v40 = vpop.f32.mrf.mxu2  ;;  %v10195_v11 = vpop.f32.mrf.mxu0  ;;  %v5245_v8 = vsel %vm1191_vm3, %v5240_v7, %v5244_v36  ;;  %v8640_v51 = vld [vmem:[#allocation9 + $0x1f8] sm:$0xff] }
 0x36b   : > { %v4271_v23 = vunpack.c.l.b16 %v4179_v42  ;;  %v4272_v16 = vunpack.c.h.b16 %v4179_v42  ;;  %v4321_v52 = vpack.c.b16 %v4273_v12, %v4273_v12  ;;  %v5692_v56 = vadd.f32 %v5691_v40, %v10033_v30  ;;  %7016 = vmatpush.bf16.msra.mxu0 %v8640_v51 }
 0x36c   : > { %v3908_v32 = vmax.f32 %v3876_v6, 0.0  ;;  %v5120_v35 = vpack.c.b16 %v5104_v33, %v5104_v33  ;;  %v10207_v0 = vadd.f32 %v10161_v39, %v5779_v41  ;;  %v5363_v30 = vsel %vm1400_vm4, %v5361_v55, %v5362_v63 }
 0x36d   : > { %v4319_v38 = vpack.c.b16 %v4271_v23, %v4271_v23  ;;  %v4320_v25 = vpack.c.b16 %v4272_v16, %v4272_v16  ;;  %4418 = vst [vmem:[#allocation3 + $0xbc] sm:$0xf] %v4321_v52  ;;  %6055 = vmatmul.bf16.gmra.mxu0 %v8538_v14  ;;  %v10197_v54 = vpop.f32.mrf.mxu1  ;;  %v5251_v59 = vrot.slane %v5249_v18, 1  ;;  %v5247_v12 = vshrl.u32 %v10085_v31, 16  ;;  %v4969_v16 = vld [vmem:[#allocation3 + $0x98] sm:$0xf] }
 0x36e   : > { %v3940_v17 = vpack.c.bf16 %v3908_v32, %v3908_v32  ;;  %5733 = vmatmul.bf16.gmra.mxu2 %v5245_v8  ;;  %v5254_v19 = vshll.u32 %v5120_v35, 16  ;;  %v8648_v52 = vld [vmem:[#allocation9 + $0x238] sm:$0xff]  ;;  %v4424_v18 = vld [vmem:[#allocation3 + $0x8] sm:$0xf] }
 0x36f   : > { %4416 = vst [vmem:[#allocation3 + $0xb4] sm:$0xf] %v4319_v38  ;;  %v5252_v7 = vor.u32 %v5251_v59, %v5247_v12  ;;  %7105 = vmatpush.bf16.msra.mxu1 %v8648_v52  ;;  %v4972_v12 = vld [vmem:[#allocation3 + $0xa4] sm:$0xf] }
 0x370   : > { %4417 = vst [vmem:[#allocation3 + $0xb8] sm:$0xf] %v4320_v25  ;;  %v4004_v5 = vunpack.c.l.b16 %v3940_v17  ;;  %v5256_v23 = vrot.slane %v5254_v19, 1  ;;  %v5105_v25 = vunpack.c.l.b16 %v4969_v16 }
 0x371   : > { %v5780_v26 = vpop.f32.mrf.mxu3 }
 0x372   : > { %v4020_v15 = vpack.c.b16 %v4004_v5, %v4003_v21  ;;  %v5781_v10 = vadd.f32 %v5780_v26, %v5692_v56  ;;  %v5694_v1 = vpop.f32.mrf.mxu2  ;;  %v10203_v50 = vpop.f32.mrf.mxu0  ;;  %v5257_v17 = vsel %vm1191_vm3, %v5252_v7, %v5256_v23  ;;  %v5364_v5 = vrot.slane %v10085_v31, 1 }
 0x373   : > { %v5695_v39 = vadd.f32 %v5694_v1, %v10050_v45  ;;  %v5365_v56 = vrot.slane %v5120_v35, 1  ;;  %v5121_v26 = vpack.c.b16 %v5105_v25, %v5105_v25  ;;  %v5261_v1 = vshll.u32 %v10118_v37, 16 }
 0x374   : > { %v4127_v13 = vshrl.u32 %v4020_v15, 16  ;;  %v4130_v58 = vshll.u32 %v4020_v15, 16  ;;  %v10227_v8 = vadd.f32 %v10173_v2, %v5781_v10  ;;  %v4582_v31 = vunpack.c.l.b16 %v4424_v18 }
 0x375   : > { %v10210_v22 = vpop.f32.mrf.mxu1  ;;  %v5366_v10 = vsel %vm1400_vm4, %v5364_v5, %v5365_v56  ;;  %v5266_v27 = vshll.u32 %v5121_v26, 16  ;;  %v4427_v56 = vld [vmem:[#allocation3 + $0x14] sm:$0xf] }
 0x376   : > { %v4129_v4 = vrot.slane %v4127_v13, 7  ;;  %5822 = vmatmul.bf16.gmra.mxu3 %v5363_v30  ;;  %v5259_v30 = vshrl.u32 %v10118_v37, 16 }
 0x377   : > { %v10212_v3 = vld [vmem:[#allocation3 + $0xb4] sm:$0xff] }
 0x378   : > { %v4132_v48 = vor.u32 %v4130_v58, %v4129_v4  ;;  %v4196_v62 = vsel %vm9145_vm2, %v4129_v4, 0  ;;  %5669 = vmatmul.bf16.gmra.mxu1 %v10212_v3  ;;  %v5268_v58 = vrot.slane %v5266_v27, 1  ;;  %v4583_v27 = vunpack.c.l.b16 %v4427_v56 }
 0x379   : > { %v4276_v46 = vunpack.c.l.b16 %v4196_v62  ;;  %v5783_v36 = vpop.f32.mrf.mxu3  ;;  %v10249_v62 = vld [vmem:[#allocation3] sm:$0xff] }
 0x37a   : > { %v4180_v42 = vsel %vm9145_vm2, 0, %v4132_v48  ;;  %v5784_v6 = vadd.f32 %v5783_v36, %v5695_v39  ;;  %v5696_v41 = vpop.f32.mrf.mxu2  ;;  %v10221_v40 = vpop.f32.mrf.mxu0  ;;  %v10247_v48 = vpack.c.b16 %v4582_v31, %v4582_v31  ;;  %v4617_v39 = vshll.u32 %v10249_v62, 16 }
 0x37b   : > { %v4274_v14 = vunpack.c.l.b16 %v4180_v42  ;;  %v4275_v45 = vunpack.c.h.b16 %v4180_v42  ;;  %v4324_v47 = vpack.c.b16 %v4276_v46, %v4276_v46  ;;  %v5697_v33 = vadd.f32 %v5696_v41, %v10066_v29  ;;  %v8540_v46 = vld [vmem:[#allocation3 + $0x84] sm:$0xff] }
 0x37c   : > { %v10235_v2 = vadd.f32 %v10195_v11, %v5784_v6  ;;  %v5263_v29 = vrot.slane %v5261_v1, 1  ;;  %v5106_v36 = vunpack.c.l.b16 %v4972_v12  ;;  %v4615_v41 = vshrl.u32 %v10249_v62, 16  ;;  %v8639_v1 = vld [vmem:[#allocation9 + $0x1f0] sm:$0xff] }
 0x37d   : > { %v4322_v32 = vpack.c.b16 %v4274_v14, %v4274_v14  ;;  %v4323_v38 = vpack.c.b16 %v4275_v45, %v4275_v45  ;;  %4421 = vst [vmem:[#allocation3 + $0xc8] sm:$0xf] %v4324_v47  ;;  %6060 = vmatmul.bf16.gmra.mxu0 %v8539_v9  ;;  %v10223_v57 = vpop.f32.mrf.mxu1  ;;  %v4619_v7 = vrot.slane %v4617_v39, 1  ;;  %v4622_v23 = vshll.u32 %v10247_v48, 16  ;;  %v10278_v39 = vld [vmem:[#allocation3 + $0xc] sm:$0xff] }
 0x37e   : > { %5738 = vmatmul.bf16.gmra.mxu2 %v5257_v17  ;;  %v5264_v51 = vor.u32 %v5263_v29, %v5259_v30  ;;  %v5367_v14 = vrot.slane %v10118_v37, 1  ;;  %v5368_v45 = vrot.slane %v5121_v26, 1  ;;  %v5273_v17 = vshll.u32 %v10151_v49, 16  ;;  %7017 = vmatpush.bf16.msra.mxu0 %v8639_v1 }
 0x37f   : > { %4419 = vst [vmem:[#allocation3 + $0xc0] sm:$0xf] %v4322_v32  ;;  %v4624_v25 = vrot.slane %v4622_v23, 1 }
 0x380   : > { %4420 = vst [vmem:[#allocation3 + $0xc4] sm:$0xf] %v4323_v38  ;;  %v5269_v6 = vsel %vm1191_vm3, %v5264_v51, %v5268_v58  ;;  %v4620_v38 = vor.u32 %v4619_v7, %v4615_v41  ;;  %v8647_v58 = vld [vmem:[#allocation9 + $0x230] sm:$0xff]  ;;  %v10276_v51 = vpack.c.b16 %v4583_v27, %v4583_v27 }
 0x381   : > { %v5785_v21 = vpop.f32.mrf.mxu3  ;;  %7106 = vmatpush.bf16.msra.mxu1 %v8647_v58  ;;  %v4978_v58 = vld [vmem:[#allocation3 + $0xbc] sm:$0xf] }
 0x382   : > { %v5786_v55 = vadd.f32 %v5785_v21, %v5697_v33  ;;  %v5699_v63 = vpop.f32.mrf.mxu2  ;;  %v10231_v15 = vpop.f32.mrf.mxu0  ;;  %v8631_v33 = vld [vmem:[#allocation9 + $0x1b0] sm:$0xff]  ;;  %v4625_v26 = vsel %vm1191_vm3, %v4620_v38, %v4624_v25  ;;  %v4634_v23 = vshll.u32 %v10276_v51, 16  ;;  %v5285_v25 = vshll.u32 %v10185_v28, 16 }
 0x383   : > { %v5700_v13 = vadd.f32 %v5699_v63, %v10083_v60  ;;  %v8567_v21 = vld [vmem:[#allocation9 + $0xb0] sm:$0xff]  ;;  %6928 = vmatpush.bf16.msra.mxu3 %v8631_v33 }
 0x384   : > { %v10253_v60 = vadd.f32 %v10203_v50, %v5786_v55  ;;  %v5122_v50 = vpack.c.b16 %v5106_v36, %v5106_v36  ;;  %6181 = vmatpush.bf16.msra.mxu2 %v8567_v21  ;;  %v5275_v55 = vrot.slane %v5273_v17, 1  ;;  %v4636_v33 = vrot.slane %v4634_v23, 1 }
 0x385   : > { %v10238_v44 = vpop.f32.mrf.mxu1  ;;  %v5108_v23 = vunpack.c.l.b16 %v4978_v58  ;;  %v8562_v58 = vld [vmem:[#allocation9 + $0x88] sm:$0xff] }
 0x386   : > { %5827 = vmatmul.bf16.gmra.mxu3 %v5366_v10  ;;  %v5278_v63 = vshll.u32 %v5122_v50, 16  ;;  %v5271_v10 = vshrl.u32 %v10151_v49, 16 }
 0x387   : > { %v10240_v35 = vld [vmem:[#allocation3 + $0xc0] sm:$0xff] }
 0x388   : > { %5674 = vmatmul.bf16.gmra.mxu1 %v10240_v35  ;;  %v5276_v30 = vor.u32 %v5275_v55, %v5271_v10  ;;  %v8638_v55 = vld [vmem:[#allocation9 + $0x1e8] sm:$0xff] }
 0x389   : > { %v5788_v4 = vpop.f32.mrf.mxu3  ;;  %7018 = vmatpush.bf16.msra.mxu0 %v8638_v55  ;;  %v8563_v55 = vld [vmem:[#allocation9 + $0x90] sm:$0xff] }
 0x38a   : > { %v5789_v11 = vadd.f32 %v5788_v4, %v5700_v13  ;;  %v5701_v59 = vpop.f32.mrf.mxu2  ;;  %v10245_v19 = vpop.f32.mrf.mxu0  ;;  %v5280_v4 = vrot.slane %v5278_v63, 1 }
 0x38b   : > { %v5702_v16 = vadd.f32 %v5701_v59, %v10099_v61  ;;  %v5369_v61 = vsel %vm1400_vm4, %v5367_v14, %v5368_v45  ;;  %v4975_v59 = vld [vmem:[#allocation3 + $0xb0] sm:$0xf]  ;;  %v5371_v14 = vrot.slane %v5122_v50, 1  ;;  %v5287_v50 = vrot.slane %v5285_v25, 1 }
 0x38c   : > { %v10266_v5 = vadd.f32 %v10221_v40, %v5789_v11  ;;  %v8541_v11 = vld [vmem:[#allocation3 + $0x90] sm:$0xff]  ;;  %v5281_v36 = vsel %vm1191_vm3, %v5276_v30, %v5280_v4  ;;  %v10308_v4 = vld [vmem:[#allocation3 + $0x9c] sm:$0xff] }
 0x38d   : > { %6065 = vmatmul.bf16.gmra.mxu0 %v8540_v46  ;;  %v10255_v42 = vpop.f32.mrf.mxu1 }
 0x38e   : > { %5743 = vmatmul.bf16.gmra.mxu2 %v5269_v6  ;;  %v5107_v6 = vunpack.c.l.b16 %v4975_v59 }
 0x390   : > { %v10293_v38 = vpack.c.b16 %v5107_v6, %v5107_v6 }
 0x391   : > { %v5790_v52 = vpop.f32.mrf.mxu3 }
 0x392   : > { %v5791_v47 = vadd.f32 %v5790_v52, %v5702_v16  ;;  %v5704_v9 = vpop.f32.mrf.mxu2  ;;  %v10262_v32 = vpop.f32.mrf.mxu0  ;;  %v5370_v52 = vrot.slane %v10151_v49, 1  ;;  %v5290_v56 = vshll.u32 %v10293_v38, 16 }
 0x393   : > { %v5705_v18 = vadd.f32 %v5704_v9, %v10116_v20  ;;  %v4629_v20 = vshll.u32 %v10278_v39, 16 }
 0x394   : > { %v10282_v12 = vadd.f32 %v10231_v15, %v5791_v47  ;;  %v4627_v47 = vshrl.u32 %v10278_v39, 16  ;;  %v5372_v21 = vsel %vm1400_vm4, %v5370_v52, %v5371_v14  ;;  %v5292_v30 = vrot.slane %v5290_v56, 1  ;;  %v8564_v52 = vld [vmem:[#allocation9 + $0x98] sm:$0xff] }
 0x395   : > { %v10269_v37 = vpop.f32.mrf.mxu1  ;;  %v4631_v7 = vrot.slane %v4629_v20, 1  ;;  %v10312_v20 = vld [vmem:[#allocation3 + $0x18] sm:$0xff]  ;;  %v8636_v14 = vld [vmem:[#allocation9 + $0x1d8] sm:$0xff]  ;;  %v10329_v56 = vpack.c.b16 %v5108_v23, %v5108_v23 }
 0x396   : > { %5832 = vmatmul.bf16.gmra.mxu3 %v5369_v61  ;;  %v4430_v61 = vld [vmem:[#allocation3 + $0x20] sm:$0xf] }
 0x397   : > { %v4632_v17 = vor.u32 %v4631_v7, %v4627_v47  ;;  %v4584_v10 = vunpack.c.l.b16 %v4430_v61 }
 0x398   : > { %6099 = vmatmul.bf16.vlgmr.msrb.gmra.mxu1 %v4625_v26  ;;  %v8566_v26 = vld [vmem:[#allocation9 + $0xa8] sm:$0xff] }
 0x399   : > { %v5793_v40 = vpop.f32.mrf.mxu3  ;;  %v4637_v1 = vsel %vm1191_vm3, %v4632_v17, %v4636_v33  ;;  %6182 = vmatpush.bf16.msra.mxu2 %v8566_v26  ;;  %v10310_v59 = vpack.c.b16 %v4584_v10, %v4584_v10  ;;  %v5374_v17 = vrot.slane %v10293_v38, 1  ;;  %v8629_v26 = vld [vmem:[#allocation9 + $0x1a0] sm:$0xff]  ;;  %v4433_v10 = vld [vmem:[#allocation3 + $0x2c] sm:$0xf] }
 0x39a   : > { %v5794_v29 = vadd.f32 %v5793_v40, %v5705_v18  ;;  %v5706_v31 = vpop.f32.mrf.mxu2  ;;  %v10274_v13 = vpop.f32.mrf.mxu0  ;;  %v5283_v18 = vshrl.u32 %v10185_v28, 16 }
 0x39b   : > { %v5707_v41 = vadd.f32 %v5706_v31, %v10132_v43  ;;  %v4646_v25 = vshll.u32 %v10310_v59, 16 }
 0x39c   : > { %v10297_v43 = vadd.f32 %v10245_v19, %v5794_v29  ;;  %v5288_v31 = vor.u32 %v5287_v50, %v5283_v18  ;;  %v4639_v50 = vshrl.u32 %v10312_v20, 16 }
 0x39d   : > { %6070 = vmatmul.bf16.gmra.mxu0 %v8541_v11  ;;  %v10284_v46 = vpop.f32.mrf.mxu1  ;;  %v8565_v11 = vld [vmem:[#allocation9 + $0xa0] sm:$0xff] }
 0x39e   : > { %5748 = vmatmul.bf16.gmra.mxu2 %v5281_v36  ;;  %v4641_v36 = vshll.u32 %v10312_v20, 16  ;;  %v5293_v7 = vsel %vm1191_vm3, %v5288_v31, %v5292_v30  ;;  %v5302_v31 = vshll.u32 %v10329_v56, 16  ;;  %v8628_v30 = vld [vmem:[#allocation9 + $0x198] sm:$0xff] }
 0x39f   : > { %6183 = vmatpush.bf16.msra.mxu2 %v8565_v11  ;;  %v8634_v11 = vld [vmem:[#allocation9 + $0x1c8] sm:$0xff] }
 0x3a0   : > { %v4643_v47 = vrot.slane %v4641_v36, 1  ;;  %v4585_v36 = vunpack.c.l.b16 %v4433_v10 }
 0x3a1   : > { %v5795_v16 = vpop.f32.mrf.mxu3 }
 0x3a2   : > { %v5796_v45 = vadd.f32 %v5795_v16, %v5707_v41  ;;  %v5709_v9 = vpop.f32.mrf.mxu2  ;;  %v10290_v15 = vpop.f32.mrf.mxu0  ;;  %v8630_v16 = vld [vmem:[#allocation9 + $0x1a8] sm:$0xff] }
 0x3a3   : > { %v5710_v63 = vadd.f32 %v5709_v9, %v10149_v34  ;;  %v8637_v34 = vld [vmem:[#allocation9 + $0x1e0] sm:$0xff]  ;;  %6929 = vmatpush.bf16.msra.mxu3 %v8630_v16  ;;  %6184 = vmatpush.bf16.msra.mxu2 %v8564_v52 }
 0x3a4   : > { %v10316_v6 = vadd.f32 %v10262_v32, %v5796_v45  ;;  %7019 = vmatpush.bf16.msra.mxu0 %v8637_v34  ;;  %v5373_v45 = vrot.slane %v10185_v28, 1  ;;  %v4648_v28 = vrot.slane %v4646_v25, 1  ;;  %v4981_v25 = vld [vmem:[#allocation3 + $0xc8] sm:$0xf] }
 0x3a5   : > { %v10300_v49 = vpop.f32.mrf.mxu1 }
 0x3a6   : > { %5837 = vmatmul.bf16.gmra.mxu3 %v5372_v21  ;;  %v5375_v18 = vsel %vm1400_vm4, %v5373_v45, %v5374_v17  ;;  %v8561_v45 = vld [vmem:[#allocation9 + $0x80] sm:$0xff] }
 0x3a7   : > { %6930 = vmatpush.bf16.msra.mxu3 %v8629_v26  ;;  %6185 = vmatpush.bf16.msra.mxu2 %v8563_v55  ;;  %v8633_v17 = vld [vmem:[#allocation9 + $0x1c0] sm:$0xff] }
 0x3a8   : > { %6104 = vmatmul.bf16.gmra.mxu1 %v4637_v1  ;;  %7020 = vmatpush.bf16.msra.mxu0 %v8636_v14  ;;  %v4644_v1 = vor.u32 %v4643_v47, %v4639_v50  ;;  %v10344_v47 = vld [vmem:[#allocation3 + $0xa8] sm:$0xff] }
 0x3a9   : > { %v5798_v19 = vpop.f32.mrf.mxu3  ;;  %v10348_v50 = vld [vmem:[#allocation3 + $0x24] sm:$0xff] }
 0x3aa   : > { %v5799_v27 = vadd.f32 %v5798_v19, %v5710_v63  ;;  %v5711_v40 = vpop.f32.mrf.mxu2  ;;  %v10306_v29 = vpop.f32.mrf.mxu0  ;;  %v8635_v63 = vld [vmem:[#allocation9 + $0x1d0] sm:$0xff] }
 0x3ab   : > { %v5712_v9 = vadd.f32 %v5711_v40, %v10165_v53  ;;  %v5297_v53 = vshll.u32 %v10212_v3, 16  ;;  %6931 = vmatpush.bf16.msra.mxu3 %v8628_v30  ;;  %6186 = vmatpush.bf16.msra.mxu2 %v8562_v58 }
 0x3ac   : > { %v10333_v38 = vadd.f32 %v10274_v13, %v5799_v27  ;;  %7021 = vmatpush.bf16.msra.mxu0 %v8635_v63  ;;  %v4649_v13 = vsel %vm1191_vm3, %v4644_v1, %v4648_v28  ;;  %v5295_v27 = vshrl.u32 %v10212_v3, 16  ;;  %v5109_v1 = vunpack.c.l.b16 %v4981_v25  ;;  %v8626_v28 = vld [vmem:[#allocation9 + $0x188] sm:$0xff] }
 0x3ad   : > { %6075 = vmatmul.bf16.gmra.mxu0 %v10308_v4  ;;  %v10319_v41 = vpop.f32.mrf.mxu1  ;;  %v5299_v40 = vrot.slane %v5297_v53, 1  ;;  %v4653_v53 = vshll.u32 %v10348_v50, 16 }
 0x3ae   : > { %5753 = vmatmul.bf16.gmra.mxu2 %v5293_v7 }
 0x3af   : > { %v5300_v14 = vor.u32 %v5299_v40, %v5295_v27  ;;  %6187 = vmatpush.bf16.msra.mxu2 %v8561_v45  ;;  %v4655_v10 = vrot.slane %v4653_v53, 1  ;;  %v5309_v27 = vshll.u32 %v10240_v35, 16  ;;  %v6272_v53 = vld [vmem:[#allocation3 + $0x20] sm:$0xf] }
 0x3b0   : > { %7022 = vmatpush.bf16.msra.mxu0 %v8634_v11 }
 0x3b1   : > { %v5800_v32 = vpop.f32.mrf.mxu3 }
 0x3b2   : > { %v5801_v33 = vadd.f32 %v5800_v32, %v5712_v9  ;;  %v5714_v21 = vpop.f32.mrf.mxu2  ;;  %v10326_v61 = vpop.f32.mrf.mxu0  ;;  %v5304_v9 = vrot.slane %v5302_v31, 1  ;;  %v8627_v32 = vld [vmem:[#allocation9 + $0x190] sm:$0xff] }
 0x3b3   : > { %v5715_v34 = vadd.f32 %v5714_v21, %v10182_v24  ;;  %v8646_v24 = vld [vmem:[#allocation9 + $0x228] sm:$0xff]  ;;  %v10346_v21 = vpack.c.b16 %v4585_v36, %v4585_v36  ;;  %6932 = vmatpush.bf16.msra.mxu3 %v8627_v32  ;;  %v8625_v36 = vld [vmem:[#allocation9 + $0x180] sm:$0xff] }
 0x3b4   : > { %7107 = vmatpush.bf16.msra.mxu1 %v8646_v24  ;;  %v10352_v26 = vadd.f32 %v10290_v15, %v5801_v33  ;;  %v5305_v63 = vsel %vm1191_vm3, %v5300_v14, %v5304_v9  ;;  %7023 = vmatpush.bf16.msra.mxu0 %v8633_v17  ;;  %v5376_v15 = vrot.slane %v10212_v3, 1  ;;  %v5377_v33 = vrot.slane %v10329_v56, 1 }
 0x3b5   : > { %v10336_v19 = vpop.f32.mrf.mxu1  ;;  %v4658_v40 = vshll.u32 %v10346_v21, 16  ;;  %v5311_v9 = vrot.slane %v5309_v27, 1  ;;  %v5307_v17 = vshrl.u32 %v10240_v35, 16 }
 0x3b6   : > { %5842 = vmatmul.bf16.gmra.mxu3 %v5375_v18  ;;  %v5378_v3 = vsel %vm1400_vm4, %v5376_v15, %v5377_v33  ;;  %v10384_v15 = vld [vmem:[#allocation3 + $0x18] sm:$0xff]  ;;  %v6430_v33 = vunpack.c.l.b16 %v6272_v53 }
 0x3b7   : > { %6933 = vmatpush.bf16.msra.mxu3 %v8626_v28  ;;  %v5312_v28 = vor.u32 %v5311_v9, %v5307_v17 }
 0x3b8   : > { %6109 = vmatmul.bf16.gmra.mxu1 %v4649_v13  ;;  %v5125_v13 = vpack.c.b16 %v5109_v1, %v5109_v1 }
 0x3b9   : > { %v5803_v7 = vpop.f32.mrf.mxu3 }
 0x3ba   : > { %v5804_v23 = vadd.f32 %v5803_v7, %v5715_v34  ;;  %v5716_v16 = vpop.f32.mrf.mxu2  ;;  %v10342_v52 = vpop.f32.mrf.mxu0  ;;  %v4651_v34 = vshrl.u32 %v10348_v50, 16  ;;  %v4660_v7 = vrot.slane %v4658_v40, 1  ;;  %v5314_v25 = vshll.u32 %v5125_v13, 16 }
 0x3bb   : > { %v5717_v18 = vadd.f32 %v5716_v16, %v10197_v54  ;;  %v4436_v16 = vld [vmem:[#allocation3 + $0x38] sm:$0xf]  ;;  %6934 = vmatpush.bf16.msra.mxu3 %v8625_v36 }
 0x3bc   : > { %v4656_v54 = vor.u32 %v4655_v10, %v4651_v34  ;;  %v10367_v14 = vadd.f32 %v10306_v29, %v5804_v23  ;;  %v4586_v24 = vunpack.c.l.b16 %v4436_v16  ;;  %v10377_v10 = vld [vmem:[#allocation3 + $0xb4] sm:$0xff]  ;;  %v6465_v16 = vshll.u32 %v10384_v15, 16 }
 0x3bd   : > { %6080 = vmatmul.bf16.gmra.mxu0 %v10344_v47  ;;  %v10355_v55 = vpop.f32.mrf.mxu1 }
 0x3be   : > { %5758 = vmatmul.bf16.gmra.mxu2 %v5305_v63  ;;  %v4661_v45 = vsel %vm1191_vm3, %v4656_v54, %v4660_v7  ;;  %v10379_v40 = vpack.c.b16 %v4586_v24, %v4586_v24  ;;  %v10394_v7 = vpack.c.b16 %v6430_v33, %v6430_v33 }
 0x3c0   : > { %v4670_v54 = vshll.u32 %v10379_v40, 16 }
 0x3c1   : > { %v5805_v31 = vpop.f32.mrf.mxu3 }
 0x3c2   : > { %v5806_v30 = vadd.f32 %v5805_v31, %v5717_v18  ;;  %v5719_v58 = vpop.f32.mrf.mxu2  ;;  %v10362_v11 = vpop.f32.mrf.mxu0  ;;  %v5316_v18 = vrot.slane %v5314_v25, 1  ;;  %v10381_v31 = vld [vmem:[#allocation3 + $0x30] sm:$0xff]  ;;  %v4672_v53 = vrot.slane %v4670_v54, 1  ;;  %v4822_v54 = vrot.slane %v10249_v62, 1  ;;  %v10423_v62 = vld [vmem:[#allocation3 + $0x24] sm:$0xff] }
 0x3c3   : > { %v5720_v32 = vadd.f32 %v5719_v58, %v10210_v22  ;;  %v4665_v22 = vshll.u32 %v10381_v31, 16  ;;  %v4663_v25 = vshrl.u32 %v10381_v31, 16  ;;  %11234 = vst [vmem:[#allocation15_spill] sm:$0xff] %v10423_v62 }
 0x3c4   : > { %v10387_v58 = vadd.f32 %v10326_v61, %v5806_v30  ;;  %v5317_v27 = vsel %vm1191_vm3, %v5312_v28, %v5316_v18  ;;  %v5379_v61 = vrot.slane %v10240_v35, 1  ;;  %v5380_v30 = vrot.slane %v5125_v13, 1  ;;  %v4439_v35 = vld [vmem:[#allocation3 + $0x44] sm:$0xf] }
 0x3c5   : > { %v10370_v56 = vpop.f32.mrf.mxu1  ;;  %v4667_v36 = vrot.slane %v4665_v22, 1  ;;  %v6470_v28 = vshll.u32 %v10394_v7, 16 }
 0x3c6   : > { %5847 = vmatmul.bf16.gmra.mxu3 %v5378_v3 }
 0x3c7   : > { %v4668_v17 = vor.u32 %v4667_v36, %v4663_v25  ;;  %v8645_v25 = vld [vmem:[#allocation9 + $0x220] sm:$0xff] }
 0x3c8   : > { %6114 = vmatmul.bf16.gmra.mxu1 %v4661_v45 }
 0x3c9   : > { %v5808_v63 = vpop.f32.mrf.mxu3  ;;  %v4673_v22 = vsel %vm1191_vm3, %v4668_v17, %v4672_v53  ;;  %7108 = vmatpush.bf16.msra.mxu1 %v8645_v25 }
 0x3ca   : > { %v5809_v29 = vadd.f32 %v5808_v63, %v5720_v32  ;;  %v5721_v23 = vpop.f32.mrf.mxu2  ;;  %v10375_v1 = vpop.f32.mrf.mxu0  ;;  %v6467_v63 = vrot.slane %v6465_v16, 1  ;;  %v4823_v16 = vrot.slane %v10247_v48, 1 }
 0x3cb   : > { %v5722_v3 = vadd.f32 %v5721_v23, %v10223_v57  ;;  %v5381_v57 = vsel %vm1400_vm4, %v5379_v61, %v5380_v30  ;;  %v6463_v23 = vshrl.u32 %v10384_v15, 16 }
 0x3cc   : > { %v10404_v18 = vadd.f32 %v10342_v52, %v5809_v29  ;;  %v4587_v52 = vunpack.c.l.b16 %v4439_v35  ;;  %v6275_v29 = vld [vmem:[#allocation3 + $0x2c] sm:$0xf]  ;;  %v4824_v53 = vsel %vm1400_vm4, %v4822_v54, %v4823_v16 }
 0x3cd   : > { %6085 = vmatmul.bf16.gmra.mxu0 %v10377_v10  ;;  %v10390_v34 = vpop.f32.mrf.mxu1  ;;  %v6468_v33 = vor.u32 %v6467_v63, %v6463_v23  ;;  %v6431_v17 = vunpack.c.l.b16 %v6275_v29 }
 0x3ce   : > { %5763 = vmatmul.bf16.gmra.mxu2 %v5317_v27  ;;  %v6472_v27 = vrot.slane %v6470_v28, 1  ;;  %v10418_v63 = vpack.c.b16 %v4587_v52, %v4587_v52 }
 0x3cf   : > { %v10430_v23 = vpack.c.b16 %v6431_v17, %v6431_v17  ;;  %v6475_v17 = vshrl.u32 %v10423_v62, 16 }
 0x3d1   : > { %v5810_v9 = vpop.f32.mrf.mxu3  ;;  %11235 = vst [vmem:[#allocation14_spill] sm:$0xff] %v10430_v23 }
 0x3d2   : > { %v5811_v24 = vadd.f32 %v5810_v9, %v5722_v3  ;;  %v5724_v32 = vpop.f32.mrf.mxu2  ;;  %v10400_v45 = vpop.f32.mrf.mxu0 }
 0x3d3   : > { %v5725_v36 = vadd.f32 %v5724_v32, %v10238_v44  ;;  %v10420_v44 = vld [vmem:[#allocation3 + $0x3c] sm:$0xff] }
 0x3d4   : > { %v4677_v48 = vshll.u32 %v10420_v44, 16  ;;  %v10426_v32 = vadd.f32 %v10362_v11, %v5811_v24  ;;  %v4675_v11 = vshrl.u32 %v10420_v44, 16  ;;  %v6482_v24 = vshll.u32 %v10430_v23, 16 }
 0x3d5   : > { %v10408_v13 = vpop.f32.mrf.mxu1 }
 0x3d6   : > { %5852 = vmatmul.bf16.gmra.mxu3 %v5381_v57  ;;  %v6473_v57 = vsel %vm1191_vm3, %v6468_v33, %v6472_v27  ;;  %v4682_v33 = vshll.u32 %v10418_v63, 16  ;;  %v6477_v27 = vshll.u32 %v10423_v62, 16 }
 0x3d8   : > { %6119 = vmatmul.bf16.gmra.mxu1 %v4673_v22  ;;  %v4679_v22 = vrot.slane %v4677_v48, 1  ;;  %v6479_v25 = vrot.slane %v6477_v27, 1 }
 0x3d9   : > { %v5813_v3 = vpop.f32.mrf.mxu3 }
 0x3da   : > { %v5814_v9 = vadd.f32 %v5813_v3, %v5725_v36  ;;  %v5726_v61 = vpop.f32.mrf.mxu2  ;;  %v10414_v30 = vpop.f32.mrf.mxu0  ;;  %v4680_v29 = vor.u32 %v4679_v22, %v4675_v11  ;;  %v4684_v3 = vrot.slane %v4682_v33, 1  ;;  %v6278_v22 = vld [vmem:[#allocation3 + $0x38] sm:$0xf]  ;;  %v4825_v11 = vrot.slane %v10278_v39, 1 }
 0x3db   : > { %v5727_v35 = vadd.f32 %v5726_v61, %v10255_v42  ;;  %v4442_v42 = vld [vmem:[#allocation3 + $0x50] sm:$0xf] }
 0x3dc   : > { %v4588_v23 = vunpack.c.l.b16 %v4442_v42 }
 0x3dd   : > { %7024 = vmatmul.bf16.vlgmr.msra.gmra.mxu0 %v6473_v57  ;;  %v10428_v28 = vpop.f32.mrf.mxu1  ;;  %v10440_v57 = vadd.f32 %v10375_v1, %v5814_v9 }
 0x3de   : > { %6188 = vmatmul.bf16.vlgmr.msra.gmra.mxu2 %v4824_v53  ;;  %v6484_v53 = vrot.slane %v6482_v24, 1  ;;  %v6432_v24 = vunpack.c.l.b16 %v6278_v22 }
 0x3e1   : > { %v5815_v36 = vpop.f32.mrf.mxu3 }
 0x3e2   : > { %v5816_v54 = vadd.f32 %v5815_v36, %v5727_v35  ;;  %v5729_v16 = vpop.f32.mrf.mxu2  ;;  %v10435_v52 = vpop.f32.mrf.mxu0  ;;  %v4685_v35 = vsel %vm1191_vm3, %v4680_v29, %v4684_v3  ;;  %v6480_v36 = vor.u32 %v6479_v25, %v6475_v17  ;;  %v10457_v29 = vld [vmem:[#allocation3 + $0x48] sm:$0xff] }
 0x3e3   : > { %11236 = vst [vmem:[#allocation16_spill] sm:$0xff] %v10435_v52  ;;  %v5730_v48 = vadd.f32 %v5729_v16, %v10269_v37  ;;  %v10452_v52 = vld [vmem:[#allocation3 + $0x30] sm:$0xff]  ;;  %v10455_v16 = vpack.c.b16 %v4588_v23, %v4588_v23  ;;  %v4689_v3 = vshll.u32 %v10457_v29, 16  ;;  %v4687_v22 = vshrl.u32 %v10457_v29, 16 }
 0x3e4   : > { %11238 = vst [vmem:[#allocation18_spill] sm:$0xff] %v10452_v52  ;;  %v6485_v37 = vsel %vm1191_vm3, %v6480_v36, %v6484_v53  ;;  %v10461_v25 = vadd.f32 %v10400_v45, %v5816_v54 }
 0x3e5   : > { %v10442_v61 = vpop.f32.mrf.mxu1  ;;  %v4691_v53 = vrot.slane %v4689_v3, 1  ;;  %v4694_v23 = vshll.u32 %v10455_v16, 16 }
 0x3e6   : > { %6935 = vmatmul.bf16.vlgmr.msra.gmra.mxu3 %v10384_v15  ;;  %v4826_v15 = vrot.slane %v10276_v51, 1  ;;  %v6489_v51 = vshll.u32 %v10452_v52, 16 }
 0x3e8   : > { %6124 = vmatmul.bf16.gmra.mxu1 %v4685_v35  ;;  %v4827_v39 = vsel %vm1400_vm4, %v4825_v11, %v4826_v15  ;;  %v4692_v11 = vor.u32 %v4691_v53, %v4687_v22  ;;  %v4696_v15 = vrot.slane %v4694_v23, 1  ;;  %v6281_v22 = vld [vmem:[#allocation3 + $0x44] sm:$0xf] }
 0x3e9   : > { %v5818_v33 = vpop.f32.mrf.mxu3 }
 0x3ea   : > { %v5819_v27 = vadd.f32 %v5818_v33, %v5730_v48  ;;  %v5731_v1 = vpop.f32.mrf.mxu2  ;;  %v10448_v9 = vpop.f32.mrf.mxu0  ;;  %v10469_v48 = vpack.c.b16 %v6432_v24, %v6432_v24  ;;  %v6491_v33 = vrot.slane %v6489_v51, 1  ;;  %v4445_v24 = vld [vmem:[#allocation3 + $0x5c] sm:$0xf] }
 0x3eb   : > { %11237 = vst [vmem:[#allocation17_spill] sm:$0xff] %v10448_v9  ;;  %v5732_v17 = vadd.f32 %v5731_v1, %v10284_v46  ;;  %v6487_v1 = vshrl.u32 %v10452_v52, 16  ;;  %v4589_v53 = vunpack.c.l.b16 %v4445_v24  ;;  %v4829_v9 = vrot.slane %v10310_v59, 1 }
 0x3ec   : > { %11239 = vst [vmem:[#allocation19_spill] sm:$0xff] %v10469_v48  ;;  %v10478_v46 = vadd.f32 %v10414_v30, %v5819_v27 }
 0x3ed   : > { %7029 = vmatmul.bf16.gmra.mxu0 %v6485_v37  ;;  %v10463_v42 = vpop.f32.mrf.mxu1  ;;  %v6494_v37 = vshll.u32 %v10469_v48, 16 }
 0x3ee   : > { %6193 = vmatmul.bf16.gmra.mxu2 %v4827_v39  ;;  %v6492_v39 = vor.u32 %v6491_v33, %v6487_v1  ;;  %v10492_v33 = vld [vmem:[#allocation3 + $0x3c] sm:$0xff] }
 0x3ef   : > { %v6496_v51 = vrot.slane %v6494_v37, 1  ;;  %11243 = vst [vmem:[#allocation23_spill] sm:$0xff] %v10492_v33  ;;  %v6433_v37 = vunpack.c.l.b16 %v6281_v22  ;;  %v6501_v59 = vshll.u32 %v10492_v33, 16 }
 0x3f1   : > { %v5820_v35 = vpop.f32.mrf.mxu3 }
 0x3f2   : > { %v10471_v36 = vadd.f32 %v5820_v35, %v5732_v17  ;;  %v5734_v45 = vpop.f32.mrf.mxu2  ;;  %v10473_v54 = vpop.f32.mrf.mxu0  ;;  %v4697_v35 = vsel %vm1191_vm3, %v4692_v11, %v4696_v15  ;;  %v10497_v11 = vld [vmem:[#allocation3 + $0x54] sm:$0xff] }
 0x3f3   : > { %11240 = vst [vmem:[#allocation21_spill] sm:$0xff] %v10473_v54  ;;  %v5735_v17 = vadd.f32 %v5734_v45, %v10300_v49  ;;  %v4828_v54 = vrot.slane %v10312_v20, 1  ;;  %v6497_v49 = vsel %vm1191_vm3, %v6492_v39, %v6496_v51  ;;  %v10495_v45 = vpack.c.b16 %v4589_v53, %v4589_v53 }
 0x3f4   : > { %v4701_v15 = vshll.u32 %v10497_v11, 16  ;;  %v4699_v22 = vshrl.u32 %v10497_v11, 16 }
 0x3f5   : > { %v10481_v3 = vpop.f32.mrf.mxu1  ;;  %v4830_v20 = vsel %vm1400_vm4, %v4828_v54, %v4829_v9  ;;  %v4706_v39 = vshll.u32 %v10495_v45, 16 }
 0x3f6   : > { %6940 = vmatmul.bf16.gmra.mxu3 %v10423_v62  ;;  %v8644_v62 = vld [vmem:[#allocation9 + $0x218] sm:$0xff] }
 0x3f7   : > { %7109 = vmatpush.bf16.msra.mxu1 %v8644_v62  ;;  %v4708_v54 = vrot.slane %v4706_v39, 1 }
 0x3f8   : > { %6129 = vmatmul.bf16.gmra.mxu1 %v4697_v35  ;;  %v10506_v35 = vpack.c.b16 %v6433_v37, %v6433_v37 }
 0x3f9   : > { %v5823_v23 = vpop.f32.mrf.mxu3 }
 0x3fa   : > { %v10486_v48 = vadd.f32 %v5823_v23, %v5735_v17  ;;  %v5736_v30 = vpop.f32.mrf.mxu2  ;;  %v10488_v27 = vpop.f32.mrf.mxu0  ;;  %v4703_v17 = vrot.slane %v4701_v15, 1  ;;  %11244 = vst [vmem:[#allocation24_spill] sm:$0xff] %v10506_v35 }
 0x3fb   : > { %11242 = vst [vmem:[#allocation22_spill] sm:$0xff] %v10488_v27  ;;  %v5737_v24 = vadd.f32 %v5736_v30, %v10319_v41  ;;  %v6499_v41 = vshrl.u32 %v10492_v33, 16  ;;  %v4448_v30 = vld [vmem:[#allocation3 + $0x68] sm:$0xf] }
 0x3fc   : > { %11241 = vst [vmem:[#allocation20_spill] sm:$0xff] %v10486_v48  ;;  %v4704_v9 = vor.u32 %v4703_v17, %v4699_v22  ;;  %v4590_v27 = vunpack.c.l.b16 %v4448_v30  ;;  %v4832_v48 = vrot.slane %v10346_v21, 1 }
 0x3fd   : > { %7034 = vmatmul.bf16.gmra.mxu0 %v6497_v49  ;;  %v10500_v1 = vpop.f32.mrf.mxu1  ;;  %v6503_v49 = vrot.slane %v6501_v59, 1  ;;  %v6284_v59 = vld [vmem:[#allocation3 + $0x50] sm:$0xf] }
 0x3fe   : > { %6198 = vmatmul.bf16.gmra.mxu2 %v4830_v20  ;;  %v6506_v20 = vshll.u32 %v10506_v35, 16  ;;  %v4831_v35 = vrot.slane %v10348_v50, 1 }
 0x3ff   : > { %v6504_v37 = vor.u32 %v6503_v49, %v6499_v41  ;;  %v10531_v49 = vld [vmem:[#allocation3 + $0x60] sm:$0xff] }
 0x401   : > { %v5825_v51 = vpop.f32.mrf.mxu3 }
 0x402   : > { %v10508_v53 = vadd.f32 %v5825_v51, %v5737_v24  ;;  %v5739_v23 = vpop.f32.mrf.mxu2  ;;  %v10510_v62 = vpop.f32.mrf.mxu0  ;;  %v4709_v51 = vsel %vm1191_vm3, %v4704_v9, %v4708_v54  ;;  %v4713_v9 = vshll.u32 %v10531_v49, 16  ;;  %v6434_v54 = vunpack.c.l.b16 %v6284_v59 }
 0x403   : > { %11246 = vst [vmem:[#allocation26_spill] sm:$0xff] %v10510_v62  ;;  %v5740_v24 = vadd.f32 %v5739_v23, %v10336_v19  ;;  %v6508_v62 = vrot.slane %v6506_v20, 1  ;;  %v10529_v23 = vpack.c.b16 %v4590_v27, %v4590_v27  ;;  %v4833_v20 = vsel %vm1400_vm4, %v4831_v35, %v4832_v48 }
 0x404   : > { %11245 = vst [vmem:[#allocation25_spill] sm:$0xff] %v10508_v53  ;;  %v4715_v41 = vrot.slane %v4713_v9, 1  ;;  %v10540_v27 = vpack.c.b16 %v6434_v54, %v6434_v54  ;;  %v4711_v59 = vshrl.u32 %v10531_v49, 16 }
 0x405   : > { %v10515_v15 = vpop.f32.mrf.mxu1  ;;  %v6509_v19 = vsel %vm1191_vm3, %v6504_v37, %v6508_v62  ;;  %v4718_v62 = vshll.u32 %v10529_v23, 16 }
 0x406   : > { %6945 = vmatmul.bf16.gmra.mxu3 %v10452_v52  ;;  %v10526_v52 = vld [vmem:[#allocation3 + $0x48] sm:$0xff]  ;;  %11249 = vst [vmem:[#allocation29_spill] sm:$0xff] %v10540_v27  ;;  %v4716_v48 = vor.u32 %v4715_v41, %v4711_v59 }
 0x407   : > { %11248 = vst [vmem:[#allocation28_spill] sm:$0xff] %v10526_v52  ;;  %v6513_v50 = vshll.u32 %v10526_v52, 16  ;;  %v4720_v35 = vrot.slane %v4718_v62, 1  ;;  %v6287_v62 = vld [vmem:[#allocation3 + $0x5c] sm:$0xf] }
 0x408   : > { %6134 = vmatmul.bf16.gmra.mxu1 %v4709_v51 }
 0x409   : > { %v5828_v53 = vpop.f32.mrf.mxu3 }
 0x40a   : > { %v10520_v17 = vadd.f32 %v5828_v53, %v5740_v24  ;;  %v5741_v39 = vpop.f32.mrf.mxu2  ;;  %v10522_v22 = vpop.f32.mrf.mxu0 }
 0x40b   : > { %11247 = vst [vmem:[#allocation27_spill] sm:$0xff] %v10522_v22  ;;  %v5742_v21 = vadd.f32 %v5741_v39, %v10355_v55  ;;  %v6511_v55 = vshrl.u32 %v10526_v52, 16  ;;  %v4451_v39 = vld [vmem:[#allocation3 + $0x74] sm:$0xf] }
 0x40d   : > { %7039 = vmatmul.bf16.gmra.mxu0 %v6509_v19  ;;  %v10534_v53 = vpop.f32.mrf.mxu1  ;;  %v6515_v19 = vrot.slane %v6513_v50, 1  ;;  %v4591_v50 = vunpack.c.l.b16 %v4451_v39 }
 0x40e   : > { %6203 = vmatmul.bf16.gmra.mxu2 %v4833_v20  ;;  %v6518_v20 = vshll.u32 %v10540_v27, 16 }
 0x410   : > { %v6520_v22 = vrot.slane %v6518_v20, 1 }
 0x411   : > { %v5830_v30 = vpop.f32.mrf.mxu3 }
 0x412   : > { %v10542_v37 = vadd.f32 %v5830_v30, %v5742_v21  ;;  %v5744_v24 = vpop.f32.mrf.mxu2  ;;  %v10544_v51 = vpop.f32.mrf.mxu0  ;;  %v6516_v21 = vor.u32 %v6515_v19, %v6511_v55  ;;  %v10561_v19 = vld [vmem:[#allocation3 + $0x54] sm:$0xff] }
 0x413   : > { %11251 = vst [vmem:[#allocation31_spill] sm:$0xff] %v10544_v51  ;;  %v5745_v30 = vadd.f32 %v5744_v24, %v10370_v56  ;;  %v4721_v51 = vsel %vm1191_vm3, %v4716_v48, %v4720_v35  ;;  %v10564_v24 = vpack.c.b16 %v4591_v50, %v4591_v50  ;;  %v10566_v48 = vld [vmem:[#allocation3 + $0x6c] sm:$0xff]  ;;  %v6435_v35 = vunpack.c.l.b16 %v6287_v62 }
 0x414   : > { %11250 = vst [vmem:[#allocation30_spill] sm:$0xff] %v10542_v37  ;;  %v6521_v56 = vsel %vm1191_vm3, %v6516_v21, %v6520_v22 }
 0x415   : > { %v6100_v9 = vpop.f32.mrf.mxu1  ;;  %11253 = vst [vmem:[#allocation33_spill] sm:$0xff] %v10561_v19  ;;  %v4730_v21 = vshll.u32 %v10564_v24, 16 }
 0x416   : > { %6950 = vmatmul.bf16.gmra.mxu3 %v10492_v33  ;;  %v10551_v54 = vadd.f32 %v6100_v9, %v10207_v0  ;;  %v4834_v33 = vrot.slane %v10381_v31, 1  ;;  %v4835_v0 = vrot.slane %v10379_v40, 1  ;;  %v8643_v9 = vld [vmem:[#allocation9 + $0x210] sm:$0xff]  ;;  %v6525_v40 = vshll.u32 %v10561_v19, 16 }
 0x417   : > { %7110 = vmatpush.bf16.msra.mxu1 %v8643_v9 }
 0x418   : > { %6139 = vmatmul.bf16.gmra.mxu1 %v4721_v51  ;;  %v4725_v51 = vshll.u32 %v10566_v48, 16  ;;  %v4836_v55 = vsel %vm1400_vm4, %v4834_v33, %v4835_v0  ;;  %v4723_v33 = vshrl.u32 %v10566_v48, 16 }
 0x419   : > { %v5833_v41 = vpop.f32.mrf.mxu3 }
 0x41a   : > { %v10555_v59 = vadd.f32 %v5833_v41, %v5745_v30  ;;  %v5746_v27 = vpop.f32.mrf.mxu2  ;;  %v10557_v37 = vpop.f32.mrf.mxu0  ;;  %v4727_v39 = vrot.slane %v4725_v51, 1  ;;  %v10576_v30 = vpack.c.b16 %v6435_v35, %v6435_v35 }
 0x41b   : > { %11252 = vst [vmem:[#allocation32_spill] sm:$0xff] %v10557_v37  ;;  %v5747_v22 = vadd.f32 %v5746_v27, %v10390_v34  ;;  %v6523_v34 = vshrl.u32 %v10561_v19, 16  ;;  %v4454_v27 = vld [vmem:[#allocation3 + $0x80] sm:$0xf] }
 0x41c   : > { %11254 = vst [vmem:[#allocation34_spill] sm:$0xff] %v10576_v30  ;;  %v4728_v0 = vor.u32 %v4727_v39, %v4723_v33 }
 0x41d   : > { %7044 = vmatmul.bf16.gmra.mxu0 %v6521_v56  ;;  %v6102_v20 = vpop.f32.mrf.mxu1  ;;  %v4732_v56 = vrot.slane %v4730_v21, 1  ;;  %v6290_v21 = vld [vmem:[#allocation3 + $0x68] sm:$0xf] }
 0x41e   : > { %v10571_v31 = vadd.f32 %v6102_v20, %v10227_v8  ;;  %6208 = vmatmul.bf16.gmra.mxu2 %v4836_v55  ;;  %v6527_v8 = vrot.slane %v6525_v40, 1  ;;  %v6530_v20 = vshll.u32 %v10576_v30, 16  ;;  %v4592_v40 = vunpack.c.l.b16 %v4454_v27 }
 0x420   : > { %v6528_v55 = vor.u32 %v6527_v8, %v6523_v34  ;;  %v10602_v8 = vld [vmem:[#allocation3 + $0x78] sm:$0xff] }
 0x421   : > { %v5835_v50 = vpop.f32.mrf.mxu3 }
 0x422   : > { %v10578_v41 = vadd.f32 %v5835_v50, %v5747_v22  ;;  %v5749_v62 = vpop.f32.mrf.mxu2  ;;  %v10580_v9 = vpop.f32.mrf.mxu0  ;;  %v4733_v50 = vsel %vm1191_vm3, %v4728_v0, %v4732_v56  ;;  %v4737_v0 = vshll.u32 %v10602_v8, 16  ;;  %v6436_v56 = vunpack.c.l.b16 %v6290_v21 }
 0x423   : > { %11255 = vst [vmem:[#allocation35_spill] sm:$0xff] %v10580_v9  ;;  %v5750_v22 = vadd.f32 %v5749_v62, %v10408_v13  ;;  %v6532_v9 = vrot.slane %v6530_v20, 1  ;;  %v10600_v62 = vpack.c.b16 %v4592_v40, %v4592_v40 }
 0x425   : > { %v6105_v51 = vpop.f32.mrf.mxu1  ;;  %v6533_v13 = vsel %vm1191_vm3, %v6528_v55, %v6532_v9  ;;  %v4739_v9 = vrot.slane %v4737_v0, 1  ;;  %v4742_v55 = vshll.u32 %v10600_v62, 16 }
 0x426   : > { %6955 = vmatmul.bf16.gmra.mxu3 %v10526_v52  ;;  %v10587_v35 = vadd.f32 %v6105_v51, %v10235_v2  ;;  %v4837_v52 = vrot.slane %v10420_v44, 1  ;;  %v4838_v2 = vrot.slane %v10418_v63, 1  ;;  %v10597_v51 = vld [vmem:[#allocation3 + $0x60] sm:$0xff] }
 0x427   : > { %11257 = vst [vmem:[#allocation37_spill] sm:$0xff] %v10597_v51  ;;  %v6537_v63 = vshll.u32 %v10597_v51, 16 }
 0x428   : > { %6144 = vmatmul.bf16.gmra.mxu1 %v4733_v50  ;;  %v4839_v34 = vsel %vm1400_vm4, %v4837_v52, %v4838_v2  ;;  %v4735_v52 = vshrl.u32 %v10602_v8, 16 }
 0x429   : > { %v5838_v39 = vpop.f32.mrf.mxu3 }
 0x42a   : > { %v10591_v33 = vadd.f32 %v5838_v39, %v5750_v22  ;;  %v5751_v30 = vpop.f32.mrf.mxu2  ;;  %v10593_v37 = vpop.f32.mrf.mxu0  ;;  %v10612_v22 = vpack.c.b16 %v6436_v56, %v6436_v56  ;;  %v4740_v2 = vor.u32 %v4739_v9, %v4735_v52 }
 0x42b   : > { %11256 = vst [vmem:[#allocation36_spill] sm:$0xff] %v10593_v37  ;;  %v5752_v44 = vadd.f32 %v5751_v30, %v10428_v28  ;;  %v6535_v28 = vshrl.u32 %v10597_v51, 16  ;;  %v4457_v30 = vld [vmem:[#allocation3 + $0x8c] sm:$0xf] }
 0x42c   : > { %11258 = vst [vmem:[#allocation38_spill] sm:$0xff] %v10612_v22 }
 0x42d   : > { %7049 = vmatmul.bf16.gmra.mxu0 %v6533_v13  ;;  %v6107_v20 = vpop.f32.mrf.mxu1  ;;  %v4744_v13 = vrot.slane %v4742_v55, 1  ;;  %v6293_v55 = vld [vmem:[#allocation3 + $0x74] sm:$0xf] }
 0x42e   : > { %v10607_v27 = vadd.f32 %v6107_v20, %v10253_v60  ;;  %6213 = vmatmul.bf16.gmra.mxu2 %v4839_v34  ;;  %v6539_v60 = vrot.slane %v6537_v63, 1  ;;  %v6542_v20 = vshll.u32 %v10612_v22, 16  ;;  %v4593_v63 = vunpack.c.l.b16 %v4457_v30 }
 0x430   : > { %v6540_v34 = vor.u32 %v6539_v60, %v6535_v28  ;;  %v10633_v60 = vld [vmem:[#allocation3 + $0x6c] sm:$0xff] }
 0x431   : > { %v5840_v50 = vpop.f32.mrf.mxu3  ;;  %11261 = vst [vmem:[#allocation41_spill] sm:$0xff] %v10633_v60 }
 0x432   : > { %v10614_v40 = vadd.f32 %v5840_v50, %v5752_v44  ;;  %v5754_v39 = vpop.f32.mrf.mxu2  ;;  %v10616_v21 = vpop.f32.mrf.mxu0  ;;  %v4745_v50 = vsel %vm1191_vm3, %v4740_v2, %v4744_v13  ;;  %v10638_v2 = vld [vmem:[#allocation3 + $0x84] sm:$0xff] }
 0x433   : > { %11259 = vst [vmem:[#allocation39_spill] sm:$0xff] %v10616_v21  ;;  %v5755_v44 = vadd.f32 %v5754_v39, %v10442_v61  ;;  %v6544_v21 = vrot.slane %v6542_v20, 1  ;;  %v10636_v39 = vpack.c.b16 %v4593_v63, %v4593_v63  ;;  %v4749_v13 = vshll.u32 %v10638_v2, 16 }
 0x434   : > { %v6437_v20 = vunpack.c.l.b16 %v6293_v55 }
 0x435   : > { %v6110_v0 = vpop.f32.mrf.mxu1  ;;  %v6545_v61 = vsel %vm1191_vm3, %v6540_v34, %v6544_v21  ;;  %v4751_v34 = vrot.slane %v4749_v13, 1 }
 0x436   : > { %6960 = vmatmul.bf16.gmra.mxu3 %v10561_v19  ;;  %v10623_v56 = vadd.f32 %v6110_v0, %v10266_v5  ;;  %v4840_v19 = vrot.slane %v10457_v29, 1  ;;  %v4841_v5 = vrot.slane %v10455_v16, 1  ;;  %v8642_v0 = vld [vmem:[#allocation9 + $0x208] sm:$0xff]  ;;  %v6549_v16 = vshll.u32 %v10633_v60, 16 }
 0x437   : > { %7111 = vmatpush.bf16.msra.mxu1 %v8642_v0 }
 0x438   : > { %6149 = vmatmul.bf16.gmra.mxu1 %v4745_v50  ;;  %v4842_v30 = vsel %vm1400_vm4, %v4840_v19, %v4841_v5  ;;  %v10648_v50 = vpack.c.b16 %v6437_v20, %v6437_v20  ;;  %v4747_v19 = vshrl.u32 %v10638_v2, 16 }
 0x439   : > { %v5843_v9 = vpop.f32.mrf.mxu3 }
 0x43a   : > { %v10627_v52 = vadd.f32 %v5843_v9, %v5755_v44  ;;  %v5756_v22 = vpop.f32.mrf.mxu2  ;;  %v10629_v37 = vpop.f32.mrf.mxu0  ;;  %v4754_v44 = vshll.u32 %v10636_v39, 16  ;;  %11262 = vst [vmem:[#allocation42_spill] sm:$0xff] %v10648_v50  ;;  %v4752_v5 = vor.u32 %v4751_v34, %v4747_v19 }
 0x43b   : > { %11260 = vst [vmem:[#allocation40_spill] sm:$0xff] %v10629_v37  ;;  %v5757_v21 = vadd.f32 %v5756_v22, %v10463_v42  ;;  %v6547_v42 = vshrl.u32 %v10633_v60, 16  ;;  %v4460_v22 = vld [vmem:[#allocation3 + $0x98] sm:$0xf]  ;;  %v4843_v37 = vrot.slane %v10497_v11, 1 }
 0x43d   : > { %7054 = vmatmul.bf16.gmra.mxu0 %v6545_v61  ;;  %v6112_v28 = vpop.f32.mrf.mxu1  ;;  %v4756_v61 = vrot.slane %v4754_v44, 1  ;;  %v6296_v44 = vld [vmem:[#allocation3 + $0x80] sm:$0xf] }
 0x43e   : > { %v10643_v29 = vadd.f32 %v6112_v28, %v10282_v12  ;;  %6218 = vmatmul.bf16.gmra.mxu2 %v4842_v30  ;;  %v6551_v12 = vrot.slane %v6549_v16, 1  ;;  %v6554_v28 = vshll.u32 %v10648_v50, 16  ;;  %v4594_v16 = vunpack.c.l.b16 %v4460_v22 }
 0x440   : > { %v6552_v30 = vor.u32 %v6551_v12, %v6547_v42  ;;  %v10674_v12 = vld [vmem:[#allocation3 + $0x90] sm:$0xff] }
 0x441   : > { %v5845_v63 = vpop.f32.mrf.mxu3 }
 0x442   : > { %v10650_v9 = vadd.f32 %v5845_v63, %v5757_v21  ;;  %v5759_v55 = vpop.f32.mrf.mxu2  ;;  %v10652_v0 = vpop.f32.mrf.mxu0  ;;  %v4757_v63 = vsel %vm1191_vm3, %v4752_v5, %v4756_v61  ;;  %v4761_v5 = vshll.u32 %v10674_v12, 16  ;;  %v6438_v61 = vunpack.c.l.b16 %v6296_v44 }
 0x443   : > { %11264 = vst [vmem:[#allocation44_spill] sm:$0xff] %v10652_v0  ;;  %v5760_v21 = vadd.f32 %v5759_v55, %v10481_v3  ;;  %v6556_v0 = vrot.slane %v6554_v28, 1  ;;  %v10672_v55 = vpack.c.b16 %v4594_v16, %v4594_v16 }
 0x444   : > { %11263 = vst [vmem:[#allocation43_spill] sm:$0xff] %v10650_v9 }
 0x445   : > { %v6115_v13 = vpop.f32.mrf.mxu1  ;;  %v6557_v3 = vsel %vm1191_vm3, %v6552_v30, %v6556_v0  ;;  %v4763_v0 = vrot.slane %v4761_v5, 1  ;;  %v10684_v30 = vpack.c.b16 %v6438_v61, %v6438_v61 }
 0x446   : > { %6965 = vmatmul.bf16.gmra.mxu3 %v10597_v51  ;;  %v10659_v20 = vadd.f32 %v6115_v13, %v10297_v43  ;;  %v4844_v51 = vrot.slane %v10495_v45, 1  ;;  %v10669_v43 = vld [vmem:[#allocation3 + $0x78] sm:$0xff]  ;;  %v4766_v13 = vshll.u32 %v10672_v55, 16 }
 0x447   : > { %v6561_v45 = vshll.u32 %v10669_v43, 16  ;;  %11266 = vst [vmem:[#allocation46_spill] sm:$0xff] %v10684_v30  ;;  %v6566_v44 = vshll.u32 %v10684_v30, 16 }
 0x448   : > { %6154 = vmatmul.bf16.gmra.mxu1 %v4757_v63  ;;  %v4845_v42 = vsel %vm1400_vm4, %v4843_v37, %v4844_v51 }
 0x449   : > { %v5848_v34 = vpop.f32.mrf.mxu3  ;;  %v6563_v37 = vrot.slane %v6561_v45, 1 }
 0x44a   : > { %v10663_v19 = vadd.f32 %v5848_v34, %v5760_v21  ;;  %v5761_v50 = vpop.f32.mrf.mxu2  ;;  %v10667_v9 = vpop.f32.mrf.mxu0  ;;  %v4759_v34 = vshrl.u32 %v10674_v12, 16 }
 0x44b   : > { %11265 = vst [vmem:[#allocation45_spill] sm:$0xff] %v10667_v9  ;;  %v5762_v22 = vadd.f32 %v5761_v50, %v10500_v1  ;;  %v6559_v1 = vshrl.u32 %v10669_v43, 16  ;;  %v4463_v50 = vld [vmem:[#allocation3 + $0xa4] sm:$0xf]  ;;  %v4847_v9 = vrot.slane %v10529_v23, 1 }
 0x44c   : > { %v4764_v51 = vor.u32 %v4763_v0, %v4759_v34  ;;  %v4595_v0 = vunpack.c.l.b16 %v4463_v50 }
 0x44d   : > { %7059 = vmatmul.bf16.gmra.mxu0 %v6557_v3  ;;  %v6117_v28 = vpop.f32.mrf.mxu1 }
 0x44e   : > { %v10679_v11 = vadd.f32 %v6117_v28, %v10316_v6  ;;  %6223 = vmatmul.bf16.gmra.mxu2 %v4845_v42  ;;  %v4768_v6 = vrot.slane %v4766_v13, 1  ;;  %v6564_v28 = vor.u32 %v6563_v37, %v6559_v1  ;;  %v6299_v13 = vld [vmem:[#allocation3 + $0x8c] sm:$0xf]  ;;  %v10704_v1 = vpack.c.b16 %v4595_v0, %v4595_v0 }
 0x450   : > { %v4769_v45 = vsel %vm1191_vm3, %v4764_v51, %v4768_v6 }
 0x451   : > { %v5850_v21 = vpop.f32.mrf.mxu3 }
 0x452   : > { %v10686_v63 = vadd.f32 %v5850_v21, %v5762_v22  ;;  %v5764_v16 = vpop.f32.mrf.mxu2  ;;  %v10690_v3 = vpop.f32.mrf.mxu0  ;;  %v6568_v22 = vrot.slane %v6566_v44, 1 }
 0x453   : > { %11267 = vst [vmem:[#allocation47_spill] sm:$0xff] %v10690_v3  ;;  %v5765_v42 = vadd.f32 %v5764_v16, %v10515_v15  ;;  %v4846_v3 = vrot.slane %v10531_v49, 1  ;;  %v4773_v15 = vshll.u32 %v10308_v4, 16  ;;  %v10707_v16 = vld [vmem:[#allocation3 + $0x84] sm:$0xff] }
 0x454   : > { %v6569_v37 = vsel %vm1191_vm3, %v6564_v28, %v6568_v22  ;;  %v4778_v28 = vshll.u32 %v10704_v1, 16  ;;  %v6573_v4 = vshll.u32 %v10707_v16, 16  ;;  %v10720_v22 = vld [vmem:[#allocation3 + $0x9c] sm:$0xff] }
 0x455   : > { %v6120_v5 = vpop.f32.mrf.mxu1  ;;  %v4848_v6 = vsel %vm1400_vm4, %v4846_v3, %v4847_v9  ;;  %v4771_v9 = vshrl.u32 %v10720_v22, 16 }
 0x456   : > { %6970 = vmatmul.bf16.gmra.mxu3 %v10633_v60  ;;  %v10695_v61 = vadd.f32 %v6120_v5, %v10333_v38  ;;  %v8641_v60 = vld [vmem:[#allocation9 + $0x200] sm:$0xff]  ;;  %v6439_v38 = vunpack.c.l.b16 %v6299_v13  ;;  %v4775_v5 = vrot.slane %v4773_v15, 1  ;;  %v4780_v0 = vrot.slane %v4778_v28, 1 }
 0x457   : > { %7112 = vmatpush.bf16.msra.mxu1 %v8641_v60  ;;  %v6575_v13 = vrot.slane %v6573_v4, 1  ;;  %v6302_v28 = vld [vmem:[#allocation3 + $0x98] sm:$0xf] }
 0x458   : > { %6159 = vmatmul.bf16.gmra.mxu1 %v4769_v45  ;;  %v10713_v23 = vpack.c.b16 %v6439_v38, %v6439_v38  ;;  %v4776_v3 = vor.u32 %v4775_v5, %v4771_v9  ;;  %v6571_v38 = vshrl.u32 %v10707_v16, 16  ;;  %v4850_v9 = vrot.slane %v10564_v24, 1 }
 0x459   : > { %v5853_v21 = vpop.f32.mrf.mxu3 }
 0x45a   : > { %v10699_v34 = vadd.f32 %v5853_v21, %v5765_v42  ;;  %v5766_v30 = vpop.f32.mrf.mxu2  ;;  %v7025_v44 = vpop.f32.mrf.mxu0  ;;  %v4781_v15 = vsel %vm1191_vm3, %v4776_v3, %v4780_v0  ;;  %v4785_v0 = vshll.u32 %v10344_v47, 16 }
 0x45b   : > { %v5767_v50 = vadd.f32 %v5766_v30, %v10534_v53  ;;  %v6578_v53 = vshll.u32 %v10713_v23, 16  ;;  %v4466_v30 = vld [vmem:[#allocation3 + $0xb0] sm:$0xf] }
 0x45c   : > { %v4787_v24 = vrot.slane %v4785_v0, 1 }
 0x45d   : > { %7064 = vmatmul.bf16.gmra.mxu0 %v6569_v37  ;;  %v6122_v51 = vpop.f32.mrf.mxu1 }
 0x45e   : > { %v10711_v49 = vadd.f32 %v6122_v51, %v10352_v26  ;;  %6228 = vmatmul.bf16.gmra.mxu2 %v4848_v6  ;;  %v6576_v51 = vor.u32 %v6575_v13, %v6571_v38  ;;  %v6580_v6 = vrot.slane %v6578_v53, 1  ;;  %v10744_v13 = vld [vmem:[#allocation3 + $0x90] sm:$0xff]  ;;  %v6440_v53 = vunpack.c.l.b16 %v6302_v28 }
 0x45f   : > { %v6585_v38 = vshll.u32 %v10744_v13, 16 }
 0x460   : > { %11268 = vst [vmem:[#allocation48_spill] sm:$0xff] %v10711_v49 }
 0x461   : > { %v5855_v42 = vpop.f32.mrf.mxu3 }
 0x462   : > { %v10718_v60 = vadd.f32 %v5855_v42, %v5767_v50  ;;  %v6189_v45 = vpop.f32.mrf.mxu2  ;;  %v7027_v50 = vpop.f32.mrf.mxu0 }
 0x463   : > { %v10724_v26 = vadd.f32 %v6189_v45, %v10551_v54  ;;  %v4596_v54 = vunpack.c.l.b16 %v4466_v30  ;;  %v4849_v45 = vrot.slane %v10566_v48, 1 }
 0x465   : > { %v6125_v21 = vpop.f32.mrf.mxu1  ;;  %v10741_v3 = vpack.c.b16 %v4596_v54, %v4596_v54  ;;  %v4851_v30 = vsel %vm1400_vm4, %v4849_v45, %v4850_v9  ;;  %v4783_v54 = vshrl.u32 %v10344_v47, 16  ;;  %v6587_v45 = vrot.slane %v6585_v38, 1 }
 0x466   : > { %6975 = vmatmul.bf16.gmra.mxu3 %v10669_v43  ;;  %v10730_v37 = vadd.f32 %v6125_v21, %v10367_v14  ;;  %v6581_v14 = vsel %vm1191_vm3, %v6576_v51, %v6580_v6  ;;  %v10751_v21 = vpack.c.b16 %v6440_v53, %v6440_v53  ;;  %v6583_v53 = vshrl.u32 %v10744_v13, 16 }
 0x468   : > { %6164 = vmatmul.bf16.gmra.mxu1 %v4781_v15  ;;  %v6590_v9 = vshll.u32 %v10751_v21, 16 }
 0x469   : > { %v6936_v5 = vpop.f32.mrf.mxu3 }
 0x46a   : > { %v10733_v4 = vadd.f32 %v7025_v44, %v6936_v5  ;;  %v6191_v42 = vpop.f32.mrf.mxu2  ;;  %v7030_v5 = vpop.f32.mrf.mxu0 }
 0x46b   : > { %v10738_v49 = vadd.f32 %v6191_v42, %v10571_v31  ;;  %v4790_v31 = vshll.u32 %v10741_v3, 16 }
 0x46d   : > { %7069 = vmatmul.bf16.gmra.mxu0 %v6581_v14  ;;  %v6127_v44 = vpop.f32.mrf.mxu1  ;;  %v4792_v42 = vrot.slane %v4790_v31, 1  ;;  %v4469_v14 = vld [vmem:[#allocation3 + $0xbc] sm:$0xf]  ;;  %v6305_v31 = vld [vmem:[#allocation3 + $0xa4] sm:$0xf] }
 0x46e   : > { %v10748_v48 = vadd.f32 %v6127_v44, %v10387_v58  ;;  %6233 = vmatmul.bf16.gmra.mxu2 %v4851_v30  ;;  %v4788_v58 = vor.u32 %v4787_v24, %v4783_v54  ;;  %v6588_v44 = vor.u32 %v6587_v45, %v6583_v53  ;;  %v6592_v30 = vrot.slane %v6590_v9, 1 }
 0x46f   : > { %v4853_v54 = vrot.slane %v10600_v62, 1  ;;  %v6441_v45 = vunpack.c.l.b16 %v6305_v31 }
 0x470   : > { %11269 = vst [vmem:[#allocation49_spill] sm:$0xff] %v10748_v48  ;;  %v4793_v47 = vsel %vm1191_vm3, %v4788_v58, %v4792_v42  ;;  %v4797_v58 = vshll.u32 %v10377_v10, 16  ;;  %v10778_v42 = vld [vmem:[#allocation3 + $0x9c] sm:$0xff] }
 0x471   : > { %v6938_v15 = vpop.f32.mrf.mxu3  ;;  %v10785_v53 = vpack.c.b16 %v6441_v45, %v6441_v45 }
 0x472   : > { %v10754_v51 = vadd.f32 %v7027_v50, %v6938_v15  ;;  %v6194_v6 = vpop.f32.mrf.mxu2  ;;  %v7032_v9 = vpop.f32.mrf.mxu0  ;;  %v4799_v62 = vrot.slane %v4797_v58, 1  ;;  %v6595_v58 = vshrl.u32 %v10778_v42, 16 }
 0x473   : > { %v10758_v28 = vadd.f32 %v6194_v6, %v10587_v35  ;;  %v4597_v35 = vunpack.c.l.b16 %v4469_v14  ;;  %v4852_v6 = vrot.slane %v10602_v8, 1 }
 0x475   : > { %v6130_v0 = vpop.f32.mrf.mxu1  ;;  %v4854_v14 = vsel %vm1400_vm4, %v4852_v6, %v4853_v54  ;;  %v6602_v54 = vshll.u32 %v10785_v53, 16 }
 0x476   : > { %6980 = vmatmul.bf16.gmra.mxu3 %v10707_v16  ;;  %v10764_v50 = vadd.f32 %v6130_v0, %v10404_v18  ;;  %v6593_v18 = vsel %vm1191_vm3, %v6588_v44, %v6592_v30  ;;  %v10775_v0 = vpack.c.b16 %v4597_v35, %v4597_v35 }
 0x478   : > { %6169 = vmatmul.bf16.gmra.mxu1 %v4793_v47  ;;  %v6597_v47 = vshll.u32 %v10778_v42, 16 }
 0x479   : > { %v6941_v24 = vpop.f32.mrf.mxu3 }
 0x47a   : > { %v10767_v38 = vadd.f32 %v7030_v5, %v6941_v24  ;;  %v6196_v15 = vpop.f32.mrf.mxu2  ;;  %v4795_v24 = vshrl.u32 %v10377_v10, 16  ;;  %v6599_v6 = vrot.slane %v6597_v47, 1  ;;  %v7035_v45 = vpop.f32.mrf.mxu0 }
 0x47b   : > { %v10772_v48 = vadd.f32 %v6196_v15, %v10607_v27  ;;  %v4802_v27 = vshll.u32 %v10775_v0, 16 }
 0x47c   : > { %v4800_v15 = vor.u32 %v4799_v62, %v4795_v24  ;;  %v6600_v10 = vor.u32 %v6599_v6, %v6595_v58  ;;  %v6308_v62 = vld [vmem:[#allocation3 + $0xb0] sm:$0xf] }
 0x47d   : > { %7074 = vmatmul.bf16.gmra.mxu0 %v6593_v18  ;;  %v6132_v5 = vpop.f32.mrf.mxu1 }
 0x47e   : > { %v10782_v8 = vadd.f32 %v6132_v5, %v10426_v32  ;;  %6238 = vmatmul.bf16.gmra.mxu2 %v4854_v14  ;;  %v4804_v32 = vrot.slane %v4802_v27, 1  ;;  %v6604_v14 = vrot.slane %v6602_v54, 1 }
 0x480   : > { %v4805_v5 = vsel %vm1191_vm3, %v4800_v15, %v4804_v32  ;;  %v6442_v15 = vunpack.c.l.b16 %v6308_v62  ;;  %v6671_v62 = vrot.slane %v10394_v7, 1  ;;  %v4858_v7 = vrot.slane %v10674_v12, 1 }
 0x481   : > { %v6943_v44 = vpop.f32.mrf.mxu3 }
 0x482   : > { %v10788_v30 = vadd.f32 %v7032_v9, %v6943_v44  ;;  %v6199_v35 = vpop.f32.mrf.mxu2  ;;  %v4855_v44 = vrot.slane %v10638_v2, 1  ;;  %v10815_v58 = vpack.c.b16 %v6442_v15, %v6442_v15  ;;  %v7037_v2 = vpop.f32.mrf.mxu0 }
 0x483   : > { %v10792_v31 = vadd.f32 %v6199_v35, %v10623_v56  ;;  %v4856_v35 = vrot.slane %v10636_v39, 1 }
 0x485   : > { %v6135_v18 = vpop.f32.mrf.mxu1  ;;  %v4857_v6 = vsel %vm1400_vm4, %v4855_v44, %v4856_v35 }
 0x486   : > { %6985 = vmatmul.bf16.gmra.mxu3 %v10744_v13  ;;  %v10798_v9 = vadd.f32 %v6135_v18, %v10440_v57  ;;  %v6605_v57 = vsel %vm1191_vm3, %v6600_v10, %v6604_v14  ;;  %v10809_v18 = vld [vmem:[#allocation3 + $0xa8] sm:$0xff]  ;;  %v8773_v14 = vld [vmem:[#allocation3 + $0x18] sm:$0xff] }
 0x487   : > { %v6609_v39 = vshll.u32 %v10809_v18, 16  ;;  %v6607_v35 = vshrl.u32 %v10809_v18, 16 }
 0x488   : > { %6174 = vmatmul.bf16.gmra.mxu1 %v4805_v5 }
 0x489   : > { %v6946_v56 = vpop.f32.mrf.mxu3 }
 0x48a   : > { %v10801_v27 = vadd.f32 %v7035_v45, %v6946_v56  ;;  %v6201_v47 = vpop.f32.mrf.mxu2  ;;  %v6670_v56 = vrot.slane %v8773_v14, 1  ;;  %v10837_v14 = vld [vmem:[#allocation3 + $0xb4] sm:$0xff] }
 0x48b   : > { %v10806_v24 = vadd.f32 %v6201_v47, %v10643_v29  ;;  %v6611_v47 = vrot.slane %v6609_v39, 1  ;;  %v4859_v39 = vrot.slane %v10672_v55, 1  ;;  %v6621_v55 = vshll.u32 %v10837_v14, 16 }
 0x48c   : > { %v6672_v15 = vsel %vm1400_vm4, %v6670_v56, %v6671_v62 }
 0x48d   : > { %7079 = vmatmul.bf16.gmra.mxu0 %v6605_v57  ;;  %v6137_v32 = vpop.f32.mrf.mxu1 }
 0x48e   : > { %v10813_v54 = vadd.f32 %v6137_v32, %v10461_v25  ;;  %6243 = vmatmul.bf16.gmra.mxu2 %v4857_v6  ;;  %v6614_v25 = vshll.u32 %v10815_v58, 16  ;;  %v6612_v32 = vor.u32 %v6611_v47, %v6607_v35  ;;  %v6311_v6 = vld [vmem:[#allocation3 + $0xbc] sm:$0xf]  ;;  %v4860_v47 = vsel %vm1400_vm4, %v4858_v7, %v4859_v39 }
 0x48f   : > { %v6619_v7 = vshrl.u32 %v10837_v14, 16 }
 0x490   : > { %11270 = vst [vmem:[#allocation50_spill] sm:$0xff] %v10813_v54 }
 0x491   : > { %v6948_v29 = vpop.f32.mrf.mxu3 }
 0x492   : > { %v10818_v45 = vadd.f32 %v7037_v2, %v6948_v29  ;;  %v6204_v5 = vpop.f32.mrf.mxu2 }
 0x493   : > { %v10821_v10 = vadd.f32 %v6204_v5, %v10659_v20  ;;  %v6616_v20 = vrot.slane %v6614_v25, 1 }
 0x495   : > { %v6140_v44 = vpop.f32.mrf.mxu1  ;;  %v6617_v5 = vsel %vm1191_vm3, %v6612_v32, %v6616_v20  ;;  %v6623_v20 = vrot.slane %v6621_v55, 1  ;;  %v4861_v55 = vrot.slane %v10720_v22, 1 }
 0x496   : > { %6990 = vmatmul.bf16.gmra.mxu3 %v10778_v42  ;;  %v10828_v57 = vadd.f32 %v6140_v44, %v10478_v46  ;;  %v6443_v46 = vunpack.c.l.b16 %v6311_v6  ;;  %v11272_v44 = vld [vmem:[#allocation16_spill] sm:$0xff] }
 0x497   : > { %v6054_v56 = vadd.f32 %v11272_v44, %v10471_v36  ;;  %v11277_v36 = vld [vmem:[#allocation17_spill] sm:$0xff] }
 0x498   : > { %11271 = vst [vmem:[#allocation51_spill] sm:$0xff] %v10828_v57  ;;  %7113 = vmatmul.bf16.vlgmr.msra.gmra.mxu1 %v6672_v15  ;;  %v10844_v12 = vpack.c.b16 %v6443_v46, %v6443_v46  ;;  %v11275_v15 = vld [vmem:[#allocation14_spill] sm:$0xff]  ;;  %v11279_v57 = vld [vmem:[#allocation21_spill] sm:$0xff] }
 0x499   : > { %v6674_v32 = vrot.slane %v11275_v15, 1 }
 0x49a   : > { %v6206_v2 = vpop.f32.mrf.mxu2  ;;  %v6626_v6 = vshll.u32 %v10844_v12, 16 }
 0x49b   : > { %v10834_v29 = vadd.f32 %v6206_v2, %v10679_v11  ;;  %v11274_v11 = vld [vmem:[#allocation15_spill] sm:$0xff]  ;;  %v11276_v2 = vld [vmem:[#allocation20_spill] sm:$0xff] }
 0x49c   : > { %v6673_v35 = vrot.slane %v11274_v11, 1  ;;  %v4862_v11 = vrot.slane %v10704_v1, 1  ;;  %v11281_v1 = vld [vmem:[#allocation18_spill] sm:$0xff] }
 0x49d   : > { %7084 = vmatmul.bf16.gmra.mxu0 %v6617_v5  ;;  %v6142_v62 = vpop.f32.mrf.mxu1  ;;  %v6057_v5 = vadd.f32 %v11277_v36, %v11276_v2  ;;  %v10860_v2 = vld [vmem:[#allocation3 + $0xc0] sm:$0xff] }
 0x49e   : > { %v10842_v25 = vadd.f32 %v6142_v62, %v6054_v56  ;;  %6248 = vmatmul.bf16.gmra.mxu2 %v4860_v47  ;;  %v6675_v46 = vsel %vm1400_vm4, %v6673_v35, %v6674_v32  ;;  %v6624_v56 = vor.u32 %v6623_v20, %v6619_v7  ;;  %v6628_v62 = vrot.slane %v6626_v6, 1  ;;  %v6314_v47 = vld [vmem:[#allocation3 + $0xc8] sm:$0xf] }
 0x49f   : > { %v6444_v36 = vunpack.c.l.b16 %v6314_v47  ;;  %v4863_v35 = vsel %vm1400_vm4, %v4861_v55, %v4862_v11  ;;  %v6633_v22 = vshll.u32 %v10860_v2, 16  ;;  %v6676_v6 = vrot.slane %v11281_v1, 1  ;;  %v11284_v1 = vld [vmem:[#allocation30_spill] sm:$0xff] }
 0x4a0   : > { %11273 = vst [vmem:[#allocation16_spill] sm:$0xff] %v10842_v25  ;;  %v6629_v15 = vsel %vm1191_vm3, %v6624_v56, %v6628_v62  ;;  %v11278_v25 = vld [vmem:[#allocation25_spill] sm:$0xff] }
 0x4a1   : > { %v6059_v54 = vadd.f32 %v11279_v57, %v11278_v25  ;;  %v10867_v20 = vpack.c.b16 %v6444_v36, %v6444_v36  ;;  %v11283_v57 = vld [vmem:[#allocation22_spill] sm:$0xff]  ;;  %v8774_v36 = vld [vmem:[#allocation3 + $0xa8] sm:$0xff] }
 0x4a2   : > { %v6062_v25 = vadd.f32 %v11283_v57, %v10520_v17  ;;  %v11285_v17 = vld [vmem:[#allocation26_spill] sm:$0xff] }
 0x4a3   : > { %v6638_v56 = vshll.u32 %v10867_v20, 16 }
 0x4a5   : > { %v6145_v44 = vpop.f32.mrf.mxu1 }
 0x4a6   : > { %6995 = vmatmul.bf16.gmra.mxu3 %v10809_v18  ;;  %v10854_v39 = vadd.f32 %v6145_v44, %v6057_v5  ;;  %v11282_v44 = vld [vmem:[#allocation19_spill] sm:$0xff] }
 0x4a7   : > { %v6677_v7 = vrot.slane %v11282_v44, 1  ;;  %v6064_v44 = vadd.f32 %v11285_v17, %v11284_v1 }
 0x4a8   : > { %7118 = vmatmul.bf16.gmra.mxu1 %v6675_v46  ;;  %v6635_v46 = vrot.slane %v6633_v22, 1 }
 0x4a9   : > { %v6678_v55 = vsel %vm1400_vm4, %v6676_v6, %v6677_v7  ;;  %v11286_v6 = vld [vmem:[#allocation23_spill] sm:$0xff] }
 0x4aa   : > { %v6679_v7 = vrot.slane %v11286_v6, 1 }
 0x4ad   : > { %7089 = vmatmul.bf16.gmra.mxu0 %v6629_v15  ;;  %v6147_v5 = vpop.f32.mrf.mxu1  ;;  %v6640_v15 = vrot.slane %v6638_v56, 1 }
 0x4ae   : > { %v10865_v32 = vadd.f32 %v6147_v5, %v6059_v54  ;;  %6253 = vmatmul.bf16.gmra.mxu2 %v4863_v35  ;;  %v6631_v54 = vshrl.u32 %v10860_v2, 16  ;;  %v4864_v5 = vrot.slane %v8774_v36, 1  ;;  %v4865_v35 = vrot.slane %v10741_v3, 1 }
 0x4b0   : > { %11280 = vst [vmem:[#allocation15_spill] sm:$0xff] %v10865_v32  ;;  %v6636_v11 = vor.u32 %v6635_v46, %v6631_v54  ;;  %v4866_v32 = vsel %vm1400_vm4, %v4864_v5, %v4865_v35  ;;  %v11287_v46 = vld [vmem:[#allocation24_spill] sm:$0xff]  ;;  %v4868_v5 = vrot.slane %v10775_v0, 1 }
 0x4b1   : > { %v6680_v56 = vrot.slane %v11287_v46, 1 }
 0x4b2   : > { %v6641_v22 = vsel %vm1191_vm3, %v6636_v11, %v6640_v15  ;;  %v8775_v15 = vld [vmem:[#allocation3 + $0xb4] sm:$0xff] }
 0x4b3   : > { %v6681_v11 = vsel %vm1400_vm4, %v6679_v7, %v6680_v56  ;;  %v4867_v36 = vrot.slane %v8775_v15, 1  ;;  %v11292_v7 = vld [vmem:[#allocation32_spill] sm:$0xff]  ;;  %v11294_v15 = vld [vmem:[#allocation33_spill] sm:$0xff] }
 0x4b4   : > { %v6072_v46 = vadd.f32 %v11292_v7, %v10591_v33 }
 0x4b5   : > { %v6150_v62 = vpop.f32.mrf.mxu1  ;;  %v4869_v1 = vsel %vm1400_vm4, %v4867_v36, %v4868_v5  ;;  %v6685_v36 = vrot.slane %v11294_v15, 1  ;;  %v11295_v5 = vld [vmem:[#allocation34_spill] sm:$0xff] }
 0x4b6   : > { %7000 = vmatmul.bf16.gmra.mxu3 %v10837_v14  ;;  %v10877_v47 = vadd.f32 %v6150_v62, %v6062_v25  ;;  %v11288_v62 = vld [vmem:[#allocation27_spill] sm:$0xff] }
 0x4b7   : > { %v6067_v54 = vadd.f32 %v11288_v62, %v10555_v59  ;;  %v11290_v59 = vld [vmem:[#allocation28_spill] sm:$0xff] }
 0x4b8   : > { %7123 = vmatmul.bf16.gmra.mxu1 %v6678_v55 }
 0x4bd   : > { %7094 = vmatmul.bf16.gmra.mxu0 %v6641_v22  ;;  %v6152_v57 = vpop.f32.mrf.mxu1 }
 0x4be   : > { %v10885_v25 = vadd.f32 %v6152_v57, %v6064_v44  ;;  %6258 = vmatmul.bf16.gmra.mxu2 %v4866_v32  ;;  %v11289_v32 = vld [vmem:[#allocation31_spill] sm:$0xff]  ;;  %v6682_v44 = vrot.slane %v11290_v59, 1  ;;  %v11291_v57 = vld [vmem:[#allocation29_spill] sm:$0xff] }
 0x4bf   : > { %v6069_v35 = vadd.f32 %v11289_v32, %v10578_v41  ;;  %v6683_v6 = vrot.slane %v11291_v57, 1  ;;  %v11293_v41 = vld [vmem:[#allocation35_spill] sm:$0xff]  ;;  %v6686_v32 = vrot.slane %v11295_v5, 1 }
 0x4c0   : > { %v11298_v57 = vld [vmem:[#allocation39_spill] sm:$0xff] }
 0x4c1   : > { %v6684_v0 = vsel %vm1400_vm4, %v6682_v44, %v6683_v6  ;;  %v6687_v59 = vsel %vm1400_vm4, %v6685_v36, %v6686_v32  ;;  %v11297_v44 = vld [vmem:[#allocation43_spill] sm:$0xff]  ;;  %v11302_v36 = vld [vmem:[#allocation44_spill] sm:$0xff] }
 0x4c2   : > { %v6079_v6 = vadd.f32 %v11298_v57, %v11297_v44  ;;  %v6084_v32 = vadd.f32 %v11302_v36, %v10686_v63  ;;  %v11304_v44 = vld [vmem:[#allocation42_spill] sm:$0xff] }
 0x4c3   : > { %v6692_v57 = vrot.slane %v11304_v44, 1 }
 0x4c5   : > { %v6155_v3 = vpop.f32.mrf.mxu1 }
 0x4c6   : > { %7005 = vmatmul.bf16.gmra.mxu3 %v10860_v2  ;;  %v10892_v55 = vadd.f32 %v6155_v3, %v6067_v54  ;;  %v6074_v54 = vadd.f32 %v11293_v41, %v10614_v40 }
 0x4c8   : > { %7128 = vmatmul.bf16.gmra.mxu1 %v6681_v11 }
 0x4cd   : > { %v6157_v22 = vpop.f32.mrf.mxu1 }
 0x4ce   : > { %v10899_v17 = vadd.f32 %v6157_v22, %v6069_v35  ;;  %6263 = vmatmul.bf16.gmra.mxu2 %v4869_v1  ;;  %v11296_v35 = vld [vmem:[#allocation36_spill] sm:$0xff] }
 0x4cf   : > { %v6077_v22 = vadd.f32 %v11296_v35, %v10627_v52 }
 0x4d5   : > { %v6160_v56 = vpop.f32.mrf.mxu1 }
 0x4d6   : > { %v10905_v62 = vadd.f32 %v6160_v56, %v6072_v46  ;;  %v11299_v46 = vld [vmem:[#allocation37_spill] sm:$0xff] }
 0x4d7   : > { %v6688_v56 = vrot.slane %v11299_v46, 1 }
 0x4d8   : > { %7133 = vmatmul.bf16.gmra.mxu1 %v6684_v0  ;;  %v11300_v0 = vld [vmem:[#allocation38_spill] sm:$0xff] }
 0x4d9   : > { %v6689_v41 = vrot.slane %v11300_v0, 1  ;;  %v11306_v0 = vld [vmem:[#allocation47_spill] sm:$0xff] }
 0x4da   : > { %v6089_v63 = vadd.f32 %v11306_v0, %v10718_v60  ;;  %v6698_v0 = vrot.slane %v10713_v23, 1 }
 0x4db   : > { %v6690_v5 = vsel %vm1400_vm4, %v6688_v56, %v6689_v41 }
 0x4dd   : > { %v6162_v3 = vpop.f32.mrf.mxu1 }
 0x4de   : > { %v10910_v11 = vadd.f32 %v6162_v3, %v6074_v54  ;;  %v11301_v54 = vld [vmem:[#allocation40_spill] sm:$0xff] }
 0x4df   : > { %v6082_v3 = vadd.f32 %v11301_v54, %v10663_v19 }
 0x4e5   : > { %v6165_v33 = vpop.f32.mrf.mxu1 }
 0x4e6   : > { %v10916_v1 = vadd.f32 %v6165_v33, %v6077_v22  ;;  %v11303_v33 = vld [vmem:[#allocation41_spill] sm:$0xff] }
 0x4e8   : > { %7138 = vmatmul.bf16.gmra.mxu1 %v6687_v59  ;;  %v6691_v59 = vrot.slane %v11303_v33, 1  ;;  %v7226_v33 = vld [vmem:[%s9089_s13] sm:$0xff] }
 0x4ea   : > { %v6693_v56 = vsel %vm1400_vm4, %v6691_v59, %v6692_v57 }
 0x4ed   : > { %v6167_v40 = vpop.f32.mrf.mxu1 }
 0x4ee   : > { %v10921_v7 = vadd.f32 %v6167_v40, %v6079_v6  ;;  %v11305_v6 = vld [vmem:[#allocation45_spill] sm:$0xff] }
 0x4ef   : > { %v6087_v19 = vadd.f32 %v11305_v6, %v10699_v34  ;;  %v6694_v34 = vrot.slane %v10669_v43, 1 }
 0x4f5   : > { %v6170_v52 = vpop.f32.mrf.mxu1 }
 0x4f6   : > { %v10927_v15 = vadd.f32 %v6170_v52, %v6082_v3  ;;  %v10945_v3 = vpop.f32.mrf.mxu0  ;;  %v10947_v52 = vpop.f32.mrf.mxu3 }
 0x4f8   : > { %7143 = vmatmul.bf16.gmra.mxu1 %v6690_v5  ;;  %v11307_v5 = vld [vmem:[#allocation46_spill] sm:$0xff] }
 0x4f9   : > { %v6695_v36 = vrot.slane %v11307_v5, 1 }
 0x4fb   : > { %v6696_v59 = vsel %vm1400_vm4, %v6694_v34, %v6695_v36 }
 0x4fd   : > { %v6172_v35 = vpop.f32.mrf.mxu1 }
 0x4fe   : > { %v10932_v22 = vadd.f32 %v6172_v35, %v6084_v32  ;;  %v10955_v44 = vpop.f32.mrf.mxu0  ;;  %v10957_v6 = vpop.f32.mrf.mxu3 }
 0x505   : > { %v6175_v40 = vpop.f32.mrf.mxu1 }
 0x506   : > { %v10938_v46 = vadd.f32 %v6175_v40, %v6087_v19  ;;  %v7227_v19 = vld [vmem:[%s9089_s13 + $0x8] sm:$0xff]  ;;  %v6956_v34 = vpop.f32.mrf.mxu3 }
 0x508   : > { %7148 = vmatmul.bf16.gmra.mxu1 %v6693_v56  ;;  %v6697_v56 = vrot.slane %v10707_v16, 1 }
 0x50d   : > { %v6177_v41 = vpop.f32.mrf.mxu1 }
 0x50e   : > { %v10943_v54 = vadd.f32 %v6177_v41, %v6089_v63  ;;  %v10969_v63 = vpop.f32.mrf.mxu0  ;;  %v10971_v41 = vpop.f32.mrf.mxu2 }
 0x515   : > { %v7114_v32 = vpop.f32.mrf.mxu1 }
 0x516   : > { %v7115_v35 = vadd.f32 %v7114_v32, %v10733_v4  ;;  %v6699_v32 = vsel %vm1400_vm4, %v6697_v56, %v6698_v0 }
 0x518   : > { %v7194_v60 = vadd.f32 %v7115_v35, %v10724_v26  ;;  %7153 = vmatmul.bf16.gmra.mxu1 %v6696_v59  ;;  %v10979_v35 = vpop.f32.mrf.mxu0 }
 0x51a   : > { %v7258_v57 = vadd.f32 %v7226_v33, %v7194_v60  ;;  %v10981_v33 = vpop.f32.mrf.mxu2  ;;  %v6958_v60 = vpop.f32.mrf.mxu3 }
 0x51c   : > { %7290 = vst [vmem:[%s10961_s21] sm:$0xff] %v7258_v57  ;;  %v7229_v57 = vld [vmem:[%s9089_s13 + $0x18] sm:$0xff] }
 0x51d   : > { %v7116_v43 = vpop.f32.mrf.mxu1 }
 0x51e   : > { %v7117_v4 = vadd.f32 %v7116_v43, %v10754_v51  ;;  %v7228_v51 = vld [vmem:[%s9089_s13 + $0x10] sm:$0xff] }
 0x520   : > { %v7195_v26 = vadd.f32 %v7117_v4, %v10738_v49  ;;  %v6700_v4 = vrot.slane %v10744_v13, 1  ;;  %v10992_v0 = vpop.f32.mrf.mxu0 }
 0x522   : > { %v7259_v40 = vadd.f32 %v7227_v19, %v7195_v26 }
 0x524   : > { %7291 = vst [vmem:[%s10961_s21 + $0x8] sm:$0xff] %v7259_v40  ;;  %v7230_v40 = vld [vmem:[%s9089_s13 + $0x20] sm:$0xff] }
 0x525   : > { %v7119_v5 = vpop.f32.mrf.mxu1 }
 0x526   : > { %v7120_v36 = vadd.f32 %v7119_v5, %v10767_v38 }
 0x528   : > { %v7196_v49 = vadd.f32 %v7120_v36, %v10758_v28  ;;  %7158 = vmatmul.bf16.gmra.mxu1 %v6699_v32  ;;  %v6701_v28 = vrot.slane %v10751_v21, 1  ;;  %v11001_v32 = vpop.f32.mrf.mxu0 }
 0x52a   : > { %v7260_v16 = vadd.f32 %v7228_v51, %v7196_v49  ;;  %v6702_v56 = vsel %vm1400_vm4, %v6700_v4, %v6701_v28  ;;  %v7231_v51 = vld [vmem:[%s9089_s13 + $0x28] sm:$0xff] }
 0x52c   : > { %7292 = vst [vmem:[%s10961_s21 + $0x10] sm:$0xff] %v7260_v16 }
 0x52d   : > { %v7121_v23 = vpop.f32.mrf.mxu1 }
 0x52e   : > { %v7122_v59 = vadd.f32 %v7121_v23, %v10788_v30  ;;  %v10994_v30 = vpop.f32.mrf.mxu2 }
 0x530   : > { %v7197_v38 = vadd.f32 %v7122_v59, %v10772_v48  ;;  %v6961_v48 = vpop.f32.mrf.mxu3  ;;  %v6704_v59 = vrot.slane %v10785_v53, 1 }
 0x532   : > { %v7261_v43 = vadd.f32 %v7229_v57, %v7197_v38  ;;  %v7041_v57 = vadd.f32 %v10945_v3, %v10947_v52 }
 0x534   : > { %7293 = vst [vmem:[%s10961_s21 + $0x18] sm:$0xff] %v7261_v43 }
 0x535   : > { %v7124_v19 = vpop.f32.mrf.mxu1 }
 0x536   : > { %v7125_v26 = vadd.f32 %v7124_v19, %v10801_v27  ;;  %v11003_v49 = vpop.f32.mrf.mxu2  ;;  %v11017_v19 = vpop.f32.mrf.mxu0 }
 0x538   : > { %v7198_v5 = vadd.f32 %v7125_v26, %v10792_v31  ;;  %7163 = vmatmul.bf16.gmra.mxu1 %v6702_v56  ;;  %v11005_v23 = vpop.f32.mrf.mxu3  ;;  %v6703_v31 = vrot.slane %v10778_v42, 1  ;;  %v7043_v42 = vadd.f32 %v10955_v44, %v10957_v6  ;;  %v7046_v44 = vadd.f32 %v10969_v63, %v6956_v34  ;;  %v11042_v34 = vld [vmem:[#allocation3 + $0xcc] sm:$0xff] }
 0x539   : > { %v7048_v63 = vadd.f32 %v10979_v35, %v6958_v60  ;;  %7010 = vmatmul.bf16.gmra.mxu3 %v11042_v34  ;;  %v6709_v60 = vrot.slane %v10837_v14, 1 }
 0x53a   : > { %v7262_v13 = vadd.f32 %v7230_v40, %v7198_v5  ;;  %v6705_v43 = vsel %vm1400_vm4, %v6703_v31, %v6704_v59  ;;  %v7233_v40 = vld [vmem:[%s9089_s13 + $0x38] sm:$0xff]  ;;  %v6706_v5 = vrot.slane %v10809_v18, 1 }
 0x53c   : > { %7294 = vst [vmem:[%s10961_s21 + $0x20] sm:$0xff] %v7262_v13  ;;  %v6707_v13 = vrot.slane %v10815_v58, 1 }
 0x53d   : > { %v7126_v21 = vpop.f32.mrf.mxu1 }
 0x53e   : > { %v7127_v36 = vadd.f32 %v7126_v21, %v10818_v45  ;;  %v11019_v53 = vpop.f32.mrf.mxu2  ;;  %v6210_v21 = vadd.f32 %v10971_v41, %v10695_v61  ;;  %v6708_v18 = vsel %vm1400_vm4, %v6706_v5, %v6707_v13  ;;  %v11308_v41 = vld [vmem:[#allocation48_spill] sm:$0xff] }
 0x53f   : > { %v6212_v59 = vadd.f32 %v10981_v33, %v11308_v41  ;;  %v6317_v33 = vld [vmem:[#allocation3 + $0xd4] sm:$0xf] }
 0x540   : > { %v7199_v27 = vadd.f32 %v7127_v36, %v10806_v24  ;;  %v7232_v24 = vld [vmem:[%s9089_s13 + $0x30] sm:$0xff]  ;;  %v11022_v3 = vpop.f32.mrf.mxu3  ;;  %v11032_v36 = vpop.f32.mrf.mxu0 }
 0x542   : > { %v7263_v16 = vadd.f32 %v7231_v51, %v7199_v27 }
 0x544   : > { %7295 = vst [vmem:[%s10961_s21 + $0x28] sm:$0xff] %v7263_v16  ;;  %v7234_v16 = vld [vmem:[%s9089_s13 + $0x40] sm:$0xff] }
 0x545   : > { %v7129_v45 = vpop.f32.mrf.mxu1 }
 0x546   : > { %v7130_v38 = vadd.f32 %v7129_v45, %v7041_v57  ;;  %v11034_v51 = vpop.f32.mrf.mxu2  ;;  %v7235_v45 = vld [vmem:[%s9089_s13 + $0x48] sm:$0xff] }
 0x548   : > { %v7200_v4 = vadd.f32 %v7130_v38, %v10821_v10  ;;  %7168 = vmatmul.bf16.gmra.mxu1 %v6705_v43  ;;  %v11048_v38 = vpop.f32.mrf.mxu0 }
 0x54a   : > { %v7264_v28 = vadd.f32 %v7232_v24, %v7200_v4 }
 0x54c   : > { %7296 = vst [vmem:[%s10961_s21 + $0x30] sm:$0xff] %v7264_v28  ;;  %v6710_v28 = vrot.slane %v10844_v12, 1 }
 0x54d   : > { %v7131_v52 = vpop.f32.mrf.mxu1 }
 0x54e   : > { %v7132_v26 = vadd.f32 %v7131_v52, %v7043_v42  ;;  %v11050_v24 = vpop.f32.mrf.mxu2  ;;  %v7051_v42 = vadd.f32 %v10992_v0, %v6961_v48  ;;  %v6645_v52 = vshll.u32 %v11042_v34, 16  ;;  %v6711_v14 = vsel %vm1400_vm4, %v6709_v60, %v6710_v28 }
 0x550   : > { %v7201_v56 = vadd.f32 %v7132_v26, %v10834_v29  ;;  %v11036_v29 = vpop.f32.mrf.mxu3  ;;  %v6647_v13 = vrot.slane %v6645_v52, 1  ;;  %v7238_v52 = vld [vmem:[%s9089_s13 + $0x60] sm:$0xff] }
 0x552   : > { %v7265_v10 = vadd.f32 %v7233_v40, %v7201_v56  ;;  %v6445_v40 = vunpack.c.l.b16 %v6317_v33  ;;  %v6643_v56 = vshrl.u32 %v11042_v34, 16 }
 0x554   : > { %7297 = vst [vmem:[%s10961_s21 + $0x38] sm:$0xff] %v7265_v10  ;;  %v6215_v10 = vadd.f32 %v10994_v30, %v10730_v37  ;;  %v6461_v12 = vpack.c.b16 %v6445_v40, %v6445_v40  ;;  %v6648_v0 = vor.u32 %v6647_v13, %v6643_v56  ;;  %v7053_v37 = vadd.f32 %v11001_v32, %v11005_v23 }
 0x555   : > { %v7134_v6 = vpop.f32.mrf.mxu1  ;;  %v7056_v32 = vadd.f32 %v11017_v19, %v11022_v3  ;;  %v7058_v19 = vadd.f32 %v11032_v36, %v11036_v29  ;;  %v6222_v40 = vadd.f32 %v11034_v51, %v10782_v8  ;;  %v6225_v51 = vadd.f32 %v11050_v24, %v10798_v9 }
 0x556   : > { %v7135_v27 = vadd.f32 %v7134_v6, %v7046_v44  ;;  %v7236_v44 = vld [vmem:[%s9089_s13 + $0x50] sm:$0xff]  ;;  %v6650_v48 = vshll.u32 %v6461_v12, 16 }
 0x558   : > { %v7202_v31 = vadd.f32 %v7135_v27, %v6210_v21  ;;  %7173 = vmatmul.bf16.gmra.mxu1 %v6708_v18  ;;  %v11052_v4 = vpop.f32.mrf.mxu3  ;;  %v7062_v21 = vpop.f32.mrf.mxu0 }
 0x559   : > { %v6226_v27 = vpop.f32.mrf.mxu2  ;;  %v7061_v36 = vadd.f32 %v11048_v38, %v11052_v4  ;;  %v11310_v4 = vld [vmem:[#allocation50_spill] sm:$0xff] }
 0x55a   : > { %v7266_v58 = vadd.f32 %v7234_v16, %v7202_v31  ;;  %v6652_v31 = vrot.slane %v6650_v48, 1  ;;  %v7240_v48 = vld [vmem:[%s9089_s13 + $0x70] sm:$0xff] }
 0x55c   : > { %7298 = vst [vmem:[%s10961_s21 + $0x40] sm:$0xff] %v7266_v58  ;;  %v6653_v58 = vsel %vm1191_vm3, %v6648_v0, %v6652_v31 }
 0x55d   : > { %v7136_v61 = vpop.f32.mrf.mxu1  ;;  %7099 = vmatmul.bf16.gmra.mxu0 %v6653_v58  ;;  %v6227_v58 = vadd.f32 %v6226_v27, %v11310_v4 }
 0x55e   : > { %v7137_v57 = vadd.f32 %v7136_v61, %v7048_v63  ;;  %v11309_v63 = vld [vmem:[#allocation49_spill] sm:$0xff] }
 0x55f   : > { %v6217_v61 = vadd.f32 %v11003_v49, %v11309_v63  ;;  %v6220_v49 = vadd.f32 %v11019_v53, %v10764_v50 }
 0x560   : > { %v7203_v43 = vadd.f32 %v7137_v57, %v6212_v59  ;;  %v6973_v18 = vpop.f32.mrf.mxu3  ;;  %v7237_v59 = vld [vmem:[%s9089_s13 + $0x58] sm:$0xff]  ;;  %v7065_v23 = vpop.f32.mrf.mxu0 }
 0x561   : > { %v6229_v60 = vpop.f32.mrf.mxu2 }
 0x562   : > { %v7267_v35 = vadd.f32 %v7235_v45, %v7203_v43  ;;  %v6712_v43 = vrot.slane %v10860_v2, 1 }
 0x564   : > { %7299 = vst [vmem:[%s10961_s21 + $0x48] sm:$0xff] %v7267_v35  ;;  %v6713_v35 = vrot.slane %v10867_v20, 1 }
 0x565   : > { %v7139_v26 = vpop.f32.mrf.mxu1 }
 0x566   : > { %v7140_v5 = vadd.f32 %v7139_v26, %v7051_v42  ;;  %v6714_v26 = vsel %vm1400_vm4, %v6712_v43, %v6713_v35  ;;  %v11311_v35 = vld [vmem:[#allocation51_spill] sm:$0xff] }
 0x568   : > { %v7204_v6 = vadd.f32 %v7140_v5, %v6215_v10  ;;  %7178 = vmatmul.bf16.gmra.mxu1 %v6711_v14  ;;  %v6976_v28 = vpop.f32.mrf.mxu3  ;;  %v7067_v56 = vpop.f32.mrf.mxu0  ;;  %v7239_v5 = vld [vmem:[%s9089_s13 + $0x68] sm:$0xff]  ;;  %v6716_v14 = vrot.slane %v6461_v12, 1 }
 0x569   : > { %v6231_v10 = vpop.f32.mrf.mxu2 }
 0x56a   : > { %v7268_v16 = vadd.f32 %v7236_v44, %v7204_v6  ;;  %v6715_v44 = vrot.slane %v11042_v34, 1 }
 0x56c   : > { %7300 = vst [vmem:[%s10961_s21 + $0x50] sm:$0xff] %v7268_v16  ;;  %v6717_v8 = vsel %vm1400_vm4, %v6715_v44, %v6716_v14  ;;  %v7244_v14 = vld [vmem:[%s9089_s13 + $0x90] sm:$0xff] }
 0x56d   : > { %v7141_v30 = vpop.f32.mrf.mxu1 }
 0x56e   : > { %v7142_v41 = vadd.f32 %v7141_v30, %v7053_v37  ;;  %v7063_v30 = vadd.f32 %v7062_v21, %v6973_v18  ;;  %v7242_v18 = vld [vmem:[%s9089_s13 + $0x80] sm:$0xff] }
 0x570   : > { %v7205_v57 = vadd.f32 %v7142_v41, %v6217_v61  ;;  %v6978_v53 = vpop.f32.mrf.mxu3  ;;  %v7070_v16 = vpop.f32.mrf.mxu0  ;;  %v7241_v61 = vld [vmem:[%s9089_s13 + $0x78] sm:$0xff] }
 0x571   : > { %v6234_v31 = vpop.f32.mrf.mxu2  ;;  %v7068_v27 = vadd.f32 %v7067_v56, %v6978_v53 }
 0x572   : > { %v7269_v45 = vadd.f32 %v7237_v59, %v7205_v57 }
 0x574   : > { %7301 = vst [vmem:[%s10961_s21 + $0x58] sm:$0xff] %v7269_v45  ;;  %v7066_v45 = vadd.f32 %v7065_v23, %v6976_v28  ;;  %v7243_v28 = vld [vmem:[%s9089_s13 + $0x88] sm:$0xff] }
 0x575   : > { %v7144_v42 = vpop.f32.mrf.mxu1 }
 0x576   : > { %v7145_v33 = vadd.f32 %v7144_v42, %v7056_v32  ;;  %v6230_v32 = vadd.f32 %v6229_v60, %v11311_v35  ;;  %v7247_v35 = vld [vmem:[%s9089_s13 + $0xa8] sm:$0xff] }
 0x578   : > { %v7206_v2 = vadd.f32 %v7145_v33, %v6220_v49  ;;  %7183 = vmatmul.bf16.gmra.mxu1 %v6714_v26  ;;  %v6981_v34 = vpop.f32.mrf.mxu3  ;;  %v7072_v9 = vpop.f32.mrf.mxu0 }
 0x579   : > { %v6236_v24 = vpop.f32.mrf.mxu2  ;;  %v7071_v60 = vadd.f32 %v7070_v16, %v6981_v34 }
 0x57a   : > { %v7270_v20 = vadd.f32 %v7238_v52, %v7206_v2 }
 0x57c   : > { %7302 = vst [vmem:[%s10961_s21 + $0x60] sm:$0xff] %v7270_v20  ;;  %v11312_v20 = vld [vmem:[#allocation16_spill] sm:$0xff] }
 0x57d   : > { %v7146_v3 = vpop.f32.mrf.mxu1 }
 0x57e   : > { %v7147_v50 = vadd.f32 %v7146_v3, %v7058_v19  ;;  %v6232_v19 = vadd.f32 %v6231_v10, %v11312_v20 }
 0x580   : > { %v7207_v13 = vadd.f32 %v7147_v50, %v6222_v40  ;;  %v6983_v57 = vpop.f32.mrf.mxu3  ;;  %v7075_v33 = vpop.f32.mrf.mxu0 }
 0x581   : > { %v6239_v52 = vpop.f32.mrf.mxu2  ;;  %v7073_v10 = vadd.f32 %v7072_v9, %v6983_v57 }
 0x582   : > { %v7271_v6 = vadd.f32 %v7239_v5, %v7207_v13  ;;  %v6235_v5 = vadd.f32 %v6234_v31, %v10854_v39 }
 0x584   : > { %7303 = vst [vmem:[%s10961_s21 + $0x68] sm:$0xff] %v7271_v6 }
 0x585   : > { %v7149_v29 = vpop.f32.mrf.mxu1 }
 0x586   : > { %v7150_v0 = vadd.f32 %v7149_v29, %v7061_v36 }
 0x588   : > { %v7208_v37 = vadd.f32 %v7150_v0, %v6225_v51  ;;  %7188 = vmatmul.bf16.gmra.mxu1 %v6717_v8  ;;  %v6986_v26 = vpop.f32.mrf.mxu3  ;;  %v7077_v56 = vpop.f32.mrf.mxu0  ;;  %v11313_v8 = vld [vmem:[#allocation15_spill] sm:$0xff] }
 0x589   : > { %v6241_v53 = vpop.f32.mrf.mxu2  ;;  %v6237_v51 = vadd.f32 %v6236_v24, %v11313_v8 }
 0x58a   : > { %v7272_v12 = vadd.f32 %v7240_v48, %v7208_v37  ;;  %v7245_v48 = vld [vmem:[%s9089_s13 + $0x98] sm:$0xff] }
 0x58c   : > { %7304 = vst [vmem:[%s10961_s21 + $0x70] sm:$0xff] %v7272_v12  ;;  %v7076_v12 = vadd.f32 %v7075_v33, %v6986_v26  ;;  %v7248_v26 = vld [vmem:[%s9089_s13 + $0xb0] sm:$0xff] }
 0x58d   : > { %v7151_v38 = vpop.f32.mrf.mxu1 }
 0x58e   : > { %v7152_v63 = vadd.f32 %v7151_v38, %v7063_v30  ;;  %v6240_v38 = vadd.f32 %v6239_v52, %v10877_v47 }
 0x590   : > { %v7209_v41 = vadd.f32 %v7152_v63, %v6227_v58  ;;  %v6988_v44 = vpop.f32.mrf.mxu3  ;;  %v7080_v16 = vpop.f32.mrf.mxu0  ;;  %v7246_v58 = vld [vmem:[%s9089_s13 + $0xa0] sm:$0xff] }
 0x591   : > { %v6244_v37 = vpop.f32.mrf.mxu2 }
 0x592   : > { %v7273_v59 = vadd.f32 %v7241_v61, %v7209_v41  ;;  %v6245_v33 = vadd.f32 %v6244_v37, %v10892_v55 }
 0x594   : > { %7305 = vst [vmem:[%s10961_s21 + $0x78] sm:$0xff] %v7273_v59  ;;  %v7078_v59 = vadd.f32 %v7077_v56, %v6988_v44 }
 0x595   : > { %v7154_v43 = vpop.f32.mrf.mxu1 }
 0x596   : > { %v7155_v21 = vadd.f32 %v7154_v43, %v7066_v45  ;;  %v6242_v45 = vadd.f32 %v6241_v53, %v10885_v25 }
 0x598   : > { %v7210_v42 = vadd.f32 %v7155_v21, %v6230_v32  ;;  %v6991_v31 = vpop.f32.mrf.mxu3  ;;  %v7082_v61 = vpop.f32.mrf.mxu0 }
 0x599   : > { %v6246_v41 = vpop.f32.mrf.mxu2  ;;  %v7081_v47 = vadd.f32 %v7080_v16, %v6991_v31  ;;  %v7251_v16 = vld [vmem:[%s9089_s13 + $0xc8] sm:$0xff] }
 0x59a   : > { %v7274_v49 = vadd.f32 %v7242_v18, %v7210_v42 }
 0x59c   : > { %7306 = vst [vmem:[%s10961_s21 + $0x80] sm:$0xff] %v7274_v49 }
 0x59d   : > { %v7156_v2 = vpop.f32.mrf.mxu1 }
 0x59e   : > { %v7157_v23 = vadd.f32 %v7156_v2, %v7068_v27 }
 0x5a0   : > { %v7211_v3 = vadd.f32 %v7157_v23, %v6232_v19  ;;  %v6993_v24 = vpop.f32.mrf.mxu3  ;;  %v7085_v18 = vpop.f32.mrf.mxu0  ;;  %v6247_v23 = vadd.f32 %v6246_v41, %v10899_v17 }
 0x5a1   : > { %v6249_v42 = vpop.f32.mrf.mxu2  ;;  %v7083_v25 = vadd.f32 %v7082_v61, %v6993_v24 }
 0x5a2   : > { %v7275_v40 = vadd.f32 %v7243_v28, %v7211_v3 }
 0x5a4   : > { %7307 = vst [vmem:[%s10961_s21 + $0x88] sm:$0xff] %v7275_v40 }
 0x5a5   : > { %v7159_v50 = vpop.f32.mrf.mxu1 }
 0x5a6   : > { %v7160_v13 = vadd.f32 %v7159_v50, %v7071_v60  ;;  %v7249_v50 = vld [vmem:[%s9089_s13 + $0xb8] sm:$0xff] }
 0x5a8   : > { %v7212_v6 = vadd.f32 %v7160_v13, %v6235_v5  ;;  %v6996_v49 = vpop.f32.mrf.mxu3  ;;  %v7087_v28 = vpop.f32.mrf.mxu0  ;;  %v6250_v13 = vadd.f32 %v6249_v42, %v10905_v62 }
 0x5a9   : > { %v6251_v3 = vpop.f32.mrf.mxu2  ;;  %v7086_v55 = vadd.f32 %v7085_v18, %v6996_v49 }
 0x5aa   : > { %v7276_v36 = vadd.f32 %v7244_v14, %v7212_v6  ;;  %v7250_v14 = vld [vmem:[%s9089_s13 + $0xc0] sm:$0xff] }
 0x5ac   : > { %7308 = vst [vmem:[%s10961_s21 + $0x90] sm:$0xff] %v7276_v36 }
 0x5ad   : > { %v7161_v29 = vpop.f32.mrf.mxu1 }
 0x5ae   : > { %v7162_v0 = vadd.f32 %v7161_v29, %v7073_v10 }
 0x5b0   : > { %v7213_v39 = vadd.f32 %v7162_v0, %v6237_v51  ;;  %v6998_v60 = vpop.f32.mrf.mxu3  ;;  %v7090_v6 = vpop.f32.mrf.mxu0  ;;  %v6252_v0 = vadd.f32 %v6251_v3, %v10910_v11 }
 0x5b1   : > { %v6254_v36 = vpop.f32.mrf.mxu2  ;;  %v7088_v8 = vadd.f32 %v7087_v28, %v6998_v60  ;;  %v7255_v28 = vld [vmem:[%s9089_s13 + $0xe8] sm:$0xff] }
 0x5b2   : > { %v7277_v34 = vadd.f32 %v7245_v48, %v7213_v39 }
 0x5b4   : > { %7309 = vst [vmem:[%s10961_s21 + $0x98] sm:$0xff] %v7277_v34 }
 0x5b5   : > { %v7164_v30 = vpop.f32.mrf.mxu1 }
 0x5b6   : > { %v7165_v4 = vadd.f32 %v7164_v30, %v7076_v12 }
 0x5b8   : > { %v7214_v63 = vadd.f32 %v7165_v4, %v6240_v38  ;;  %v7001_v10 = vpop.f32.mrf.mxu3  ;;  %v7092_v39 = vpop.f32.mrf.mxu0  ;;  %v6255_v38 = vadd.f32 %v6254_v36, %v10916_v1 }
 0x5b9   : > { %v6256_v62 = vpop.f32.mrf.mxu2  ;;  %v7091_v12 = vadd.f32 %v7090_v6, %v7001_v10  ;;  %v7257_v10 = vld [vmem:[%s9089_s13 + $0xf8] sm:$0xff] }
 0x5ba   : > { %v7278_v9 = vadd.f32 %v7246_v58, %v7214_v63  ;;  %v7252_v58 = vld [vmem:[%s9089_s13 + $0xd0] sm:$0xff] }
 0x5bc   : > { %7310 = vst [vmem:[%s10961_s21 + $0xa0] sm:$0xff] %v7278_v9 }
 0x5bd   : > { %v7166_v57 = vpop.f32.mrf.mxu1 }
 0x5be   : > { %v7167_v43 = vadd.f32 %v7166_v57, %v7078_v59  ;;  %v6257_v57 = vadd.f32 %v6256_v62, %v10921_v7 }
 0x5c0   : > { %v7215_v32 = vadd.f32 %v7167_v43, %v6242_v45  ;;  %v7003_v34 = vpop.f32.mrf.mxu3  ;;  %v7095_v11 = vpop.f32.mrf.mxu0  ;;  %v7253_v43 = vld [vmem:[%s9089_s13 + $0xd8] sm:$0xff] }
 0x5c1   : > { %v7093_v41 = vadd.f32 %v7092_v39, %v7003_v34  ;;  %v6259_v9 = vpop.f32.mrf.mxu2 }
 0x5c2   : > { %v7279_v21 = vadd.f32 %v7247_v35, %v7215_v32 }
 0x5c4   : > { %7311 = vst [vmem:[%s10961_s21 + $0xa8] sm:$0xff] %v7279_v21 }
 0x5c5   : > { %v7169_v27 = vpop.f32.mrf.mxu1 }
 0x5c6   : > { %v7170_v52 = vadd.f32 %v7169_v27, %v7081_v47  ;;  %v6260_v47 = vadd.f32 %v6259_v9, %v10927_v15 }
 0x5c8   : > { %v7216_v2 = vadd.f32 %v7170_v52, %v6245_v33  ;;  %v7006_v24 = vpop.f32.mrf.mxu3  ;;  %v7097_v18 = vpop.f32.mrf.mxu0  ;;  %v7254_v33 = vld [vmem:[%s9089_s13 + $0xe0] sm:$0xff] }
 0x5c9   : > { %v7096_v1 = vadd.f32 %v7095_v11, %v7006_v24  ;;  %v6261_v49 = vpop.f32.mrf.mxu2 }
 0x5ca   : > { %v7280_v20 = vadd.f32 %v7248_v26, %v7216_v2 }
 0x5cc   : > { %7312 = vst [vmem:[%s10961_s21 + $0xb0] sm:$0xff] %v7280_v20  ;;  %v6262_v20 = vadd.f32 %v6261_v49, %v10932_v22 }
 0x5cd   : > { %v7171_v19 = vpop.f32.mrf.mxu1 }
 0x5ce   : > { %v7172_v40 = vadd.f32 %v7171_v19, %v7083_v25 }
 0x5d0   : > { %v7217_v5 = vadd.f32 %v7172_v40, %v6247_v23  ;;  %v7008_v27 = vpop.f32.mrf.mxu3 }
 0x5d1   : > { %v7098_v7 = vadd.f32 %v7097_v18, %v7008_v27  ;;  %v6264_v3 = vpop.f32.mrf.mxu2 }
 0x5d2   : > { %v7281_v56 = vadd.f32 %v7249_v50, %v7217_v5  ;;  %v6265_v5 = vadd.f32 %v6264_v3, %v10938_v46 }
 0x5d4   : > { %7313 = vst [vmem:[%s10961_s21 + $0xb8] sm:$0xff] %v7281_v56 }
 0x5d5   : > { %v7174_v53 = vpop.f32.mrf.mxu1 }
 0x5d6   : > { %v7175_v44 = vadd.f32 %v7174_v53, %v7086_v55  ;;  %v7256_v55 = vld [vmem:[%s9089_s13 + $0xf0] sm:$0xff] }
 0x5d8   : > { %v7218_v17 = vadd.f32 %v7175_v44, %v6250_v13  ;;  %v7011_v19 = vpop.f32.mrf.mxu3 }
 0x5da   : > { %v7282_v29 = vadd.f32 %v7250_v14, %v7218_v17  ;;  %v7100_v23 = vpop.f32.mrf.mxu0  ;;  %v6266_v14 = vpop.f32.mrf.mxu2 }
 0x5db   : > { %v7101_v40 = vadd.f32 %v7100_v23, %v7011_v19  ;;  %v6267_v46 = vadd.f32 %v6266_v14, %v10943_v54 }
 0x5dc   : > { %7314 = vst [vmem:[%s10961_s21 + $0xc0] sm:$0xff] %v7282_v29 }
 0x5dd   : > { %v7176_v51 = vpop.f32.mrf.mxu1 }
 0x5de   : > { %v7177_v48 = vadd.f32 %v7176_v51, %v7088_v8 }
 0x5e0   : > { %v7219_v37 = vadd.f32 %v7177_v48, %v6252_v0  ;;  %v7013_v22 = vpop.f32.mrf.mxu3 }
 0x5e2   : > { %v7283_v31 = vadd.f32 %v7251_v16, %v7219_v37  ;;  %v7102_v13 = vpop.f32.mrf.mxu0 }
 0x5e3   : > { %v7103_v6 = vadd.f32 %v7102_v13, %v7013_v22 }
 0x5e4   : > { %7315 = vst [vmem:[%s10961_s21 + $0xc8] sm:$0xff] %v7283_v31 }
 0x5e5   : > { %v7179_v30 = vpop.f32.mrf.mxu1 }
 0x5e6   : > { %v7180_v4 = vadd.f32 %v7179_v30, %v7091_v12 }
 0x5e8   : > { %v7220_v63 = vadd.f32 %v7180_v4, %v6255_v38 }
 0x5ea   : > { %v7284_v61 = vadd.f32 %v7252_v58, %v7220_v63 }
 0x5ec   : > { %7316 = vst [vmem:[%s10961_s21 + $0xd0] sm:$0xff] %v7284_v61 }
 0x5ed   : > { %v7181_v59 = vpop.f32.mrf.mxu1 }
 0x5ee   : > { %v7182_v45 = vadd.f32 %v7181_v59, %v7093_v41 }
 0x5f0   : > { %v7221_v35 = vadd.f32 %v7182_v45, %v6257_v57 }
 0x5f2   : > { %v7285_v32 = vadd.f32 %v7253_v43, %v7221_v35 }
 0x5f4   : > { %7317 = vst [vmem:[%s10961_s21 + $0xd8] sm:$0xff] %v7285_v32 }
 0x5f5   : > { %v7184_v21 = vpop.f32.mrf.mxu1 }
 0x5f6   : > { %v7185_v42 = vadd.f32 %v7184_v21, %v7096_v1 }
 0x5f8   : > { %v7222_v52 = vadd.f32 %v7185_v42, %v6260_v47 }
 0x5fa   : > { %v7286_v26 = vadd.f32 %v7254_v33, %v7222_v52 }
 0x5fc   : > { %7318 = vst [vmem:[%s10961_s21 + $0xe0] sm:$0xff] %v7286_v26 }
 0x5fd   : > { %v7186_v2 = vpop.f32.mrf.mxu1 }
 0x5fe   : > { %v7187_v25 = vadd.f32 %v7186_v2, %v7098_v7 }
 0x600   : > { %v7223_v15 = vadd.f32 %v7187_v25, %v6262_v20 }
 0x602   : > { %v7287_v60 = vadd.f32 %v7255_v28, %v7223_v15 }
 0x604   : > { %7319 = vst [vmem:[%s10961_s21 + $0xe8] sm:$0xff] %v7287_v60 }
 0x605   : > { %v7189_v50 = vpop.f32.mrf.mxu1 }
 0x606   : > { %v7190_v56 = vadd.f32 %v7189_v50, %v7101_v40 }
 0x608   : > { %v7224_v53 = vadd.f32 %v7190_v56, %v6265_v5 }
 0x60a   : > { %v7288_v44 = vadd.f32 %v7256_v55, %v7224_v53 }
 0x60c   : > { %7320 = vst [vmem:[%s10961_s21 + $0xf0] sm:$0xff] %v7288_v44 }
 0x60d   : > { %v7191_v36 = vpop.f32.mrf.mxu1 }
 0x60e   : > { %v7192_v17 = vadd.f32 %v7191_v36, %v7103_v6 }
 0x610   : > { %v7225_v29 = vadd.f32 %v7192_v17, %v6267_v46 }
 0x612   : > { %v7289_v8 = vadd.f32 %v7257_v10, %v7225_v29 }
 0x614   : > { %7321 = vst [vmem:[%s10961_s21 + $0xf8] sm:$0xff] %v7289_v8 }
 0x615   : > { %8893 = shalt.err (!%p8890_p10)
}
 0x616   : > { %s8945_s14 = smov 128   ;;  %s8946_s13 = smov 8  }
 0x617   : > { %8676 = dma.vmem_to_hbm [thread:$0]  (%p9053_p3), %s7336_s17, 4096, %s7338_s11, %s7323_s28, %s8945_s14, %s8945_s14, %s8946_s13  }
 0x618 PF: > { %s7352_s21 = sand.u32 1, %s8924_s24   ;;  %p11314_p12 = scmp.ge.s32.totalorder %s8936_s27, 2 }
 0x619   : > { %s7353_s23 = scalar_lea.sflag [#allocation6], %s7352_s21 }
 0x61a   : > { %p8690_p13 = pnand %p11314_p12, %p9022_p6 }
 0x61c   : > { %p8691_p0 = pneg %p8690_p13 }
 0x61e   : > { %8919 = dma.done.wait (%p8691_p0), %s7353_s23, 4096  }
 0x61f   : > { %8921 = vsyncadd (%p8691_p0), %s7353_s23, 4294963200  ;;  %p21_p5 = scmp.ge.s32.totalorder %s9043_s22, 4   ;;  %s11315_s24 = smov %s8928_s25 }
 0x620   : > { %s11316_s25 = smov %s8932_s26  ;;  %s11317_s26 = smov %s9059_s10 }
 0x621   : > { %s11318_s27 = smov %s9043_s22  ;;  %23 = sbr.rel (!%p21_p5) target bundleno = 8 (0x8), region = 111 }
 0x626   :  { %7359 = vsyncpa [#allocation5], 1 }
 0x627   :  { %7361 = vsyncpa [#allocation5 + $0x1], 1 }
 0x628   :  { %7362 = vsyncpa [#allocation8], 1 }
 0x629   :  { %7363 = vsyncpa [#allocation6], 1 }
 0x62a   :  { %7365 = vsyncpa [#allocation6 + $0x1], 1 }

</bundles_post_ra>
